<compile_context>
chip_gen: v7x
topology: tpu7x:2x2x1
jax: 0.10.0
libtpu: 0.0.40
codegen_flags: <defaults>
</compile_context>

<pallas_src>
import functools
import math

import jax
import jax.numpy as jnp
from jax import lax
from jax.experimental import pallas as pl
from jax.experimental.pallas import tpu as pltpu

LRELU_SLOPE = 0.01   # nn.LeakyReLU default
BN_EPS = 1e-5        # nn.BatchNorm2d default

# Static geometry for 64x64 inputs (matches the module's conv_size arithmetic).
S1 = 15              # conv1 output spatial (k=8, s=4)
S2 = 6               # conv2 output spatial (k=4, s=2)
S3 = 4               # conv3 output spatial (k=3, s=1)
C1, C2, C3 = 32, 64, 64
FEAT = S3 * S3 * C3  # 1024
HEAD_LANES = 128     # padded lane width of the merged pi/value head


def _lrelu(x):
    return jnp.where(x > 0, x, LRELU_SLOPE * x)


def _bn_lrelu_blocks(blocks, total_rows, gamma, beta):
    """Training-mode BatchNorm2d (stats over ALL blocks' rows) + LeakyReLU, per block."""
    inv_n = 1.0 / float(total_rows)
    ssum = None
    for b in blocks:
        bs = jnp.sum(b, axis=0, keepdims=True)
        ssum = bs if ssum is None else ssum + bs
    mean = ssum * inv_n
    vsum = None
    for b in blocks:
        d = b - mean
        ds = jnp.sum(d * d, axis=0, keepdims=True)
        vsum = ds if vsum is None else vsum + ds
    scale = lax.rsqrt(vsum * inv_n + BN_EPS) * gamma
    return [_lrelu((b - mean) * scale + beta) for b in blocks]


# ---------------------------------------------------------------------------
# Fully fused forward kernel
# ---------------------------------------------------------------------------
def ppo_fused_kernel(p1_ref, w1_ref, b1_ref, g1_ref, be1_ref,
                     w2_ref, b2_ref, g2_ref, be2_ref,
                     w3_ref, b3_ref, g3_ref, be3_ref,
                     wh_ref, bh_ref,
                     out_ref, feat_ref, *, n, num_actions):
    f32 = jnp.float32
    bf16 = jnp.bfloat16

    # ---------------- conv1 (im2col matmul) + BN(train) + LeakyReLU -----------------
    m1 = n * S1 * S1
    y1 = jnp.dot(p1_ref[...], w1_ref[...], preferred_element_type=f32) + b1_ref[...]
    # BN row reductions on the MXU instead of a long cross-sublane (XLU) reduction.
    ones1 = jnp.ones((1, m1), f32)
    mean1 = jnp.dot(ones1, y1, preferred_element_type=f32) * (1.0 / m1)
    d1 = y1 - mean1
    var1 = jnp.dot(ones1, d1 * d1, preferred_element_type=f32) * (1.0 / m1)
    r1 = _lrelu(d1 * (lax.rsqrt(var1 + BN_EPS) * g1_ref[...]) + be1_ref[...])
    # r1: (n*15*15, 32) f32, rows ordered (n, oh1, wpos) with wpos = [even ow1 (8) | odd ow1 (7)]

    # ---------------- conv2 (k=4, s=2), computed in-VMEM ----------------------------
    # For kernel row i, one matmul of the 15-row (n, h=2*oh2+i) group against the four
    # stacked kernel-column weights (32, 4*64); stride-2 column selection then becomes
    # four static slices of the product thanks to the even/odd wpos ordering.
    w2 = w2_ref[...]                                       # (4*32, 4*64)
    w2_rows = [w2[i * C1:(i + 1) * C1, :] for i in range(4)]
    bias2 = b2_ref[...]
    y2_blocks = []                                         # per (n, oh2): (6, 64) f32, rows=ow2
    for im in range(n):
        for oh2 in range(S2):
            acc = jnp.zeros((S2, C2), f32)
            for i in range(4):
                g0 = (im * S1 + 2 * oh2 + i) * S1
                lhs = r1[g0:g0 + S1, :].astype(bf16)       # (15, 32)
                prod = jnp.dot(lhs, w2_rows[i], preferred_element_type=f32)   # (15, 256)
                acc = (acc
                       + prod[0:6, 0:64]                   # kw=0 : even cols, wpos ow2..ow2+5
                       + prod[8:14, 64:128]                # kw=1 : odd  cols, wpos 8+ow2..
                       + prod[1:7, 128:192]                # kw=2 : even cols, wpos ow2+1..
                       + prod[9:15, 192:256])              # kw=3 : odd  cols, wpos 9+ow2..
            y2_blocks.append(acc + bias2)
    r2_blocks = _bn_lrelu_blocks(y2_blocks, n * S2 * S2, g2_ref[...], be2_ref[...])

    # ---------------- conv3 (k=3, s=1) -----------------------------------------------
    w3 = w3_ref[...]                                       # (3*64, 3*64)
    w3_rows = [w3[i * C2:(i + 1) * C2, :] for i in range(3)]
    bias3 = b3_ref[...]
    y3_blocks = []                                         # per (n, oh3): (4, 64) f32, rows=ow3
    for im in range(n):
        for oh3 in range(S3):
            acc = jnp.zeros((S3, C3), f32)
            for i in range(3):
                blk = r2_blocks[im * S2 + oh3 + i].astype(bf16)               # (6, 64)
                prod = jnp.dot(blk, w3_rows[i], preferred_element_type=f32)   # (6, 192)
                acc = acc + prod[0:4, 0:64] + prod[1:5, 64:128] + prod[2:6, 128:192]
            y3_blocks.append(acc + bias3)
    r3_blocks = _bn_lrelu_blocks(y3_blocks, n * S3 * S3, g3_ref[...], be3_ref[...])

    # ---------------- flatten (NHWC order; head weight rows match this order) --------
    for im in range(n):
        for oh3 in range(S3):
            blk = r3_blocks[im * S3 + oh3]                 # (4, 64)
            for ow3 in range(S3):
                c0 = (oh3 * S3 + ow3) * C3
                feat_ref[im:im + 1, c0:c0 + C3] = blk[ow3:ow3 + 1, :]

    # ---------------- merged policy / value head + masked log_softmax ----------------
    feat = feat_ref[...].astype(bf16)                      # (n, 1024)
    raw = jnp.dot(feat, wh_ref[...], preferred_element_type=f32) + bh_ref[...]   # (n, 128)
    lane = lax.broadcasted_iota(jnp.int32, raw.shape, 1)
    act = lane < num_actions
    m = jnp.max(jnp.where(act, raw, -1e30), axis=-1, keepdims=True)
    z = raw - m
    ssum = jnp.sum(jnp.where(act, jnp.exp(z), 0.0), axis=-1, keepdims=True)
    logp = z - jnp.log(ssum)
    # lanes [0, A) = log-probs, lane A = value head, remaining lanes = raw (zeros).
    out_ref[...] = jnp.where(act, logp, raw)


# ---------------------------------------------------------------------------
# Wrapper glue
# ---------------------------------------------------------------------------
def _im2col_conv1(x_nhwc):
    """(N,64,64,3) f32 -> (N*225, 192) bf16 patches; rows ordered (n, oh1, [even ow1 | odd ow1])."""
    n = x_nhwc.shape[0]
    cols = []
    for i in range(8):
        for j in range(8):
            cols.append(x_nhwc[:, i:i + 4 * (S1 - 1) + 1:4, j:j + 4 * (S1 - 1) + 1:4, :])
    p = jnp.concatenate(cols, axis=-1)                                   # (N,15,15,192) (kh,kw,cin)
    p = jnp.concatenate([p[:, :, 0::2, :], p[:, :, 1::2, :]], axis=2)    # even cols | odd cols
    return p.reshape(n * S1 * S1, 8 * 8 * 3).astype(jnp.bfloat16)


def init_params(key, num_actions):
    assert num_actions + 1 <= HEAD_LANES
    ks = jax.random.split(key, 10)

    def unif(k, shape, fan_in):
        b = 1.0 / math.sqrt(float(fan_in))
        return jax.random.uniform(k, shape, jnp.float32, -b, b)

    # Weights are stored directly in the kernel's matmul layouts.  They are iid uniform, so the
    # layout does not change the init distribution.  To load a real PyTorch checkpoint permute:
    #   w1[kh*24 + kw*3 + cin, cout]  = conv1.weight[cout, cin, kh, kw]
    #   w2[kh*32 + cin, kw*64 + cout] = conv2.weight[cout, cin, kh, kw]
    #   w3[kh*64 + cin, kw*64 + cout] = conv3.weight[cout, cin, kh, kw]
    #   wh[(h*4 + w)*64 + c, a]       = fc_pi.weight[a, c*16 + h*4 + w]   (column A = fc_v)
    w1 = unif(ks[0], (8 * 8 * 3, C1), 3 * 8 * 8)
    w2 = unif(ks[1], (4 * C1, 4 * C2), C1 * 4 * 4)
    w3 = unif(ks[2], (3 * C2, 3 * C3), C2 * 3 * 3)
    b1 = unif(ks[3], (1, C1), 3 * 8 * 8)
    b2 = unif(ks[4], (1, C2), C1 * 4 * 4)
    b3 = unif(ks[5], (1, C3), C2 * 3 * 3)
    wpi = unif(ks[6], (FEAT, num_actions), FEAT)
    bpi = unif(ks[7], (1, num_actions), FEAT)
    wv = unif(ks[8], (FEAT, 1), FEAT)
    bv = unif(ks[9], (1, 1), FEAT)
    pad = HEAD_LANES - num_actions - 1
    wh = jnp.concatenate([wpi, wv, jnp.zeros((FEAT, pad), jnp.float32)], axis=1)
    bh = jnp.concatenate([bpi, bv, jnp.zeros((1, pad), jnp.float32)], axis=1)
    ones = jnp.ones
    zeros = jnp.zeros
    return {
        "w1": w1.astype(jnp.bfloat16), "b1": b1, "g1": ones((1, C1), jnp.float32), "be1": zeros((1, C1), jnp.float32),
        "w2": w2.astype(jnp.bfloat16), "b2": b2, "g2": ones((1, C2), jnp.float32), "be2": zeros((1, C2), jnp.float32),
        "w3": w3.astype(jnp.bfloat16), "b3": b3, "g3": ones((1, C3), jnp.float32), "be3": zeros((1, C3), jnp.float32),
        "wh": wh.astype(jnp.bfloat16), "bh": bh,
    }


@functools.partial(jax.jit, static_argnames=("num_actions",))
def ppo_forward(x_nchw, params, num_actions):
    if x_nchw.ndim < 4:                         # matches `x.unsqueeze(0)` in PyTorch
        x_nchw = x_nchw[None]
    x = jnp.transpose(x_nchw, (0, 2, 3, 1)).astype(jnp.float32)   # NCHW -> NHWC
    n = x.shape[0]
    p1 = _im2col_conv1(x)

    kern = functools.partial(ppo_fused_kernel, n=n, num_actions=num_actions)
    vmem = lambda: pl.BlockSpec(memory_space=pltpu.MemorySpace.VMEM)
    out = pl.pallas_call(
        kern,
        out_shape=jax.ShapeDtypeStruct((n, HEAD_LANES), jnp.float32),
        in_specs=[vmem() for _ in range(15)],
        out_specs=vmem(),
        scratch_shapes=[pltpu.VMEM((n, FEAT), jnp.float32)],
        compiler_params=pltpu.CompilerParams(vmem_limit_bytes=32 * 1024 * 1024),
    )(p1,
      params["w1"], params["b1"], params["g1"], params["be1"],
      params["w2"], params["b2"], params["g2"], params["be2"],
      params["w3"], params["b3"], params["g3"], params["be3"],
      params["wh"], params["bh"])

    log_prob = out[:, :num_actions]
    value = out[:, num_actions:num_actions + 1]
    return log_prob, value


if __name__ == "__main__":
    num_actions = 6
    key = jax.random.PRNGKey(0)
    k_x, k_p = jax.random.split(key)
    # The module's conv_size arithmetic assumes 64x64 inputs; batch=2, 3 channels.
    x = jax.random.normal(k_x, (2, 3, 64, 64), jnp.float32)
    params = init_params(k_p, num_actions)

    log_prob, value = ppo_forward(x, params, num_actions=num_actions)
    jax.block_until_ready((log_prob, value))

    assert log_prob.shape == (2, num_actions) and value.shape == (2, 1)
    # log_softmax rows must sum (in prob space) to ~1
    assert bool(jnp.allclose(jnp.sum(jnp.exp(log_prob), axis=1), 1.0, atol=1e-4))
    print("KERNEL_OK")
</pallas_src>

<mosaic_0001>
module attributes {stable_mosaic.version = 11 : i64} {
  func.func @ppo_fused_kernel(%arg0: memref<450x192xbf16, #tpu.memory_space<vmem>>, %arg1: memref<192x32xbf16, #tpu.memory_space<vmem>>, %arg2: memref<1x32xf32, #tpu.memory_space<vmem>>, %arg3: memref<1x32xf32, #tpu.memory_space<vmem>>, %arg4: memref<1x32xf32, #tpu.memory_space<vmem>>, %arg5: memref<128x256xbf16, #tpu.memory_space<vmem>>, %arg6: memref<1x64xf32, #tpu.memory_space<vmem>>, %arg7: memref<1x64xf32, #tpu.memory_space<vmem>>, %arg8: memref<1x64xf32, #tpu.memory_space<vmem>>, %arg9: memref<192x192xbf16, #tpu.memory_space<vmem>>, %arg10: memref<1x64xf32, #tpu.memory_space<vmem>>, %arg11: memref<1x64xf32, #tpu.memory_space<vmem>>, %arg12: memref<1x64xf32, #tpu.memory_space<vmem>>, %arg13: memref<1024x128xbf16, #tpu.memory_space<vmem>>, %arg14: memref<1x128xf32, #tpu.memory_space<vmem>>, %arg15: memref<2x128xf32, #tpu.memory_space<vmem>>, %arg16: memref<2x1024xf32, #tpu.memory_space<vmem>>) attributes {dimension_semantics = [], scalar_prefetch = 0 : i64, scratch_operands = 1 : i64, tpu.core_type = #tpu.core_type<tc>} {
    %c0 = arith.constant 0 : index
    %c0_0 = arith.constant 0 : index
    %0 = vector.load %arg0[%c0, %c0_0] : memref<450x192xbf16, #tpu.memory_space<vmem>>, vector<450x192xbf16>
    %c0_1 = arith.constant 0 : index
    %c0_2 = arith.constant 0 : index
    %1 = vector.load %arg1[%c0_1, %c0_2] : memref<192x32xbf16, #tpu.memory_space<vmem>>, vector<192x32xbf16>
    %cst = arith.constant dense<0.000000e+00> : vector<450x32xf32>
    %2 = tpu.matmul %0, %1, %cst {dimension_numbers = #tpu.dot_dimension_numbers<[1], [0], [0], [1], [0, 0, 1, 1], [], []>} : vector<450x192xbf16>, vector<192x32xbf16>, vector<450x32xf32> -> vector<450x32xf32>
    %c0_3 = arith.constant 0 : index
    %c0_4 = arith.constant 0 : index
    %3 = vector.load %arg2[%c0_3, %c0_4] : memref<1x32xf32, #tpu.memory_space<vmem>>, vector<1x32xf32>
    %4 = vector.broadcast %3 : vector<1x32xf32> to vector<450x32xf32>
    %5 = arith.addf %2, %4 : vector<450x32xf32>
    %cst_5 = arith.constant 1.000000e+00 : f32
    %6 = vector.broadcast %cst_5 : f32 to vector<1x450xf32>
    %cst_6 = arith.constant dense<0.000000e+00> : vector<1x32xf32>
    %7 = tpu.matmul %6, %5, %cst_6 {dimension_numbers = #tpu.dot_dimension_numbers<[1], [0], [0], [1], [0, 0, 1, 1], [], []>} : vector<1x450xf32>, vector<450x32xf32>, vector<1x32xf32> -> vector<1x32xf32>
    %cst_7 = arith.constant 0.00222222228 : f32
    %8 = vector.broadcast %cst_7 : f32 to vector<1x32xf32>
    %9 = arith.mulf %7, %8 : vector<1x32xf32>
    %10 = vector.broadcast %9 : vector<1x32xf32> to vector<450x32xf32>
    %11 = arith.subf %5, %10 : vector<450x32xf32>
    %12 = arith.mulf %11, %11 : vector<450x32xf32>
    %cst_8 = arith.constant dense<0.000000e+00> : vector<1x32xf32>
    %13 = tpu.matmul %6, %12, %cst_8 {dimension_numbers = #tpu.dot_dimension_numbers<[1], [0], [0], [1], [0, 0, 1, 1], [], []>} : vector<1x450xf32>, vector<450x32xf32>, vector<1x32xf32> -> vector<1x32xf32>
    %cst_9 = arith.constant 0.00222222228 : f32
    %14 = vector.broadcast %cst_9 : f32 to vector<1x32xf32>
    %15 = arith.mulf %13, %14 : vector<1x32xf32>
    %cst_10 = arith.constant 9.99999974E-6 : f32
    %16 = vector.broadcast %cst_10 : f32 to vector<1x32xf32>
    %17 = arith.addf %15, %16 : vector<1x32xf32>
    %18 = math.rsqrt %17 : vector<1x32xf32>
    %c0_11 = arith.constant 0 : index
    %c0_12 = arith.constant 0 : index
    %19 = vector.load %arg3[%c0_11, %c0_12] : memref<1x32xf32, #tpu.memory_space<vmem>>, vector<1x32xf32>
    %20 = arith.mulf %18, %19 : vector<1x32xf32>
    %21 = vector.broadcast %20 : vector<1x32xf32> to vector<450x32xf32>
    %22 = arith.mulf %11, %21 : vector<450x32xf32>
    %c0_13 = arith.constant 0 : index
    %c0_14 = arith.constant 0 : index
    %23 = vector.load %arg4[%c0_13, %c0_14] : memref<1x32xf32, #tpu.memory_space<vmem>>, vector<1x32xf32>
    %24 = vector.broadcast %23 : vector<1x32xf32> to vector<450x32xf32>
    %25 = arith.addf %22, %24 : vector<450x32xf32>
    %cst_15 = arith.constant 0.000000e+00 : f32
    %26 = vector.broadcast %cst_15 : f32 to vector<450x32xf32>
    %27 = arith.cmpf ogt, %25, %26 : vector<450x32xf32>
    %cst_16 = arith.constant 0.00999999977 : f32
    %28 = vector.broadcast %cst_16 : f32 to vector<450x32xf32>
    %29 = arith.mulf %28, %25 : vector<450x32xf32>
    %30 = arith.select %27, %25, %29 : vector<450x32xi1>, vector<450x32xf32>
    %c0_17 = arith.constant 0 : index
    %c0_18 = arith.constant 0 : index
    %31 = vector.load %arg5[%c0_17, %c0_18] : memref<128x256xbf16, #tpu.memory_space<vmem>>, vector<128x256xbf16>
    %32 = vector.extract_strided_slice %31 {offsets = [0, 0], sizes = [32, 256], strides = [1, 1]} : vector<128x256xbf16> to vector<32x256xbf16>
    %33 = vector.extract_strided_slice %31 {offsets = [32, 0], sizes = [32, 256], strides = [1, 1]} : vector<128x256xbf16> to vector<32x256xbf16>
    %34 = vector.extract_strided_slice %31 {offsets = [64, 0], sizes = [32, 256], strides = [1, 1]} : vector<128x256xbf16> to vector<32x256xbf16>
    %35 = vector.extract_strided_slice %31 {offsets = [96, 0], sizes = [32, 256], strides = [1, 1]} : vector<128x256xbf16> to vector<32x256xbf16>
    %c0_19 = arith.constant 0 : index
    %c0_20 = arith.constant 0 : index
    %36 = vector.load %arg6[%c0_19, %c0_20] : memref<1x64xf32, #tpu.memory_space<vmem>>, vector<1x64xf32>
    %cst_21 = arith.constant 0.000000e+00 : f32
    %37 = vector.broadcast %cst_21 : f32 to vector<6x64xf32>
    %38 = vector.extract_strided_slice %30 {offsets = [0, 0], sizes = [15, 32], strides = [1, 1]} : vector<450x32xf32> to vector<15x32xf32>
    %39 = arith.truncf %38 : vector<15x32xf32> to vector<15x32xbf16>
    %cst_22 = arith.constant dense<0.000000e+00> : vector<15x256xf32>
    %40 = tpu.matmul %39, %32, %cst_22 {dimension_numbers = #tpu.dot_dimension_numbers<[1], [0], [0], [1], [0, 0, 1, 1], [], []>} : vector<15x32xbf16>, vector<32x256xbf16>, vector<15x256xf32> -> vector<15x256xf32>
    %41 = vector.extract_strided_slice %40 {offsets = [0, 0], sizes = [6, 64], strides = [1, 1]} : vector<15x256xf32> to vector<6x64xf32>
    %42 = arith.addf %37, %41 : vector<6x64xf32>
    %43 = vector.extract_strided_slice %40 {offsets = [8, 64], sizes = [6, 64], strides = [1, 1]} : vector<15x256xf32> to vector<6x64xf32>
    %44 = arith.addf %42, %43 : vector<6x64xf32>
    %45 = vector.extract_strided_slice %40 {offsets = [1, 128], sizes = [6, 64], strides = [1, 1]} : vector<15x256xf32> to vector<6x64xf32>
    %46 = arith.addf %44, %45 : vector<6x64xf32>
    %47 = vector.extract_strided_slice %40 {offsets = [9, 192], sizes = [6, 64], strides = [1, 1]} : vector<15x256xf32> to vector<6x64xf32>
    %48 = arith.addf %46, %47 : vector<6x64xf32>
    %49 = vector.extract_strided_slice %30 {offsets = [15, 0], sizes = [15, 32], strides = [1, 1]} : vector<450x32xf32> to vector<15x32xf32>
    %50 = arith.truncf %49 : vector<15x32xf32> to vector<15x32xbf16>
    %cst_23 = arith.constant dense<0.000000e+00> : vector<15x256xf32>
    %51 = tpu.matmul %50, %33, %cst_23 {dimension_numbers = #tpu.dot_dimension_numbers<[1], [0], [0], [1], [0, 0, 1, 1], [], []>} : vector<15x32xbf16>, vector<32x256xbf16>, vector<15x256xf32> -> vector<15x256xf32>
    %52 = vector.extract_strided_slice %51 {offsets = [0, 0], sizes = [6, 64], strides = [1, 1]} : vector<15x256xf32> to vector<6x64xf32>
    %53 = arith.addf %48, %52 : vector<6x64xf32>
    %54 = vector.extract_strided_slice %51 {offsets = [8, 64], sizes = [6, 64], strides = [1, 1]} : vector<15x256xf32> to vector<6x64xf32>
    %55 = arith.addf %53, %54 : vector<6x64xf32>
    %56 = vector.extract_strided_slice %51 {offsets = [1, 128], sizes = [6, 64], strides = [1, 1]} : vector<15x256xf32> to vector<6x64xf32>
    %57 = arith.addf %55, %56 : vector<6x64xf32>
    %58 = vector.extract_strided_slice %51 {offsets = [9, 192], sizes = [6, 64], strides = [1, 1]} : vector<15x256xf32> to vector<6x64xf32>
    %59 = arith.addf %57, %58 : vector<6x64xf32>
    %60 = vector.extract_strided_slice %30 {offsets = [30, 0], sizes = [15, 32], strides = [1, 1]} : vector<450x32xf32> to vector<15x32xf32>
    %61 = arith.truncf %60 : vector<15x32xf32> to vector<15x32xbf16>
    %cst_24 = arith.constant dense<0.000000e+00> : vector<15x256xf32>
    %62 = tpu.matmul %61, %34, %cst_24 {dimension_numbers = #tpu.dot_dimension_numbers<[1], [0], [0], [1], [0, 0, 1, 1], [], []>} : vector<15x32xbf16>, vector<32x256xbf16>, vector<15x256xf32> -> vector<15x256xf32>
    %63 = vector.extract_strided_slice %62 {offsets = [0, 0], sizes = [6, 64], strides = [1, 1]} : vector<15x256xf32> to vector<6x64xf32>
    %64 = arith.addf %59, %63 : vector<6x64xf32>
    %65 = vector.extract_strided_slice %62 {offsets = [8, 64], sizes = [6, 64], strides = [1, 1]} : vector<15x256xf32> to vector<6x64xf32>
    %66 = arith.addf %64, %65 : vector<6x64xf32>
    %67 = vector.extract_strided_slice %62 {offsets = [1, 128], sizes = [6, 64], strides = [1, 1]} : vector<15x256xf32> to vector<6x64xf32>
    %68 = arith.addf %66, %67 : vector<6x64xf32>
    %69 = vector.extract_strided_slice %62 {offsets = [9, 192], sizes = [6, 64], strides = [1, 1]} : vector<15x256xf32> to vector<6x64xf32>
    %70 = arith.addf %68, %69 : vector<6x64xf32>
    %71 = vector.extract_strided_slice %30 {offsets = [45, 0], sizes = [15, 32], strides = [1, 1]} : vector<450x32xf32> to vector<15x32xf32>
    %72 = arith.truncf %71 : vector<15x32xf32> to vector<15x32xbf16>
    %cst_25 = arith.constant dense<0.000000e+00> : vector<15x256xf32>
    %73 = tpu.matmul %72, %35, %cst_25 {dimension_numbers = #tpu.dot_dimension_numbers<[1], [0], [0], [1], [0, 0, 1, 1], [], []>} : vector<15x32xbf16>, vector<32x256xbf16>, vector<15x256xf32> -> vector<15x256xf32>
    %74 = vector.extract_strided_slice %73 {offsets = [0, 0], sizes = [6, 64], strides = [1, 1]} : vector<15x256xf32> to vector<6x64xf32>
    %75 = arith.addf %70, %74 : vector<6x64xf32>
    %76 = vector.extract_strided_slice %73 {offsets = [8, 64], sizes = [6, 64], strides = [1, 1]} : vector<15x256xf32> to vector<6x64xf32>
    %77 = arith.addf %75, %76 : vector<6x64xf32>
    %78 = vector.extract_strided_slice %73 {offsets = [1, 128], sizes = [6, 64], strides = [1, 1]} : vector<15x256xf32> to vector<6x64xf32>
    %79 = arith.addf %77, %78 : vector<6x64xf32>
    %80 = vector.extract_strided_slice %73 {offsets = [9, 192], sizes = [6, 64], strides = [1, 1]} : vector<15x256xf32> to vector<6x64xf32>
    %81 = arith.addf %79, %80 : vector<6x64xf32>
    %82 = vector.broadcast %36 : vector<1x64xf32> to vector<6x64xf32>
    %83 = arith.addf %81, %82 : vector<6x64xf32>
    %cst_26 = arith.constant 0.000000e+00 : f32
    %84 = vector.broadcast %cst_26 : f32 to vector<6x64xf32>
    %85 = vector.extract_strided_slice %30 {offsets = [30, 0], sizes = [15, 32], strides = [1, 1]} : vector<450x32xf32> to vector<15x32xf32>
    %86 = arith.truncf %85 : vector<15x32xf32> to vector<15x32xbf16>
    %cst_27 = arith.constant dense<0.000000e+00> : vector<15x256xf32>
    %87 = tpu.matmul %86, %32, %cst_27 {dimension_numbers = #tpu.dot_dimension_numbers<[1], [0], [0], [1], [0, 0, 1, 1], [], []>} : vector<15x32xbf16>, vector<32x256xbf16>, vector<15x256xf32> -> vector<15x256xf32>
    %88 = vector.extract_strided_slice %87 {offsets = [0, 0], sizes = [6, 64], strides = [1, 1]} : vector<15x256xf32> to vector<6x64xf32>
    %89 = arith.addf %84, %88 : vector<6x64xf32>
    %90 = vector.extract_strided_slice %87 {offsets = [8, 64], sizes = [6, 64], strides = [1, 1]} : vector<15x256xf32> to vector<6x64xf32>
    %91 = arith.addf %89, %90 : vector<6x64xf32>
    %92 = vector.extract_strided_slice %87 {offsets = [1, 128], sizes = [6, 64], strides = [1, 1]} : vector<15x256xf32> to vector<6x64xf32>
    %93 = arith.addf %91, %92 : vector<6x64xf32>
    %94 = vector.extract_strided_slice %87 {offsets = [9, 192], sizes = [6, 64], strides = [1, 1]} : vector<15x256xf32> to vector<6x64xf32>
    %95 = arith.addf %93, %94 : vector<6x64xf32>
    %96 = vector.extract_strided_slice %30 {offsets = [45, 0], sizes = [15, 32], strides = [1, 1]} : vector<450x32xf32> to vector<15x32xf32>
    %97 = arith.truncf %96 : vector<15x32xf32> to vector<15x32xbf16>
    %cst_28 = arith.constant dense<0.000000e+00> : vector<15x256xf32>
    %98 = tpu.matmul %97, %33, %cst_28 {dimension_numbers = #tpu.dot_dimension_numbers<[1], [0], [0], [1], [0, 0, 1, 1], [], []>} : vector<15x32xbf16>, vector<32x256xbf16>, vector<15x256xf32> -> vector<15x256xf32>
    %99 = vector.extract_strided_slice %98 {offsets = [0, 0], sizes = [6, 64], strides = [1, 1]} : vector<15x256xf32> to vector<6x64xf32>
    %100 = arith.addf %95, %99 : vector<6x64xf32>
    %101 = vector.extract_strided_slice %98 {offsets = [8, 64], sizes = [6, 64], strides = [1, 1]} : vector<15x256xf32> to vector<6x64xf32>
    %102 = arith.addf %100, %101 : vector<6x64xf32>
    %103 = vector.extract_strided_slice %98 {offsets = [1, 128], sizes = [6, 64], strides = [1, 1]} : vector<15x256xf32> to vector<6x64xf32>
    %104 = arith.addf %102, %103 : vector<6x64xf32>
    %105 = vector.extract_strided_slice %98 {offsets = [9, 192], sizes = [6, 64], strides = [1, 1]} : vector<15x256xf32> to vector<6x64xf32>
    %106 = arith.addf %104, %105 : vector<6x64xf32>
    %107 = vector.extract_strided_slice %30 {offsets = [60, 0], sizes = [15, 32], strides = [1, 1]} : vector<450x32xf32> to vector<15x32xf32>
    %108 = arith.truncf %107 : vector<15x32xf32> to vector<15x32xbf16>
    %cst_29 = arith.constant dense<0.000000e+00> : vector<15x256xf32>
    %109 = tpu.matmul %108, %34, %cst_29 {dimension_numbers = #tpu.dot_dimension_numbers<[1], [0], [0], [1], [0, 0, 1, 1], [], []>} : vector<15x32xbf16>, vector<32x256xbf16>, vector<15x256xf32> -> vector<15x256xf32>
    %110 = vector.extract_strided_slice %109 {offsets = [0, 0], sizes = [6, 64], strides = [1, 1]} : vector<15x256xf32> to vector<6x64xf32>
    %111 = arith.addf %106, %110 : vector<6x64xf32>
    %112 = vector.extract_strided_slice %109 {offsets = [8, 64], sizes = [6, 64], strides = [1, 1]} : vector<15x256xf32> to vector<6x64xf32>
    %113 = arith.addf %111, %112 : vector<6x64xf32>
    %114 = vector.extract_strided_slice %109 {offsets = [1, 128], sizes = [6, 64], strides = [1, 1]} : vector<15x256xf32> to vector<6x64xf32>
    %115 = arith.addf %113, %114 : vector<6x64xf32>
    %116 = vector.extract_strided_slice %109 {offsets = [9, 192], sizes = [6, 64], strides = [1, 1]} : vector<15x256xf32> to vector<6x64xf32>
    %117 = arith.addf %115, %116 : vector<6x64xf32>
    %118 = vector.extract_strided_slice %30 {offsets = [75, 0], sizes = [15, 32], strides = [1, 1]} : vector<450x32xf32> to vector<15x32xf32>
    %119 = arith.truncf %118 : vector<15x32xf32> to vector<15x32xbf16>
    %cst_30 = arith.constant dense<0.000000e+00> : vector<15x256xf32>
    %120 = tpu.matmul %119, %35, %cst_30 {dimension_numbers = #tpu.dot_dimension_numbers<[1], [0], [0], [1], [0, 0, 1, 1], [], []>} : vector<15x32xbf16>, vector<32x256xbf16>, vector<15x256xf32> -> vector<15x256xf32>
    %121 = vector.extract_strided_slice %120 {offsets = [0, 0], sizes = [6, 64], strides = [1, 1]} : vector<15x256xf32> to vector<6x64xf32>
    %122 = arith.addf %117, %121 : vector<6x64xf32>
    %123 = vector.extract_strided_slice %120 {offsets = [8, 64], sizes = [6, 64], strides = [1, 1]} : vector<15x256xf32> to vector<6x64xf32>
    %124 = arith.addf %122, %123 : vector<6x64xf32>
    %125 = vector.extract_strided_slice %120 {offsets = [1, 128], sizes = [6, 64], strides = [1, 1]} : vector<15x256xf32> to vector<6x64xf32>
    %126 = arith.addf %124, %125 : vector<6x64xf32>
    %127 = vector.extract_strided_slice %120 {offsets = [9, 192], sizes = [6, 64], strides = [1, 1]} : vector<15x256xf32> to vector<6x64xf32>
    %128 = arith.addf %126, %127 : vector<6x64xf32>
    %129 = vector.broadcast %36 : vector<1x64xf32> to vector<6x64xf32>
    %130 = arith.addf %128, %129 : vector<6x64xf32>
    %cst_31 = arith.constant 0.000000e+00 : f32
    %131 = vector.broadcast %cst_31 : f32 to vector<6x64xf32>
    %132 = vector.extract_strided_slice %30 {offsets = [60, 0], sizes = [15, 32], strides = [1, 1]} : vector<450x32xf32> to vector<15x32xf32>
    %133 = arith.truncf %132 : vector<15x32xf32> to vector<15x32xbf16>
    %cst_32 = arith.constant dense<0.000000e+00> : vector<15x256xf32>
    %134 = tpu.matmul %133, %32, %cst_32 {dimension_numbers = #tpu.dot_dimension_numbers<[1], [0], [0], [1], [0, 0, 1, 1], [], []>} : vector<15x32xbf16>, vector<32x256xbf16>, vector<15x256xf32> -> vector<15x256xf32>
    %135 = vector.extract_strided_slice %134 {offsets = [0, 0], sizes = [6, 64], strides = [1, 1]} : vector<15x256xf32> to vector<6x64xf32>
    %136 = arith.addf %131, %135 : vector<6x64xf32>
    %137 = vector.extract_strided_slice %134 {offsets = [8, 64], sizes = [6, 64], strides = [1, 1]} : vector<15x256xf32> to vector<6x64xf32>
    %138 = arith.addf %136, %137 : vector<6x64xf32>
    %139 = vector.extract_strided_slice %134 {offsets = [1, 128], sizes = [6, 64], strides = [1, 1]} : vector<15x256xf32> to vector<6x64xf32>
    %140 = arith.addf %138, %139 : vector<6x64xf32>
    %141 = vector.extract_strided_slice %134 {offsets = [9, 192], sizes = [6, 64], strides = [1, 1]} : vector<15x256xf32> to vector<6x64xf32>
    %142 = arith.addf %140, %141 : vector<6x64xf32>
    %143 = vector.extract_strided_slice %30 {offsets = [75, 0], sizes = [15, 32], strides = [1, 1]} : vector<450x32xf32> to vector<15x32xf32>
    %144 = arith.truncf %143 : vector<15x32xf32> to vector<15x32xbf16>
    %cst_33 = arith.constant dense<0.000000e+00> : vector<15x256xf32>
    %145 = tpu.matmul %144, %33, %cst_33 {dimension_numbers = #tpu.dot_dimension_numbers<[1], [0], [0], [1], [0, 0, 1, 1], [], []>} : vector<15x32xbf16>, vector<32x256xbf16>, vector<15x256xf32> -> vector<15x256xf32>
    %146 = vector.extract_strided_slice %145 {offsets = [0, 0], sizes = [6, 64], strides = [1, 1]} : vector<15x256xf32> to vector<6x64xf32>
    %147 = arith.addf %142, %146 : vector<6x64xf32>
    %148 = vector.extract_strided_slice %145 {offsets = [8, 64], sizes = [6, 64], strides = [1, 1]} : vector<15x256xf32> to vector<6x64xf32>
    %149 = arith.addf %147, %148 : vector<6x64xf32>
    %150 = vector.extract_strided_slice %145 {offsets = [1, 128], sizes = [6, 64], strides = [1, 1]} : vector<15x256xf32> to vector<6x64xf32>
    %151 = arith.addf %149, %150 : vector<6x64xf32>
    %152 = vector.extract_strided_slice %145 {offsets = [9, 192], sizes = [6, 64], strides = [1, 1]} : vector<15x256xf32> to vector<6x64xf32>
    %153 = arith.addf %151, %152 : vector<6x64xf32>
    %154 = vector.extract_strided_slice %30 {offsets = [90, 0], sizes = [15, 32], strides = [1, 1]} : vector<450x32xf32> to vector<15x32xf32>
    %155 = arith.truncf %154 : vector<15x32xf32> to vector<15x32xbf16>
    %cst_34 = arith.constant dense<0.000000e+00> : vector<15x256xf32>
    %156 = tpu.matmul %155, %34, %cst_34 {dimension_numbers = #tpu.dot_dimension_numbers<[1], [0], [0], [1], [0, 0, 1, 1], [], []>} : vector<15x32xbf16>, vector<32x256xbf16>, vector<15x256xf32> -> vector<15x256xf32>
    %157 = vector.extract_strided_slice %156 {offsets = [0, 0], sizes = [6, 64], strides = [1, 1]} : vector<15x256xf32> to vector<6x64xf32>
    %158 = arith.addf %153, %157 : vector<6x64xf32>
    %159 = vector.extract_strided_slice %156 {offsets = [8, 64], sizes = [6, 64], strides = [1, 1]} : vector<15x256xf32> to vector<6x64xf32>
    %160 = arith.addf %158, %159 : vector<6x64xf32>
    %161 = vector.extract_strided_slice %156 {offsets = [1, 128], sizes = [6, 64], strides = [1, 1]} : vector<15x256xf32> to vector<6x64xf32>
    %162 = arith.addf %160, %161 : vector<6x64xf32>
    %163 = vector.extract_strided_slice %156 {offsets = [9, 192], sizes = [6, 64], strides = [1, 1]} : vector<15x256xf32> to vector<6x64xf32>
    %164 = arith.addf %162, %163 : vector<6x64xf32>
    %165 = vector.extract_strided_slice %30 {offsets = [105, 0], sizes = [15, 32], strides = [1, 1]} : vector<450x32xf32> to vector<15x32xf32>
    %166 = arith.truncf %165 : vector<15x32xf32> to vector<15x32xbf16>
    %cst_35 = arith.constant dense<0.000000e+00> : vector<15x256xf32>
    %167 = tpu.matmul %166, %35, %cst_35 {dimension_numbers = #tpu.dot_dimension_numbers<[1], [0], [0], [1], [0, 0, 1, 1], [], []>} : vector<15x32xbf16>, vector<32x256xbf16>, vector<15x256xf32> -> vector<15x256xf32>
    %168 = vector.extract_strided_slice %167 {offsets = [0, 0], sizes = [6, 64], strides = [1, 1]} : vector<15x256xf32> to vector<6x64xf32>
    %169 = arith.addf %164, %168 : vector<6x64xf32>
    %170 = vector.extract_strided_slice %167 {offsets = [8, 64], sizes = [6, 64], strides = [1, 1]} : vector<15x256xf32> to vector<6x64xf32>
    %171 = arith.addf %169, %170 : vector<6x64xf32>
    %172 = vector.extract_strided_slice %167 {offsets = [1, 128], sizes = [6, 64], strides = [1, 1]} : vector<15x256xf32> to vector<6x64xf32>
    %173 = arith.addf %171, %172 : vector<6x64xf32>
    %174 = vector.extract_strided_slice %167 {offsets = [9, 192], sizes = [6, 64], strides = [1, 1]} : vector<15x256xf32> to vector<6x64xf32>
    %175 = arith.addf %173, %174 : vector<6x64xf32>
    %176 = vector.broadcast %36 : vector<1x64xf32> to vector<6x64xf32>
    %177 = arith.addf %175, %176 : vector<6x64xf32>
    %cst_36 = arith.constant 0.000000e+00 : f32
    %178 = vector.broadcast %cst_36 : f32 to vector<6x64xf32>
    %179 = vector.extract_strided_slice %30 {offsets = [90, 0], sizes = [15, 32], strides = [1, 1]} : vector<450x32xf32> to vector<15x32xf32>
    %180 = arith.truncf %179 : vector<15x32xf32> to vector<15x32xbf16>
    %cst_37 = arith.constant dense<0.000000e+00> : vector<15x256xf32>
    %181 = tpu.matmul %180, %32, %cst_37 {dimension_numbers = #tpu.dot_dimension_numbers<[1], [0], [0], [1], [0, 0, 1, 1], [], []>} : vector<15x32xbf16>, vector<32x256xbf16>, vector<15x256xf32> -> vector<15x256xf32>
    %182 = vector.extract_strided_slice %181 {offsets = [0, 0], sizes = [6, 64], strides = [1, 1]} : vector<15x256xf32> to vector<6x64xf32>
    %183 = arith.addf %178, %182 : vector<6x64xf32>
    %184 = vector.extract_strided_slice %181 {offsets = [8, 64], sizes = [6, 64], strides = [1, 1]} : vector<15x256xf32> to vector<6x64xf32>
    %185 = arith.addf %183, %184 : vector<6x64xf32>
    %186 = vector.extract_strided_slice %181 {offsets = [1, 128], sizes = [6, 64], strides = [1, 1]} : vector<15x256xf32> to vector<6x64xf32>
    %187 = arith.addf %185, %186 : vector<6x64xf32>
    %188 = vector.extract_strided_slice %181 {offsets = [9, 192], sizes = [6, 64], strides = [1, 1]} : vector<15x256xf32> to vector<6x64xf32>
    %189 = arith.addf %187, %188 : vector<6x64xf32>
    %190 = vector.extract_strided_slice %30 {offsets = [105, 0], sizes = [15, 32], strides = [1, 1]} : vector<450x32xf32> to vector<15x32xf32>
    %191 = arith.truncf %190 : vector<15x32xf32> to vector<15x32xbf16>
    %cst_38 = arith.constant dense<0.000000e+00> : vector<15x256xf32>
    %192 = tpu.matmul %191, %33, %cst_38 {dimension_numbers = #tpu.dot_dimension_numbers<[1], [0], [0], [1], [0, 0, 1, 1], [], []>} : vector<15x32xbf16>, vector<32x256xbf16>, vector<15x256xf32> -> vector<15x256xf32>
    %193 = vector.extract_strided_slice %192 {offsets = [0, 0], sizes = [6, 64], strides = [1, 1]} : vector<15x256xf32> to vector<6x64xf32>
    %194 = arith.addf %189, %193 : vector<6x64xf32>
    %195 = vector.extract_strided_slice %192 {offsets = [8, 64], sizes = [6, 64], strides = [1, 1]} : vector<15x256xf32> to vector<6x64xf32>
    %196 = arith.addf %194, %195 : vector<6x64xf32>
    %197 = vector.extract_strided_slice %192 {offsets = [1, 128], sizes = [6, 64], strides = [1, 1]} : vector<15x256xf32> to vector<6x64xf32>
    %198 = arith.addf %196, %197 : vector<6x64xf32>
    %199 = vector.extract_strided_slice %192 {offsets = [9, 192], sizes = [6, 64], strides = [1, 1]} : vector<15x256xf32> to vector<6x64xf32>
    %200 = arith.addf %198, %199 : vector<6x64xf32>
    %201 = vector.extract_strided_slice %30 {offsets = [120, 0], sizes = [15, 32], strides = [1, 1]} : vector<450x32xf32> to vector<15x32xf32>
    %202 = arith.truncf %201 : vector<15x32xf32> to vector<15x32xbf16>
    %cst_39 = arith.constant dense<0.000000e+00> : vector<15x256xf32>
    %203 = tpu.matmul %202, %34, %cst_39 {dimension_numbers = #tpu.dot_dimension_numbers<[1], [0], [0], [1], [0, 0, 1, 1], [], []>} : vector<15x32xbf16>, vector<32x256xbf16>, vector<15x256xf32> -> vector<15x256xf32>
    %204 = vector.extract_strided_slice %203 {offsets = [0, 0], sizes = [6, 64], strides = [1, 1]} : vector<15x256xf32> to vector<6x64xf32>
    %205 = arith.addf %200, %204 : vector<6x64xf32>
    %206 = vector.extract_strided_slice %203 {offsets = [8, 64], sizes = [6, 64], strides = [1, 1]} : vector<15x256xf32> to vector<6x64xf32>
    %207 = arith.addf %205, %206 : vector<6x64xf32>
    %208 = vector.extract_strided_slice %203 {offsets = [1, 128], sizes = [6, 64], strides = [1, 1]} : vector<15x256xf32> to vector<6x64xf32>
    %209 = arith.addf %207, %208 : vector<6x64xf32>
    %210 = vector.extract_strided_slice %203 {offsets = [9, 192], sizes = [6, 64], strides = [1, 1]} : vector<15x256xf32> to vector<6x64xf32>
    %211 = arith.addf %209, %210 : vector<6x64xf32>
    %212 = vector.extract_strided_slice %30 {offsets = [135, 0], sizes = [15, 32], strides = [1, 1]} : vector<450x32xf32> to vector<15x32xf32>
    %213 = arith.truncf %212 : vector<15x32xf32> to vector<15x32xbf16>
    %cst_40 = arith.constant dense<0.000000e+00> : vector<15x256xf32>
    %214 = tpu.matmul %213, %35, %cst_40 {dimension_numbers = #tpu.dot_dimension_numbers<[1], [0], [0], [1], [0, 0, 1, 1], [], []>} : vector<15x32xbf16>, vector<32x256xbf16>, vector<15x256xf32> -> vector<15x256xf32>
    %215 = vector.extract_strided_slice %214 {offsets = [0, 0], sizes = [6, 64], strides = [1, 1]} : vector<15x256xf32> to vector<6x64xf32>
    %216 = arith.addf %211, %215 : vector<6x64xf32>
    %217 = vector.extract_strided_slice %214 {offsets = [8, 64], sizes = [6, 64], strides = [1, 1]} : vector<15x256xf32> to vector<6x64xf32>
    %218 = arith.addf %216, %217 : vector<6x64xf32>
    %219 = vector.extract_strided_slice %214 {offsets = [1, 128], sizes = [6, 64], strides = [1, 1]} : vector<15x256xf32> to vector<6x64xf32>
    %220 = arith.addf %218, %219 : vector<6x64xf32>
    %221 = vector.extract_strided_slice %214 {offsets = [9, 192], sizes = [6, 64], strides = [1, 1]} : vector<15x256xf32> to vector<6x64xf32>
    %222 = arith.addf %220, %221 : vector<6x64xf32>
    %223 = vector.broadcast %36 : vector<1x64xf32> to vector<6x64xf32>
    %224 = arith.addf %222, %223 : vector<6x64xf32>
    %cst_41 = arith.constant 0.000000e+00 : f32
    %225 = vector.broadcast %cst_41 : f32 to vector<6x64xf32>
    %226 = vector.extract_strided_slice %30 {offsets = [120, 0], sizes = [15, 32], strides = [1, 1]} : vector<450x32xf32> to vector<15x32xf32>
    %227 = arith.truncf %226 : vector<15x32xf32> to vector<15x32xbf16>
    %cst_42 = arith.constant dense<0.000000e+00> : vector<15x256xf32>
    %228 = tpu.matmul %227, %32, %cst_42 {dimension_numbers = #tpu.dot_dimension_numbers<[1], [0], [0], [1], [0, 0, 1, 1], [], []>} : vector<15x32xbf16>, vector<32x256xbf16>, vector<15x256xf32> -> vector<15x256xf32>
    %229 = vector.extract_strided_slice %228 {offsets = [0, 0], sizes = [6, 64], strides = [1, 1]} : vector<15x256xf32> to vector<6x64xf32>
    %230 = arith.addf %225, %229 : vector<6x64xf32>
    %231 = vector.extract_strided_slice %228 {offsets = [8, 64], sizes = [6, 64], strides = [1, 1]} : vector<15x256xf32> to vector<6x64xf32>
    %232 = arith.addf %230, %231 : vector<6x64xf32>
    %233 = vector.extract_strided_slice %228 {offsets = [1, 128], sizes = [6, 64], strides = [1, 1]} : vector<15x256xf32> to vector<6x64xf32>
    %234 = arith.addf %232, %233 : vector<6x64xf32>
    %235 = vector.extract_strided_slice %228 {offsets = [9, 192], sizes = [6, 64], strides = [1, 1]} : vector<15x256xf32> to vector<6x64xf32>
    %236 = arith.addf %234, %235 : vector<6x64xf32>
    %237 = vector.extract_strided_slice %30 {offsets = [135, 0], sizes = [15, 32], strides = [1, 1]} : vector<450x32xf32> to vector<15x32xf32>
    %238 = arith.truncf %237 : vector<15x32xf32> to vector<15x32xbf16>
    %cst_43 = arith.constant dense<0.000000e+00> : vector<15x256xf32>
    %239 = tpu.matmul %238, %33, %cst_43 {dimension_numbers = #tpu.dot_dimension_numbers<[1], [0], [0], [1], [0, 0, 1, 1], [], []>} : vector<15x32xbf16>, vector<32x256xbf16>, vector<15x256xf32> -> vector<15x256xf32>
    %240 = vector.extract_strided_slice %239 {offsets = [0, 0], sizes = [6, 64], strides = [1, 1]} : vector<15x256xf32> to vector<6x64xf32>
    %241 = arith.addf %236, %240 : vector<6x64xf32>
    %242 = vector.extract_strided_slice %239 {offsets = [8, 64], sizes = [6, 64], strides = [1, 1]} : vector<15x256xf32> to vector<6x64xf32>
    %243 = arith.addf %241, %242 : vector<6x64xf32>
    %244 = vector.extract_strided_slice %239 {offsets = [1, 128], sizes = [6, 64], strides = [1, 1]} : vector<15x256xf32> to vector<6x64xf32>
    %245 = arith.addf %243, %244 : vector<6x64xf32>
    %246 = vector.extract_strided_slice %239 {offsets = [9, 192], sizes = [6, 64], strides = [1, 1]} : vector<15x256xf32> to vector<6x64xf32>
    %247 = arith.addf %245, %246 : vector<6x64xf32>
    %248 = vector.extract_strided_slice %30 {offsets = [150, 0], sizes = [15, 32], strides = [1, 1]} : vector<450x32xf32> to vector<15x32xf32>
    %249 = arith.truncf %248 : vector<15x32xf32> to vector<15x32xbf16>
    %cst_44 = arith.constant dense<0.000000e+00> : vector<15x256xf32>
    %250 = tpu.matmul %249, %34, %cst_44 {dimension_numbers = #tpu.dot_dimension_numbers<[1], [0], [0], [1], [0, 0, 1, 1], [], []>} : vector<15x32xbf16>, vector<32x256xbf16>, vector<15x256xf32> -> vector<15x256xf32>
    %251 = vector.extract_strided_slice %250 {offsets = [0, 0], sizes = [6, 64], strides = [1, 1]} : vector<15x256xf32> to vector<6x64xf32>
    %252 = arith.addf %247, %251 : vector<6x64xf32>
    %253 = vector.extract_strided_slice %250 {offsets = [8, 64], sizes = [6, 64], strides = [1, 1]} : vector<15x256xf32> to vector<6x64xf32>
    %254 = arith.addf %252, %253 : vector<6x64xf32>
    %255 = vector.extract_strided_slice %250 {offsets = [1, 128], sizes = [6, 64], strides = [1, 1]} : vector<15x256xf32> to vector<6x64xf32>
    %256 = arith.addf %254, %255 : vector<6x64xf32>
    %257 = vector.extract_strided_slice %250 {offsets = [9, 192], sizes = [6, 64], strides = [1, 1]} : vector<15x256xf32> to vector<6x64xf32>
    %258 = arith.addf %256, %257 : vector<6x64xf32>
    %259 = vector.extract_strided_slice %30 {offsets = [165, 0], sizes = [15, 32], strides = [1, 1]} : vector<450x32xf32> to vector<15x32xf32>
    %260 = arith.truncf %259 : vector<15x32xf32> to vector<15x32xbf16>
    %cst_45 = arith.constant dense<0.000000e+00> : vector<15x256xf32>
    %261 = tpu.matmul %260, %35, %cst_45 {dimension_numbers = #tpu.dot_dimension_numbers<[1], [0], [0], [1], [0, 0, 1, 1], [], []>} : vector<15x32xbf16>, vector<32x256xbf16>, vector<15x256xf32> -> vector<15x256xf32>
    %262 = vector.extract_strided_slice %261 {offsets = [0, 0], sizes = [6, 64], strides = [1, 1]} : vector<15x256xf32> to vector<6x64xf32>
    %263 = arith.addf %258, %262 : vector<6x64xf32>
    %264 = vector.extract_strided_slice %261 {offsets = [8, 64], sizes = [6, 64], strides = [1, 1]} : vector<15x256xf32> to vector<6x64xf32>
    %265 = arith.addf %263, %264 : vector<6x64xf32>
    %266 = vector.extract_strided_slice %261 {offsets = [1, 128], sizes = [6, 64], strides = [1, 1]} : vector<15x256xf32> to vector<6x64xf32>
    %267 = arith.addf %265, %266 : vector<6x64xf32>
    %268 = vector.extract_strided_slice %261 {offsets = [9, 192], sizes = [6, 64], strides = [1, 1]} : vector<15x256xf32> to vector<6x64xf32>
    %269 = arith.addf %267, %268 : vector<6x64xf32>
    %270 = vector.broadcast %36 : vector<1x64xf32> to vector<6x64xf32>
    %271 = arith.addf %269, %270 : vector<6x64xf32>
    %cst_46 = arith.constant 0.000000e+00 : f32
    %272 = vector.broadcast %cst_46 : f32 to vector<6x64xf32>
    %273 = vector.extract_strided_slice %30 {offsets = [150, 0], sizes = [15, 32], strides = [1, 1]} : vector<450x32xf32> to vector<15x32xf32>
    %274 = arith.truncf %273 : vector<15x32xf32> to vector<15x32xbf16>
    %cst_47 = arith.constant dense<0.000000e+00> : vector<15x256xf32>
    %275 = tpu.matmul %274, %32, %cst_47 {dimension_numbers = #tpu.dot_dimension_numbers<[1], [0], [0], [1], [0, 0, 1, 1], [], []>} : vector<15x32xbf16>, vector<32x256xbf16>, vector<15x256xf32> -> vector<15x256xf32>
    %276 = vector.extract_strided_slice %275 {offsets = [0, 0], sizes = [6, 64], strides = [1, 1]} : vector<15x256xf32> to vector<6x64xf32>
    %277 = arith.addf %272, %276 : vector<6x64xf32>
    %278 = vector.extract_strided_slice %275 {offsets = [8, 64], sizes = [6, 64], strides = [1, 1]} : vector<15x256xf32> to vector<6x64xf32>
    %279 = arith.addf %277, %278 : vector<6x64xf32>
    %280 = vector.extract_strided_slice %275 {offsets = [1, 128], sizes = [6, 64], strides = [1, 1]} : vector<15x256xf32> to vector<6x64xf32>
    %281 = arith.addf %279, %280 : vector<6x64xf32>
    %282 = vector.extract_strided_slice %275 {offsets = [9, 192], sizes = [6, 64], strides = [1, 1]} : vector<15x256xf32> to vector<6x64xf32>
    %283 = arith.addf %281, %282 : vector<6x64xf32>
    %284 = vector.extract_strided_slice %30 {offsets = [165, 0], sizes = [15, 32], strides = [1, 1]} : vector<450x32xf32> to vector<15x32xf32>
    %285 = arith.truncf %284 : vector<15x32xf32> to vector<15x32xbf16>
    %cst_48 = arith.constant dense<0.000000e+00> : vector<15x256xf32>
    %286 = tpu.matmul %285, %33, %cst_48 {dimension_numbers = #tpu.dot_dimension_numbers<[1], [0], [0], [1], [0, 0, 1, 1], [], []>} : vector<15x32xbf16>, vector<32x256xbf16>, vector<15x256xf32> -> vector<15x256xf32>
    %287 = vector.extract_strided_slice %286 {offsets = [0, 0], sizes = [6, 64], strides = [1, 1]} : vector<15x256xf32> to vector<6x64xf32>
    %288 = arith.addf %283, %287 : vector<6x64xf32>
    %289 = vector.extract_strided_slice %286 {offsets = [8, 64], sizes = [6, 64], strides = [1, 1]} : vector<15x256xf32> to vector<6x64xf32>
    %290 = arith.addf %288, %289 : vector<6x64xf32>
    %291 = vector.extract_strided_slice %286 {offsets = [1, 128], sizes = [6, 64], strides = [1, 1]} : vector<15x256xf32> to vector<6x64xf32>
    %292 = arith.addf %290, %291 : vector<6x64xf32>
    %293 = vector.extract_strided_slice %286 {offsets = [9, 192], sizes = [6, 64], strides = [1, 1]} : vector<15x256xf32> to vector<6x64xf32>
    %294 = arith.addf %292, %293 : vector<6x64xf32>
    %295 = vector.extract_strided_slice %30 {offsets = [180, 0], sizes = [15, 32], strides = [1, 1]} : vector<450x32xf32> to vector<15x32xf32>
    %296 = arith.truncf %295 : vector<15x32xf32> to vector<15x32xbf16>
    %cst_49 = arith.constant dense<0.000000e+00> : vector<15x256xf32>
    %297 = tpu.matmul %296, %34, %cst_49 {dimension_numbers = #tpu.dot_dimension_numbers<[1], [0], [0], [1], [0, 0, 1, 1], [], []>} : vector<15x32xbf16>, vector<32x256xbf16>, vector<15x256xf32> -> vector<15x256xf32>
    %298 = vector.extract_strided_slice %297 {offsets = [0, 0], sizes = [6, 64], strides = [1, 1]} : vector<15x256xf32> to vector<6x64xf32>
    %299 = arith.addf %294, %298 : vector<6x64xf32>
    %300 = vector.extract_strided_slice %297 {offsets = [8, 64], sizes = [6, 64], strides = [1, 1]} : vector<15x256xf32> to vector<6x64xf32>
    %301 = arith.addf %299, %300 : vector<6x64xf32>
    %302 = vector.extract_strided_slice %297 {offsets = [1, 128], sizes = [6, 64], strides = [1, 1]} : vector<15x256xf32> to vector<6x64xf32>
    %303 = arith.addf %301, %302 : vector<6x64xf32>
    %304 = vector.extract_strided_slice %297 {offsets = [9, 192], sizes = [6, 64], strides = [1, 1]} : vector<15x256xf32> to vector<6x64xf32>
    %305 = arith.addf %303, %304 : vector<6x64xf32>
    %306 = vector.extract_strided_slice %30 {offsets = [195, 0], sizes = [15, 32], strides = [1, 1]} : vector<450x32xf32> to vector<15x32xf32>
    %307 = arith.truncf %306 : vector<15x32xf32> to vector<15x32xbf16>
    %cst_50 = arith.constant dense<0.000000e+00> : vector<15x256xf32>
    %308 = tpu.matmul %307, %35, %cst_50 {dimension_numbers = #tpu.dot_dimension_numbers<[1], [0], [0], [1], [0, 0, 1, 1], [], []>} : vector<15x32xbf16>, vector<32x256xbf16>, vector<15x256xf32> -> vector<15x256xf32>
    %309 = vector.extract_strided_slice %308 {offsets = [0, 0], sizes = [6, 64], strides = [1, 1]} : vector<15x256xf32> to vector<6x64xf32>
    %310 = arith.addf %305, %309 : vector<6x64xf32>
    %311 = vector.extract_strided_slice %308 {offsets = [8, 64], sizes = [6, 64], strides = [1, 1]} : vector<15x256xf32> to vector<6x64xf32>
    %312 = arith.addf %310, %311 : vector<6x64xf32>
    %313 = vector.extract_strided_slice %308 {offsets = [1, 128], sizes = [6, 64], strides = [1, 1]} : vector<15x256xf32> to vector<6x64xf32>
    %314 = arith.addf %312, %313 : vector<6x64xf32>
    %315 = vector.extract_strided_slice %308 {offsets = [9, 192], sizes = [6, 64], strides = [1, 1]} : vector<15x256xf32> to vector<6x64xf32>
    %316 = arith.addf %314, %315 : vector<6x64xf32>
    %317 = vector.broadcast %36 : vector<1x64xf32> to vector<6x64xf32>
    %318 = arith.addf %316, %317 : vector<6x64xf32>
    %cst_51 = arith.constant 0.000000e+00 : f32
    %319 = vector.broadcast %cst_51 : f32 to vector<6x64xf32>
    %320 = vector.extract_strided_slice %30 {offsets = [225, 0], sizes = [15, 32], strides = [1, 1]} : vector<450x32xf32> to vector<15x32xf32>
    %321 = arith.truncf %320 : vector<15x32xf32> to vector<15x32xbf16>
    %cst_52 = arith.constant dense<0.000000e+00> : vector<15x256xf32>
    %322 = tpu.matmul %321, %32, %cst_52 {dimension_numbers = #tpu.dot_dimension_numbers<[1], [0], [0], [1], [0, 0, 1, 1], [], []>} : vector<15x32xbf16>, vector<32x256xbf16>, vector<15x256xf32> -> vector<15x256xf32>
    %323 = vector.extract_strided_slice %322 {offsets = [0, 0], sizes = [6, 64], strides = [1, 1]} : vector<15x256xf32> to vector<6x64xf32>
    %324 = arith.addf %319, %323 : vector<6x64xf32>
    %325 = vector.extract_strided_slice %322 {offsets = [8, 64], sizes = [6, 64], strides = [1, 1]} : vector<15x256xf32> to vector<6x64xf32>
    %326 = arith.addf %324, %325 : vector<6x64xf32>
    %327 = vector.extract_strided_slice %322 {offsets = [1, 128], sizes = [6, 64], strides = [1, 1]} : vector<15x256xf32> to vector<6x64xf32>
    %328 = arith.addf %326, %327 : vector<6x64xf32>
    %329 = vector.extract_strided_slice %322 {offsets = [9, 192], sizes = [6, 64], strides = [1, 1]} : vector<15x256xf32> to vector<6x64xf32>
    %330 = arith.addf %328, %329 : vector<6x64xf32>
    %331 = vector.extract_strided_slice %30 {offsets = [240, 0], sizes = [15, 32], strides = [1, 1]} : vector<450x32xf32> to vector<15x32xf32>
    %332 = arith.truncf %331 : vector<15x32xf32> to vector<15x32xbf16>
    %cst_53 = arith.constant dense<0.000000e+00> : vector<15x256xf32>
    %333 = tpu.matmul %332, %33, %cst_53 {dimension_numbers = #tpu.dot_dimension_numbers<[1], [0], [0], [1], [0, 0, 1, 1], [], []>} : vector<15x32xbf16>, vector<32x256xbf16>, vector<15x256xf32> -> vector<15x256xf32>
    %334 = vector.extract_strided_slice %333 {offsets = [0, 0], sizes = [6, 64], strides = [1, 1]} : vector<15x256xf32> to vector<6x64xf32>
    %335 = arith.addf %330, %334 : vector<6x64xf32>
    %336 = vector.extract_strided_slice %333 {offsets = [8, 64], sizes = [6, 64], strides = [1, 1]} : vector<15x256xf32> to vector<6x64xf32>
    %337 = arith.addf %335, %336 : vector<6x64xf32>
    %338 = vector.extract_strided_slice %333 {offsets = [1, 128], sizes = [6, 64], strides = [1, 1]} : vector<15x256xf32> to vector<6x64xf32>
    %339 = arith.addf %337, %338 : vector<6x64xf32>
    %340 = vector.extract_strided_slice %333 {offsets = [9, 192], sizes = [6, 64], strides = [1, 1]} : vector<15x256xf32> to vector<6x64xf32>
    %341 = arith.addf %339, %340 : vector<6x64xf32>
    %342 = vector.extract_strided_slice %30 {offsets = [255, 0], sizes = [15, 32], strides = [1, 1]} : vector<450x32xf32> to vector<15x32xf32>
    %343 = arith.truncf %342 : vector<15x32xf32> to vector<15x32xbf16>
    %cst_54 = arith.constant dense<0.000000e+00> : vector<15x256xf32>
    %344 = tpu.matmul %343, %34, %cst_54 {dimension_numbers = #tpu.dot_dimension_numbers<[1], [0], [0], [1], [0, 0, 1, 1], [], []>} : vector<15x32xbf16>, vector<32x256xbf16>, vector<15x256xf32> -> vector<15x256xf32>
    %345 = vector.extract_strided_slice %344 {offsets = [0, 0], sizes = [6, 64], strides = [1, 1]} : vector<15x256xf32> to vector<6x64xf32>
    %346 = arith.addf %341, %345 : vector<6x64xf32>
    %347 = vector.extract_strided_slice %344 {offsets = [8, 64], sizes = [6, 64], strides = [1, 1]} : vector<15x256xf32> to vector<6x64xf32>
    %348 = arith.addf %346, %347 : vector<6x64xf32>
    %349 = vector.extract_strided_slice %344 {offsets = [1, 128], sizes = [6, 64], strides = [1, 1]} : vector<15x256xf32> to vector<6x64xf32>
    %350 = arith.addf %348, %349 : vector<6x64xf32>
    %351 = vector.extract_strided_slice %344 {offsets = [9, 192], sizes = [6, 64], strides = [1, 1]} : vector<15x256xf32> to vector<6x64xf32>
    %352 = arith.addf %350, %351 : vector<6x64xf32>
    %353 = vector.extract_strided_slice %30 {offsets = [270, 0], sizes = [15, 32], strides = [1, 1]} : vector<450x32xf32> to vector<15x32xf32>
    %354 = arith.truncf %353 : vector<15x32xf32> to vector<15x32xbf16>
    %cst_55 = arith.constant dense<0.000000e+00> : vector<15x256xf32>
    %355 = tpu.matmul %354, %35, %cst_55 {dimension_numbers = #tpu.dot_dimension_numbers<[1], [0], [0], [1], [0, 0, 1, 1], [], []>} : vector<15x32xbf16>, vector<32x256xbf16>, vector<15x256xf32> -> vector<15x256xf32>
    %356 = vector.extract_strided_slice %355 {offsets = [0, 0], sizes = [6, 64], strides = [1, 1]} : vector<15x256xf32> to vector<6x64xf32>
    %357 = arith.addf %352, %356 : vector<6x64xf32>
    %358 = vector.extract_strided_slice %355 {offsets = [8, 64], sizes = [6, 64], strides = [1, 1]} : vector<15x256xf32> to vector<6x64xf32>
    %359 = arith.addf %357, %358 : vector<6x64xf32>
    %360 = vector.extract_strided_slice %355 {offsets = [1, 128], sizes = [6, 64], strides = [1, 1]} : vector<15x256xf32> to vector<6x64xf32>
    %361 = arith.addf %359, %360 : vector<6x64xf32>
    %362 = vector.extract_strided_slice %355 {offsets = [9, 192], sizes = [6, 64], strides = [1, 1]} : vector<15x256xf32> to vector<6x64xf32>
    %363 = arith.addf %361, %362 : vector<6x64xf32>
    %364 = vector.broadcast %36 : vector<1x64xf32> to vector<6x64xf32>
    %365 = arith.addf %363, %364 : vector<6x64xf32>
    %cst_56 = arith.constant 0.000000e+00 : f32
    %366 = vector.broadcast %cst_56 : f32 to vector<6x64xf32>
    %367 = vector.extract_strided_slice %30 {offsets = [255, 0], sizes = [15, 32], strides = [1, 1]} : vector<450x32xf32> to vector<15x32xf32>
    %368 = arith.truncf %367 : vector<15x32xf32> to vector<15x32xbf16>
    %cst_57 = arith.constant dense<0.000000e+00> : vector<15x256xf32>
    %369 = tpu.matmul %368, %32, %cst_57 {dimension_numbers = #tpu.dot_dimension_numbers<[1], [0], [0], [1], [0, 0, 1, 1], [], []>} : vector<15x32xbf16>, vector<32x256xbf16>, vector<15x256xf32> -> vector<15x256xf32>
    %370 = vector.extract_strided_slice %369 {offsets = [0, 0], sizes = [6, 64], strides = [1, 1]} : vector<15x256xf32> to vector<6x64xf32>
    %371 = arith.addf %366, %370 : vector<6x64xf32>
    %372 = vector.extract_strided_slice %369 {offsets = [8, 64], sizes = [6, 64], strides = [1, 1]} : vector<15x256xf32> to vector<6x64xf32>
    %373 = arith.addf %371, %372 : vector<6x64xf32>
    %374 = vector.extract_strided_slice %369 {offsets = [1, 128], sizes = [6, 64], strides = [1, 1]} : vector<15x256xf32> to vector<6x64xf32>
    %375 = arith.addf %373, %374 : vector<6x64xf32>
    %376 = vector.extract_strided_slice %369 {offsets = [9, 192], sizes = [6, 64], strides = [1, 1]} : vector<15x256xf32> to vector<6x64xf32>
    %377 = arith.addf %375, %376 : vector<6x64xf32>
    %378 = vector.extract_strided_slice %30 {offsets = [270, 0], sizes = [15, 32], strides = [1, 1]} : vector<450x32xf32> to vector<15x32xf32>
    %379 = arith.truncf %378 : vector<15x32xf32> to vector<15x32xbf16>
    %cst_58 = arith.constant dense<0.000000e+00> : vector<15x256xf32>
    %380 = tpu.matmul %379, %33, %cst_58 {dimension_numbers = #tpu.dot_dimension_numbers<[1], [0], [0], [1], [0, 0, 1, 1], [], []>} : vector<15x32xbf16>, vector<32x256xbf16>, vector<15x256xf32> -> vector<15x256xf32>
    %381 = vector.extract_strided_slice %380 {offsets = [0, 0], sizes = [6, 64], strides = [1, 1]} : vector<15x256xf32> to vector<6x64xf32>
    %382 = arith.addf %377, %381 : vector<6x64xf32>
    %383 = vector.extract_strided_slice %380 {offsets = [8, 64], sizes = [6, 64], strides = [1, 1]} : vector<15x256xf32> to vector<6x64xf32>
    %384 = arith.addf %382, %383 : vector<6x64xf32>
    %385 = vector.extract_strided_slice %380 {offsets = [1, 128], sizes = [6, 64], strides = [1, 1]} : vector<15x256xf32> to vector<6x64xf32>
    %386 = arith.addf %384, %385 : vector<6x64xf32>
    %387 = vector.extract_strided_slice %380 {offsets = [9, 192], sizes = [6, 64], strides = [1, 1]} : vector<15x256xf32> to vector<6x64xf32>
    %388 = arith.addf %386, %387 : vector<6x64xf32>
    %389 = vector.extract_strided_slice %30 {offsets = [285, 0], sizes = [15, 32], strides = [1, 1]} : vector<450x32xf32> to vector<15x32xf32>
    %390 = arith.truncf %389 : vector<15x32xf32> to vector<15x32xbf16>
    %cst_59 = arith.constant dense<0.000000e+00> : vector<15x256xf32>
    %391 = tpu.matmul %390, %34, %cst_59 {dimension_numbers = #tpu.dot_dimension_numbers<[1], [0], [0], [1], [0, 0, 1, 1], [], []>} : vector<15x32xbf16>, vector<32x256xbf16>, vector<15x256xf32> -> vector<15x256xf32>
    %392 = vector.extract_strided_slice %391 {offsets = [0, 0], sizes = [6, 64], strides = [1, 1]} : vector<15x256xf32> to vector<6x64xf32>
    %393 = arith.addf %388, %392 : vector<6x64xf32>
    %394 = vector.extract_strided_slice %391 {offsets = [8, 64], sizes = [6, 64], strides = [1, 1]} : vector<15x256xf32> to vector<6x64xf32>
    %395 = arith.addf %393, %394 : vector<6x64xf32>
    %396 = vector.extract_strided_slice %391 {offsets = [1, 128], sizes = [6, 64], strides = [1, 1]} : vector<15x256xf32> to vector<6x64xf32>
    %397 = arith.addf %395, %396 : vector<6x64xf32>
    %398 = vector.extract_strided_slice %391 {offsets = [9, 192], sizes = [6, 64], strides = [1, 1]} : vector<15x256xf32> to vector<6x64xf32>
    %399 = arith.addf %397, %398 : vector<6x64xf32>
    %400 = vector.extract_strided_slice %30 {offsets = [300, 0], sizes = [15, 32], strides = [1, 1]} : vector<450x32xf32> to vector<15x32xf32>
    %401 = arith.truncf %400 : vector<15x32xf32> to vector<15x32xbf16>
    %cst_60 = arith.constant dense<0.000000e+00> : vector<15x256xf32>
    %402 = tpu.matmul %401, %35, %cst_60 {dimension_numbers = #tpu.dot_dimension_numbers<[1], [0], [0], [1], [0, 0, 1, 1], [], []>} : vector<15x32xbf16>, vector<32x256xbf16>, vector<15x256xf32> -> vector<15x256xf32>
    %403 = vector.extract_strided_slice %402 {offsets = [0, 0], sizes = [6, 64], strides = [1, 1]} : vector<15x256xf32> to vector<6x64xf32>
    %404 = arith.addf %399, %403 : vector<6x64xf32>
    %405 = vector.extract_strided_slice %402 {offsets = [8, 64], sizes = [6, 64], strides = [1, 1]} : vector<15x256xf32> to vector<6x64xf32>
    %406 = arith.addf %404, %405 : vector<6x64xf32>
    %407 = vector.extract_strided_slice %402 {offsets = [1, 128], sizes = [6, 64], strides = [1, 1]} : vector<15x256xf32> to vector<6x64xf32>
    %408 = arith.addf %406, %407 : vector<6x64xf32>
    %409 = vector.extract_strided_slice %402 {offsets = [9, 192], sizes = [6, 64], strides = [1, 1]} : vector<15x256xf32> to vector<6x64xf32>
    %410 = arith.addf %408, %409 : vector<6x64xf32>
    %411 = vector.broadcast %36 : vector<1x64xf32> to vector<6x64xf32>
    %412 = arith.addf %410, %411 : vector<6x64xf32>
    %cst_61 = arith.constant 0.000000e+00 : f32
    %413 = vector.broadcast %cst_61 : f32 to vector<6x64xf32>
    %414 = vector.extract_strided_slice %30 {offsets = [285, 0], sizes = [15, 32], strides = [1, 1]} : vector<450x32xf32> to vector<15x32xf32>
    %415 = arith.truncf %414 : vector<15x32xf32> to vector<15x32xbf16>
    %cst_62 = arith.constant dense<0.000000e+00> : vector<15x256xf32>
    %416 = tpu.matmul %415, %32, %cst_62 {dimension_numbers = #tpu.dot_dimension_numbers<[1], [0], [0], [1], [0, 0, 1, 1], [], []>} : vector<15x32xbf16>, vector<32x256xbf16>, vector<15x256xf32> -> vector<15x256xf32>
    %417 = vector.extract_strided_slice %416 {offsets = [0, 0], sizes = [6, 64], strides = [1, 1]} : vector<15x256xf32> to vector<6x64xf32>
    %418 = arith.addf %413, %417 : vector<6x64xf32>
    %419 = vector.extract_strided_slice %416 {offsets = [8, 64], sizes = [6, 64], strides = [1, 1]} : vector<15x256xf32> to vector<6x64xf32>
    %420 = arith.addf %418, %419 : vector<6x64xf32>
    %421 = vector.extract_strided_slice %416 {offsets = [1, 128], sizes = [6, 64], strides = [1, 1]} : vector<15x256xf32> to vector<6x64xf32>
    %422 = arith.addf %420, %421 : vector<6x64xf32>
    %423 = vector.extract_strided_slice %416 {offsets = [9, 192], sizes = [6, 64], strides = [1, 1]} : vector<15x256xf32> to vector<6x64xf32>
    %424 = arith.addf %422, %423 : vector<6x64xf32>
    %425 = vector.extract_strided_slice %30 {offsets = [300, 0], sizes = [15, 32], strides = [1, 1]} : vector<450x32xf32> to vector<15x32xf32>
    %426 = arith.truncf %425 : vector<15x32xf32> to vector<15x32xbf16>
    %cst_63 = arith.constant dense<0.000000e+00> : vector<15x256xf32>
    %427 = tpu.matmul %426, %33, %cst_63 {dimension_numbers = #tpu.dot_dimension_numbers<[1], [0], [0], [1], [0, 0, 1, 1], [], []>} : vector<15x32xbf16>, vector<32x256xbf16>, vector<15x256xf32> -> vector<15x256xf32>
    %428 = vector.extract_strided_slice %427 {offsets = [0, 0], sizes = [6, 64], strides = [1, 1]} : vector<15x256xf32> to vector<6x64xf32>
    %429 = arith.addf %424, %428 : vector<6x64xf32>
    %430 = vector.extract_strided_slice %427 {offsets = [8, 64], sizes = [6, 64], strides = [1, 1]} : vector<15x256xf32> to vector<6x64xf32>
    %431 = arith.addf %429, %430 : vector<6x64xf32>
    %432 = vector.extract_strided_slice %427 {offsets = [1, 128], sizes = [6, 64], strides = [1, 1]} : vector<15x256xf32> to vector<6x64xf32>
    %433 = arith.addf %431, %432 : vector<6x64xf32>
    %434 = vector.extract_strided_slice %427 {offsets = [9, 192], sizes = [6, 64], strides = [1, 1]} : vector<15x256xf32> to vector<6x64xf32>
    %435 = arith.addf %433, %434 : vector<6x64xf32>
    %436 = vector.extract_strided_slice %30 {offsets = [315, 0], sizes = [15, 32], strides = [1, 1]} : vector<450x32xf32> to vector<15x32xf32>
    %437 = arith.truncf %436 : vector<15x32xf32> to vector<15x32xbf16>
    %cst_64 = arith.constant dense<0.000000e+00> : vector<15x256xf32>
    %438 = tpu.matmul %437, %34, %cst_64 {dimension_numbers = #tpu.dot_dimension_numbers<[1], [0], [0], [1], [0, 0, 1, 1], [], []>} : vector<15x32xbf16>, vector<32x256xbf16>, vector<15x256xf32> -> vector<15x256xf32>
    %439 = vector.extract_strided_slice %438 {offsets = [0, 0], sizes = [6, 64], strides = [1, 1]} : vector<15x256xf32> to vector<6x64xf32>
    %440 = arith.addf %435, %439 : vector<6x64xf32>
    %441 = vector.extract_strided_slice %438 {offsets = [8, 64], sizes = [6, 64], strides = [1, 1]} : vector<15x256xf32> to vector<6x64xf32>
    %442 = arith.addf %440, %441 : vector<6x64xf32>
    %443 = vector.extract_strided_slice %438 {offsets = [1, 128], sizes = [6, 64], strides = [1, 1]} : vector<15x256xf32> to vector<6x64xf32>
    %444 = arith.addf %442, %443 : vector<6x64xf32>
    %445 = vector.extract_strided_slice %438 {offsets = [9, 192], sizes = [6, 64], strides = [1, 1]} : vector<15x256xf32> to vector<6x64xf32>
    %446 = arith.addf %444, %445 : vector<6x64xf32>
    %447 = vector.extract_strided_slice %30 {offsets = [330, 0], sizes = [15, 32], strides = [1, 1]} : vector<450x32xf32> to vector<15x32xf32>
    %448 = arith.truncf %447 : vector<15x32xf32> to vector<15x32xbf16>
    %cst_65 = arith.constant dense<0.000000e+00> : vector<15x256xf32>
    %449 = tpu.matmul %448, %35, %cst_65 {dimension_numbers = #tpu.dot_dimension_numbers<[1], [0], [0], [1], [0, 0, 1, 1], [], []>} : vector<15x32xbf16>, vector<32x256xbf16>, vector<15x256xf32> -> vector<15x256xf32>
    %450 = vector.extract_strided_slice %449 {offsets = [0, 0], sizes = [6, 64], strides = [1, 1]} : vector<15x256xf32> to vector<6x64xf32>
    %451 = arith.addf %446, %450 : vector<6x64xf32>
    %452 = vector.extract_strided_slice %449 {offsets = [8, 64], sizes = [6, 64], strides = [1, 1]} : vector<15x256xf32> to vector<6x64xf32>
    %453 = arith.addf %451, %452 : vector<6x64xf32>
    %454 = vector.extract_strided_slice %449 {offsets = [1, 128], sizes = [6, 64], strides = [1, 1]} : vector<15x256xf32> to vector<6x64xf32>
    %455 = arith.addf %453, %454 : vector<6x64xf32>
    %456 = vector.extract_strided_slice %449 {offsets = [9, 192], sizes = [6, 64], strides = [1, 1]} : vector<15x256xf32> to vector<6x64xf32>
    %457 = arith.addf %455, %456 : vector<6x64xf32>
    %458 = vector.broadcast %36 : vector<1x64xf32> to vector<6x64xf32>
    %459 = arith.addf %457, %458 : vector<6x64xf32>
    %cst_66 = arith.constant 0.000000e+00 : f32
    %460 = vector.broadcast %cst_66 : f32 to vector<6x64xf32>
    %461 = vector.extract_strided_slice %30 {offsets = [315, 0], sizes = [15, 32], strides = [1, 1]} : vector<450x32xf32> to vector<15x32xf32>
    %462 = arith.truncf %461 : vector<15x32xf32> to vector<15x32xbf16>
    %cst_67 = arith.constant dense<0.000000e+00> : vector<15x256xf32>
    %463 = tpu.matmul %462, %32, %cst_67 {dimension_numbers = #tpu.dot_dimension_numbers<[1], [0], [0], [1], [0, 0, 1, 1], [], []>} : vector<15x32xbf16>, vector<32x256xbf16>, vector<15x256xf32> -> vector<15x256xf32>
    %464 = vector.extract_strided_slice %463 {offsets = [0, 0], sizes = [6, 64], strides = [1, 1]} : vector<15x256xf32> to vector<6x64xf32>
    %465 = arith.addf %460, %464 : vector<6x64xf32>
    %466 = vector.extract_strided_slice %463 {offsets = [8, 64], sizes = [6, 64], strides = [1, 1]} : vector<15x256xf32> to vector<6x64xf32>
    %467 = arith.addf %465, %466 : vector<6x64xf32>
    %468 = vector.extract_strided_slice %463 {offsets = [1, 128], sizes = [6, 64], strides = [1, 1]} : vector<15x256xf32> to vector<6x64xf32>
    %469 = arith.addf %467, %468 : vector<6x64xf32>
    %470 = vector.extract_strided_slice %463 {offsets = [9, 192], sizes = [6, 64], strides = [1, 1]} : vector<15x256xf32> to vector<6x64xf32>
    %471 = arith.addf %469, %470 : vector<6x64xf32>
    %472 = vector.extract_strided_slice %30 {offsets = [330, 0], sizes = [15, 32], strides = [1, 1]} : vector<450x32xf32> to vector<15x32xf32>
    %473 = arith.truncf %472 : vector<15x32xf32> to vector<15x32xbf16>
    %cst_68 = arith.constant dense<0.000000e+00> : vector<15x256xf32>
    %474 = tpu.matmul %473, %33, %cst_68 {dimension_numbers = #tpu.dot_dimension_numbers<[1], [0], [0], [1], [0, 0, 1, 1], [], []>} : vector<15x32xbf16>, vector<32x256xbf16>, vector<15x256xf32> -> vector<15x256xf32>
    %475 = vector.extract_strided_slice %474 {offsets = [0, 0], sizes = [6, 64], strides = [1, 1]} : vector<15x256xf32> to vector<6x64xf32>
    %476 = arith.addf %471, %475 : vector<6x64xf32>
    %477 = vector.extract_strided_slice %474 {offsets = [8, 64], sizes = [6, 64], strides = [1, 1]} : vector<15x256xf32> to vector<6x64xf32>
    %478 = arith.addf %476, %477 : vector<6x64xf32>
    %479 = vector.extract_strided_slice %474 {offsets = [1, 128], sizes = [6, 64], strides = [1, 1]} : vector<15x256xf32> to vector<6x64xf32>
    %480 = arith.addf %478, %479 : vector<6x64xf32>
    %481 = vector.extract_strided_slice %474 {offsets = [9, 192], sizes = [6, 64], strides = [1, 1]} : vector<15x256xf32> to vector<6x64xf32>
    %482 = arith.addf %480, %481 : vector<6x64xf32>
    %483 = vector.extract_strided_slice %30 {offsets = [345, 0], sizes = [15, 32], strides = [1, 1]} : vector<450x32xf32> to vector<15x32xf32>
    %484 = arith.truncf %483 : vector<15x32xf32> to vector<15x32xbf16>
    %cst_69 = arith.constant dense<0.000000e+00> : vector<15x256xf32>
    %485 = tpu.matmul %484, %34, %cst_69 {dimension_numbers = #tpu.dot_dimension_numbers<[1], [0], [0], [1], [0, 0, 1, 1], [], []>} : vector<15x32xbf16>, vector<32x256xbf16>, vector<15x256xf32> -> vector<15x256xf32>
    %486 = vector.extract_strided_slice %485 {offsets = [0, 0], sizes = [6, 64], strides = [1, 1]} : vector<15x256xf32> to vector<6x64xf32>
    %487 = arith.addf %482, %486 : vector<6x64xf32>
    %488 = vector.extract_strided_slice %485 {offsets = [8, 64], sizes = [6, 64], strides = [1, 1]} : vector<15x256xf32> to vector<6x64xf32>
    %489 = arith.addf %487, %488 : vector<6x64xf32>
    %490 = vector.extract_strided_slice %485 {offsets = [1, 128], sizes = [6, 64], strides = [1, 1]} : vector<15x256xf32> to vector<6x64xf32>
    %491 = arith.addf %489, %490 : vector<6x64xf32>
    %492 = vector.extract_strided_slice %485 {offsets = [9, 192], sizes = [6, 64], strides = [1, 1]} : vector<15x256xf32> to vector<6x64xf32>
    %493 = arith.addf %491, %492 : vector<6x64xf32>
    %494 = vector.extract_strided_slice %30 {offsets = [360, 0], sizes = [15, 32], strides = [1, 1]} : vector<450x32xf32> to vector<15x32xf32>
    %495 = arith.truncf %494 : vector<15x32xf32> to vector<15x32xbf16>
    %cst_70 = arith.constant dense<0.000000e+00> : vector<15x256xf32>
    %496 = tpu.matmul %495, %35, %cst_70 {dimension_numbers = #tpu.dot_dimension_numbers<[1], [0], [0], [1], [0, 0, 1, 1], [], []>} : vector<15x32xbf16>, vector<32x256xbf16>, vector<15x256xf32> -> vector<15x256xf32>
    %497 = vector.extract_strided_slice %496 {offsets = [0, 0], sizes = [6, 64], strides = [1, 1]} : vector<15x256xf32> to vector<6x64xf32>
    %498 = arith.addf %493, %497 : vector<6x64xf32>
    %499 = vector.extract_strided_slice %496 {offsets = [8, 64], sizes = [6, 64], strides = [1, 1]} : vector<15x256xf32> to vector<6x64xf32>
    %500 = arith.addf %498, %499 : vector<6x64xf32>
    %501 = vector.extract_strided_slice %496 {offsets = [1, 128], sizes = [6, 64], strides = [1, 1]} : vector<15x256xf32> to vector<6x64xf32>
    %502 = arith.addf %500, %501 : vector<6x64xf32>
    %503 = vector.extract_strided_slice %496 {offsets = [9, 192], sizes = [6, 64], strides = [1, 1]} : vector<15x256xf32> to vector<6x64xf32>
    %504 = arith.addf %502, %503 : vector<6x64xf32>
    %505 = vector.broadcast %36 : vector<1x64xf32> to vector<6x64xf32>
    %506 = arith.addf %504, %505 : vector<6x64xf32>
    %cst_71 = arith.constant 0.000000e+00 : f32
    %507 = vector.broadcast %cst_71 : f32 to vector<6x64xf32>
    %508 = vector.extract_strided_slice %30 {offsets = [345, 0], sizes = [15, 32], strides = [1, 1]} : vector<450x32xf32> to vector<15x32xf32>
    %509 = arith.truncf %508 : vector<15x32xf32> to vector<15x32xbf16>
    %cst_72 = arith.constant dense<0.000000e+00> : vector<15x256xf32>
    %510 = tpu.matmul %509, %32, %cst_72 {dimension_numbers = #tpu.dot_dimension_numbers<[1], [0], [0], [1], [0, 0, 1, 1], [], []>} : vector<15x32xbf16>, vector<32x256xbf16>, vector<15x256xf32> -> vector<15x256xf32>
    %511 = vector.extract_strided_slice %510 {offsets = [0, 0], sizes = [6, 64], strides = [1, 1]} : vector<15x256xf32> to vector<6x64xf32>
    %512 = arith.addf %507, %511 : vector<6x64xf32>
    %513 = vector.extract_strided_slice %510 {offsets = [8, 64], sizes = [6, 64], strides = [1, 1]} : vector<15x256xf32> to vector<6x64xf32>
    %514 = arith.addf %512, %513 : vector<6x64xf32>
    %515 = vector.extract_strided_slice %510 {offsets = [1, 128], sizes = [6, 64], strides = [1, 1]} : vector<15x256xf32> to vector<6x64xf32>
    %516 = arith.addf %514, %515 : vector<6x64xf32>
    %517 = vector.extract_strided_slice %510 {offsets = [9, 192], sizes = [6, 64], strides = [1, 1]} : vector<15x256xf32> to vector<6x64xf32>
    %518 = arith.addf %516, %517 : vector<6x64xf32>
    %519 = vector.extract_strided_slice %30 {offsets = [360, 0], sizes = [15, 32], strides = [1, 1]} : vector<450x32xf32> to vector<15x32xf32>
    %520 = arith.truncf %519 : vector<15x32xf32> to vector<15x32xbf16>
    %cst_73 = arith.constant dense<0.000000e+00> : vector<15x256xf32>
    %521 = tpu.matmul %520, %33, %cst_73 {dimension_numbers = #tpu.dot_dimension_numbers<[1], [0], [0], [1], [0, 0, 1, 1], [], []>} : vector<15x32xbf16>, vector<32x256xbf16>, vector<15x256xf32> -> vector<15x256xf32>
    %522 = vector.extract_strided_slice %521 {offsets = [0, 0], sizes = [6, 64], strides = [1, 1]} : vector<15x256xf32> to vector<6x64xf32>
    %523 = arith.addf %518, %522 : vector<6x64xf32>
    %524 = vector.extract_strided_slice %521 {offsets = [8, 64], sizes = [6, 64], strides = [1, 1]} : vector<15x256xf32> to vector<6x64xf32>
    %525 = arith.addf %523, %524 : vector<6x64xf32>
    %526 = vector.extract_strided_slice %521 {offsets = [1, 128], sizes = [6, 64], strides = [1, 1]} : vector<15x256xf32> to vector<6x64xf32>
    %527 = arith.addf %525, %526 : vector<6x64xf32>
    %528 = vector.extract_strided_slice %521 {offsets = [9, 192], sizes = [6, 64], strides = [1, 1]} : vector<15x256xf32> to vector<6x64xf32>
    %529 = arith.addf %527, %528 : vector<6x64xf32>
    %530 = vector.extract_strided_slice %30 {offsets = [375, 0], sizes = [15, 32], strides = [1, 1]} : vector<450x32xf32> to vector<15x32xf32>
    %531 = arith.truncf %530 : vector<15x32xf32> to vector<15x32xbf16>
    %cst_74 = arith.constant dense<0.000000e+00> : vector<15x256xf32>
    %532 = tpu.matmul %531, %34, %cst_74 {dimension_numbers = #tpu.dot_dimension_numbers<[1], [0], [0], [1], [0, 0, 1, 1], [], []>} : vector<15x32xbf16>, vector<32x256xbf16>, vector<15x256xf32> -> vector<15x256xf32>
    %533 = vector.extract_strided_slice %532 {offsets = [0, 0], sizes = [6, 64], strides = [1, 1]} : vector<15x256xf32> to vector<6x64xf32>
    %534 = arith.addf %529, %533 : vector<6x64xf32>
    %535 = vector.extract_strided_slice %532 {offsets = [8, 64], sizes = [6, 64], strides = [1, 1]} : vector<15x256xf32> to vector<6x64xf32>
    %536 = arith.addf %534, %535 : vector<6x64xf32>
    %537 = vector.extract_strided_slice %532 {offsets = [1, 128], sizes = [6, 64], strides = [1, 1]} : vector<15x256xf32> to vector<6x64xf32>
    %538 = arith.addf %536, %537 : vector<6x64xf32>
    %539 = vector.extract_strided_slice %532 {offsets = [9, 192], sizes = [6, 64], strides = [1, 1]} : vector<15x256xf32> to vector<6x64xf32>
    %540 = arith.addf %538, %539 : vector<6x64xf32>
    %541 = vector.extract_strided_slice %30 {offsets = [390, 0], sizes = [15, 32], strides = [1, 1]} : vector<450x32xf32> to vector<15x32xf32>
    %542 = arith.truncf %541 : vector<15x32xf32> to vector<15x32xbf16>
    %cst_75 = arith.constant dense<0.000000e+00> : vector<15x256xf32>
    %543 = tpu.matmul %542, %35, %cst_75 {dimension_numbers = #tpu.dot_dimension_numbers<[1], [0], [0], [1], [0, 0, 1, 1], [], []>} : vector<15x32xbf16>, vector<32x256xbf16>, vector<15x256xf32> -> vector<15x256xf32>
    %544 = vector.extract_strided_slice %543 {offsets = [0, 0], sizes = [6, 64], strides = [1, 1]} : vector<15x256xf32> to vector<6x64xf32>
    %545 = arith.addf %540, %544 : vector<6x64xf32>
    %546 = vector.extract_strided_slice %543 {offsets = [8, 64], sizes = [6, 64], strides = [1, 1]} : vector<15x256xf32> to vector<6x64xf32>
    %547 = arith.addf %545, %546 : vector<6x64xf32>
    %548 = vector.extract_strided_slice %543 {offsets = [1, 128], sizes = [6, 64], strides = [1, 1]} : vector<15x256xf32> to vector<6x64xf32>
    %549 = arith.addf %547, %548 : vector<6x64xf32>
    %550 = vector.extract_strided_slice %543 {offsets = [9, 192], sizes = [6, 64], strides = [1, 1]} : vector<15x256xf32> to vector<6x64xf32>
    %551 = arith.addf %549, %550 : vector<6x64xf32>
    %552 = vector.broadcast %36 : vector<1x64xf32> to vector<6x64xf32>
    %553 = arith.addf %551, %552 : vector<6x64xf32>
    %cst_76 = arith.constant 0.000000e+00 : f32
    %554 = vector.broadcast %cst_76 : f32 to vector<6x64xf32>
    %555 = vector.extract_strided_slice %30 {offsets = [375, 0], sizes = [15, 32], strides = [1, 1]} : vector<450x32xf32> to vector<15x32xf32>
    %556 = arith.truncf %555 : vector<15x32xf32> to vector<15x32xbf16>
    %cst_77 = arith.constant dense<0.000000e+00> : vector<15x256xf32>
    %557 = tpu.matmul %556, %32, %cst_77 {dimension_numbers = #tpu.dot_dimension_numbers<[1], [0], [0], [1], [0, 0, 1, 1], [], []>} : vector<15x32xbf16>, vector<32x256xbf16>, vector<15x256xf32> -> vector<15x256xf32>
    %558 = vector.extract_strided_slice %557 {offsets = [0, 0], sizes = [6, 64], strides = [1, 1]} : vector<15x256xf32> to vector<6x64xf32>
    %559 = arith.addf %554, %558 : vector<6x64xf32>
    %560 = vector.extract_strided_slice %557 {offsets = [8, 64], sizes = [6, 64], strides = [1, 1]} : vector<15x256xf32> to vector<6x64xf32>
    %561 = arith.addf %559, %560 : vector<6x64xf32>
    %562 = vector.extract_strided_slice %557 {offsets = [1, 128], sizes = [6, 64], strides = [1, 1]} : vector<15x256xf32> to vector<6x64xf32>
    %563 = arith.addf %561, %562 : vector<6x64xf32>
    %564 = vector.extract_strided_slice %557 {offsets = [9, 192], sizes = [6, 64], strides = [1, 1]} : vector<15x256xf32> to vector<6x64xf32>
    %565 = arith.addf %563, %564 : vector<6x64xf32>
    %566 = vector.extract_strided_slice %30 {offsets = [390, 0], sizes = [15, 32], strides = [1, 1]} : vector<450x32xf32> to vector<15x32xf32>
    %567 = arith.truncf %566 : vector<15x32xf32> to vector<15x32xbf16>
    %cst_78 = arith.constant dense<0.000000e+00> : vector<15x256xf32>
    %568 = tpu.matmul %567, %33, %cst_78 {dimension_numbers = #tpu.dot_dimension_numbers<[1], [0], [0], [1], [0, 0, 1, 1], [], []>} : vector<15x32xbf16>, vector<32x256xbf16>, vector<15x256xf32> -> vector<15x256xf32>
    %569 = vector.extract_strided_slice %568 {offsets = [0, 0], sizes = [6, 64], strides = [1, 1]} : vector<15x256xf32> to vector<6x64xf32>
    %570 = arith.addf %565, %569 : vector<6x64xf32>
    %571 = vector.extract_strided_slice %568 {offsets = [8, 64], sizes = [6, 64], strides = [1, 1]} : vector<15x256xf32> to vector<6x64xf32>
    %572 = arith.addf %570, %571 : vector<6x64xf32>
    %573 = vector.extract_strided_slice %568 {offsets = [1, 128], sizes = [6, 64], strides = [1, 1]} : vector<15x256xf32> to vector<6x64xf32>
    %574 = arith.addf %572, %573 : vector<6x64xf32>
    %575 = vector.extract_strided_slice %568 {offsets = [9, 192], sizes = [6, 64], strides = [1, 1]} : vector<15x256xf32> to vector<6x64xf32>
    %576 = arith.addf %574, %575 : vector<6x64xf32>
    %577 = vector.extract_strided_slice %30 {offsets = [405, 0], sizes = [15, 32], strides = [1, 1]} : vector<450x32xf32> to vector<15x32xf32>
    %578 = arith.truncf %577 : vector<15x32xf32> to vector<15x32xbf16>
    %cst_79 = arith.constant dense<0.000000e+00> : vector<15x256xf32>
    %579 = tpu.matmul %578, %34, %cst_79 {dimension_numbers = #tpu.dot_dimension_numbers<[1], [0], [0], [1], [0, 0, 1, 1], [], []>} : vector<15x32xbf16>, vector<32x256xbf16>, vector<15x256xf32> -> vector<15x256xf32>
    %580 = vector.extract_strided_slice %579 {offsets = [0, 0], sizes = [6, 64], strides = [1, 1]} : vector<15x256xf32> to vector<6x64xf32>
    %581 = arith.addf %576, %580 : vector<6x64xf32>
    %582 = vector.extract_strided_slice %579 {offsets = [8, 64], sizes = [6, 64], strides = [1, 1]} : vector<15x256xf32> to vector<6x64xf32>
    %583 = arith.addf %581, %582 : vector<6x64xf32>
    %584 = vector.extract_strided_slice %579 {offsets = [1, 128], sizes = [6, 64], strides = [1, 1]} : vector<15x256xf32> to vector<6x64xf32>
    %585 = arith.addf %583, %584 : vector<6x64xf32>
    %586 = vector.extract_strided_slice %579 {offsets = [9, 192], sizes = [6, 64], strides = [1, 1]} : vector<15x256xf32> to vector<6x64xf32>
    %587 = arith.addf %585, %586 : vector<6x64xf32>
    %588 = vector.extract_strided_slice %30 {offsets = [420, 0], sizes = [15, 32], strides = [1, 1]} : vector<450x32xf32> to vector<15x32xf32>
    %589 = arith.truncf %588 : vector<15x32xf32> to vector<15x32xbf16>
    %cst_80 = arith.constant dense<0.000000e+00> : vector<15x256xf32>
    %590 = tpu.matmul %589, %35, %cst_80 {dimension_numbers = #tpu.dot_dimension_numbers<[1], [0], [0], [1], [0, 0, 1, 1], [], []>} : vector<15x32xbf16>, vector<32x256xbf16>, vector<15x256xf32> -> vector<15x256xf32>
    %591 = vector.extract_strided_slice %590 {offsets = [0, 0], sizes = [6, 64], strides = [1, 1]} : vector<15x256xf32> to vector<6x64xf32>
    %592 = arith.addf %587, %591 : vector<6x64xf32>
    %593 = vector.extract_strided_slice %590 {offsets = [8, 64], sizes = [6, 64], strides = [1, 1]} : vector<15x256xf32> to vector<6x64xf32>
    %594 = arith.addf %592, %593 : vector<6x64xf32>
    %595 = vector.extract_strided_slice %590 {offsets = [1, 128], sizes = [6, 64], strides = [1, 1]} : vector<15x256xf32> to vector<6x64xf32>
    %596 = arith.addf %594, %595 : vector<6x64xf32>
    %597 = vector.extract_strided_slice %590 {offsets = [9, 192], sizes = [6, 64], strides = [1, 1]} : vector<15x256xf32> to vector<6x64xf32>
    %598 = arith.addf %596, %597 : vector<6x64xf32>
    %599 = vector.broadcast %36 : vector<1x64xf32> to vector<6x64xf32>
    %600 = arith.addf %598, %599 : vector<6x64xf32>
    %c0_81 = arith.constant 0 : index
    %c0_82 = arith.constant 0 : index
    %601 = vector.load %arg7[%c0_81, %c0_82] : memref<1x64xf32, #tpu.memory_space<vmem>>, vector<1x64xf32>
    %c0_83 = arith.constant 0 : index
    %c0_84 = arith.constant 0 : index
    %602 = vector.load %arg8[%c0_83, %c0_84] : memref<1x64xf32, #tpu.memory_space<vmem>>, vector<1x64xf32>
    %cst_85 = arith.constant dense<0.000000e+00> : vector<64xf32>
    %603 = vector.multi_reduction <add>, %83, %cst_85 [0] : vector<6x64xf32> to vector<64xf32>
    %604 = vector.shape_cast %603 : vector<64xf32> to vector<1x64xf32>
    %cst_86 = arith.constant dense<0.000000e+00> : vector<64xf32>
    %605 = vector.multi_reduction <add>, %130, %cst_86 [0] : vector<6x64xf32> to vector<64xf32>
    %606 = vector.shape_cast %605 : vector<64xf32> to vector<1x64xf32>
    %607 = arith.addf %604, %606 : vector<1x64xf32>
    %cst_87 = arith.constant dense<0.000000e+00> : vector<64xf32>
    %608 = vector.multi_reduction <add>, %177, %cst_87 [0] : vector<6x64xf32> to vector<64xf32>
    %609 = vector.shape_cast %608 : vector<64xf32> to vector<1x64xf32>
    %610 = arith.addf %607, %609 : vector<1x64xf32>
    %cst_88 = arith.constant dense<0.000000e+00> : vector<64xf32>
    %611 = vector.multi_reduction <add>, %224, %cst_88 [0] : vector<6x64xf32> to vector<64xf32>
    %612 = vector.shape_cast %611 : vector<64xf32> to vector<1x64xf32>
    %613 = arith.addf %610, %612 : vector<1x64xf32>
    %cst_89 = arith.constant dense<0.000000e+00> : vector<64xf32>
    %614 = vector.multi_reduction <add>, %271, %cst_89 [0] : vector<6x64xf32> to vector<64xf32>
    %615 = vector.shape_cast %614 : vector<64xf32> to vector<1x64xf32>
    %616 = arith.addf %613, %615 : vector<1x64xf32>
    %cst_90 = arith.constant dense<0.000000e+00> : vector<64xf32>
    %617 = vector.multi_reduction <add>, %318, %cst_90 [0] : vector<6x64xf32> to vector<64xf32>
    %618 = vector.shape_cast %617 : vector<64xf32> to vector<1x64xf32>
    %619 = arith.addf %616, %618 : vector<1x64xf32>
    %cst_91 = arith.constant dense<0.000000e+00> : vector<64xf32>
    %620 = vector.multi_reduction <add>, %365, %cst_91 [0] : vector<6x64xf32> to vector<64xf32>
    %621 = vector.shape_cast %620 : vector<64xf32> to vector<1x64xf32>
    %622 = arith.addf %619, %621 : vector<1x64xf32>
    %cst_92 = arith.constant dense<0.000000e+00> : vector<64xf32>
    %623 = vector.multi_reduction <add>, %412, %cst_92 [0] : vector<6x64xf32> to vector<64xf32>
    %624 = vector.shape_cast %623 : vector<64xf32> to vector<1x64xf32>
    %625 = arith.addf %622, %624 : vector<1x64xf32>
    %cst_93 = arith.constant dense<0.000000e+00> : vector<64xf32>
    %626 = vector.multi_reduction <add>, %459, %cst_93 [0] : vector<6x64xf32> to vector<64xf32>
    %627 = vector.shape_cast %626 : vector<64xf32> to vector<1x64xf32>
    %628 = arith.addf %625, %627 : vector<1x64xf32>
    %cst_94 = arith.constant dense<0.000000e+00> : vector<64xf32>
    %629 = vector.multi_reduction <add>, %506, %cst_94 [0] : vector<6x64xf32> to vector<64xf32>
    %630 = vector.shape_cast %629 : vector<64xf32> to vector<1x64xf32>
    %631 = arith.addf %628, %630 : vector<1x64xf32>
    %cst_95 = arith.constant dense<0.000000e+00> : vector<64xf32>
    %632 = vector.multi_reduction <add>, %553, %cst_95 [0] : vector<6x64xf32> to vector<64xf32>
    %633 = vector.shape_cast %632 : vector<64xf32> to vector<1x64xf32>
    %634 = arith.addf %631, %633 : vector<1x64xf32>
    %cst_96 = arith.constant dense<0.000000e+00> : vector<64xf32>
    %635 = vector.multi_reduction <add>, %600, %cst_96 [0] : vector<6x64xf32> to vector<64xf32>
    %636 = vector.shape_cast %635 : vector<64xf32> to vector<1x64xf32>
    %637 = arith.addf %634, %636 : vector<1x64xf32>
    %cst_97 = arith.constant 0.013888889 : f32
    %638 = vector.broadcast %cst_97 : f32 to vector<1x64xf32>
    %639 = arith.mulf %637, %638 : vector<1x64xf32>
    %640 = vector.broadcast %639 : vector<1x64xf32> to vector<6x64xf32>
    %641 = arith.subf %83, %640 : vector<6x64xf32>
    %642 = arith.mulf %641, %641 : vector<6x64xf32>
    %cst_98 = arith.constant dense<0.000000e+00> : vector<64xf32>
    %643 = vector.multi_reduction <add>, %642, %cst_98 [0] : vector<6x64xf32> to vector<64xf32>
    %644 = vector.shape_cast %643 : vector<64xf32> to vector<1x64xf32>
    %645 = vector.broadcast %639 : vector<1x64xf32> to vector<6x64xf32>
    %646 = arith.subf %130, %645 : vector<6x64xf32>
    %647 = arith.mulf %646, %646 : vector<6x64xf32>
    %cst_99 = arith.constant dense<0.000000e+00> : vector<64xf32>
    %648 = vector.multi_reduction <add>, %647, %cst_99 [0] : vector<6x64xf32> to vector<64xf32>
    %649 = vector.shape_cast %648 : vector<64xf32> to vector<1x64xf32>
    %650 = arith.addf %644, %649 : vector<1x64xf32>
    %651 = vector.broadcast %639 : vector<1x64xf32> to vector<6x64xf32>
    %652 = arith.subf %177, %651 : vector<6x64xf32>
    %653 = arith.mulf %652, %652 : vector<6x64xf32>
    %cst_100 = arith.constant dense<0.000000e+00> : vector<64xf32>
    %654 = vector.multi_reduction <add>, %653, %cst_100 [0] : vector<6x64xf32> to vector<64xf32>
    %655 = vector.shape_cast %654 : vector<64xf32> to vector<1x64xf32>
    %656 = arith.addf %650, %655 : vector<1x64xf32>
    %657 = vector.broadcast %639 : vector<1x64xf32> to vector<6x64xf32>
    %658 = arith.subf %224, %657 : vector<6x64xf32>
    %659 = arith.mulf %658, %658 : vector<6x64xf32>
    %cst_101 = arith.constant dense<0.000000e+00> : vector<64xf32>
    %660 = vector.multi_reduction <add>, %659, %cst_101 [0] : vector<6x64xf32> to vector<64xf32>
    %661 = vector.shape_cast %660 : vector<64xf32> to vector<1x64xf32>
    %662 = arith.addf %656, %661 : vector<1x64xf32>
    %663 = vector.broadcast %639 : vector<1x64xf32> to vector<6x64xf32>
    %664 = arith.subf %271, %663 : vector<6x64xf32>
    %665 = arith.mulf %664, %664 : vector<6x64xf32>
    %cst_102 = arith.constant dense<0.000000e+00> : vector<64xf32>
    %666 = vector.multi_reduction <add>, %665, %cst_102 [0] : vector<6x64xf32> to vector<64xf32>
    %667 = vector.shape_cast %666 : vector<64xf32> to vector<1x64xf32>
    %668 = arith.addf %662, %667 : vector<1x64xf32>
    %669 = vector.broadcast %639 : vector<1x64xf32> to vector<6x64xf32>
    %670 = arith.subf %318, %669 : vector<6x64xf32>
    %671 = arith.mulf %670, %670 : vector<6x64xf32>
    %cst_103 = arith.constant dense<0.000000e+00> : vector<64xf32>
    %672 = vector.multi_reduction <add>, %671, %cst_103 [0] : vector<6x64xf32> to vector<64xf32>
    %673 = vector.shape_cast %672 : vector<64xf32> to vector<1x64xf32>
    %674 = arith.addf %668, %673 : vector<1x64xf32>
    %675 = vector.broadcast %639 : vector<1x64xf32> to vector<6x64xf32>
    %676 = arith.subf %365, %675 : vector<6x64xf32>
    %677 = arith.mulf %676, %676 : vector<6x64xf32>
    %cst_104 = arith.constant dense<0.000000e+00> : vector<64xf32>
    %678 = vector.multi_reduction <add>, %677, %cst_104 [0] : vector<6x64xf32> to vector<64xf32>
    %679 = vector.shape_cast %678 : vector<64xf32> to vector<1x64xf32>
    %680 = arith.addf %674, %679 : vector<1x64xf32>
    %681 = vector.broadcast %639 : vector<1x64xf32> to vector<6x64xf32>
    %682 = arith.subf %412, %681 : vector<6x64xf32>
    %683 = arith.mulf %682, %682 : vector<6x64xf32>
    %cst_105 = arith.constant dense<0.000000e+00> : vector<64xf32>
    %684 = vector.multi_reduction <add>, %683, %cst_105 [0] : vector<6x64xf32> to vector<64xf32>
    %685 = vector.shape_cast %684 : vector<64xf32> to vector<1x64xf32>
    %686 = arith.addf %680, %685 : vector<1x64xf32>
    %687 = vector.broadcast %639 : vector<1x64xf32> to vector<6x64xf32>
    %688 = arith.subf %459, %687 : vector<6x64xf32>
    %689 = arith.mulf %688, %688 : vector<6x64xf32>
    %cst_106 = arith.constant dense<0.000000e+00> : vector<64xf32>
    %690 = vector.multi_reduction <add>, %689, %cst_106 [0] : vector<6x64xf32> to vector<64xf32>
    %691 = vector.shape_cast %690 : vector<64xf32> to vector<1x64xf32>
    %692 = arith.addf %686, %691 : vector<1x64xf32>
    %693 = vector.broadcast %639 : vector<1x64xf32> to vector<6x64xf32>
    %694 = arith.subf %506, %693 : vector<6x64xf32>
    %695 = arith.mulf %694, %694 : vector<6x64xf32>
    %cst_107 = arith.constant dense<0.000000e+00> : vector<64xf32>
    %696 = vector.multi_reduction <add>, %695, %cst_107 [0] : vector<6x64xf32> to vector<64xf32>
    %697 = vector.shape_cast %696 : vector<64xf32> to vector<1x64xf32>
    %698 = arith.addf %692, %697 : vector<1x64xf32>
    %699 = vector.broadcast %639 : vector<1x64xf32> to vector<6x64xf32>
    %700 = arith.subf %553, %699 : vector<6x64xf32>
    %701 = arith.mulf %700, %700 : vector<6x64xf32>
    %cst_108 = arith.constant dense<0.000000e+00> : vector<64xf32>
    %702 = vector.multi_reduction <add>, %701, %cst_108 [0] : vector<6x64xf32> to vector<64xf32>
    %703 = vector.shape_cast %702 : vector<64xf32> to vector<1x64xf32>
    %704 = arith.addf %698, %703 : vector<1x64xf32>
    %705 = vector.broadcast %639 : vector<1x64xf32> to vector<6x64xf32>
    %706 = arith.subf %600, %705 : vector<6x64xf32>
    %707 = arith.mulf %706, %706 : vector<6x64xf32>
    %cst_109 = arith.constant dense<0.000000e+00> : vector<64xf32>
    %708 = vector.multi_reduction <add>, %707, %cst_109 [0] : vector<6x64xf32> to vector<64xf32>
    %709 = vector.shape_cast %708 : vector<64xf32> to vector<1x64xf32>
    %710 = arith.addf %704, %709 : vector<1x64xf32>
    %cst_110 = arith.constant 0.013888889 : f32
    %711 = vector.broadcast %cst_110 : f32 to vector<1x64xf32>
    %712 = arith.mulf %710, %711 : vector<1x64xf32>
    %cst_111 = arith.constant 9.99999974E-6 : f32
    %713 = vector.broadcast %cst_111 : f32 to vector<1x64xf32>
    %714 = arith.addf %712, %713 : vector<1x64xf32>
    %715 = math.rsqrt %714 : vector<1x64xf32>
    %716 = arith.mulf %715, %601 : vector<1x64xf32>
    %717 = vector.broadcast %639 : vector<1x64xf32> to vector<6x64xf32>
    %718 = arith.subf %83, %717 : vector<6x64xf32>
    %719 = vector.broadcast %716 : vector<1x64xf32> to vector<6x64xf32>
    %720 = arith.mulf %718, %719 : vector<6x64xf32>
    %721 = vector.broadcast %602 : vector<1x64xf32> to vector<6x64xf32>
    %722 = arith.addf %720, %721 : vector<6x64xf32>
    %cst_112 = arith.constant 0.000000e+00 : f32
    %723 = vector.broadcast %cst_112 : f32 to vector<6x64xf32>
    %724 = arith.cmpf ogt, %722, %723 : vector<6x64xf32>
    %cst_113 = arith.constant 0.00999999977 : f32
    %725 = vector.broadcast %cst_113 : f32 to vector<6x64xf32>
    %726 = arith.mulf %725, %722 : vector<6x64xf32>
    %727 = arith.select %724, %722, %726 : vector<6x64xi1>, vector<6x64xf32>
    %728 = vector.broadcast %639 : vector<1x64xf32> to vector<6x64xf32>
    %729 = arith.subf %130, %728 : vector<6x64xf32>
    %730 = vector.broadcast %716 : vector<1x64xf32> to vector<6x64xf32>
    %731 = arith.mulf %729, %730 : vector<6x64xf32>
    %732 = vector.broadcast %602 : vector<1x64xf32> to vector<6x64xf32>
    %733 = arith.addf %731, %732 : vector<6x64xf32>
    %cst_114 = arith.constant 0.000000e+00 : f32
    %734 = vector.broadcast %cst_114 : f32 to vector<6x64xf32>
    %735 = arith.cmpf ogt, %733, %734 : vector<6x64xf32>
    %cst_115 = arith.constant 0.00999999977 : f32
    %736 = vector.broadcast %cst_115 : f32 to vector<6x64xf32>
    %737 = arith.mulf %736, %733 : vector<6x64xf32>
    %738 = arith.select %735, %733, %737 : vector<6x64xi1>, vector<6x64xf32>
    %739 = vector.broadcast %639 : vector<1x64xf32> to vector<6x64xf32>
    %740 = arith.subf %177, %739 : vector<6x64xf32>
    %741 = vector.broadcast %716 : vector<1x64xf32> to vector<6x64xf32>
    %742 = arith.mulf %740, %741 : vector<6x64xf32>
    %743 = vector.broadcast %602 : vector<1x64xf32> to vector<6x64xf32>
    %744 = arith.addf %742, %743 : vector<6x64xf32>
    %cst_116 = arith.constant 0.000000e+00 : f32
    %745 = vector.broadcast %cst_116 : f32 to vector<6x64xf32>
    %746 = arith.cmpf ogt, %744, %745 : vector<6x64xf32>
    %cst_117 = arith.constant 0.00999999977 : f32
    %747 = vector.broadcast %cst_117 : f32 to vector<6x64xf32>
    %748 = arith.mulf %747, %744 : vector<6x64xf32>
    %749 = arith.select %746, %744, %748 : vector<6x64xi1>, vector<6x64xf32>
    %750 = vector.broadcast %639 : vector<1x64xf32> to vector<6x64xf32>
    %751 = arith.subf %224, %750 : vector<6x64xf32>
    %752 = vector.broadcast %716 : vector<1x64xf32> to vector<6x64xf32>
    %753 = arith.mulf %751, %752 : vector<6x64xf32>
    %754 = vector.broadcast %602 : vector<1x64xf32> to vector<6x64xf32>
    %755 = arith.addf %753, %754 : vector<6x64xf32>
    %cst_118 = arith.constant 0.000000e+00 : f32
    %756 = vector.broadcast %cst_118 : f32 to vector<6x64xf32>
    %757 = arith.cmpf ogt, %755, %756 : vector<6x64xf32>
    %cst_119 = arith.constant 0.00999999977 : f32
    %758 = vector.broadcast %cst_119 : f32 to vector<6x64xf32>
    %759 = arith.mulf %758, %755 : vector<6x64xf32>
    %760 = arith.select %757, %755, %759 : vector<6x64xi1>, vector<6x64xf32>
    %761 = vector.broadcast %639 : vector<1x64xf32> to vector<6x64xf32>
    %762 = arith.subf %271, %761 : vector<6x64xf32>
    %763 = vector.broadcast %716 : vector<1x64xf32> to vector<6x64xf32>
    %764 = arith.mulf %762, %763 : vector<6x64xf32>
    %765 = vector.broadcast %602 : vector<1x64xf32> to vector<6x64xf32>
    %766 = arith.addf %764, %765 : vector<6x64xf32>
    %cst_120 = arith.constant 0.000000e+00 : f32
    %767 = vector.broadcast %cst_120 : f32 to vector<6x64xf32>
    %768 = arith.cmpf ogt, %766, %767 : vector<6x64xf32>
    %cst_121 = arith.constant 0.00999999977 : f32
    %769 = vector.broadcast %cst_121 : f32 to vector<6x64xf32>
    %770 = arith.mulf %769, %766 : vector<6x64xf32>
    %771 = arith.select %768, %766, %770 : vector<6x64xi1>, vector<6x64xf32>
    %772 = vector.broadcast %639 : vector<1x64xf32> to vector<6x64xf32>
    %773 = arith.subf %318, %772 : vector<6x64xf32>
    %774 = vector.broadcast %716 : vector<1x64xf32> to vector<6x64xf32>
    %775 = arith.mulf %773, %774 : vector<6x64xf32>
    %776 = vector.broadcast %602 : vector<1x64xf32> to vector<6x64xf32>
    %777 = arith.addf %775, %776 : vector<6x64xf32>
    %cst_122 = arith.constant 0.000000e+00 : f32
    %778 = vector.broadcast %cst_122 : f32 to vector<6x64xf32>
    %779 = arith.cmpf ogt, %777, %778 : vector<6x64xf32>
    %cst_123 = arith.constant 0.00999999977 : f32
    %780 = vector.broadcast %cst_123 : f32 to vector<6x64xf32>
    %781 = arith.mulf %780, %777 : vector<6x64xf32>
    %782 = arith.select %779, %777, %781 : vector<6x64xi1>, vector<6x64xf32>
    %783 = vector.broadcast %639 : vector<1x64xf32> to vector<6x64xf32>
    %784 = arith.subf %365, %783 : vector<6x64xf32>
    %785 = vector.broadcast %716 : vector<1x64xf32> to vector<6x64xf32>
    %786 = arith.mulf %784, %785 : vector<6x64xf32>
    %787 = vector.broadcast %602 : vector<1x64xf32> to vector<6x64xf32>
    %788 = arith.addf %786, %787 : vector<6x64xf32>
    %cst_124 = arith.constant 0.000000e+00 : f32
    %789 = vector.broadcast %cst_124 : f32 to vector<6x64xf32>
    %790 = arith.cmpf ogt, %788, %789 : vector<6x64xf32>
    %cst_125 = arith.constant 0.00999999977 : f32
    %791 = vector.broadcast %cst_125 : f32 to vector<6x64xf32>
    %792 = arith.mulf %791, %788 : vector<6x64xf32>
    %793 = arith.select %790, %788, %792 : vector<6x64xi1>, vector<6x64xf32>
    %794 = vector.broadcast %639 : vector<1x64xf32> to vector<6x64xf32>
    %795 = arith.subf %412, %794 : vector<6x64xf32>
    %796 = vector.broadcast %716 : vector<1x64xf32> to vector<6x64xf32>
    %797 = arith.mulf %795, %796 : vector<6x64xf32>
    %798 = vector.broadcast %602 : vector<1x64xf32> to vector<6x64xf32>
    %799 = arith.addf %797, %798 : vector<6x64xf32>
    %cst_126 = arith.constant 0.000000e+00 : f32
    %800 = vector.broadcast %cst_126 : f32 to vector<6x64xf32>
    %801 = arith.cmpf ogt, %799, %800 : vector<6x64xf32>
    %cst_127 = arith.constant 0.00999999977 : f32
    %802 = vector.broadcast %cst_127 : f32 to vector<6x64xf32>
    %803 = arith.mulf %802, %799 : vector<6x64xf32>
    %804 = arith.select %801, %799, %803 : vector<6x64xi1>, vector<6x64xf32>
    %805 = vector.broadcast %639 : vector<1x64xf32> to vector<6x64xf32>
    %806 = arith.subf %459, %805 : vector<6x64xf32>
    %807 = vector.broadcast %716 : vector<1x64xf32> to vector<6x64xf32>
    %808 = arith.mulf %806, %807 : vector<6x64xf32>
    %809 = vector.broadcast %602 : vector<1x64xf32> to vector<6x64xf32>
    %810 = arith.addf %808, %809 : vector<6x64xf32>
    %cst_128 = arith.constant 0.000000e+00 : f32
    %811 = vector.broadcast %cst_128 : f32 to vector<6x64xf32>
    %812 = arith.cmpf ogt, %810, %811 : vector<6x64xf32>
    %cst_129 = arith.constant 0.00999999977 : f32
    %813 = vector.broadcast %cst_129 : f32 to vector<6x64xf32>
    %814 = arith.mulf %813, %810 : vector<6x64xf32>
    %815 = arith.select %812, %810, %814 : vector<6x64xi1>, vector<6x64xf32>
    %816 = vector.broadcast %639 : vector<1x64xf32> to vector<6x64xf32>
    %817 = arith.subf %506, %816 : vector<6x64xf32>
    %818 = vector.broadcast %716 : vector<1x64xf32> to vector<6x64xf32>
    %819 = arith.mulf %817, %818 : vector<6x64xf32>
    %820 = vector.broadcast %602 : vector<1x64xf32> to vector<6x64xf32>
    %821 = arith.addf %819, %820 : vector<6x64xf32>
    %cst_130 = arith.constant 0.000000e+00 : f32
    %822 = vector.broadcast %cst_130 : f32 to vector<6x64xf32>
    %823 = arith.cmpf ogt, %821, %822 : vector<6x64xf32>
    %cst_131 = arith.constant 0.00999999977 : f32
    %824 = vector.broadcast %cst_131 : f32 to vector<6x64xf32>
    %825 = arith.mulf %824, %821 : vector<6x64xf32>
    %826 = arith.select %823, %821, %825 : vector<6x64xi1>, vector<6x64xf32>
    %827 = vector.broadcast %639 : vector<1x64xf32> to vector<6x64xf32>
    %828 = arith.subf %553, %827 : vector<6x64xf32>
    %829 = vector.broadcast %716 : vector<1x64xf32> to vector<6x64xf32>
    %830 = arith.mulf %828, %829 : vector<6x64xf32>
    %831 = vector.broadcast %602 : vector<1x64xf32> to vector<6x64xf32>
    %832 = arith.addf %830, %831 : vector<6x64xf32>
    %cst_132 = arith.constant 0.000000e+00 : f32
    %833 = vector.broadcast %cst_132 : f32 to vector<6x64xf32>
    %834 = arith.cmpf ogt, %832, %833 : vector<6x64xf32>
    %cst_133 = arith.constant 0.00999999977 : f32
    %835 = vector.broadcast %cst_133 : f32 to vector<6x64xf32>
    %836 = arith.mulf %835, %832 : vector<6x64xf32>
    %837 = arith.select %834, %832, %836 : vector<6x64xi1>, vector<6x64xf32>
    %838 = vector.broadcast %639 : vector<1x64xf32> to vector<6x64xf32>
    %839 = arith.subf %600, %838 : vector<6x64xf32>
    %840 = vector.broadcast %716 : vector<1x64xf32> to vector<6x64xf32>
    %841 = arith.mulf %839, %840 : vector<6x64xf32>
    %842 = vector.broadcast %602 : vector<1x64xf32> to vector<6x64xf32>
    %843 = arith.addf %841, %842 : vector<6x64xf32>
    %cst_134 = arith.constant 0.000000e+00 : f32
    %844 = vector.broadcast %cst_134 : f32 to vector<6x64xf32>
    %845 = arith.cmpf ogt, %843, %844 : vector<6x64xf32>
    %cst_135 = arith.constant 0.00999999977 : f32
    %846 = vector.broadcast %cst_135 : f32 to vector<6x64xf32>
    %847 = arith.mulf %846, %843 : vector<6x64xf32>
    %848 = arith.select %845, %843, %847 : vector<6x64xi1>, vector<6x64xf32>
    %c0_136 = arith.constant 0 : index
    %c0_137 = arith.constant 0 : index
    %849 = vector.load %arg9[%c0_136, %c0_137] : memref<192x192xbf16, #tpu.memory_space<vmem>>, vector<192x192xbf16>
    %850 = vector.extract_strided_slice %849 {offsets = [0, 0], sizes = [64, 192], strides = [1, 1]} : vector<192x192xbf16> to vector<64x192xbf16>
    %851 = vector.extract_strided_slice %849 {offsets = [64, 0], sizes = [64, 192], strides = [1, 1]} : vector<192x192xbf16> to vector<64x192xbf16>
    %852 = vector.extract_strided_slice %849 {offsets = [128, 0], sizes = [64, 192], strides = [1, 1]} : vector<192x192xbf16> to vector<64x192xbf16>
    %c0_138 = arith.constant 0 : index
    %c0_139 = arith.constant 0 : index
    %853 = vector.load %arg10[%c0_138, %c0_139] : memref<1x64xf32, #tpu.memory_space<vmem>>, vector<1x64xf32>
    %cst_140 = arith.constant 0.000000e+00 : f32
    %854 = vector.broadcast %cst_140 : f32 to vector<4x64xf32>
    %855 = arith.truncf %727 : vector<6x64xf32> to vector<6x64xbf16>
    %cst_141 = arith.constant dense<0.000000e+00> : vector<6x192xf32>
    %856 = tpu.matmul %855, %850, %cst_141 {dimension_numbers = #tpu.dot_dimension_numbers<[1], [0], [0], [1], [0, 0, 1, 1], [], []>} : vector<6x64xbf16>, vector<64x192xbf16>, vector<6x192xf32> -> vector<6x192xf32>
    %857 = vector.extract_strided_slice %856 {offsets = [0, 0], sizes = [4, 64], strides = [1, 1]} : vector<6x192xf32> to vector<4x64xf32>
    %858 = arith.addf %854, %857 : vector<4x64xf32>
    %859 = vector.extract_strided_slice %856 {offsets = [1, 64], sizes = [4, 64], strides = [1, 1]} : vector<6x192xf32> to vector<4x64xf32>
    %860 = arith.addf %858, %859 : vector<4x64xf32>
    %861 = vector.extract_strided_slice %856 {offsets = [2, 128], sizes = [4, 64], strides = [1, 1]} : vector<6x192xf32> to vector<4x64xf32>
    %862 = arith.addf %860, %861 : vector<4x64xf32>
    %863 = arith.truncf %738 : vector<6x64xf32> to vector<6x64xbf16>
    %cst_142 = arith.constant dense<0.000000e+00> : vector<6x192xf32>
    %864 = tpu.matmul %863, %851, %cst_142 {dimension_numbers = #tpu.dot_dimension_numbers<[1], [0], [0], [1], [0, 0, 1, 1], [], []>} : vector<6x64xbf16>, vector<64x192xbf16>, vector<6x192xf32> -> vector<6x192xf32>
    %865 = vector.extract_strided_slice %864 {offsets = [0, 0], sizes = [4, 64], strides = [1, 1]} : vector<6x192xf32> to vector<4x64xf32>
    %866 = arith.addf %862, %865 : vector<4x64xf32>
    %867 = vector.extract_strided_slice %864 {offsets = [1, 64], sizes = [4, 64], strides = [1, 1]} : vector<6x192xf32> to vector<4x64xf32>
    %868 = arith.addf %866, %867 : vector<4x64xf32>
    %869 = vector.extract_strided_slice %864 {offsets = [2, 128], sizes = [4, 64], strides = [1, 1]} : vector<6x192xf32> to vector<4x64xf32>
    %870 = arith.addf %868, %869 : vector<4x64xf32>
    %871 = arith.truncf %749 : vector<6x64xf32> to vector<6x64xbf16>
    %cst_143 = arith.constant dense<0.000000e+00> : vector<6x192xf32>
    %872 = tpu.matmul %871, %852, %cst_143 {dimension_numbers = #tpu.dot_dimension_numbers<[1], [0], [0], [1], [0, 0, 1, 1], [], []>} : vector<6x64xbf16>, vector<64x192xbf16>, vector<6x192xf32> -> vector<6x192xf32>
    %873 = vector.extract_strided_slice %872 {offsets = [0, 0], sizes = [4, 64], strides = [1, 1]} : vector<6x192xf32> to vector<4x64xf32>
    %874 = arith.addf %870, %873 : vector<4x64xf32>
    %875 = vector.extract_strided_slice %872 {offsets = [1, 64], sizes = [4, 64], strides = [1, 1]} : vector<6x192xf32> to vector<4x64xf32>
    %876 = arith.addf %874, %875 : vector<4x64xf32>
    %877 = vector.extract_strided_slice %872 {offsets = [2, 128], sizes = [4, 64], strides = [1, 1]} : vector<6x192xf32> to vector<4x64xf32>
    %878 = arith.addf %876, %877 : vector<4x64xf32>
    %879 = vector.broadcast %853 : vector<1x64xf32> to vector<4x64xf32>
    %880 = arith.addf %878, %879 : vector<4x64xf32>
    %cst_144 = arith.constant 0.000000e+00 : f32
    %881 = vector.broadcast %cst_144 : f32 to vector<4x64xf32>
    %882 = arith.truncf %738 : vector<6x64xf32> to vector<6x64xbf16>
    %cst_145 = arith.constant dense<0.000000e+00> : vector<6x192xf32>
    %883 = tpu.matmul %882, %850, %cst_145 {dimension_numbers = #tpu.dot_dimension_numbers<[1], [0], [0], [1], [0, 0, 1, 1], [], []>} : vector<6x64xbf16>, vector<64x192xbf16>, vector<6x192xf32> -> vector<6x192xf32>
    %884 = vector.extract_strided_slice %883 {offsets = [0, 0], sizes = [4, 64], strides = [1, 1]} : vector<6x192xf32> to vector<4x64xf32>
    %885 = arith.addf %881, %884 : vector<4x64xf32>
    %886 = vector.extract_strided_slice %883 {offsets = [1, 64], sizes = [4, 64], strides = [1, 1]} : vector<6x192xf32> to vector<4x64xf32>
    %887 = arith.addf %885, %886 : vector<4x64xf32>
    %888 = vector.extract_strided_slice %883 {offsets = [2, 128], sizes = [4, 64], strides = [1, 1]} : vector<6x192xf32> to vector<4x64xf32>
    %889 = arith.addf %887, %888 : vector<4x64xf32>
    %890 = arith.truncf %749 : vector<6x64xf32> to vector<6x64xbf16>
    %cst_146 = arith.constant dense<0.000000e+00> : vector<6x192xf32>
    %891 = tpu.matmul %890, %851, %cst_146 {dimension_numbers = #tpu.dot_dimension_numbers<[1], [0], [0], [1], [0, 0, 1, 1], [], []>} : vector<6x64xbf16>, vector<64x192xbf16>, vector<6x192xf32> -> vector<6x192xf32>
    %892 = vector.extract_strided_slice %891 {offsets = [0, 0], sizes = [4, 64], strides = [1, 1]} : vector<6x192xf32> to vector<4x64xf32>
    %893 = arith.addf %889, %892 : vector<4x64xf32>
    %894 = vector.extract_strided_slice %891 {offsets = [1, 64], sizes = [4, 64], strides = [1, 1]} : vector<6x192xf32> to vector<4x64xf32>
    %895 = arith.addf %893, %894 : vector<4x64xf32>
    %896 = vector.extract_strided_slice %891 {offsets = [2, 128], sizes = [4, 64], strides = [1, 1]} : vector<6x192xf32> to vector<4x64xf32>
    %897 = arith.addf %895, %896 : vector<4x64xf32>
    %898 = arith.truncf %760 : vector<6x64xf32> to vector<6x64xbf16>
    %cst_147 = arith.constant dense<0.000000e+00> : vector<6x192xf32>
    %899 = tpu.matmul %898, %852, %cst_147 {dimension_numbers = #tpu.dot_dimension_numbers<[1], [0], [0], [1], [0, 0, 1, 1], [], []>} : vector<6x64xbf16>, vector<64x192xbf16>, vector<6x192xf32> -> vector<6x192xf32>
    %900 = vector.extract_strided_slice %899 {offsets = [0, 0], sizes = [4, 64], strides = [1, 1]} : vector<6x192xf32> to vector<4x64xf32>
    %901 = arith.addf %897, %900 : vector<4x64xf32>
    %902 = vector.extract_strided_slice %899 {offsets = [1, 64], sizes = [4, 64], strides = [1, 1]} : vector<6x192xf32> to vector<4x64xf32>
    %903 = arith.addf %901, %902 : vector<4x64xf32>
    %904 = vector.extract_strided_slice %899 {offsets = [2, 128], sizes = [4, 64], strides = [1, 1]} : vector<6x192xf32> to vector<4x64xf32>
    %905 = arith.addf %903, %904 : vector<4x64xf32>
    %906 = vector.broadcast %853 : vector<1x64xf32> to vector<4x64xf32>
    %907 = arith.addf %905, %906 : vector<4x64xf32>
    %cst_148 = arith.constant 0.000000e+00 : f32
    %908 = vector.broadcast %cst_148 : f32 to vector<4x64xf32>
    %909 = arith.truncf %749 : vector<6x64xf32> to vector<6x64xbf16>
    %cst_149 = arith.constant dense<0.000000e+00> : vector<6x192xf32>
    %910 = tpu.matmul %909, %850, %cst_149 {dimension_numbers = #tpu.dot_dimension_numbers<[1], [0], [0], [1], [0, 0, 1, 1], [], []>} : vector<6x64xbf16>, vector<64x192xbf16>, vector<6x192xf32> -> vector<6x192xf32>
    %911 = vector.extract_strided_slice %910 {offsets = [0, 0], sizes = [4, 64], strides = [1, 1]} : vector<6x192xf32> to vector<4x64xf32>
    %912 = arith.addf %908, %911 : vector<4x64xf32>
    %913 = vector.extract_strided_slice %910 {offsets = [1, 64], sizes = [4, 64], strides = [1, 1]} : vector<6x192xf32> to vector<4x64xf32>
    %914 = arith.addf %912, %913 : vector<4x64xf32>
    %915 = vector.extract_strided_slice %910 {offsets = [2, 128], sizes = [4, 64], strides = [1, 1]} : vector<6x192xf32> to vector<4x64xf32>
    %916 = arith.addf %914, %915 : vector<4x64xf32>
    %917 = arith.truncf %760 : vector<6x64xf32> to vector<6x64xbf16>
    %cst_150 = arith.constant dense<0.000000e+00> : vector<6x192xf32>
    %918 = tpu.matmul %917, %851, %cst_150 {dimension_numbers = #tpu.dot_dimension_numbers<[1], [0], [0], [1], [0, 0, 1, 1], [], []>} : vector<6x64xbf16>, vector<64x192xbf16>, vector<6x192xf32> -> vector<6x192xf32>
    %919 = vector.extract_strided_slice %918 {offsets = [0, 0], sizes = [4, 64], strides = [1, 1]} : vector<6x192xf32> to vector<4x64xf32>
    %920 = arith.addf %916, %919 : vector<4x64xf32>
    %921 = vector.extract_strided_slice %918 {offsets = [1, 64], sizes = [4, 64], strides = [1, 1]} : vector<6x192xf32> to vector<4x64xf32>
    %922 = arith.addf %920, %921 : vector<4x64xf32>
    %923 = vector.extract_strided_slice %918 {offsets = [2, 128], sizes = [4, 64], strides = [1, 1]} : vector<6x192xf32> to vector<4x64xf32>
    %924 = arith.addf %922, %923 : vector<4x64xf32>
    %925 = arith.truncf %771 : vector<6x64xf32> to vector<6x64xbf16>
    %cst_151 = arith.constant dense<0.000000e+00> : vector<6x192xf32>
    %926 = tpu.matmul %925, %852, %cst_151 {dimension_numbers = #tpu.dot_dimension_numbers<[1], [0], [0], [1], [0, 0, 1, 1], [], []>} : vector<6x64xbf16>, vector<64x192xbf16>, vector<6x192xf32> -> vector<6x192xf32>
    %927 = vector.extract_strided_slice %926 {offsets = [0, 0], sizes = [4, 64], strides = [1, 1]} : vector<6x192xf32> to vector<4x64xf32>
    %928 = arith.addf %924, %927 : vector<4x64xf32>
    %929 = vector.extract_strided_slice %926 {offsets = [1, 64], sizes = [4, 64], strides = [1, 1]} : vector<6x192xf32> to vector<4x64xf32>
    %930 = arith.addf %928, %929 : vector<4x64xf32>
    %931 = vector.extract_strided_slice %926 {offsets = [2, 128], sizes = [4, 64], strides = [1, 1]} : vector<6x192xf32> to vector<4x64xf32>
    %932 = arith.addf %930, %931 : vector<4x64xf32>
    %933 = vector.broadcast %853 : vector<1x64xf32> to vector<4x64xf32>
    %934 = arith.addf %932, %933 : vector<4x64xf32>
    %cst_152 = arith.constant 0.000000e+00 : f32
    %935 = vector.broadcast %cst_152 : f32 to vector<4x64xf32>
    %936 = arith.truncf %760 : vector<6x64xf32> to vector<6x64xbf16>
    %cst_153 = arith.constant dense<0.000000e+00> : vector<6x192xf32>
    %937 = tpu.matmul %936, %850, %cst_153 {dimension_numbers = #tpu.dot_dimension_numbers<[1], [0], [0], [1], [0, 0, 1, 1], [], []>} : vector<6x64xbf16>, vector<64x192xbf16>, vector<6x192xf32> -> vector<6x192xf32>
    %938 = vector.extract_strided_slice %937 {offsets = [0, 0], sizes = [4, 64], strides = [1, 1]} : vector<6x192xf32> to vector<4x64xf32>
    %939 = arith.addf %935, %938 : vector<4x64xf32>
    %940 = vector.extract_strided_slice %937 {offsets = [1, 64], sizes = [4, 64], strides = [1, 1]} : vector<6x192xf32> to vector<4x64xf32>
    %941 = arith.addf %939, %940 : vector<4x64xf32>
    %942 = vector.extract_strided_slice %937 {offsets = [2, 128], sizes = [4, 64], strides = [1, 1]} : vector<6x192xf32> to vector<4x64xf32>
    %943 = arith.addf %941, %942 : vector<4x64xf32>
    %944 = arith.truncf %771 : vector<6x64xf32> to vector<6x64xbf16>
    %cst_154 = arith.constant dense<0.000000e+00> : vector<6x192xf32>
    %945 = tpu.matmul %944, %851, %cst_154 {dimension_numbers = #tpu.dot_dimension_numbers<[1], [0], [0], [1], [0, 0, 1, 1], [], []>} : vector<6x64xbf16>, vector<64x192xbf16>, vector<6x192xf32> -> vector<6x192xf32>
    %946 = vector.extract_strided_slice %945 {offsets = [0, 0], sizes = [4, 64], strides = [1, 1]} : vector<6x192xf32> to vector<4x64xf32>
    %947 = arith.addf %943, %946 : vector<4x64xf32>
    %948 = vector.extract_strided_slice %945 {offsets = [1, 64], sizes = [4, 64], strides = [1, 1]} : vector<6x192xf32> to vector<4x64xf32>
    %949 = arith.addf %947, %948 : vector<4x64xf32>
    %950 = vector.extract_strided_slice %945 {offsets = [2, 128], sizes = [4, 64], strides = [1, 1]} : vector<6x192xf32> to vector<4x64xf32>
    %951 = arith.addf %949, %950 : vector<4x64xf32>
    %952 = arith.truncf %782 : vector<6x64xf32> to vector<6x64xbf16>
    %cst_155 = arith.constant dense<0.000000e+00> : vector<6x192xf32>
    %953 = tpu.matmul %952, %852, %cst_155 {dimension_numbers = #tpu.dot_dimension_numbers<[1], [0], [0], [1], [0, 0, 1, 1], [], []>} : vector<6x64xbf16>, vector<64x192xbf16>, vector<6x192xf32> -> vector<6x192xf32>
    %954 = vector.extract_strided_slice %953 {offsets = [0, 0], sizes = [4, 64], strides = [1, 1]} : vector<6x192xf32> to vector<4x64xf32>
    %955 = arith.addf %951, %954 : vector<4x64xf32>
    %956 = vector.extract_strided_slice %953 {offsets = [1, 64], sizes = [4, 64], strides = [1, 1]} : vector<6x192xf32> to vector<4x64xf32>
    %957 = arith.addf %955, %956 : vector<4x64xf32>
    %958 = vector.extract_strided_slice %953 {offsets = [2, 128], sizes = [4, 64], strides = [1, 1]} : vector<6x192xf32> to vector<4x64xf32>
    %959 = arith.addf %957, %958 : vector<4x64xf32>
    %960 = vector.broadcast %853 : vector<1x64xf32> to vector<4x64xf32>
    %961 = arith.addf %959, %960 : vector<4x64xf32>
    %cst_156 = arith.constant 0.000000e+00 : f32
    %962 = vector.broadcast %cst_156 : f32 to vector<4x64xf32>
    %963 = arith.truncf %793 : vector<6x64xf32> to vector<6x64xbf16>
    %cst_157 = arith.constant dense<0.000000e+00> : vector<6x192xf32>
    %964 = tpu.matmul %963, %850, %cst_157 {dimension_numbers = #tpu.dot_dimension_numbers<[1], [0], [0], [1], [0, 0, 1, 1], [], []>} : vector<6x64xbf16>, vector<64x192xbf16>, vector<6x192xf32> -> vector<6x192xf32>
    %965 = vector.extract_strided_slice %964 {offsets = [0, 0], sizes = [4, 64], strides = [1, 1]} : vector<6x192xf32> to vector<4x64xf32>
    %966 = arith.addf %962, %965 : vector<4x64xf32>
    %967 = vector.extract_strided_slice %964 {offsets = [1, 64], sizes = [4, 64], strides = [1, 1]} : vector<6x192xf32> to vector<4x64xf32>
    %968 = arith.addf %966, %967 : vector<4x64xf32>
    %969 = vector.extract_strided_slice %964 {offsets = [2, 128], sizes = [4, 64], strides = [1, 1]} : vector<6x192xf32> to vector<4x64xf32>
    %970 = arith.addf %968, %969 : vector<4x64xf32>
    %971 = arith.truncf %804 : vector<6x64xf32> to vector<6x64xbf16>
    %cst_158 = arith.constant dense<0.000000e+00> : vector<6x192xf32>
    %972 = tpu.matmul %971, %851, %cst_158 {dimension_numbers = #tpu.dot_dimension_numbers<[1], [0], [0], [1], [0, 0, 1, 1], [], []>} : vector<6x64xbf16>, vector<64x192xbf16>, vector<6x192xf32> -> vector<6x192xf32>
    %973 = vector.extract_strided_slice %972 {offsets = [0, 0], sizes = [4, 64], strides = [1, 1]} : vector<6x192xf32> to vector<4x64xf32>
    %974 = arith.addf %970, %973 : vector<4x64xf32>
    %975 = vector.extract_strided_slice %972 {offsets = [1, 64], sizes = [4, 64], strides = [1, 1]} : vector<6x192xf32> to vector<4x64xf32>
    %976 = arith.addf %974, %975 : vector<4x64xf32>
    %977 = vector.extract_strided_slice %972 {offsets = [2, 128], sizes = [4, 64], strides = [1, 1]} : vector<6x192xf32> to vector<4x64xf32>
    %978 = arith.addf %976, %977 : vector<4x64xf32>
    %979 = arith.truncf %815 : vector<6x64xf32> to vector<6x64xbf16>
    %cst_159 = arith.constant dense<0.000000e+00> : vector<6x192xf32>
    %980 = tpu.matmul %979, %852, %cst_159 {dimension_numbers = #tpu.dot_dimension_numbers<[1], [0], [0], [1], [0, 0, 1, 1], [], []>} : vector<6x64xbf16>, vector<64x192xbf16>, vector<6x192xf32> -> vector<6x192xf32>
    %981 = vector.extract_strided_slice %980 {offsets = [0, 0], sizes = [4, 64], strides = [1, 1]} : vector<6x192xf32> to vector<4x64xf32>
    %982 = arith.addf %978, %981 : vector<4x64xf32>
    %983 = vector.extract_strided_slice %980 {offsets = [1, 64], sizes = [4, 64], strides = [1, 1]} : vector<6x192xf32> to vector<4x64xf32>
    %984 = arith.addf %982, %983 : vector<4x64xf32>
    %985 = vector.extract_strided_slice %980 {offsets = [2, 128], sizes = [4, 64], strides = [1, 1]} : vector<6x192xf32> to vector<4x64xf32>
    %986 = arith.addf %984, %985 : vector<4x64xf32>
    %987 = vector.broadcast %853 : vector<1x64xf32> to vector<4x64xf32>
    %988 = arith.addf %986, %987 : vector<4x64xf32>
    %cst_160 = arith.constant 0.000000e+00 : f32
    %989 = vector.broadcast %cst_160 : f32 to vector<4x64xf32>
    %990 = arith.truncf %804 : vector<6x64xf32> to vector<6x64xbf16>
    %cst_161 = arith.constant dense<0.000000e+00> : vector<6x192xf32>
    %991 = tpu.matmul %990, %850, %cst_161 {dimension_numbers = #tpu.dot_dimension_numbers<[1], [0], [0], [1], [0, 0, 1, 1], [], []>} : vector<6x64xbf16>, vector<64x192xbf16>, vector<6x192xf32> -> vector<6x192xf32>
    %992 = vector.extract_strided_slice %991 {offsets = [0, 0], sizes = [4, 64], strides = [1, 1]} : vector<6x192xf32> to vector<4x64xf32>
    %993 = arith.addf %989, %992 : vector<4x64xf32>
    %994 = vector.extract_strided_slice %991 {offsets = [1, 64], sizes = [4, 64], strides = [1, 1]} : vector<6x192xf32> to vector<4x64xf32>
    %995 = arith.addf %993, %994 : vector<4x64xf32>
    %996 = vector.extract_strided_slice %991 {offsets = [2, 128], sizes = [4, 64], strides = [1, 1]} : vector<6x192xf32> to vector<4x64xf32>
    %997 = arith.addf %995, %996 : vector<4x64xf32>
    %998 = arith.truncf %815 : vector<6x64xf32> to vector<6x64xbf16>
    %cst_162 = arith.constant dense<0.000000e+00> : vector<6x192xf32>
    %999 = tpu.matmul %998, %851, %cst_162 {dimension_numbers = #tpu.dot_dimension_numbers<[1], [0], [0], [1], [0, 0, 1, 1], [], []>} : vector<6x64xbf16>, vector<64x192xbf16>, vector<6x192xf32> -> vector<6x192xf32>
    %1000 = vector.extract_strided_slice %999 {offsets = [0, 0], sizes = [4, 64], strides = [1, 1]} : vector<6x192xf32> to vector<4x64xf32>
    %1001 = arith.addf %997, %1000 : vector<4x64xf32>
    %1002 = vector.extract_strided_slice %999 {offsets = [1, 64], sizes = [4, 64], strides = [1, 1]} : vector<6x192xf32> to vector<4x64xf32>
    %1003 = arith.addf %1001, %1002 : vector<4x64xf32>
    %1004 = vector.extract_strided_slice %999 {offsets = [2, 128], sizes = [4, 64], strides = [1, 1]} : vector<6x192xf32> to vector<4x64xf32>
    %1005 = arith.addf %1003, %1004 : vector<4x64xf32>
    %1006 = arith.truncf %826 : vector<6x64xf32> to vector<6x64xbf16>
    %cst_163 = arith.constant dense<0.000000e+00> : vector<6x192xf32>
    %1007 = tpu.matmul %1006, %852, %cst_163 {dimension_numbers = #tpu.dot_dimension_numbers<[1], [0], [0], [1], [0, 0, 1, 1], [], []>} : vector<6x64xbf16>, vector<64x192xbf16>, vector<6x192xf32> -> vector<6x192xf32>
    %1008 = vector.extract_strided_slice %1007 {offsets = [0, 0], sizes = [4, 64], strides = [1, 1]} : vector<6x192xf32> to vector<4x64xf32>
    %1009 = arith.addf %1005, %1008 : vector<4x64xf32>
    %1010 = vector.extract_strided_slice %1007 {offsets = [1, 64], sizes = [4, 64], strides = [1, 1]} : vector<6x192xf32> to vector<4x64xf32>
    %1011 = arith.addf %1009, %1010 : vector<4x64xf32>
    %1012 = vector.extract_strided_slice %1007 {offsets = [2, 128], sizes = [4, 64], strides = [1, 1]} : vector<6x192xf32> to vector<4x64xf32>
    %1013 = arith.addf %1011, %1012 : vector<4x64xf32>
    %1014 = vector.broadcast %853 : vector<1x64xf32> to vector<4x64xf32>
    %1015 = arith.addf %1013, %1014 : vector<4x64xf32>
    %cst_164 = arith.constant 0.000000e+00 : f32
    %1016 = vector.broadcast %cst_164 : f32 to vector<4x64xf32>
    %1017 = arith.truncf %815 : vector<6x64xf32> to vector<6x64xbf16>
    %cst_165 = arith.constant dense<0.000000e+00> : vector<6x192xf32>
    %1018 = tpu.matmul %1017, %850, %cst_165 {dimension_numbers = #tpu.dot_dimension_numbers<[1], [0], [0], [1], [0, 0, 1, 1], [], []>} : vector<6x64xbf16>, vector<64x192xbf16>, vector<6x192xf32> -> vector<6x192xf32>
    %1019 = vector.extract_strided_slice %1018 {offsets = [0, 0], sizes = [4, 64], strides = [1, 1]} : vector<6x192xf32> to vector<4x64xf32>
    %1020 = arith.addf %1016, %1019 : vector<4x64xf32>
    %1021 = vector.extract_strided_slice %1018 {offsets = [1, 64], sizes = [4, 64], strides = [1, 1]} : vector<6x192xf32> to vector<4x64xf32>
    %1022 = arith.addf %1020, %1021 : vector<4x64xf32>
    %1023 = vector.extract_strided_slice %1018 {offsets = [2, 128], sizes = [4, 64], strides = [1, 1]} : vector<6x192xf32> to vector<4x64xf32>
    %1024 = arith.addf %1022, %1023 : vector<4x64xf32>
    %1025 = arith.truncf %826 : vector<6x64xf32> to vector<6x64xbf16>
    %cst_166 = arith.constant dense<0.000000e+00> : vector<6x192xf32>
    %1026 = tpu.matmul %1025, %851, %cst_166 {dimension_numbers = #tpu.dot_dimension_numbers<[1], [0], [0], [1], [0, 0, 1, 1], [], []>} : vector<6x64xbf16>, vector<64x192xbf16>, vector<6x192xf32> -> vector<6x192xf32>
    %1027 = vector.extract_strided_slice %1026 {offsets = [0, 0], sizes = [4, 64], strides = [1, 1]} : vector<6x192xf32> to vector<4x64xf32>
    %1028 = arith.addf %1024, %1027 : vector<4x64xf32>
    %1029 = vector.extract_strided_slice %1026 {offsets = [1, 64], sizes = [4, 64], strides = [1, 1]} : vector<6x192xf32> to vector<4x64xf32>
    %1030 = arith.addf %1028, %1029 : vector<4x64xf32>
    %1031 = vector.extract_strided_slice %1026 {offsets = [2, 128], sizes = [4, 64], strides = [1, 1]} : vector<6x192xf32> to vector<4x64xf32>
    %1032 = arith.addf %1030, %1031 : vector<4x64xf32>
    %1033 = arith.truncf %837 : vector<6x64xf32> to vector<6x64xbf16>
    %cst_167 = arith.constant dense<0.000000e+00> : vector<6x192xf32>
    %1034 = tpu.matmul %1033, %852, %cst_167 {dimension_numbers = #tpu.dot_dimension_numbers<[1], [0], [0], [1], [0, 0, 1, 1], [], []>} : vector<6x64xbf16>, vector<64x192xbf16>, vector<6x192xf32> -> vector<6x192xf32>
    %1035 = vector.extract_strided_slice %1034 {offsets = [0, 0], sizes = [4, 64], strides = [1, 1]} : vector<6x192xf32> to vector<4x64xf32>
    %1036 = arith.addf %1032, %1035 : vector<4x64xf32>
    %1037 = vector.extract_strided_slice %1034 {offsets = [1, 64], sizes = [4, 64], strides = [1, 1]} : vector<6x192xf32> to vector<4x64xf32>
    %1038 = arith.addf %1036, %1037 : vector<4x64xf32>
    %1039 = vector.extract_strided_slice %1034 {offsets = [2, 128], sizes = [4, 64], strides = [1, 1]} : vector<6x192xf32> to vector<4x64xf32>
    %1040 = arith.addf %1038, %1039 : vector<4x64xf32>
    %1041 = vector.broadcast %853 : vector<1x64xf32> to vector<4x64xf32>
    %1042 = arith.addf %1040, %1041 : vector<4x64xf32>
    %cst_168 = arith.constant 0.000000e+00 : f32
    %1043 = vector.broadcast %cst_168 : f32 to vector<4x64xf32>
    %1044 = arith.truncf %826 : vector<6x64xf32> to vector<6x64xbf16>
    %cst_169 = arith.constant dense<0.000000e+00> : vector<6x192xf32>
    %1045 = tpu.matmul %1044, %850, %cst_169 {dimension_numbers = #tpu.dot_dimension_numbers<[1], [0], [0], [1], [0, 0, 1, 1], [], []>} : vector<6x64xbf16>, vector<64x192xbf16>, vector<6x192xf32> -> vector<6x192xf32>
    %1046 = vector.extract_strided_slice %1045 {offsets = [0, 0], sizes = [4, 64], strides = [1, 1]} : vector<6x192xf32> to vector<4x64xf32>
    %1047 = arith.addf %1043, %1046 : vector<4x64xf32>
    %1048 = vector.extract_strided_slice %1045 {offsets = [1, 64], sizes = [4, 64], strides = [1, 1]} : vector<6x192xf32> to vector<4x64xf32>
    %1049 = arith.addf %1047, %1048 : vector<4x64xf32>
    %1050 = vector.extract_strided_slice %1045 {offsets = [2, 128], sizes = [4, 64], strides = [1, 1]} : vector<6x192xf32> to vector<4x64xf32>
    %1051 = arith.addf %1049, %1050 : vector<4x64xf32>
    %1052 = arith.truncf %837 : vector<6x64xf32> to vector<6x64xbf16>
    %cst_170 = arith.constant dense<0.000000e+00> : vector<6x192xf32>
    %1053 = tpu.matmul %1052, %851, %cst_170 {dimension_numbers = #tpu.dot_dimension_numbers<[1], [0], [0], [1], [0, 0, 1, 1], [], []>} : vector<6x64xbf16>, vector<64x192xbf16>, vector<6x192xf32> -> vector<6x192xf32>
    %1054 = vector.extract_strided_slice %1053 {offsets = [0, 0], sizes = [4, 64], strides = [1, 1]} : vector<6x192xf32> to vector<4x64xf32>
    %1055 = arith.addf %1051, %1054 : vector<4x64xf32>
    %1056 = vector.extract_strided_slice %1053 {offsets = [1, 64], sizes = [4, 64], strides = [1, 1]} : vector<6x192xf32> to vector<4x64xf32>
    %1057 = arith.addf %1055, %1056 : vector<4x64xf32>
    %1058 = vector.extract_strided_slice %1053 {offsets = [2, 128], sizes = [4, 64], strides = [1, 1]} : vector<6x192xf32> to vector<4x64xf32>
    %1059 = arith.addf %1057, %1058 : vector<4x64xf32>
    %1060 = arith.truncf %848 : vector<6x64xf32> to vector<6x64xbf16>
    %cst_171 = arith.constant dense<0.000000e+00> : vector<6x192xf32>
    %1061 = tpu.matmul %1060, %852, %cst_171 {dimension_numbers = #tpu.dot_dimension_numbers<[1], [0], [0], [1], [0, 0, 1, 1], [], []>} : vector<6x64xbf16>, vector<64x192xbf16>, vector<6x192xf32> -> vector<6x192xf32>
    %1062 = vector.extract_strided_slice %1061 {offsets = [0, 0], sizes = [4, 64], strides = [1, 1]} : vector<6x192xf32> to vector<4x64xf32>
    %1063 = arith.addf %1059, %1062 : vector<4x64xf32>
    %1064 = vector.extract_strided_slice %1061 {offsets = [1, 64], sizes = [4, 64], strides = [1, 1]} : vector<6x192xf32> to vector<4x64xf32>
    %1065 = arith.addf %1063, %1064 : vector<4x64xf32>
    %1066 = vector.extract_strided_slice %1061 {offsets = [2, 128], sizes = [4, 64], strides = [1, 1]} : vector<6x192xf32> to vector<4x64xf32>
    %1067 = arith.addf %1065, %1066 : vector<4x64xf32>
    %1068 = vector.broadcast %853 : vector<1x64xf32> to vector<4x64xf32>
    %1069 = arith.addf %1067, %1068 : vector<4x64xf32>
    %c0_172 = arith.constant 0 : index
    %c0_173 = arith.constant 0 : index
    %1070 = vector.load %arg11[%c0_172, %c0_173] : memref<1x64xf32, #tpu.memory_space<vmem>>, vector<1x64xf32>
    %c0_174 = arith.constant 0 : index
    %c0_175 = arith.constant 0 : index
    %1071 = vector.load %arg12[%c0_174, %c0_175] : memref<1x64xf32, #tpu.memory_space<vmem>>, vector<1x64xf32>
    %cst_176 = arith.constant dense<0.000000e+00> : vector<64xf32>
    %1072 = vector.multi_reduction <add>, %880, %cst_176 [0] : vector<4x64xf32> to vector<64xf32>
    %1073 = vector.shape_cast %1072 : vector<64xf32> to vector<1x64xf32>
    %cst_177 = arith.constant dense<0.000000e+00> : vector<64xf32>
    %1074 = vector.multi_reduction <add>, %907, %cst_177 [0] : vector<4x64xf32> to vector<64xf32>
    %1075 = vector.shape_cast %1074 : vector<64xf32> to vector<1x64xf32>
    %1076 = arith.addf %1073, %1075 : vector<1x64xf32>
    %cst_178 = arith.constant dense<0.000000e+00> : vector<64xf32>
    %1077 = vector.multi_reduction <add>, %934, %cst_178 [0] : vector<4x64xf32> to vector<64xf32>
    %1078 = vector.shape_cast %1077 : vector<64xf32> to vector<1x64xf32>
    %1079 = arith.addf %1076, %1078 : vector<1x64xf32>
    %cst_179 = arith.constant dense<0.000000e+00> : vector<64xf32>
    %1080 = vector.multi_reduction <add>, %961, %cst_179 [0] : vector<4x64xf32> to vector<64xf32>
    %1081 = vector.shape_cast %1080 : vector<64xf32> to vector<1x64xf32>
    %1082 = arith.addf %1079, %1081 : vector<1x64xf32>
    %cst_180 = arith.constant dense<0.000000e+00> : vector<64xf32>
    %1083 = vector.multi_reduction <add>, %988, %cst_180 [0] : vector<4x64xf32> to vector<64xf32>
    %1084 = vector.shape_cast %1083 : vector<64xf32> to vector<1x64xf32>
    %1085 = arith.addf %1082, %1084 : vector<1x64xf32>
    %cst_181 = arith.constant dense<0.000000e+00> : vector<64xf32>
    %1086 = vector.multi_reduction <add>, %1015, %cst_181 [0] : vector<4x64xf32> to vector<64xf32>
    %1087 = vector.shape_cast %1086 : vector<64xf32> to vector<1x64xf32>
    %1088 = arith.addf %1085, %1087 : vector<1x64xf32>
    %cst_182 = arith.constant dense<0.000000e+00> : vector<64xf32>
    %1089 = vector.multi_reduction <add>, %1042, %cst_182 [0] : vector<4x64xf32> to vector<64xf32>
    %1090 = vector.shape_cast %1089 : vector<64xf32> to vector<1x64xf32>
    %1091 = arith.addf %1088, %1090 : vector<1x64xf32>
    %cst_183 = arith.constant dense<0.000000e+00> : vector<64xf32>
    %1092 = vector.multi_reduction <add>, %1069, %cst_183 [0] : vector<4x64xf32> to vector<64xf32>
    %1093 = vector.shape_cast %1092 : vector<64xf32> to vector<1x64xf32>
    %1094 = arith.addf %1091, %1093 : vector<1x64xf32>
    %cst_184 = arith.constant 3.125000e-02 : f32
    %1095 = vector.broadcast %cst_184 : f32 to vector<1x64xf32>
    %1096 = arith.mulf %1094, %1095 : vector<1x64xf32>
    %1097 = vector.broadcast %1096 : vector<1x64xf32> to vector<4x64xf32>
    %1098 = arith.subf %880, %1097 : vector<4x64xf32>
    %1099 = arith.mulf %1098, %1098 : vector<4x64xf32>
    %cst_185 = arith.constant dense<0.000000e+00> : vector<64xf32>
    %1100 = vector.multi_reduction <add>, %1099, %cst_185 [0] : vector<4x64xf32> to vector<64xf32>
    %1101 = vector.shape_cast %1100 : vector<64xf32> to vector<1x64xf32>
    %1102 = vector.broadcast %1096 : vector<1x64xf32> to vector<4x64xf32>
    %1103 = arith.subf %907, %1102 : vector<4x64xf32>
    %1104 = arith.mulf %1103, %1103 : vector<4x64xf32>
    %cst_186 = arith.constant dense<0.000000e+00> : vector<64xf32>
    %1105 = vector.multi_reduction <add>, %1104, %cst_186 [0] : vector<4x64xf32> to vector<64xf32>
    %1106 = vector.shape_cast %1105 : vector<64xf32> to vector<1x64xf32>
    %1107 = arith.addf %1101, %1106 : vector<1x64xf32>
    %1108 = vector.broadcast %1096 : vector<1x64xf32> to vector<4x64xf32>
    %1109 = arith.subf %934, %1108 : vector<4x64xf32>
    %1110 = arith.mulf %1109, %1109 : vector<4x64xf32>
    %cst_187 = arith.constant dense<0.000000e+00> : vector<64xf32>
    %1111 = vector.multi_reduction <add>, %1110, %cst_187 [0] : vector<4x64xf32> to vector<64xf32>
    %1112 = vector.shape_cast %1111 : vector<64xf32> to vector<1x64xf32>
    %1113 = arith.addf %1107, %1112 : vector<1x64xf32>
    %1114 = vector.broadcast %1096 : vector<1x64xf32> to vector<4x64xf32>
    %1115 = arith.subf %961, %1114 : vector<4x64xf32>
    %1116 = arith.mulf %1115, %1115 : vector<4x64xf32>
    %cst_188 = arith.constant dense<0.000000e+00> : vector<64xf32>
    %1117 = vector.multi_reduction <add>, %1116, %cst_188 [0] : vector<4x64xf32> to vector<64xf32>
    %1118 = vector.shape_cast %1117 : vector<64xf32> to vector<1x64xf32>
    %1119 = arith.addf %1113, %1118 : vector<1x64xf32>
    %1120 = vector.broadcast %1096 : vector<1x64xf32> to vector<4x64xf32>
    %1121 = arith.subf %988, %1120 : vector<4x64xf32>
    %1122 = arith.mulf %1121, %1121 : vector<4x64xf32>
    %cst_189 = arith.constant dense<0.000000e+00> : vector<64xf32>
    %1123 = vector.multi_reduction <add>, %1122, %cst_189 [0] : vector<4x64xf32> to vector<64xf32>
    %1124 = vector.shape_cast %1123 : vector<64xf32> to vector<1x64xf32>
    %1125 = arith.addf %1119, %1124 : vector<1x64xf32>
    %1126 = vector.broadcast %1096 : vector<1x64xf32> to vector<4x64xf32>
    %1127 = arith.subf %1015, %1126 : vector<4x64xf32>
    %1128 = arith.mulf %1127, %1127 : vector<4x64xf32>
    %cst_190 = arith.constant dense<0.000000e+00> : vector<64xf32>
    %1129 = vector.multi_reduction <add>, %1128, %cst_190 [0] : vector<4x64xf32> to vector<64xf32>
    %1130 = vector.shape_cast %1129 : vector<64xf32> to vector<1x64xf32>
    %1131 = arith.addf %1125, %1130 : vector<1x64xf32>
    %1132 = vector.broadcast %1096 : vector<1x64xf32> to vector<4x64xf32>
    %1133 = arith.subf %1042, %1132 : vector<4x64xf32>
    %1134 = arith.mulf %1133, %1133 : vector<4x64xf32>
    %cst_191 = arith.constant dense<0.000000e+00> : vector<64xf32>
    %1135 = vector.multi_reduction <add>, %1134, %cst_191 [0] : vector<4x64xf32> to vector<64xf32>
    %1136 = vector.shape_cast %1135 : vector<64xf32> to vector<1x64xf32>
    %1137 = arith.addf %1131, %1136 : vector<1x64xf32>
    %1138 = vector.broadcast %1096 : vector<1x64xf32> to vector<4x64xf32>
    %1139 = arith.subf %1069, %1138 : vector<4x64xf32>
    %1140 = arith.mulf %1139, %1139 : vector<4x64xf32>
    %cst_192 = arith.constant dense<0.000000e+00> : vector<64xf32>
    %1141 = vector.multi_reduction <add>, %1140, %cst_192 [0] : vector<4x64xf32> to vector<64xf32>
    %1142 = vector.shape_cast %1141 : vector<64xf32> to vector<1x64xf32>
    %1143 = arith.addf %1137, %1142 : vector<1x64xf32>
    %cst_193 = arith.constant 3.125000e-02 : f32
    %1144 = vector.broadcast %cst_193 : f32 to vector<1x64xf32>
    %1145 = arith.mulf %1143, %1144 : vector<1x64xf32>
    %cst_194 = arith.constant 9.99999974E-6 : f32
    %1146 = vector.broadcast %cst_194 : f32 to vector<1x64xf32>
    %1147 = arith.addf %1145, %1146 : vector<1x64xf32>
    %1148 = math.rsqrt %1147 : vector<1x64xf32>
    %1149 = arith.mulf %1148, %1070 : vector<1x64xf32>
    %1150 = vector.broadcast %1096 : vector<1x64xf32> to vector<4x64xf32>
    %1151 = arith.subf %880, %1150 : vector<4x64xf32>
    %1152 = vector.broadcast %1149 : vector<1x64xf32> to vector<4x64xf32>
    %1153 = arith.mulf %1151, %1152 : vector<4x64xf32>
    %1154 = vector.broadcast %1071 : vector<1x64xf32> to vector<4x64xf32>
    %1155 = arith.addf %1153, %1154 : vector<4x64xf32>
    %cst_195 = arith.constant 0.000000e+00 : f32
    %1156 = vector.broadcast %cst_195 : f32 to vector<4x64xf32>
    %1157 = arith.cmpf ogt, %1155, %1156 : vector<4x64xf32>
    %cst_196 = arith.constant 0.00999999977 : f32
    %1158 = vector.broadcast %cst_196 : f32 to vector<4x64xf32>
    %1159 = arith.mulf %1158, %1155 : vector<4x64xf32>
    %1160 = arith.select %1157, %1155, %1159 : vector<4x64xi1>, vector<4x64xf32>
    %1161 = vector.broadcast %1096 : vector<1x64xf32> to vector<4x64xf32>
    %1162 = arith.subf %907, %1161 : vector<4x64xf32>
    %1163 = vector.broadcast %1149 : vector<1x64xf32> to vector<4x64xf32>
    %1164 = arith.mulf %1162, %1163 : vector<4x64xf32>
    %1165 = vector.broadcast %1071 : vector<1x64xf32> to vector<4x64xf32>
    %1166 = arith.addf %1164, %1165 : vector<4x64xf32>
    %cst_197 = arith.constant 0.000000e+00 : f32
    %1167 = vector.broadcast %cst_197 : f32 to vector<4x64xf32>
    %1168 = arith.cmpf ogt, %1166, %1167 : vector<4x64xf32>
    %cst_198 = arith.constant 0.00999999977 : f32
    %1169 = vector.broadcast %cst_198 : f32 to vector<4x64xf32>
    %1170 = arith.mulf %1169, %1166 : vector<4x64xf32>
    %1171 = arith.select %1168, %1166, %1170 : vector<4x64xi1>, vector<4x64xf32>
    %1172 = vector.broadcast %1096 : vector<1x64xf32> to vector<4x64xf32>
    %1173 = arith.subf %934, %1172 : vector<4x64xf32>
    %1174 = vector.broadcast %1149 : vector<1x64xf32> to vector<4x64xf32>
    %1175 = arith.mulf %1173, %1174 : vector<4x64xf32>
    %1176 = vector.broadcast %1071 : vector<1x64xf32> to vector<4x64xf32>
    %1177 = arith.addf %1175, %1176 : vector<4x64xf32>
    %cst_199 = arith.constant 0.000000e+00 : f32
    %1178 = vector.broadcast %cst_199 : f32 to vector<4x64xf32>
    %1179 = arith.cmpf ogt, %1177, %1178 : vector<4x64xf32>
    %cst_200 = arith.constant 0.00999999977 : f32
    %1180 = vector.broadcast %cst_200 : f32 to vector<4x64xf32>
    %1181 = arith.mulf %1180, %1177 : vector<4x64xf32>
    %1182 = arith.select %1179, %1177, %1181 : vector<4x64xi1>, vector<4x64xf32>
    %1183 = vector.broadcast %1096 : vector<1x64xf32> to vector<4x64xf32>
    %1184 = arith.subf %961, %1183 : vector<4x64xf32>
    %1185 = vector.broadcast %1149 : vector<1x64xf32> to vector<4x64xf32>
    %1186 = arith.mulf %1184, %1185 : vector<4x64xf32>
    %1187 = vector.broadcast %1071 : vector<1x64xf32> to vector<4x64xf32>
    %1188 = arith.addf %1186, %1187 : vector<4x64xf32>
    %cst_201 = arith.constant 0.000000e+00 : f32
    %1189 = vector.broadcast %cst_201 : f32 to vector<4x64xf32>
    %1190 = arith.cmpf ogt, %1188, %1189 : vector<4x64xf32>
    %cst_202 = arith.constant 0.00999999977 : f32
    %1191 = vector.broadcast %cst_202 : f32 to vector<4x64xf32>
    %1192 = arith.mulf %1191, %1188 : vector<4x64xf32>
    %1193 = arith.select %1190, %1188, %1192 : vector<4x64xi1>, vector<4x64xf32>
    %1194 = vector.broadcast %1096 : vector<1x64xf32> to vector<4x64xf32>
    %1195 = arith.subf %988, %1194 : vector<4x64xf32>
    %1196 = vector.broadcast %1149 : vector<1x64xf32> to vector<4x64xf32>
    %1197 = arith.mulf %1195, %1196 : vector<4x64xf32>
    %1198 = vector.broadcast %1071 : vector<1x64xf32> to vector<4x64xf32>
    %1199 = arith.addf %1197, %1198 : vector<4x64xf32>
    %cst_203 = arith.constant 0.000000e+00 : f32
    %1200 = vector.broadcast %cst_203 : f32 to vector<4x64xf32>
    %1201 = arith.cmpf ogt, %1199, %1200 : vector<4x64xf32>
    %cst_204 = arith.constant 0.00999999977 : f32
    %1202 = vector.broadcast %cst_204 : f32 to vector<4x64xf32>
    %1203 = arith.mulf %1202, %1199 : vector<4x64xf32>
    %1204 = arith.select %1201, %1199, %1203 : vector<4x64xi1>, vector<4x64xf32>
    %1205 = vector.broadcast %1096 : vector<1x64xf32> to vector<4x64xf32>
    %1206 = arith.subf %1015, %1205 : vector<4x64xf32>
    %1207 = vector.broadcast %1149 : vector<1x64xf32> to vector<4x64xf32>
    %1208 = arith.mulf %1206, %1207 : vector<4x64xf32>
    %1209 = vector.broadcast %1071 : vector<1x64xf32> to vector<4x64xf32>
    %1210 = arith.addf %1208, %1209 : vector<4x64xf32>
    %cst_205 = arith.constant 0.000000e+00 : f32
    %1211 = vector.broadcast %cst_205 : f32 to vector<4x64xf32>
    %1212 = arith.cmpf ogt, %1210, %1211 : vector<4x64xf32>
    %cst_206 = arith.constant 0.00999999977 : f32
    %1213 = vector.broadcast %cst_206 : f32 to vector<4x64xf32>
    %1214 = arith.mulf %1213, %1210 : vector<4x64xf32>
    %1215 = arith.select %1212, %1210, %1214 : vector<4x64xi1>, vector<4x64xf32>
    %1216 = vector.broadcast %1096 : vector<1x64xf32> to vector<4x64xf32>
    %1217 = arith.subf %1042, %1216 : vector<4x64xf32>
    %1218 = vector.broadcast %1149 : vector<1x64xf32> to vector<4x64xf32>
    %1219 = arith.mulf %1217, %1218 : vector<4x64xf32>
    %1220 = vector.broadcast %1071 : vector<1x64xf32> to vector<4x64xf32>
    %1221 = arith.addf %1219, %1220 : vector<4x64xf32>
    %cst_207 = arith.constant 0.000000e+00 : f32
    %1222 = vector.broadcast %cst_207 : f32 to vector<4x64xf32>
    %1223 = arith.cmpf ogt, %1221, %1222 : vector<4x64xf32>
    %cst_208 = arith.constant 0.00999999977 : f32
    %1224 = vector.broadcast %cst_208 : f32 to vector<4x64xf32>
    %1225 = arith.mulf %1224, %1221 : vector<4x64xf32>
    %1226 = arith.select %1223, %1221, %1225 : vector<4x64xi1>, vector<4x64xf32>
    %1227 = vector.broadcast %1096 : vector<1x64xf32> to vector<4x64xf32>
    %1228 = arith.subf %1069, %1227 : vector<4x64xf32>
    %1229 = vector.broadcast %1149 : vector<1x64xf32> to vector<4x64xf32>
    %1230 = arith.mulf %1228, %1229 : vector<4x64xf32>
    %1231 = vector.broadcast %1071 : vector<1x64xf32> to vector<4x64xf32>
    %1232 = arith.addf %1230, %1231 : vector<4x64xf32>
    %cst_209 = arith.constant 0.000000e+00 : f32
    %1233 = vector.broadcast %cst_209 : f32 to vector<4x64xf32>
    %1234 = arith.cmpf ogt, %1232, %1233 : vector<4x64xf32>
    %cst_210 = arith.constant 0.00999999977 : f32
    %1235 = vector.broadcast %cst_210 : f32 to vector<4x64xf32>
    %1236 = arith.mulf %1235, %1232 : vector<4x64xf32>
    %1237 = arith.select %1234, %1232, %1236 : vector<4x64xi1>, vector<4x64xf32>
    %1238 = vector.extract_strided_slice %1160 {offsets = [0, 0], sizes = [1, 64], strides = [1, 1]} : vector<4x64xf32> to vector<1x64xf32>
    %c0_211 = arith.constant 0 : index
    %c0_212 = arith.constant 0 : index
    %1239 = vector.load %arg16[%c0_211, %c0_212] : memref<2x1024xf32, #tpu.memory_space<vmem>>, vector<1x64xf32>
    tpu.vector_store %arg16[%c0_211, %c0_212], %1238 {strides = array<i32>} : memref<2x1024xf32, #tpu.memory_space<vmem>>, vector<1x64xf32>,
    %1240 = vector.extract_strided_slice %1160 {offsets = [1, 0], sizes = [1, 64], strides = [1, 1]} : vector<4x64xf32> to vector<1x64xf32>
    %c0_213 = arith.constant 0 : index
    %c64 = arith.constant 64 : index
    %1241 = vector.load %arg16[%c0_213, %c64] : memref<2x1024xf32, #tpu.memory_space<vmem>>, vector<1x64xf32>
    tpu.vector_store %arg16[%c0_213, %c64], %1240 {strides = array<i32>} : memref<2x1024xf32, #tpu.memory_space<vmem>>, vector<1x64xf32>,
    %1242 = vector.extract_strided_slice %1160 {offsets = [2, 0], sizes = [1, 64], strides = [1, 1]} : vector<4x64xf32> to vector<1x64xf32>
    %c0_214 = arith.constant 0 : index
    %c128 = arith.constant 128 : index
    %1243 = vector.load %arg16[%c0_214, %c128] : memref<2x1024xf32, #tpu.memory_space<vmem>>, vector<1x64xf32>
    tpu.vector_store %arg16[%c0_214, %c128], %1242 {strides = array<i32>} : memref<2x1024xf32, #tpu.memory_space<vmem>>, vector<1x64xf32>,
    %1244 = vector.extract_strided_slice %1160 {offsets = [3, 0], sizes = [1, 64], strides = [1, 1]} : vector<4x64xf32> to vector<1x64xf32>
    %c0_215 = arith.constant 0 : index
    %c192 = arith.constant 192 : index
    %1245 = vector.load %arg16[%c0_215, %c192] : memref<2x1024xf32, #tpu.memory_space<vmem>>, vector<1x64xf32>
    tpu.vector_store %arg16[%c0_215, %c192], %1244 {strides = array<i32>} : memref<2x1024xf32, #tpu.memory_space<vmem>>, vector<1x64xf32>,
    %1246 = vector.extract_strided_slice %1171 {offsets = [0, 0], sizes = [1, 64], strides = [1, 1]} : vector<4x64xf32> to vector<1x64xf32>
    %c0_216 = arith.constant 0 : index
    %c256 = arith.constant 256 : index
    %1247 = vector.load %arg16[%c0_216, %c256] : memref<2x1024xf32, #tpu.memory_space<vmem>>, vector<1x64xf32>
    tpu.vector_store %arg16[%c0_216, %c256], %1246 {strides = array<i32>} : memref<2x1024xf32, #tpu.memory_space<vmem>>, vector<1x64xf32>,
    %1248 = vector.extract_strided_slice %1171 {offsets = [1, 0], sizes = [1, 64], strides = [1, 1]} : vector<4x64xf32> to vector<1x64xf32>
    %c0_217 = arith.constant 0 : index
    %c320 = arith.constant 320 : index
    %1249 = vector.load %arg16[%c0_217, %c320] : memref<2x1024xf32, #tpu.memory_space<vmem>>, vector<1x64xf32>
    tpu.vector_store %arg16[%c0_217, %c320], %1248 {strides = array<i32>} : memref<2x1024xf32, #tpu.memory_space<vmem>>, vector<1x64xf32>,
    %1250 = vector.extract_strided_slice %1171 {offsets = [2, 0], sizes = [1, 64], strides = [1, 1]} : vector<4x64xf32> to vector<1x64xf32>
    %c0_218 = arith.constant 0 : index
    %c384 = arith.constant 384 : index
    %1251 = vector.load %arg16[%c0_218, %c384] : memref<2x1024xf32, #tpu.memory_space<vmem>>, vector<1x64xf32>
    tpu.vector_store %arg16[%c0_218, %c384], %1250 {strides = array<i32>} : memref<2x1024xf32, #tpu.memory_space<vmem>>, vector<1x64xf32>,
    %1252 = vector.extract_strided_slice %1171 {offsets = [3, 0], sizes = [1, 64], strides = [1, 1]} : vector<4x64xf32> to vector<1x64xf32>
    %c0_219 = arith.constant 0 : index
    %c448 = arith.constant 448 : index
    %1253 = vector.load %arg16[%c0_219, %c448] : memref<2x1024xf32, #tpu.memory_space<vmem>>, vector<1x64xf32>
    tpu.vector_store %arg16[%c0_219, %c448], %1252 {strides = array<i32>} : memref<2x1024xf32, #tpu.memory_space<vmem>>, vector<1x64xf32>,
    %1254 = vector.extract_strided_slice %1182 {offsets = [0, 0], sizes = [1, 64], strides = [1, 1]} : vector<4x64xf32> to vector<1x64xf32>
    %c0_220 = arith.constant 0 : index
    %c512 = arith.constant 512 : index
    %1255 = vector.load %arg16[%c0_220, %c512] : memref<2x1024xf32, #tpu.memory_space<vmem>>, vector<1x64xf32>
    tpu.vector_store %arg16[%c0_220, %c512], %1254 {strides = array<i32>} : memref<2x1024xf32, #tpu.memory_space<vmem>>, vector<1x64xf32>,
    %1256 = vector.extract_strided_slice %1182 {offsets = [1, 0], sizes = [1, 64], strides = [1, 1]} : vector<4x64xf32> to vector<1x64xf32>
    %c0_221 = arith.constant 0 : index
    %c576 = arith.constant 576 : index
    %1257 = vector.load %arg16[%c0_221, %c576] : memref<2x1024xf32, #tpu.memory_space<vmem>>, vector<1x64xf32>
    tpu.vector_store %arg16[%c0_221, %c576], %1256 {strides = array<i32>} : memref<2x1024xf32, #tpu.memory_space<vmem>>, vector<1x64xf32>,
    %1258 = vector.extract_strided_slice %1182 {offsets = [2, 0], sizes = [1, 64], strides = [1, 1]} : vector<4x64xf32> to vector<1x64xf32>
    %c0_222 = arith.constant 0 : index
    %c640 = arith.constant 640 : index
    %1259 = vector.load %arg16[%c0_222, %c640] : memref<2x1024xf32, #tpu.memory_space<vmem>>, vector<1x64xf32>
    tpu.vector_store %arg16[%c0_222, %c640], %1258 {strides = array<i32>} : memref<2x1024xf32, #tpu.memory_space<vmem>>, vector<1x64xf32>,
    %1260 = vector.extract_strided_slice %1182 {offsets = [3, 0], sizes = [1, 64], strides = [1, 1]} : vector<4x64xf32> to vector<1x64xf32>
    %c0_223 = arith.constant 0 : index
    %c704 = arith.constant 704 : index
    %1261 = vector.load %arg16[%c0_223, %c704] : memref<2x1024xf32, #tpu.memory_space<vmem>>, vector<1x64xf32>
    tpu.vector_store %arg16[%c0_223, %c704], %1260 {strides = array<i32>} : memref<2x1024xf32, #tpu.memory_space<vmem>>, vector<1x64xf32>,
    %1262 = vector.extract_strided_slice %1193 {offsets = [0, 0], sizes = [1, 64], strides = [1, 1]} : vector<4x64xf32> to vector<1x64xf32>
    %c0_224 = arith.constant 0 : index
    %c768 = arith.constant 768 : index
    %1263 = vector.load %arg16[%c0_224, %c768] : memref<2x1024xf32, #tpu.memory_space<vmem>>, vector<1x64xf32>
    tpu.vector_store %arg16[%c0_224, %c768], %1262 {strides = array<i32>} : memref<2x1024xf32, #tpu.memory_space<vmem>>, vector<1x64xf32>,
    %1264 = vector.extract_strided_slice %1193 {offsets = [1, 0], sizes = [1, 64], strides = [1, 1]} : vector<4x64xf32> to vector<1x64xf32>
    %c0_225 = arith.constant 0 : index
    %c832 = arith.constant 832 : index
    %1265 = vector.load %arg16[%c0_225, %c832] : memref<2x1024xf32, #tpu.memory_space<vmem>>, vector<1x64xf32>
    tpu.vector_store %arg16[%c0_225, %c832], %1264 {strides = array<i32>} : memref<2x1024xf32, #tpu.memory_space<vmem>>, vector<1x64xf32>,
    %1266 = vector.extract_strided_slice %1193 {offsets = [2, 0], sizes = [1, 64], strides = [1, 1]} : vector<4x64xf32> to vector<1x64xf32>
    %c0_226 = arith.constant 0 : index
    %c896 = arith.constant 896 : index
    %1267 = vector.load %arg16[%c0_226, %c896] : memref<2x1024xf32, #tpu.memory_space<vmem>>, vector<1x64xf32>
    tpu.vector_store %arg16[%c0_226, %c896], %1266 {strides = array<i32>} : memref<2x1024xf32, #tpu.memory_space<vmem>>, vector<1x64xf32>,
    %1268 = vector.extract_strided_slice %1193 {offsets = [3, 0], sizes = [1, 64], strides = [1, 1]} : vector<4x64xf32> to vector<1x64xf32>
    %c0_227 = arith.constant 0 : index
    %c960 = arith.constant 960 : index
    %1269 = vector.load %arg16[%c0_227, %c960] : memref<2x1024xf32, #tpu.memory_space<vmem>>, vector<1x64xf32>
    tpu.vector_store %arg16[%c0_227, %c960], %1268 {strides = array<i32>} : memref<2x1024xf32, #tpu.memory_space<vmem>>, vector<1x64xf32>,
    %1270 = vector.extract_strided_slice %1204 {offsets = [0, 0], sizes = [1, 64], strides = [1, 1]} : vector<4x64xf32> to vector<1x64xf32>
    %c1 = arith.constant 1 : index
    %c0_228 = arith.constant 0 : index
    %1271 = vector.load %arg16[%c1, %c0_228] : memref<2x1024xf32, #tpu.memory_space<vmem>>, vector<1x64xf32>
    tpu.vector_store %arg16[%c1, %c0_228], %1270 {strides = array<i32>} : memref<2x1024xf32, #tpu.memory_space<vmem>>, vector<1x64xf32>,
    %1272 = vector.extract_strided_slice %1204 {offsets = [1, 0], sizes = [1, 64], strides = [1, 1]} : vector<4x64xf32> to vector<1x64xf32>
    %c1_229 = arith.constant 1 : index
    %c64_230 = arith.constant 64 : index
    %1273 = vector.load %arg16[%c1_229, %c64_230] : memref<2x1024xf32, #tpu.memory_space<vmem>>, vector<1x64xf32>
    tpu.vector_store %arg16[%c1_229, %c64_230], %1272 {strides = array<i32>} : memref<2x1024xf32, #tpu.memory_space<vmem>>, vector<1x64xf32>,
    %1274 = vector.extract_strided_slice %1204 {offsets = [2, 0], sizes = [1, 64], strides = [1, 1]} : vector<4x64xf32> to vector<1x64xf32>
    %c1_231 = arith.constant 1 : index
    %c128_232 = arith.constant 128 : index
    %1275 = vector.load %arg16[%c1_231, %c128_232] : memref<2x1024xf32, #tpu.memory_space<vmem>>, vector<1x64xf32>
    tpu.vector_store %arg16[%c1_231, %c128_232], %1274 {strides = array<i32>} : memref<2x1024xf32, #tpu.memory_space<vmem>>, vector<1x64xf32>,
    %1276 = vector.extract_strided_slice %1204 {offsets = [3, 0], sizes = [1, 64], strides = [1, 1]} : vector<4x64xf32> to vector<1x64xf32>
    %c1_233 = arith.constant 1 : index
    %c192_234 = arith.constant 192 : index
    %1277 = vector.load %arg16[%c1_233, %c192_234] : memref<2x1024xf32, #tpu.memory_space<vmem>>, vector<1x64xf32>
    tpu.vector_store %arg16[%c1_233, %c192_234], %1276 {strides = array<i32>} : memref<2x1024xf32, #tpu.memory_space<vmem>>, vector<1x64xf32>,
    %1278 = vector.extract_strided_slice %1215 {offsets = [0, 0], sizes = [1, 64], strides = [1, 1]} : vector<4x64xf32> to vector<1x64xf32>
    %c1_235 = arith.constant 1 : index
    %c256_236 = arith.constant 256 : index
    %1279 = vector.load %arg16[%c1_235, %c256_236] : memref<2x1024xf32, #tpu.memory_space<vmem>>, vector<1x64xf32>
    tpu.vector_store %arg16[%c1_235, %c256_236], %1278 {strides = array<i32>} : memref<2x1024xf32, #tpu.memory_space<vmem>>, vector<1x64xf32>,
    %1280 = vector.extract_strided_slice %1215 {offsets = [1, 0], sizes = [1, 64], strides = [1, 1]} : vector<4x64xf32> to vector<1x64xf32>
    %c1_237 = arith.constant 1 : index
    %c320_238 = arith.constant 320 : index
    %1281 = vector.load %arg16[%c1_237, %c320_238] : memref<2x1024xf32, #tpu.memory_space<vmem>>, vector<1x64xf32>
    tpu.vector_store %arg16[%c1_237, %c320_238], %1280 {strides = array<i32>} : memref<2x1024xf32, #tpu.memory_space<vmem>>, vector<1x64xf32>,
    %1282 = vector.extract_strided_slice %1215 {offsets = [2, 0], sizes = [1, 64], strides = [1, 1]} : vector<4x64xf32> to vector<1x64xf32>
    %c1_239 = arith.constant 1 : index
    %c384_240 = arith.constant 384 : index
    %1283 = vector.load %arg16[%c1_239, %c384_240] : memref<2x1024xf32, #tpu.memory_space<vmem>>, vector<1x64xf32>
    tpu.vector_store %arg16[%c1_239, %c384_240], %1282 {strides = array<i32>} : memref<2x1024xf32, #tpu.memory_space<vmem>>, vector<1x64xf32>,
    %1284 = vector.extract_strided_slice %1215 {offsets = [3, 0], sizes = [1, 64], strides = [1, 1]} : vector<4x64xf32> to vector<1x64xf32>
    %c1_241 = arith.constant 1 : index
    %c448_242 = arith.constant 448 : index
    %1285 = vector.load %arg16[%c1_241, %c448_242] : memref<2x1024xf32, #tpu.memory_space<vmem>>, vector<1x64xf32>
    tpu.vector_store %arg16[%c1_241, %c448_242], %1284 {strides = array<i32>} : memref<2x1024xf32, #tpu.memory_space<vmem>>, vector<1x64xf32>,
    %1286 = vector.extract_strided_slice %1226 {offsets = [0, 0], sizes = [1, 64], strides = [1, 1]} : vector<4x64xf32> to vector<1x64xf32>
    %c1_243 = arith.constant 1 : index
    %c512_244 = arith.constant 512 : index
    %1287 = vector.load %arg16[%c1_243, %c512_244] : memref<2x1024xf32, #tpu.memory_space<vmem>>, vector<1x64xf32>
    tpu.vector_store %arg16[%c1_243, %c512_244], %1286 {strides = array<i32>} : memref<2x1024xf32, #tpu.memory_space<vmem>>, vector<1x64xf32>,
    %1288 = vector.extract_strided_slice %1226 {offsets = [1, 0], sizes = [1, 64], strides = [1, 1]} : vector<4x64xf32> to vector<1x64xf32>
    %c1_245 = arith.constant 1 : index
    %c576_246 = arith.constant 576 : index
    %1289 = vector.load %arg16[%c1_245, %c576_246] : memref<2x1024xf32, #tpu.memory_space<vmem>>, vector<1x64xf32>
    tpu.vector_store %arg16[%c1_245, %c576_246], %1288 {strides = array<i32>} : memref<2x1024xf32, #tpu.memory_space<vmem>>, vector<1x64xf32>,
    %1290 = vector.extract_strided_slice %1226 {offsets = [2, 0], sizes = [1, 64], strides = [1, 1]} : vector<4x64xf32> to vector<1x64xf32>
    %c1_247 = arith.constant 1 : index
    %c640_248 = arith.constant 640 : index
    %1291 = vector.load %arg16[%c1_247, %c640_248] : memref<2x1024xf32, #tpu.memory_space<vmem>>, vector<1x64xf32>
    tpu.vector_store %arg16[%c1_247, %c640_248], %1290 {strides = array<i32>} : memref<2x1024xf32, #tpu.memory_space<vmem>>, vector<1x64xf32>,
    %1292 = vector.extract_strided_slice %1226 {offsets = [3, 0], sizes = [1, 64], strides = [1, 1]} : vector<4x64xf32> to vector<1x64xf32>
    %c1_249 = arith.constant 1 : index
    %c704_250 = arith.constant 704 : index
    %1293 = vector.load %arg16[%c1_249, %c704_250] : memref<2x1024xf32, #tpu.memory_space<vmem>>, vector<1x64xf32>
    tpu.vector_store %arg16[%c1_249, %c704_250], %1292 {strides = array<i32>} : memref<2x1024xf32, #tpu.memory_space<vmem>>, vector<1x64xf32>,
    %1294 = vector.extract_strided_slice %1237 {offsets = [0, 0], sizes = [1, 64], strides = [1, 1]} : vector<4x64xf32> to vector<1x64xf32>
    %c1_251 = arith.constant 1 : index
    %c768_252 = arith.constant 768 : index
    %1295 = vector.load %arg16[%c1_251, %c768_252] : memref<2x1024xf32, #tpu.memory_space<vmem>>, vector<1x64xf32>
    tpu.vector_store %arg16[%c1_251, %c768_252], %1294 {strides = array<i32>} : memref<2x1024xf32, #tpu.memory_space<vmem>>, vector<1x64xf32>,
    %1296 = vector.extract_strided_slice %1237 {offsets = [1, 0], sizes = [1, 64], strides = [1, 1]} : vector<4x64xf32> to vector<1x64xf32>
    %c1_253 = arith.constant 1 : index
    %c832_254 = arith.constant 832 : index
    %1297 = vector.load %arg16[%c1_253, %c832_254] : memref<2x1024xf32, #tpu.memory_space<vmem>>, vector<1x64xf32>
    tpu.vector_store %arg16[%c1_253, %c832_254], %1296 {strides = array<i32>} : memref<2x1024xf32, #tpu.memory_space<vmem>>, vector<1x64xf32>,
    %1298 = vector.extract_strided_slice %1237 {offsets = [2, 0], sizes = [1, 64], strides = [1, 1]} : vector<4x64xf32> to vector<1x64xf32>
    %c1_255 = arith.constant 1 : index
    %c896_256 = arith.constant 896 : index
    %1299 = vector.load %arg16[%c1_255, %c896_256] : memref<2x1024xf32, #tpu.memory_space<vmem>>, vector<1x64xf32>
    tpu.vector_store %arg16[%c1_255, %c896_256], %1298 {strides = array<i32>} : memref<2x1024xf32, #tpu.memory_space<vmem>>, vector<1x64xf32>,
    %1300 = vector.extract_strided_slice %1237 {offsets = [3, 0], sizes = [1, 64], strides = [1, 1]} : vector<4x64xf32> to vector<1x64xf32>
    %c1_257 = arith.constant 1 : index
    %c960_258 = arith.constant 960 : index
    %1301 = vector.load %arg16[%c1_257, %c960_258] : memref<2x1024xf32, #tpu.memory_space<vmem>>, vector<1x64xf32>
    tpu.vector_store %arg16[%c1_257, %c960_258], %1300 {strides = array<i32>} : memref<2x1024xf32, #tpu.memory_space<vmem>>, vector<1x64xf32>,
    %c0_259 = arith.constant 0 : index
    %c0_260 = arith.constant 0 : index
    %1302 = vector.load %arg16[%c0_259, %c0_260] : memref<2x1024xf32, #tpu.memory_space<vmem>>, vector<2x1024xf32>
    %1303 = arith.truncf %1302 : vector<2x1024xf32> to vector<2x1024xbf16>
    %c0_261 = arith.constant 0 : index
    %c0_262 = arith.constant 0 : index
    %1304 = vector.load %arg13[%c0_261, %c0_262] : memref<1024x128xbf16, #tpu.memory_space<vmem>>, vector<1024x128xbf16>
    %cst_263 = arith.constant dense<0.000000e+00> : vector<2x128xf32>
    %1305 = tpu.matmul %1303, %1304, %cst_263 {dimension_numbers = #tpu.dot_dimension_numbers<[1], [0], [0], [1], [0, 0, 1, 1], [], []>} : vector<2x1024xbf16>, vector<1024x128xbf16>, vector<2x128xf32> -> vector<2x128xf32>
    %c0_264 = arith.constant 0 : index
    %c0_265 = arith.constant 0 : index
    %1306 = vector.load %arg14[%c0_264, %c0_265] : memref<1x128xf32, #tpu.memory_space<vmem>>, vector<1x128xf32>
    %1307 = vector.broadcast %1306 : vector<1x128xf32> to vector<2x128xf32>
    %1308 = arith.addf %1305, %1307 : vector<2x128xf32>
    %1309 = tpu.iota {dimensions = array<i32: 1>} : vector<2x128xi32>
    %c6_i32 = arith.constant 6 : i32
    %1310 = vector.broadcast %c6_i32 : i32 to vector<2x128xi32>
    %1311 = arith.cmpi slt, %1309, %1310 : vector<2x128xi32>
    %cst_266 = arith.constant -1.000000e+30 : f32
    %1312 = vector.broadcast %cst_266 : f32 to vector<2x128xf32>
    %1313 = arith.select %1311, %1308, %1312 : vector<2x128xi1>, vector<2x128xf32>
    %cst_267 = arith.constant dense<0xFF800000> : vector<2xf32>
    %1314 = vector.multi_reduction <maximumf>, %1313, %cst_267 [1] : vector<2x128xf32> to vector<2xf32>
    %1315 = vector.shape_cast %1314 : vector<2xf32> to vector<2x1xf32>
    %1316 = vector.broadcast %1315 : vector<2x1xf32> to vector<2x128xf32>
    %1317 = arith.subf %1308, %1316 : vector<2x128xf32>
    %1318 = math.exp %1317 : vector<2x128xf32>
    %cst_268 = arith.constant 0.000000e+00 : f32
    %1319 = vector.broadcast %cst_268 : f32 to vector<2x128xf32>
    %1320 = arith.select %1311, %1318, %1319 : vector<2x128xi1>, vector<2x128xf32>
    %cst_269 = arith.constant dense<0.000000e+00> : vector<2xf32>
    %1321 = vector.multi_reduction <add>, %1320, %cst_269 [1] : vector<2x128xf32> to vector<2xf32>
    %1322 = vector.shape_cast %1321 : vector<2xf32> to vector<2x1xf32>
    %1323 = math.log %1322 : vector<2x1xf32>
    %1324 = vector.broadcast %1323 : vector<2x1xf32> to vector<2x128xf32>
    %1325 = arith.subf %1317, %1324 : vector<2x128xf32>
    %1326 = arith.select %1311, %1325, %1308 : vector<2x128xi1>, vector<2x128xf32>
    %c0_270 = arith.constant 0 : index
    %c0_271 = arith.constant 0 : index
    %1327 = vector.load %arg15[%c0_270, %c0_271] : memref<2x128xf32, #tpu.memory_space<vmem>>, vector<2x128xf32>
    tpu.vector_store %arg15[%c0_270, %c0_271], %1326 {strides = array<i32>} : memref<2x128xf32, #tpu.memory_space<vmem>>, vector<2x128xf32>,
    return
  }
}

</mosaic_0001>

<bundles_post_ra>
// kernel: ppo_forward.1
= control target key start
LH: loop header
LB: loop body
LE: loop exit
PB: predicated region body
PF: predicated region fallthrough
CT: control target
= control target key end

     0   :  { %v12672_v0 = vmov 0   ;;  %vm12718_vm0 = vcmask 523264   ;;  %vm821_vm1 = vcmask 539648   ;;  %vm12717_vm2 = vcmask 1041408   ;;  %s8619_s27 = smov 64   ;;  %s12656_s1 = inlined_call_operand.vmem [shape: bf16[192,32], index: 1, kind: input, shape index: {}]   ;;  %s12657_s0 = inlined_call_operand.vmem [shape: bf16[450,192], index: 0, kind: input, shape index: {}]   ;;  %s12658_s2 = inlined_call_operand.vmem [shape: f32[1,32], index: 2, kind: input, shape index: {}]   ;;  %s12659_s5 = inlined_call_operand.vmem [shape: bf16[128,256], index: 5, kind: input, shape index: {}]   ;;  %s12660_s3 = inlined_call_operand.vmem [shape: f32[1,32], index: 3, kind: input, shape index: {}]   ;;  %s12661_s4 = inlined_call_operand.vmem [shape: f32[1,32], index: 4, kind: input, shape index: {}]   ;;  %s12662_s6 = inlined_call_operand.vmem [shape: f32[1,64], index: 6, kind: input, shape index: {}]   ;;  %s12663_s9 = inlined_call_operand.vmem [shape: bf16[192,192], index: 9, kind: input, shape index: {}]   ;;  %s12664_s7 = inlined_call_operand.vmem [shape: f32[1,64], index: 7, kind: input, shape index: {}]   ;;  %s12665_s8 = inlined_call_operand.vmem [shape: f32[1,64], index: 8, kind: input, shape index: {}]   ;;  %s12666_s10 = inlined_call_operand.vmem [shape: f32[1,64], index: 10, kind: input, shape index: {}]   ;;  %s12667_s13 = inlined_call_operand.vmem [shape: bf16[1024,128], index: 13, kind: input, shape index: {}]   ;;  %s12668_s11 = inlined_call_operand.vmem [shape: f32[1,64], index: 11, kind: input, shape index: {}]   ;;  %s12669_s12 = inlined_call_operand.vmem [shape: f32[1,64], index: 12, kind: input, shape index: {}]   ;;  %s12670_s14 = inlined_call_operand.vmem [shape: f32[1,128], index: 14, kind: input, shape index: {}]   ;;  %s12671_s15 = inlined_call_operand.vmem [shape: f32[2,128], index: 15, kind: output, shape index: {}]  }
   0x1   :  { %557 = vmatprep.subr.bf16.mxu0 %v12672_v0  ;;  %v8361_v1 = vld [vmem:[%s12656_s1] sm:$0xff]   ;;  %v8362_v2 = vld [vmem:[%s12656_s1 + $0x8] sm:$0xff]   ;;  %v8363_v3 = vld [vmem:[%s12656_s1 + $0x10] sm:$0xff]  }
   0x2   :  { %558 = vmatpush1.bf16.msra.mxu0 %v8361_v1  ;;  %v8364_v4 = vld [vmem:[%s12656_s1 + $0x18] sm:$0xff]   ;;  %v8375_v5 = vld [vmem:[%s12657_s0 + $0x4] ss:$8 sps:$4 sm:$0xff]   ;;  %v8367_v8 = vld [vmem:[%s12656_s1 + $0x30] sm:$0xff]  }
   0x3   :  { %559 = vmatprep.subr.bf16.mxu0 %v12672_v0  ;;  %v8365_v6 = vld [vmem:[%s12656_s1 + $0x20] sm:$0xff]   ;;  %7830 = vmatprep.mubr.msk.bf16.mxu0 %vm12718_vm0, %v8375_v5  ;;  %v8366_v7 = vld [vmem:[%s12656_s1 + $0x28] sm:$0xff]   ;;  %v8368_v9 = vld [vmem:[%s12656_s1 + $0x38] sm:$0xff]  }
   0x4   :  { %v8369_v10 = vld [vmem:[%s12656_s1 + $0x40] sm:$0xff]   ;;  %v8370_v11 = vld [vmem:[%s12656_s1 + $0x48] sm:$0xff]   ;;  %v8371_v12 = vld [vmem:[%s12656_s1 + $0x50] sm:$0xff]  }
   0x5   :  { %v8372_v13 = vld [vmem:[%s12656_s1 + $0x58] sm:$0xff]   ;;  %v8373_v14 = vld [vmem:[%s12657_s0] ss:$8 sps:$4 sm:$0xff]   ;;  %v8379_v17 = vld [vmem:[%s12657_s0 + $0x24] ss:$8 sps:$4 sm:$0xff]  }
   0x6   :  { %560 = vmatpush1.bf16.msra.mxu0 %v8362_v2  ;;  %v8376_v15 = vld [vmem:[%s12657_s0 + $0x14] ss:$8 sps:$4 sm:$0xff]   ;;  %v8378_v16 = vld [vmem:[%s12657_s0 + $0x10] ss:$8 sps:$4 sm:$0xff]   ;;  %v8381_v18 = vld [vmem:[%s12657_s0 + $0x20] ss:$8 sps:$4 sm:$0xff]  }
   0x7   :  { %561 = vmatprep.subr.bf16.mxu0 %v12672_v0  ;;  %v8382_v19 = vld [vmem:[%s12657_s0 + $0x34] ss:$8 sps:$4 sm:$0xff]   ;;  %v8384_v20 = vld [vmem:[%s12657_s0 + $0x30] ss:$8 sps:$4 sm:$0xff]   ;;  %v8385_v21 = vld [vmem:[%s12657_s0 + $0x44] ss:$8 sps:$4 sm:$0xff]  }
   0x8   :  { %v8387_v22 = vld [vmem:[%s12657_s0 + $0x40] ss:$8 sps:$4 sm:$0xff]   ;;  %v8388_v23 = vld [vmem:[%s12657_s0 + $0x54] ss:$8 sps:$4 sm:$0xff]   ;;  %v8390_v24 = vld [vmem:[%s12657_s0 + $0x50] ss:$8 sps:$4 sm:$0xff]  }
   0x9   :  { %v8391_v25 = vld [vmem:[%s12657_s0 + $0x64] ss:$8 sps:$4 sm:$0xff]   ;;  %v8393_v26 = vld [vmem:[%s12657_s0 + $0x60] ss:$8 sps:$4 sm:$0xff]   ;;  %v8394_v27 = vld [vmem:[%s12657_s0 + $0x74] ss:$8 sps:$4 sm:$0xff]  }
   0xa   :  { %562 = vmatpush1.bf16.msra.mxu0 %v8363_v3  ;;  %v8396_v28 = vld [vmem:[%s12657_s0 + $0x70] ss:$8 sps:$4 sm:$0xff]   ;;  %v8397_v29 = vld [vmem:[%s12657_s0 + $0x84] ss:$8 sps:$4 sm:$0xff]   ;;  %v8399_v30 = vld [vmem:[%s12657_s0 + $0x80] ss:$8 sps:$4 sm:$0xff]  }
   0xb   :  { %563 = vmatprep.subr.bf16.mxu0 %v12672_v0  ;;  %v8400_v31 = vld [vmem:[%s12657_s0 + $0x94] ss:$8 sps:$4 sm:$0xff]   ;;  %v8402_v32 = vld [vmem:[%s12657_s0 + $0x90] ss:$8 sps:$4 sm:$0xff]   ;;  %v8403_v33 = vld [vmem:[%s12657_s0 + $0xa4] ss:$8 sps:$4 sm:$0xff]  }
   0xc   :  { %v8405_v34 = vld [vmem:[%s12657_s0 + $0xa0] ss:$8 sps:$4 sm:$0xff]   ;;  %v8406_v35 = vld [vmem:[%s12657_s0 + $0xb4] ss:$8 sps:$4 sm:$0xff]   ;;  %v8408_v36 = vld [vmem:[%s12657_s0 + $0xb0] ss:$8 sps:$4 sm:$0xff]  }
   0xd   :  { %v8409_v37 = vld [vmem:[%s12657_s0 + $0xc4] ss:$8 sps:$4 sm:$0xff]   ;;  %v8411_v38 = vld [vmem:[%s12657_s0 + $0xc0] ss:$8 sps:$4 sm:$0xff]   ;;  %v8412_v39 = vld [vmem:[%s12657_s0 + $0xd4] ss:$8 sps:$4 sm:$0xff]  }
   0xe   :  { %564 = vmatpush1.bf16.msra.mxu0 %v8364_v4  ;;  %v8414_v40 = vld [vmem:[%s12657_s0 + $0xd0] ss:$8 sps:$4 sm:$0xff]   ;;  %v8415_v41 = vld [vmem:[%s12657_s0 + $0xe4] ss:$8 sps:$4 sm:$0xff]   ;;  %v8417_v42 = vld [vmem:[%s12657_s0 + $0xe0] ss:$8 sps:$4 sm:$0xff]  }
   0xf   :  { %565 = vmatprep.subr.bf16.mxu0 %v12672_v0  ;;  %v8418_v43 = vld [vmem:[%s12657_s0 + $0xf4] ss:$8 sps:$4 sm:$0xff]   ;;  %v8420_v44 = vld [vmem:[%s12657_s0 + $0xf0] ss:$8 sps:$4 sm:$0xff]   ;;  %v8421_v45 = vld [vmem:[%s12657_s0 + $0x104] ss:$8 sps:$4 sm:$0xff]  }
  0x10   :  { %v8423_v46 = vld [vmem:[%s12657_s0 + $0x100] ss:$8 sps:$4 sm:$0xff]   ;;  %v8424_v47 = vld [vmem:[%s12657_s0 + $0x114] ss:$8 sps:$4 sm:$0xff]   ;;  %v8426_v48 = vld [vmem:[%s12657_s0 + $0x110] ss:$8 sps:$4 sm:$0xff]  }
  0x11   :  { %v8427_v49 = vld [vmem:[%s12657_s0 + $0x124] ss:$8 sps:$4 sm:$0xff]   ;;  %v8429_v50 = vld [vmem:[%s12657_s0 + $0x120] ss:$8 sps:$4 sm:$0xff]   ;;  %v8430_v51 = vld [vmem:[%s12657_s0 + $0x134] ss:$8 sps:$4 sm:$0xff]  }
  0x12   :  { %566 = vmatpush1.bf16.msra.mxu0 %v8365_v6  ;;  %v8432_v52 = vld [vmem:[%s12657_s0 + $0x130] ss:$8 sps:$4 sm:$0xff]   ;;  %v8433_v53 = vld [vmem:[%s12657_s0 + $0x144] ss:$8 sps:$4 sm:$0xff]   ;;  %v8435_v54 = vld [vmem:[%s12657_s0 + $0x140] ss:$8 sps:$4 sm:$0xff]  }
  0x13   :  { %567 = vmatprep.subr.bf16.mxu0 %v12672_v0  ;;  %v8436_v55 = vld [vmem:[%s12657_s0 + $0x154] ss:$8 sps:$4 sm:$0xff]   ;;  %v8438_v56 = vld [vmem:[%s12657_s0 + $0x150] ss:$8 sps:$4 sm:$0xff]   ;;  %v8439_v57 = vld [vmem:[%s12657_s0 + $0x164] ss:$8 sps:$4 sm:$0xff]  }
  0x14   :  { %v8441_v58 = vld [vmem:[%s12657_s0 + $0x160] ss:$8 sps:$4 sm:$0xff]   ;;  %v8442_v59 = vld [vmem:[%s12657_s0 + $0x174] ss:$8 sps:$4 sm:$0xff]   ;;  %v8444_v60 = vld [vmem:[%s12657_s0 + $0x170] ss:$8 sps:$4 sm:$0xff]  }
  0x15   :  { %v8445_v61 = vld [vmem:[%s12657_s0 + $0x184] ss:$8 sps:$4 sm:$0xff]   ;;  %v8447_v62 = vld [vmem:[%s12657_s0 + $0x180] ss:$8 sps:$4 sm:$0xff]   ;;  %v8448_v63 = vld [vmem:[%s12657_s0 + $0x194] ss:$8 sps:$4 sm:$0xff]  }
  0x16   :  { %568 = vmatpush1.bf16.msra.mxu0 %v8366_v7  ;;  %v8450_v1 = vld [vmem:[%s12657_s0 + $0x190] ss:$8 sps:$4 sm:$0xff]   ;;  %v8451_v2 = vld [vmem:[%s12657_s0 + $0x1a4] ss:$8 sps:$4 sm:$0xff]   ;;  %v8453_v3 = vld [vmem:[%s12657_s0 + $0x1a0] ss:$8 sps:$4 sm:$0xff]  }
  0x17   :  { %569 = vmatprep.subr.bf16.mxu0 %v12672_v0  ;;  %v8454_v4 = vld [vmem:[%s12657_s0 + $0x1b4] ss:$8 sps:$4 sm:$0xff]   ;;  %v107_v5 = vld [vmem:[%s12657_s0 + $0x1c0] sm:$0x11] }
  0x1a   :  { %570 = vmatpush1.bf16.msra.mxu0 %v8367_v8  ;;  %v8456_v8 = vld [vmem:[%s12657_s0 + $0x1b0] ss:$8 sps:$4 sm:$0xff]  }
  0x1b   :  { %571 = vmatprep.subr.bf16.mxu0 %v12672_v0 }
  0x1e   :  { %572 = vmatpush1.bf16.msra.mxu0 %v8368_v9 }
  0x1f   :  { %573 = vmatprep.subr.bf16.mxu0 %v12672_v0 }
  0x22   :  { %574 = vmatpush1.bf16.msra.mxu0 %v8369_v10  ;;  %v7817_v10 = vcombine.high %v107_v5, %v107_v5 }
  0x23   :  { %575 = vmatprep.subr.bf16.mxu0 %v12672_v0 }
  0x26   :  { %576 = vmatpush1.bf16.msra.mxu0 %v8370_v11 }
  0x27   :  { %577 = vmatprep.subr.bf16.mxu0 %v12672_v0 }
  0x2a   :  { %578 = vmatpush1.bf16.msra.mxu0 %v8371_v12  ;;  %v12674_v12 = vmov 1.0  }
  0x2b   :  { %579 = vmatprep.subr.bf16.mxu0 %v12672_v0  ;;  %893 = vmatprep.mubr.f32.mxu1 %v12674_v12 }
  0x2e   :  { %580 = vmatpush1.bf16.msra.mxu0 %v8372_v13 }
  0x31   :  { %590 = vmatmul.mubr.bf16.vlgmr.msra.gmra.mrb[0].mxu0 %v8373_v14 }
  0x32   :  { %7831 = vmatprep.mubr.msk.bf16.mxu0 %vm12718_vm0, %v8376_v15  ;;  %v7816_v15 = vcombine.low %v107_v5, %v107_v5 }
  0x39   :  { %598 = vmatmul.mubr.bf16.gmra.mrb[4].mxu0 %v8378_v16 }
  0x3a   :  { %7832 = vmatprep.mubr.msk.bf16.mxu0 %vm12718_vm0, %v8379_v17 }
  0x41   :  { %606 = vmatmul.mubr.bf16.gmra.mrb[8].mxu0 %v8381_v18 }
  0x42   :  { %7833 = vmatprep.mubr.msk.bf16.mxu0 %vm12718_vm0, %v8382_v19 }
  0x49   :  { %614 = vmatmul.mubr.bf16.gmra.mrb[12].mxu0 %v8384_v20 }
  0x4a   :  { %7834 = vmatprep.mubr.msk.bf16.mxu0 %vm12718_vm0, %v8385_v21 }
  0x51   :  { %622 = vmatmul.mubr.bf16.gmra.mrb[16].mxu0 %v8387_v22 }
  0x52   :  { %7835 = vmatprep.mubr.msk.bf16.mxu0 %vm12718_vm0, %v8388_v23 }
  0x59   :  { %630 = vmatmul.mubr.bf16.gmra.mrb[20].mxu0 %v8390_v24 }
  0x5a   :  { %7836 = vmatprep.mubr.msk.bf16.mxu0 %vm12718_vm0, %v8391_v25 }
  0x61   :  { %638 = vmatmul.mubr.bf16.gmra.mrb[24].mxu0 %v8393_v26 }
  0x62   :  { %7837 = vmatprep.mubr.msk.bf16.mxu0 %vm12718_vm0, %v8394_v27 }
  0x69   :  { %646 = vmatmul.mubr.bf16.gmra.mrb[28].mxu0 %v8396_v28 }
  0x6a   :  { %7838 = vmatprep.mubr.msk.bf16.mxu0 %vm12718_vm0, %v8397_v29 }
  0x71   :  { %654 = vmatmul.mubr.bf16.gmra.mrb[32].mxu0 %v8399_v30 }
  0x72   :  { %7839 = vmatprep.mubr.msk.bf16.mxu0 %vm12718_vm0, %v8400_v31 }
  0x79   :  { %662 = vmatmul.mubr.bf16.gmra.mrb[36].mxu0 %v8402_v32 }
  0x7a   :  { %7840 = vmatprep.mubr.msk.bf16.mxu0 %vm12718_vm0, %v8403_v33 }
  0x81   :  { %670 = vmatmul.mubr.bf16.gmra.mrb[40].mxu0 %v8405_v34 }
  0x82   :  { %7841 = vmatprep.mubr.msk.bf16.mxu0 %vm12718_vm0, %v8406_v35 }
  0x89   :  { %678 = vmatmul.mubr.bf16.gmra.mrb[44].mxu0 %v8408_v36 }
  0x8a   :  { %7842 = vmatprep.mubr.msk.bf16.mxu0 %vm12718_vm0, %v8409_v37 }
  0x91   :  { %686 = vmatmul.mubr.bf16.gmra.mrb[48].mxu0 %v8411_v38 }
  0x92   :  { %7843 = vmatprep.mubr.msk.bf16.mxu0 %vm12718_vm0, %v8412_v39 }
  0x99   :  { %694 = vmatmul.mubr.bf16.gmra.mrb[52].mxu0 %v8414_v40 }
  0x9a   :  { %7844 = vmatprep.mubr.msk.bf16.mxu0 %vm12718_vm0, %v8415_v41 }
  0xa1   :  { %702 = vmatmul.mubr.bf16.gmra.mrb[56].mxu0 %v8417_v42 }
  0xa2   :  { %7845 = vmatprep.mubr.msk.bf16.mxu0 %vm12718_vm0, %v8418_v43  ;;  %v8972_v43 = vld [vmem:[%s12658_s2] ss:$0 sm:$0xff] }
  0xa9   :  { %710 = vmatmul.mubr.bf16.gmra.mrb[60].mxu0 %v8420_v44 }
  0xaa   :  { %7846 = vmatprep.mubr.msk.bf16.mxu0 %vm12718_vm0, %v8421_v45 }
  0xb1   :  { %718 = vmatmul.mubr.bf16.gmra.mrb[64].mxu0 %v8423_v46 }
  0xb2   :  { %7847 = vmatprep.mubr.msk.bf16.mxu0 %vm12718_vm0, %v8424_v47 }
  0xb9   :  { %726 = vmatmul.mubr.bf16.gmra.mrb[68].mxu0 %v8426_v48 }
  0xba   :  { %7848 = vmatprep.mubr.msk.bf16.mxu0 %vm12718_vm0, %v8427_v49 }
  0xc1   :  { %734 = vmatmul.mubr.bf16.gmra.mrb[72].mxu0 %v8429_v50 }
  0xc2   :  { %7849 = vmatprep.mubr.msk.bf16.mxu0 %vm12718_vm0, %v8430_v51 }
  0xc9   :  { %742 = vmatmul.mubr.bf16.gmra.mrb[76].mxu0 %v8432_v52 }
  0xca   :  { %7850 = vmatprep.mubr.msk.bf16.mxu0 %vm12718_vm0, %v8433_v53 }
  0xd1   :  { %750 = vmatmul.mubr.bf16.gmra.mrb[80].mxu0 %v8435_v54 }
  0xd2   :  { %7851 = vmatprep.mubr.msk.bf16.mxu0 %vm12718_vm0, %v8436_v55 }
  0xd9   :  { %758 = vmatmul.mubr.bf16.gmra.mrb[84].mxu0 %v8438_v56 }
  0xda   :  { %7852 = vmatprep.mubr.msk.bf16.mxu0 %vm12718_vm0, %v8439_v57 }
  0xe1   :  { %766 = vmatmul.mubr.bf16.gmra.mrb[88].mxu0 %v8441_v58 }
  0xe2   :  { %7853 = vmatprep.mubr.msk.bf16.mxu0 %vm12718_vm0, %v8442_v59 }
  0xe9   :  { %774 = vmatmul.mubr.bf16.gmra.mrb[92].mxu0 %v8444_v60 }
  0xea   :  { %7854 = vmatprep.mubr.msk.bf16.mxu0 %vm12718_vm0, %v8445_v61 }
  0xf1   :  { %782 = vmatmul.mubr.bf16.gmra.mrb[96].mxu0 %v8447_v62 }
  0xf2   :  { %7855 = vmatprep.mubr.msk.bf16.mxu0 %vm12718_vm0, %v8448_v63 }
  0xf9   :  { %790 = vmatmul.mubr.bf16.gmra.mrb[100].mxu0 %v8450_v1 }
  0xfa   :  { %7856 = vmatprep.mubr.msk.bf16.mxu0 %vm12718_vm0, %v8451_v2 }
 0x101   :  { %798 = vmatmul.mubr.bf16.gmra.mrb[104].mxu0 %v8453_v3 }
 0x102   :  { %7857 = vmatprep.mubr.msk.bf16.mxu0 %vm12718_vm0, %v8454_v4 }
 0x104   :  { %v591_v6 = vpop.f32.mrb[0].mxu0 }
 0x105   :  { %v593_v7 = vpop.f32.mrb[1].mxu0  ;;  %v8984_v50 = vadd.f32 %v8972_v43, %v591_v6 }
 0x106   :  { %v594_v9 = vpop.f32.mrb[2].mxu0 }
 0x107   :  { %v596_v11 = vpop.f32.mrb[3].mxu0  ;;  %v8975_v45 = vadd.f32 %v8972_v43, %v594_v9 }
 0x109   :  { %806 = vmatmul.mubr.bf16.gmra.mrb[108].mxu0 %v8456_v8  ;;  %v8221_v52 = vpack.c.bf16 %v8975_v45, %v8984_v50 }
 0x10a   :  { %7858 = vmatprep.mubr.msk.bf16.mxu0 %vm12718_vm0, %v7817_v10 }
 0x10c   :  { %v599_v13 = vpop.f32.mrb[4].mxu0 }
 0x10d   :  { %v601_v14 = vpop.f32.mrb[5].mxu0  ;;  %v9000_v60 = vadd.f32 %v8972_v43, %v599_v13 }
 0x10e   :  { %v602_v16 = vpop.f32.mrb[6].mxu0 }
 0x10f   :  { %v604_v17 = vpop.f32.mrb[7].mxu0  ;;  %v8991_v55 = vadd.f32 %v8972_v43, %v602_v16 }
 0x111   :  { %814 = vmatmul.mubr.bf16.gmra.mrb[112].mxu0 %v7816_v15  ;;  %v8225_v62 = vpack.c.bf16 %v8991_v55, %v9000_v60 }
 0x112   :  { %2603 = vmatprep.mubr.bf16.mxu0 %v12672_v0 }
 0x114   :  { %v607_v18 = vpop.f32.mrb[8].mxu0 }
 0x115   :  { %v609_v19 = vpop.f32.mrb[9].mxu0  ;;  %v9016_v7 = vadd.f32 %v8972_v43, %v607_v18 }
 0x116   :  { %v610_v20 = vpop.f32.mrb[10].mxu0 }
 0x117   :  { %v612_v21 = vpop.f32.mrb[11].mxu0  ;;  %v9007_v2 = vadd.f32 %v8972_v43, %v610_v20 }
 0x119   :  { %v8229_v9 = vpack.c.bf16 %v9007_v2, %v9016_v7 }
 0x11c   :  { %v8951_v22 = vpop.f32.mrb[12].mxu0 }
 0x11d   :  { %v617_v23 = vpop.f32.mrb[13].mxu0  ;;  %v9033_v18 = vadd.f32 %v8972_v43, %v8951_v22 }
 0x11e   :  { %v618_v24 = vpop.f32.mrb[14].mxu0 }
 0x11f   :  { %v620_v25 = vpop.f32.mrb[15].mxu0  ;;  %v9023_v13 = vadd.f32 %v8972_v43, %v618_v24 }
 0x121   :  { %v8233_v20 = vpack.c.bf16 %v9023_v13, %v9033_v18 }
 0x124   :  { %v8953_v26 = vpop.f32.mrb[16].mxu0 }
 0x125   :  { %v625_v27 = vpop.f32.mrb[17].mxu0 }
 0x126   :  { %v8955_v28 = vpop.f32.mrb[18].mxu0 }
 0x127   :  { %v628_v29 = vpop.f32.mrb[19].mxu0  ;;  %v9041_v24 = vadd.f32 %v8972_v43, %v8955_v28 }
 0x12c   :  { %v8957_v30 = vpop.f32.mrb[20].mxu0 }
 0x12d   :  { %v633_v31 = vpop.f32.mrb[21].mxu0 }
 0x12e   :  { %v8959_v32 = vpop.f32.mrb[22].mxu0  ;;  %v9051_v31 = vadd.f32 %v8972_v43, %v8953_v26 }
 0x12f   :  { %v636_v33 = vpop.f32.mrb[23].mxu0 }
 0x134   :  { %v8961_v34 = vpop.f32.mrb[24].mxu0 }
 0x135   :  { %v641_v35 = vpop.f32.mrb[25].mxu0 }
 0x136   :  { %v8963_v36 = vpop.f32.mrb[26].mxu0  ;;  %v8237_v35 = vpack.c.bf16 %v9041_v24, %v9051_v31 }
 0x137   :  { %v644_v37 = vpop.f32.mrb[27].mxu0 }
 0x13c   :  { %v8965_v38 = vpop.f32.mrb[28].mxu0 }
 0x13d   :  { %v649_v39 = vpop.f32.mrb[29].mxu0 }
 0x13e   :  { %v8967_v40 = vpop.f32.mrb[30].mxu0  ;;  %v9059_v39 = vadd.f32 %v8972_v43, %v8959_v32 }
 0x13f   :  { %v652_v41 = vpop.f32.mrb[31].mxu0 }
 0x144   :  { %v655_v42 = vpop.f32.mrb[32].mxu0 }
 0x145   :  { %v657_v44 = vpop.f32.mrb[33].mxu0  ;;  %v8978_v47 = vadd.f32 %v8972_v43, %v655_v42 }
 0x146   :  { %v658_v46 = vpop.f32.mrb[34].mxu0 }
 0x147   :  { %v8981_v48 = vadd.f32 %v8972_v43, %v658_v46  ;;  %v660_v49 = vpop.f32.mrb[35].mxu0  ;;  %v9069_v46 = vadd.f32 %v8972_v43, %v8957_v30 }
 0x149   :  { %v8219_v51 = vpack.c.bf16 %v8981_v48, %v8978_v47 }
 0x14b   :  { %8220 = vmatprep.subr.bf16.mxu1 %v8219_v51  ;;  %v8241_v51 = vpack.c.bf16 %v9059_v39, %v9069_v46 }
 0x14c   :  { %v663_v53 = vpop.f32.mrb[36].mxu0  ;;  %8222 = vmatpush3.bf16.msra.mxu1 %v8221_v52 }
 0x14d   :  { %v665_v54 = vpop.f32.mrb[37].mxu0  ;;  %v8994_v57 = vadd.f32 %v8972_v43, %v663_v53  ;;  %v9077_v53 = vadd.f32 %v8972_v43, %v8963_v36 }
 0x14e   :  { %v666_v56 = vpop.f32.mrb[38].mxu0 }
 0x14f   :  { %v8997_v58 = vadd.f32 %v8972_v43, %v666_v56  ;;  %v668_v59 = vpop.f32.mrb[39].mxu0 }
 0x151   :  { %v8223_v61 = vpack.c.bf16 %v8997_v58, %v8994_v57 }
 0x153   :  { %8224 = vmatprep.subr.bf16.mxu1 %v8223_v61  ;;  %v9087_v61 = vadd.f32 %v8972_v43, %v8961_v34 }
 0x154   :  { %v671_v63 = vpop.f32.mrb[40].mxu0  ;;  %8226 = vmatpush3.bf16.msra.mxu1 %v8225_v62 }
 0x155   :  { %v673_v1 = vpop.f32.mrb[41].mxu0  ;;  %v9010_v4 = vadd.f32 %v8972_v43, %v671_v63  ;;  %v8245_v63 = vpack.c.bf16 %v9077_v53, %v9087_v61 }
 0x156   :  { %v674_v3 = vpop.f32.mrb[42].mxu0 }
 0x157   :  { %v9013_v5 = vadd.f32 %v8972_v43, %v674_v3  ;;  %v676_v6 = vpop.f32.mrb[43].mxu0  ;;  %v9095_v3 = vadd.f32 %v8972_v43, %v8967_v40 }
 0x159   :  { %v8227_v8 = vpack.c.bf16 %v9013_v5, %v9010_v4 }
 0x15b   :  { %8228 = vmatprep.subr.bf16.mxu1 %v8227_v8 }
 0x15c   :  { %v679_v10 = vpop.f32.mrb[44].mxu0  ;;  %8230 = vmatpush3.bf16.msra.mxu1 %v8229_v9 }
 0x15d   :  { %v681_v11 = vpop.f32.mrb[45].mxu0  ;;  %v9026_v15 = vadd.f32 %v8972_v43, %v679_v10  ;;  %v9105_v10 = vadd.f32 %v8972_v43, %v8965_v38 }
 0x15e   :  { %v682_v14 = vpop.f32.mrb[46].mxu0 }
 0x15f   :  { %v9029_v16 = vadd.f32 %v8972_v43, %v682_v14  ;;  %v684_v17 = vpop.f32.mrb[47].mxu0  ;;  %v8249_v14 = vpack.c.bf16 %v9095_v3, %v9105_v10 }
 0x161   :  { %v8231_v19 = vpack.c.bf16 %v9029_v16, %v9026_v15 }
 0x163   :  { %8232 = vmatprep.subr.bf16.mxu1 %v8231_v19  ;;  %v12678_v19 = vmov 0.0|0.0  }
 0x164   :  { %v687_v21 = vpop.f32.mrb[48].mxu0  ;;  %8234 = vmatpush3.bf16.msra.mxu1 %v8233_v20 }
 0x165   :  { %v689_v23 = vpop.f32.mrb[49].mxu0  ;;  %v9044_v27 = vadd.f32 %v8972_v43, %v687_v21 }
 0x166   :  { %v690_v25 = vpop.f32.mrb[50].mxu0 }
 0x167   :  { %v9047_v22 = vadd.f32 %v8972_v43, %v690_v25  ;;  %v692_v29 = vpop.f32.mrb[51].mxu0 }
 0x169   :  { %v8235_v33 = vpack.c.bf16 %v9047_v22, %v9044_v27 }
 0x16b   :  { %8236 = vmatprep.subr.bf16.mxu1 %v8235_v33 }
 0x16c   :  { %v695_v28 = vpop.f32.mrb[52].mxu0  ;;  %8238 = vmatpush3.bf16.msra.mxu1 %v8237_v35 }
 0x16d   :  { %v697_v37 = vpop.f32.mrb[53].mxu0  ;;  %v9062_v42 = vadd.f32 %v8972_v43, %v695_v28 }
 0x16e   :  { %v698_v41 = vpop.f32.mrb[54].mxu0 }
 0x16f   :  { %v9065_v26 = vadd.f32 %v8972_v43, %v698_v41  ;;  %v700_v44 = vpop.f32.mrb[55].mxu0 }
 0x171   :  { %v8239_v49 = vpack.c.bf16 %v9065_v26, %v9062_v42 }
 0x173   :  { %8240 = vmatprep.subr.bf16.mxu1 %v8239_v49 }
 0x174   :  { %v703_v32 = vpop.f32.mrb[56].mxu0  ;;  %8242 = vmatpush3.bf16.msra.mxu1 %v8241_v51 }
 0x175   :  { %v705_v52 = vpop.f32.mrb[57].mxu0  ;;  %v9080_v56 = vadd.f32 %v8972_v43, %v703_v32 }
 0x176   :  { %v706_v54 = vpop.f32.mrb[58].mxu0 }
 0x177   :  { %v9083_v30 = vadd.f32 %v8972_v43, %v706_v54  ;;  %v708_v59 = vpop.f32.mrb[59].mxu0 }
 0x179   :  { %v8243_v62 = vpack.c.bf16 %v9083_v30, %v9080_v56 }
 0x17b   :  { %8244 = vmatprep.subr.bf16.mxu1 %v8243_v62 }
 0x17c   :  { %v711_v36 = vpop.f32.mrb[60].mxu0  ;;  %8246 = vmatpush3.bf16.msra.mxu1 %v8245_v63 }
 0x17d   :  { %v713_v1 = vpop.f32.mrb[61].mxu0  ;;  %v9098_v8 = vadd.f32 %v8972_v43, %v711_v36 }
 0x17e   :  { %v714_v6 = vpop.f32.mrb[62].mxu0 }
 0x17f   :  { %v9101_v34 = vadd.f32 %v8972_v43, %v714_v6  ;;  %v716_v9 = vpop.f32.mrb[63].mxu0 }
 0x181   :  { %v8247_v11 = vpack.c.bf16 %v9101_v34, %v9098_v8 }
 0x183   :  { %8248 = vmatprep.subr.bf16.mxu1 %v8247_v11 }
 0x184   :  { %v719_v40 = vpop.f32.mrb[64].mxu0  ;;  %8250 = vmatpush3.bf16.msra.mxu1 %v8249_v14 }
 0x185   :  { %v721_v17 = vpop.f32.mrb[65].mxu0  ;;  %8251 = vmatprep.subr.bf16.mxu1 %v12678_v19  ;;  %v9113_v21 = vadd.f32 %v8972_v43, %v719_v40 }
 0x186   :  { %v722_v20 = vpop.f32.mrb[66].mxu0 }
 0x187   :  { %v9116_v38 = vadd.f32 %v8972_v43, %v722_v20  ;;  %v724_v23 = vpop.f32.mrb[67].mxu0  ;;  %894 = vmatmul.mubr.f32.vlgmr.msra.gmra.mrb[0].mxu1 %v12674_v12 }
 0x188   :  { %7860 = vmatprep.mubr.msk.f32.mxu1 %vm821_vm1, %v12674_v12 }
 0x189   :  { %v8252_v25 = vpack.c.bf16 %v9116_v38, %v9113_v21 }
 0x18b   :  { %8253 = vmatpush1.bf16.msra.mxu1 %v8252_v25 }
 0x18c   :  { %v727_v29 = vpop.f32.mrb[68].mxu0  ;;  %8254 = vmatprep.subr.bf16.mxu1 %v12678_v19 }
 0x18d   :  { %v729_v33 = vpop.f32.mrb[69].mxu0  ;;  %v9125_v28 = vadd.f32 %v8972_v43, %v727_v29 }
 0x18e   :  { %v730_v35 = vpop.f32.mrb[70].mxu0 }
 0x18f   :  { %v9128_v37 = vadd.f32 %v8972_v43, %v730_v35  ;;  %v732_v41 = vpop.f32.mrb[71].mxu0 }
 0x191   :  { %v8255_v44 = vpack.c.bf16 %v9128_v37, %v9125_v28 }
 0x193   :  { %8256 = vmatpush1.bf16.msra.mxu1 %v8255_v44 }
 0x194   :  { %v735_v49 = vpop.f32.mrb[72].mxu0  ;;  %8257 = vmatprep.subr.bf16.mxu1 %v12678_v19 }
 0x195   :  { %v737_v51 = vpop.f32.mrb[73].mxu0  ;;  %v9134_v52 = vadd.f32 %v8972_v43, %v735_v49 }
 0x196   :  { %v738_v32 = vpop.f32.mrb[74].mxu0 }
 0x197   :  { %v9137_v54 = vadd.f32 %v8972_v43, %v738_v32  ;;  %v740_v59 = vpop.f32.mrb[75].mxu0 }
 0x199   :  { %v8258_v62 = vpack.c.bf16 %v9137_v54, %v9134_v52 }
 0x19b   :  { %8259 = vmatpush1.bf16.msra.mxu1 %v8258_v62 }
 0x19c   :  { %v743_v63 = vpop.f32.mrb[76].mxu0  ;;  %8260 = vmatprep.subr.bf16.mxu1 %v12678_v19 }
 0x19d   :  { %v745_v36 = vpop.f32.mrb[77].mxu0  ;;  %v9143_v6 = vadd.f32 %v8972_v43, %v743_v63 }
 0x19e   :  { %v746_v1 = vpop.f32.mrb[78].mxu0 }
 0x19f   :  { %v9146_v9 = vadd.f32 %v8972_v43, %v746_v1  ;;  %v748_v11 = vpop.f32.mrb[79].mxu0 }
 0x1a1   :  { %v8261_v14 = vpack.c.bf16 %v9146_v9, %v9143_v6 }
 0x1a3   :  { %8262 = vmatpush1.bf16.msra.mxu1 %v8261_v14 }
 0x1a4   :  { %v751_v40 = vpop.f32.mrb[80].mxu0  ;;  %8263 = vmatprep.subr.bf16.mxu1 %v12678_v19 }
 0x1a5   :  { %v753_v17 = vpop.f32.mrb[81].mxu0  ;;  %v9152_v23 = vadd.f32 %v8972_v43, %v751_v40 }
 0x1a6   :  { %v754_v20 = vpop.f32.mrb[82].mxu0 }
 0x1a7   :  { %v9155_v25 = vadd.f32 %v8972_v43, %v754_v20  ;;  %v756_v29 = vpop.f32.mrb[83].mxu0 }
 0x1a9   :  { %v8264_v33 = vpack.c.bf16 %v9155_v25, %v9152_v23 }
 0x1ab   :  { %8265 = vmatpush1.bf16.msra.mxu1 %v8264_v33 }
 0x1ac   :  { %v759_v35 = vpop.f32.mrb[84].mxu0  ;;  %8266 = vmatprep.subr.bf16.mxu1 %v12678_v19 }
 0x1ad   :  { %v761_v41 = vpop.f32.mrb[85].mxu0  ;;  %v9161_v49 = vadd.f32 %v8972_v43, %v759_v35 }
 0x1ae   :  { %v762_v44 = vpop.f32.mrb[86].mxu0 }
 0x1af   :  { %v9164_v51 = vadd.f32 %v8972_v43, %v762_v44  ;;  %v764_v32 = vpop.f32.mrb[87].mxu0 }
 0x1b1   :  { %v8267_v59 = vpack.c.bf16 %v9164_v51, %v9161_v49 }
 0x1b3   :  { %8268 = vmatpush1.bf16.msra.mxu1 %v8267_v59 }
 0x1b4   :  { %v767_v62 = vpop.f32.mrb[88].mxu0  ;;  %8269 = vmatprep.subr.bf16.mxu1 %v12678_v19 }
 0x1b5   :  { %v769_v63 = vpop.f32.mrb[89].mxu0  ;;  %v9170_v1 = vadd.f32 %v8972_v43, %v767_v62 }
 0x1b6   :  { %v770_v36 = vpop.f32.mrb[90].mxu0 }
 0x1b7   :  { %v9173_v11 = vadd.f32 %v8972_v43, %v770_v36  ;;  %v772_v14 = vpop.f32.mrb[91].mxu0 }
 0x1b9   :  { %v8270_v40 = vpack.c.bf16 %v9173_v11, %v9170_v1 }
 0x1bb   :  { %8271 = vmatpush1.bf16.msra.mxu1 %v8270_v40 }
 0x1bc   :  { %v775_v17 = vpop.f32.mrb[92].mxu0  ;;  %8272 = vmatprep.subr.bf16.mxu1 %v12678_v19 }
 0x1bd   :  { %v777_v20 = vpop.f32.mrb[93].mxu0  ;;  %v9179_v33 = vadd.f32 %v8972_v43, %v775_v17 }
 0x1be   :  { %v778_v29 = vpop.f32.mrb[94].mxu0 }
 0x1bf   :  { %v9182_v35 = vadd.f32 %v8972_v43, %v778_v29  ;;  %v780_v41 = vpop.f32.mrb[95].mxu0 }
 0x1c1   :  { %v8273_v44 = vpack.c.bf16 %v9182_v35, %v9179_v33 }
 0x1c3   :  { %8274 = vmatpush1.bf16.msra.mxu1 %v8273_v44 }
 0x1c4   :  { %v783_v32 = vpop.f32.mrb[96].mxu0  ;;  %8275 = vmatprep.subr.bf16.mxu1 %v12678_v19 }
 0x1c5   :  { %v785_v59 = vpop.f32.mrb[97].mxu0  ;;  %v9188_v63 = vadd.f32 %v8972_v43, %v783_v32 }
 0x1c6   :  { %v786_v62 = vpop.f32.mrb[98].mxu0 }
 0x1c7   :  { %v9191_v36 = vadd.f32 %v8972_v43, %v786_v62  ;;  %v788_v14 = vpop.f32.mrb[99].mxu0 }
 0x1c9   :  { %v8276_v40 = vpack.c.bf16 %v9191_v36, %v9188_v63 }
 0x1cb   :  { %8277 = vmatpush1.bf16.msra.mxu1 %v8276_v40 }
 0x1cc   :  { %v791_v17 = vpop.f32.mrb[100].mxu0  ;;  %8278 = vmatprep.subr.bf16.mxu1 %v12678_v19 }
 0x1cd   :  { %v793_v20 = vpop.f32.mrb[101].mxu0  ;;  %v9197_v41 = vadd.f32 %v8972_v43, %v791_v17 }
 0x1ce   :  { %v794_v29 = vpop.f32.mrb[102].mxu0 }
 0x1cf   :  { %12752 = vst [vmem:[#allocation3_spill] sm:$0xff] %v9197_v41  ;;  %v9200_v44 = vadd.f32 %v8972_v43, %v794_v29  ;;  %v796_v32 = vpop.f32.mrb[103].mxu0 }
 0x1d1   :  { %12753 = vst [vmem:[#allocation4_spill] sm:$0xff] %v9200_v44  ;;  %v8279_v59 = vpack.c.bf16 %v9200_v44, %v9197_v41  ;;  %v12681_v41 = vmov 0.0  }
 0x1d3   :  { %8280 = vmatpush1.bf16.msra.mxu1 %v8279_v59 }
 0x1d4   :  { %v799_v62 = vpop.f32.mrb[104].mxu0  ;;  %8281 = vmatprep.subr.bf16.mxu1 %v12678_v19 }
 0x1d5   :  { %v801_v14 = vpop.f32.mrb[105].mxu0  ;;  %v9206_v0 = vadd.f32 %v8972_v43, %v799_v62 }
 0x1d6   :  { %v802_v40 = vpop.f32.mrb[106].mxu0 }
 0x1d7   :  { %v9209_v20 = vadd.f32 %v8972_v43, %v802_v40  ;;  %v804_v17 = vpop.f32.mrb[107].mxu0 }
 0x1d9   :  { %12754 = vst [vmem:[#allocation5_spill] sm:$0xff] %v9209_v20  ;;  %v8282_v29 = vpack.c.bf16 %v9209_v20, %v9206_v0 }
 0x1db   :  { %8283 = vmatpush1.bf16.msra.mxu1 %v8282_v29 }
 0x1dc   :  { %v807_v32 = vpop.f32.mrb[108].mxu0  ;;  %8284 = vmatprep.subr.bf16.mxu1 %v12678_v19 }
 0x1dd   :  { %v809_v59 = vpop.f32.mrb[109].mxu0  ;;  %v9215_v44 = vadd.f32 %v8972_v43, %v807_v32 }
 0x1de   :  { %v810_v12 = vpop.f32.mrb[110].mxu0 }
 0x1df   :  { %12755 = vst [vmem:[#allocation6_spill] sm:$0xff] %v9215_v44  ;;  %v9218_v14 = vadd.f32 %v8972_v43, %v810_v12  ;;  %v812_v62 = vpop.f32.mrb[111].mxu0  ;;  %v12758_v12 = vmov 1.0  }
 0x1e1   :  { %12756 = vst [vmem:[#allocation7_spill] sm:$0xff] %v9218_v14  ;;  %v8285_v40 = vpack.c.bf16 %v9218_v14, %v9215_v44 }
 0x1e3   :  { %8286 = vmatpush1.bf16.msra.mxu1 %v8285_v40 }
 0x1e4   :  { %v815_v17 = vpop.f32.mrb[112].mxu0  ;;  %947 = vmatprep.subr.mxu1 %v12681_v41  ;;  %v8459_v41 = vld [vmem:[%s12659_s5 + $0x44] ss:$8 sps:$4 sm:$0xff]  }
 0x1e5   :  { %v9224_v29 = vadd.f32 %v8972_v43, %v815_v17  ;;  %v817_v59 = vpop.f32.mrb[113].mxu0  ;;  %v8461_v43 = vld [vmem:[%s12659_s5 + $0x40] ss:$8 sps:$4 sm:$0xff]   ;;  %2571 = vmatprep.subr.bf16.mxu0 %v8459_v41 }
 0x1e6   :  { %v818_v19 = vpop.f32.mrb[114].mxu0  ;;  %2572 = vmatpush1.bf16.msra.mxu0 %v8461_v43 }
 0x1e7   :  { %12757 = vst [vmem:[#allocation8_spill] sm:$0xff] %v9224_v29  ;;  %v819_v32 = vpop.f32.mrb[115].mxu0  ;;  %7859 = vmatpush1.msk.msra.mxu1 %vm12717_vm2, %v9224_v29 }
 0x1e8   :  { %964 = vmatmul.mubr.f32.vlgmr.msra.gmra.mrb[2].mxu1 %v12758_v12  ;;  %v12685_v32 = vlaneseq }
 0x1e9   :  { %1155 = vmatprep.mubr.f32.mxu1 %v12758_v12 }
 0x1ea   :  { %v9237_v29 = vshrl.u32 %v12685_v32, 7 }
 0x1ec   :  { %12759 = vst [vmem:[#allocation9_spill] sm:$0xff] %v9237_v29 }
 0x25a   :  { %v8093_v62 = vpop.f32.mrb[0].mxu1 }
 0x25b   :  { %v8094_v40 = vpop.f32.mrb[1].mxu1 }
 0x25c   :  { %v8095_v14 = vadd.f32 %v8094_v40, %v8093_v62  ;;  %v9240_v62 = vsub.s32 0, %v9237_v29 }
 0x25e   :  { %12760 = vst [vmem:[#allocation10_spill] sm:$0xff] %v9240_v62 }
 0x2bb   :  { %v965_v19 = vpop.f32.mrb[2].mxu1 }
 0x2bc   :  { %v966_v17 = vadd.f32 %v8095_v14, %v965_v19  ;;  %v967_v59 = vpop.f32.mrb[3].mxu1 }
 0x2be   :  { %v969_v44 = vmul.f32 0.0022222223, %v966_v17 }
 0x2c0   :  { %v9243_v40 = vrot.slane %v969_v44, %v9240_v62 }
 0x2c2   :  { %v9247_v20 = vsub.f32 %v8984_v50, %v9243_v40  ;;  %v9251_v41 = vsub.f32 %v8975_v45, %v9243_v40  ;;  %v9255_v14 = vsub.f32 %v8978_v47, %v9243_v40  ;;  %v9259_v43 = vsub.f32 %v8981_v48, %v9243_v40 }
 0x2c3   :  { %v9271_v47 = vsub.f32 %v8994_v57, %v9243_v40  ;;  %v9275_v48 = vsub.f32 %v8997_v58, %v9243_v40  ;;  %v9279_v17 = vsub.f32 %v9000_v60, %v9243_v40  ;;  %v9283_v59 = vsub.f32 %v8991_v55, %v9243_v40 }
 0x2c4   :  { %12761 = vst [vmem:[#allocation11_spill] sm:$0xff] %v9255_v14  ;;  %v1031_v44 = vmul.f32 %v9247_v20, %v9247_v20  ;;  %v1032_v19 = vmul.f32 %v9251_v41, %v9251_v41  ;;  %v1047_v50 = vmul.f32 %v9255_v14, %v9255_v14  ;;  %v1048_v45 = vmul.f32 %v9259_v43, %v9259_v43 }
 0x2c5   :  { %12762 = vst [vmem:[#allocation12_spill] sm:$0xff] %v9275_v48  ;;  %v9287_v32 = vsub.f32 %v9010_v4, %v9243_v40  ;;  %v9291_v57 = vsub.f32 %v9013_v5, %v9243_v40  ;;  %v1049_v58 = vmul.f32 %v9271_v47, %v9271_v47  ;;  %v1050_v60 = vmul.f32 %v9275_v48, %v9275_v48 }
 0x2c6   :  { %v8287_v29 = vpack.c.bf16 %v1048_v45, %v1047_v50  ;;  %v8289_v14 = vpack.c.bf16 %v1032_v19, %v1031_v44  ;;  %v9299_v55 = vsub.f32 %v9016_v7, %v9243_v40  ;;  %v9303_v4 = vsub.f32 %v9007_v2, %v9243_v40 }
 0x2c7   :  { %12763 = vst [vmem:[#allocation13_spill] sm:$0xff] %v9287_v32  ;;  %v1033_v5 = vmul.f32 %v9279_v17, %v9279_v17  ;;  %v1034_v44 = vmul.f32 %v9283_v59, %v9283_v59  ;;  %v9311_v19 = vsub.f32 %v9026_v15, %v9243_v40  ;;  %v9315_v50 = vsub.f32 %v9029_v16, %v9243_v40 }
 0x2c8   :  { %8288 = vmatprep.subr.bf16.mxu1 %v8287_v29  ;;  %v1051_v7 = vmul.f32 %v9287_v32, %v9287_v32  ;;  %v1052_v2 = vmul.f32 %v9291_v57, %v9291_v57  ;;  %v9323_v45 = vsub.f32 %v9033_v18, %v9243_v40  ;;  %v9327_v29 = vsub.f32 %v9023_v13, %v9243_v40 }
 0x2c9   :  { %8290 = vmatpush3.bf16.msra.mxu1 %v8289_v14  ;;  %v8291_v15 = vpack.c.bf16 %v1050_v60, %v1049_v58  ;;  %v9331_v16 = vsub.f32 %v9044_v27, %v9243_v40  ;;  %v1035_v32 = vmul.f32 %v9299_v55, %v9299_v55  ;;  %v1036_v48 = vmul.f32 %v9303_v4, %v9303_v4 }
 0x2ca   :  { %v8293_v14 = vpack.c.bf16 %v1034_v44, %v1033_v5  ;;  %v9339_v18 = vsub.f32 %v9047_v22, %v9243_v40  ;;  %v1053_v13 = vmul.f32 %v9311_v19, %v9311_v19  ;;  %v1054_v58 = vmul.f32 %v9315_v50, %v9315_v50 }
 0x2cb   :  { %8292 = vmatprep.subr.bf16.mxu1 %v8291_v15  ;;  %v8295_v27 = vpack.c.bf16 %v1052_v2, %v1051_v7  ;;  %v9347_v60 = vsub.f32 %v9051_v31, %v9243_v40  ;;  %v9351_v5 = vsub.f32 %v9041_v24, %v9243_v40  ;;  %v9355_v22 = vsub.f32 %v9062_v42, %v9243_v40 }
 0x2cc   :  { %v1037_v44 = vmul.f32 %v9323_v45, %v9323_v45  ;;  %v1038_v7 = vmul.f32 %v9327_v29, %v9327_v29  ;;  %v8297_v2 = vpack.c.bf16 %v1036_v48, %v1035_v32  ;;  %v1001_v31 = vsub.f32 %v9065_v26, %v9243_v40 }
 0x2cd   :  { %8294 = vmatpush3.bf16.msra.mxu1 %v8293_v14  ;;  %v1055_v15 = vmul.f32 %v9331_v16, %v9331_v16  ;;  %v1056_v24 = vmul.f32 %v9339_v18, %v9339_v18  ;;  %v8299_v14 = vpack.c.bf16 %v1054_v58, %v1053_v13  ;;  %v9369_v42 = vsub.f32 %v9069_v46, %v9243_v40 }
 0x2ce   :  { %8296 = vmatprep.subr.bf16.mxu1 %v8295_v27  ;;  %v9373_v27 = vsub.f32 %v9059_v39, %v9243_v40  ;;  %v9377_v26 = vsub.f32 %v9080_v56, %v9243_v40  ;;  %v1039_v32 = vmul.f32 %v9347_v60, %v9347_v60  ;;  %v1040_v48 = vmul.f32 %v9351_v5, %v9351_v5 }
 0x2cf   :  { %v8301_v13 = vpack.c.bf16 %v1038_v7, %v1037_v44  ;;  %v9385_v46 = vsub.f32 %v9083_v30, %v9243_v40  ;;  %v1057_v39 = vmul.f32 %v9355_v22, %v9355_v22  ;;  %v1058_v58 = vmul.f32 %v1001_v31, %v1001_v31 }
 0x2d0   :  { %v9391_v56 = vsub.f32 %v9087_v61, %v9243_v40  ;;  %v9399_v44 = vsub.f32 %v9098_v8, %v9243_v40  ;;  %v1041_v30 = vmul.f32 %v9369_v42, %v9369_v42  ;;  %v1042_v7 = vmul.f32 %v9373_v27, %v9373_v27 }
 0x2d1   :  { %8298 = vmatpush3.bf16.msra.mxu1 %v8297_v2  ;;  %v8303_v2 = vpack.c.bf16 %v1056_v24, %v1055_v15  ;;  %v8305_v31 = vpack.c.bf16 %v1040_v48, %v1039_v32  ;;  %v9407_v61 = vsub.f32 %v9101_v34, %v9243_v40  ;;  %v1060_v15 = vmul.f32 %v9385_v46, %v9385_v46 }
 0x2d2   :  { %8300 = vmatprep.subr.bf16.mxu1 %v8299_v14  ;;  %v9395_v14 = vsub.f32 %v9077_v53, %v9243_v40  ;;  %v1059_v53 = vmul.f32 %v9377_v26, %v9377_v26  ;;  %v8307_v24 = vpack.c.bf16 %v1058_v58, %v1057_v39  ;;  %v9415_v8 = vsub.f32 %v9105_v10, %v9243_v40 }
 0x2d3   :  { %v9419_v32 = vsub.f32 %v9095_v3, %v9243_v40  ;;  %v1043_v34 = vmul.f32 %v9391_v56, %v9391_v56  ;;  %v1061_v39 = vmul.f32 %v9399_v44, %v9399_v44  ;;  %v1062_v58 = vmul.f32 %v9407_v61, %v9407_v61 }
 0x2d4   :  { %v1044_v48 = vmul.f32 %v9395_v14, %v9395_v14  ;;  %v8311_v10 = vpack.c.bf16 %v1060_v15, %v1059_v53  ;;  %v9435_v3 = vsub.f32 %v9116_v38, %v9243_v40  ;;  %v9443_v53 = vsub.f32 %v9125_v28, %v9243_v40 }
 0x2d5   :  { %8302 = vmatpush3.bf16.msra.mxu1 %v8301_v13  ;;  %v8309_v13 = vpack.c.bf16 %v1042_v7, %v1041_v30  ;;  %v1045_v30 = vmul.f32 %v9415_v8, %v9415_v8  ;;  %v1046_v7 = vmul.f32 %v9419_v32, %v9419_v32  ;;  %v9460_v28 = vsub.f32 %v9137_v54, %v9243_v40 }
 0x2d6   :  { %8304 = vmatprep.subr.bf16.mxu1 %v8303_v2  ;;  %v9431_v2 = vsub.f32 %v9113_v21, %v9243_v40  ;;  %12765 = vst [vmem:[#allocation15_spill] sm:$0xff] %v9435_v3  ;;  %v9447_v21 = vsub.f32 %v9128_v37, %v9243_v40  ;;  %v1064_v15 = vmul.f32 %v9435_v3, %v9435_v3  ;;  %v12776_v3 = vmov 0.0  }
 0x2d7   :  { %12769 = vst [vmem:[#allocation18_spill] sm:$0xff] %v9460_v28  ;;  %v1065_v37 = vmul.f32 %v9443_v53, %v9443_v53  ;;  %v9476_v54 = vsub.f32 %v9146_v9, %v9243_v40 }
 0x2d8   :  { %12764 = vst [vmem:[#allocation14_spill] sm:$0xff] %v9431_v2  ;;  %12766 = vst [vmem:[#allocation16_spill] sm:$0xff] %v9447_v21  ;;  %v1063_v38 = vmul.f32 %v9431_v2, %v9431_v2 }
 0x2d9   :  { %8306 = vmatpush3.bf16.msra.mxu1 %v8305_v31  ;;  %v8313_v31 = vpack.c.bf16 %v1044_v48, %v1043_v34  ;;  %v9455_v34 = vsub.f32 %v9134_v52, %v9243_v40  ;;  %v12768_v48 = vmov 0.0|0.0   ;;  %v9471_v52 = vsub.f32 %v9143_v6, %v9243_v40 }
 0x2da   :  { %8308 = vmatprep.subr.bf16.mxu1 %v8307_v24  ;;  %v8315_v24 = vpack.c.bf16 %v1062_v58, %v1061_v39  ;;  %v1066_v39 = vmul.f32 %v9447_v21, %v9447_v21  ;;  %v8320_v58 = vpack.c.bf16 %v1064_v15, %v1063_v38  ;;  %v9489_v6 = vsub.f32 %v9155_v25, %v9243_v40 }
 0x2db   :  { %12767 = vst [vmem:[#allocation17_spill] sm:$0xff] %v9455_v34  ;;  %v1069_v9 = vmul.f32 %v9471_v52, %v9471_v52  ;;  %v9497_v15 = vsub.f32 %v9161_v49, %v9243_v40  ;;  %v9515_v49 = vsub.f32 %v9173_v11, %v9243_v40 }
 0x2dd   :  { %8310 = vmatpush3.bf16.msra.mxu1 %v8309_v13  ;;  %v8317_v13 = vpack.c.bf16 %v1046_v7, %v1045_v30  ;;  %v1068_v30 = vmul.f32 %v9460_v28, %v9460_v28  ;;  %v8323_v7 = vpack.c.bf16 %v1066_v39, %v1065_v37  ;;  %v9510_v39 = vsub.f32 %v9170_v1, %v9243_v40 }
 0x2de   :  { %8312 = vmatprep.subr.bf16.mxu1 %v8311_v10  ;;  %v1067_v10 = vmul.f32 %v9455_v34, %v9455_v34  ;;  %v9528_v1 = vsub.f32 %v9182_v35, %v9243_v40 }
 0x2df   :  { %v1075_v11 = vmul.f32 %v9510_v39, %v9510_v39 }
 0x2e0   :  { %v8326_v38 = vpack.c.bf16 %v1068_v30, %v1067_v10  ;;  %v9523_v30 = vsub.f32 %v9179_v33, %v9243_v40  ;;  %v9541_v33 = vsub.f32 %v9191_v36, %v9243_v40 }
 0x2e1   :  { %8314 = vmatpush3.bf16.msra.mxu1 %v8313_v31  ;;  %v9484_v31 = vsub.f32 %v9152_v23, %v9243_v40  ;;  %v9502_v23 = vsub.f32 %v9164_v51, %v9243_v40  ;;  %v1073_v51 = vmul.f32 %v9497_v15, %v9497_v15 }
 0x2e2   :  { %8316 = vmatprep.subr.bf16.mxu1 %v8315_v24  ;;  %v1070_v24 = vmul.f32 %v9476_v54, %v9476_v54  ;;  %v1077_v35 = vmul.f32 %v9523_v30, %v9523_v30 }
 0x2e3   :  { %v1071_v25 = vmul.f32 %v9484_v31, %v9484_v31 }
 0x2e4   :  { %v8329_v37 = vpack.c.bf16 %v1070_v24, %v1069_v9  ;;  %v9536_v24 = vsub.f32 %v9188_v63, %v9243_v40  ;;  %v12771_v63 = vld [vmem:[#allocation4_spill] sm:$0xff] }
 0x2e5   :  { %8318 = vmatpush3.bf16.msra.mxu1 %v8317_v13  ;;  %v1072_v13 = vmul.f32 %v9489_v6, %v9489_v6 }
 0x2e6   :  { %8319 = vmatprep.subr.bf16.mxu1 %v12768_v48  ;;  %v1079_v36 = vmul.f32 %v9536_v24, %v9536_v24 }
 0x2e7   :  { %v8332_v10 = vpack.c.bf16 %v1072_v13, %v1071_v25  ;;  %v12770_v13 = vld [vmem:[#allocation3_spill] sm:$0xff] }
 0x2e8   :  { %1156 = vmatmul.mubr.f32.vlgmr.msra.gmra.mrb[4].mxu1 %v12758_v12 }
 0x2e9   :  { %8321 = vmatpush1.bf16.msra.mxu1 %v8320_v58  ;;  %7862 = vmatprep.mubr.msk.f32.mxu1 %vm821_vm1, %v12758_v12  ;;  %v1074_v58 = vmul.f32 %v9502_v23, %v9502_v23 }
 0x2ea   :  { %8322 = vmatprep.subr.bf16.mxu1 %v12768_v48 }
 0x2eb   :  { %v8335_v9 = vpack.c.bf16 %v1074_v58, %v1073_v51  ;;  %v9554_v51 = vsub.f32 %v12771_v63, %v9243_v40  ;;  %v1080_v58 = vmul.f32 %v9541_v33, %v9541_v33 }
 0x2ed   :  { %8324 = vmatpush1.bf16.msra.mxu1 %v8323_v7  ;;  %v1076_v7 = vmul.f32 %v9515_v49, %v9515_v49  ;;  %v8344_v63 = vpack.c.bf16 %v1080_v58, %v1079_v36 }
 0x2ee   :  { %8325 = vmatprep.subr.bf16.mxu1 %v12768_v48 }
 0x2ef   :  { %v8338_v25 = vpack.c.bf16 %v1076_v7, %v1075_v11  ;;  %v9562_v11 = vsub.f32 %v9206_v0, %v9243_v40  ;;  %v12772_v7 = vld [vmem:[#allocation5_spill] sm:$0xff]  ;;  %v12774_v0 = vld [vmem:[#allocation7_spill] sm:$0xff] }
 0x2f1   :  { %8327 = vmatpush1.bf16.msra.mxu1 %v8326_v38  ;;  %v1078_v38 = vmul.f32 %v9528_v1, %v9528_v1 }
 0x2f2   :  { %8328 = vmatprep.subr.bf16.mxu1 %v12768_v48 }
 0x2f5   :  { %8330 = vmatpush1.bf16.msra.mxu1 %v8329_v37  ;;  %v9549_v37 = vsub.f32 %v12770_v13, %v9243_v40  ;;  %v1082_v13 = vmul.f32 %v9554_v51, %v9554_v51 }
 0x2f6   :  { %8331 = vmatprep.subr.bf16.mxu1 %v12768_v48 }
 0x2f9   :  { %8333 = vmatpush1.bf16.msra.mxu1 %v8332_v10  ;;  %v8341_v10 = vpack.c.bf16 %v1078_v38, %v1077_v35  ;;  %v12773_v35 = vld [vmem:[#allocation6_spill] sm:$0xff] }
 0x2fa   :  { %8334 = vmatprep.subr.bf16.mxu1 %v12768_v48  ;;  %v9575_v38 = vsub.f32 %v12773_v35, %v9243_v40  ;;  %v12775_v35 = vld [vmem:[#allocation8_spill] sm:$0xff] }
 0x2fc   :  { %v1085_v36 = vmul.f32 %v9575_v38, %v9575_v38 }
 0x2fd   :  { %8336 = vmatpush1.bf16.msra.mxu1 %v8335_v9  ;;  %v9567_v9 = vsub.f32 %v12772_v7, %v9243_v40  ;;  %v1083_v7 = vmul.f32 %v9562_v11, %v9562_v11 }
 0x2fe   :  { %8337 = vmatprep.subr.bf16.mxu1 %v12768_v48 }
 0x2ff   :  { %v1084_v28 = vmul.f32 %v9567_v9, %v9567_v9 }
 0x301   :  { %8339 = vmatpush1.bf16.msra.mxu1 %v8338_v25  ;;  %v1081_v25 = vmul.f32 %v9549_v37, %v9549_v37 }
 0x302   :  { %8340 = vmatprep.subr.bf16.mxu1 %v12768_v48 }
 0x303   :  { %v8347_v34 = vpack.c.bf16 %v1082_v13, %v1081_v25  ;;  %v9622_v25 = vld [vmem:[%s12659_s5 + $0x14] ss:$8 sps:$4 sm:$0xff]   ;;  %v9627_v13 = vld [vmem:[%s12659_s5 + $0x10] ss:$8 sps:$4 sm:$0xff]  }
 0x304   :  { %12782 = vst [vmem:[#allocation7_spill] sm:$0xff] %v9622_v25  ;;  %12783 = vst [vmem:[#allocation8_spill] sm:$0xff] %v9627_v13 }
 0x305   :  { %8342 = vmatpush1.bf16.msra.mxu1 %v8341_v10  ;;  %v1029_v10 = vsub.f32 %v12774_v0, %v9243_v40  ;;  %v1030_v0 = vsub.f32 %v12775_v35, %v9243_v40  ;;  %v9602_v40 = vld [vmem:[%s12659_s5 + $0x50] ss:$8 sps:$4 sm:$0xff]  }
 0x306   :  { %8343 = vmatprep.subr.bf16.mxu1 %v12768_v48  ;;  %12779 = vst [vmem:[#allocation4_spill] sm:$0xff] %v9602_v40 }
 0x307   :  { %v1086_v58 = vmul.f32 %v1029_v10, %v1029_v10  ;;  %v1087_v2 = vmul.f32 %v1030_v0, %v1030_v0  ;;  %v9634_v10 = vld [vmem:[%s12659_s5 + $0x24] ss:$8 sps:$4 sm:$0xff]  }
 0x308   :  { %12784 = vst [vmem:[#allocation19_spill] sm:$0xff] %v9634_v10 }
 0x309   :  { %8345 = vmatpush1.bf16.msra.mxu1 %v8344_v63  ;;  %v8350_v63 = vpack.c.bf16 %v1084_v28, %v1083_v7  ;;  %v8353_v21 = vpack.c.bf16 %v1086_v58, %v1085_v36  ;;  %v9597_v28 = vld [vmem:[%s12659_s5 + $0x54] ss:$8 sps:$4 sm:$0xff]  }
 0x30a   :  { %8346 = vmatprep.subr.bf16.mxu1 %v12768_v48  ;;  %12778 = vst [vmem:[#allocation3_spill] sm:$0xff] %v9597_v28  ;;  %2573 = vmatprep.subr.bf16.mxu0 %v9597_v28  ;;  %v12797_v28 = vld [vmem:[#allocation16_spill] sm:$0xff] }
 0x30b   :  { %2574 = vmatpush1.bf16.msra.mxu0 %v9602_v40 }
 0x30d   :  { %8348 = vmatpush1.bf16.msra.mxu1 %v8347_v34  ;;  %v12777_v34 = vmov 0  }
 0x30e   :  { %8349 = vmatprep.subr.bf16.mxu1 %v12768_v48 }
 0x311   :  { %8351 = vmatpush1.bf16.msra.mxu1 %v8350_v63 }
 0x312   :  { %8352 = vmatprep.subr.bf16.mxu1 %v12768_v48  ;;  %v9616_v48 = vld [vmem:[%s12659_s5] ss:$8 sps:$4 sm:$0xff]  }
 0x313   :  { %12781 = vst [vmem:[#allocation6_spill] sm:$0xff] %v9616_v48 }
 0x315   :  { %8354 = vmatpush1.bf16.msra.mxu1 %v8353_v21 }
 0x316   :  { %1209 = vmatprep.subr.mxu1 %v12776_v3 }
 0x319   :  { %7861 = vmatpush1.msk.msra.mxu1 %vm12717_vm2, %v1087_v2 }
 0x31a   :  { %1226 = vmatmul.mubr.f32.vlgmr.msra.gmra.mrb[6].mxu1 %v12758_v12  ;;  %v9609_v12 = vld [vmem:[%s12659_s5 + $0x4] ss:$8 sps:$4 sm:$0xff]  }
 0x31b   :  { %1591 = vmatprep.mubr.bf16.mxu1 %v12777_v34  ;;  %12780 = vst [vmem:[#allocation5_spill] sm:$0xff] %v9609_v12  ;;  %1559 = vmatprep.subr.bf16.mxu1 %v9609_v12  ;;  %v12799_v34 = vld [vmem:[#allocation18_spill] sm:$0xff] }
 0x31c   :  { %2712 = vmatprep.subr.bf16.mxu0 %v9609_v12  ;;  %1560 = vmatpush1.bf16.msra.mxu1 %v9616_v48 }
 0x31d   :  { %1561 = vmatprep.subr.bf16.mxu1 %v9622_v25 }
 0x320   :  { %1562 = vmatpush1.bf16.msra.mxu1 %v9627_v13  ;;  %v12798_v13 = vld [vmem:[#allocation17_spill] sm:$0xff] }
 0x321   :  { %1661 = vmatprep.subr.bf16.mxu1 %v9634_v10 }
 0x3bb   :  { %v8128_v3 = vpop.f32.mrb[4].mxu1 }
 0x3bc   :  { %v8129_v2 = vpop.f32.mrb[5].mxu1 }
 0x3bd   :  { %v8130_v21 = vadd.f32 %v8129_v2, %v8128_v3  ;;  %v1234_v3 = vld [vmem:[%s12660_s3] sm:$0x1] }
 0x3ed   :  { %v1227_v7 = vpop.f32.mrb[6].mxu1 }
 0x3ee   :  { %v1228_v36 = vadd.f32 %v8130_v21, %v1227_v7  ;;  %v1229_v58 = vpop.f32.mrb[7].mxu1  ;;  %v9650_v21 = vld [vmem:[%s12661_s4] ss:$0 sm:$0xff] }
 0x3f0   :  { %v1231_v63 = vmul.f32 0.0022222223, %v1228_v36 }
 0x3f2   :  { %v1232_v35 = vadd.f32 1e-05, %v1231_v63 }
 0x3f4   :  { %8584 = vrsqrt.f32 %v1232_v35 }
 0x3fe   :  { %v8585_v0 = vpop.eup %8584 }
 0x3ff   :  { %v1235_v2 = vmul.f32 %v8585_v0, %v1234_v3 }
 0x401   :  { %v9641_v12 = vrot.slane %v1235_v2, %v9240_v62  ;;  %v12795_v62 = vld [vmem:[#allocation14_spill] sm:$0xff] }
 0x403   :  { %v1252_v40 = vmul.f32 %v9641_v12, %v9391_v56  ;;  %v1253_v10 = vmul.f32 %v9641_v12, %v9395_v14  ;;  %v1254_v7 = vmul.f32 %v9641_v12, %v9415_v8  ;;  %v1257_v36 = vmul.f32 %v9641_v12, %v9259_v43 }
 0x404   :  { %v1261_v58 = vmul.f32 %v9641_v12, %v9291_v57  ;;  %v1265_v56 = vmul.f32 %v9641_v12, %v9339_v18  ;;  %v1266_v14 = vmul.f32 %v9641_v12, %v9355_v22  ;;  %v1269_v63 = vmul.f32 %v9641_v12, %v9399_v44 }
 0x405   :  { %v1273_v35 = vmul.f32 %v9641_v12, %v9443_v53  ;;  %v1277_v8 = vmul.f32 %v9641_v12, %v9471_v52  ;;  %v9669_v43 = vadd.f32 %v9650_v21, %v1252_v40  ;;  %v9672_v57 = vadd.f32 %v9650_v21, %v1253_v10 }
 0x406   :  { %v1278_v18 = vmul.f32 %v9641_v12, %v9476_v54  ;;  %v1279_v22 = vmul.f32 %v9641_v12, %v9484_v31  ;;  %v9679_v44 = vadd.f32 %v9650_v21, %v1254_v7  ;;  %v9682_v53 = vadd.f32 %v9650_v21, %v1257_v36 }
 0x407   :  { %v1280_v52 = vmul.f32 %v9641_v12, %v9489_v6  ;;  %v1281_v40 = vmul.f32 %v9641_v12, %v9497_v15  ;;  %v1282_v10 = vmul.f32 %v9641_v12, %v9502_v23  ;;  %v9691_v54 = vadd.f32 %v9650_v21, %v1261_v58 }
 0x408   :  { %v1283_v31 = vmul.f32 %v9641_v12, %v9510_v39  ;;  %v1284_v0 = vmul.f32 %v9641_v12, %v9515_v49  ;;  %v1285_v3 = vmul.f32 %v9641_v12, %v9523_v30  ;;  %v9700_v6 = vadd.f32 %v9650_v21, %v1265_v56 }
 0x409   :  { %v1286_v15 = vmul.f32 %v9641_v12, %v9528_v1  ;;  %v1287_v23 = vmul.f32 %v9641_v12, %v9536_v24  ;;  %v9707_v2 = vadd.f32 %v9650_v21, %v1266_v14  ;;  %v9710_v39 = vadd.f32 %v9650_v21, %v1269_v63 }
 0x40a   :  { %v1288_v49 = vmul.f32 %v9641_v12, %v9541_v33  ;;  %v1289_v30 = vmul.f32 %v9641_v12, %v9549_v37  ;;  %v1290_v7 = vmul.f32 %v9641_v12, %v9554_v51  ;;  %v9719_v1 = vadd.f32 %v9650_v21, %v1273_v35 }
 0x40b   :  { %v1291_v24 = vmul.f32 %v9641_v12, %v9562_v11  ;;  %v1292_v36 = vmul.f32 %v9641_v12, %v9567_v9  ;;  %v1293_v58 = vmul.f32 %v9641_v12, %v9575_v38  ;;  %v9728_v33 = vadd.f32 %v9650_v21, %v1277_v8 }
 0x40c   :  { %v9731_v37 = vadd.f32 %v9650_v21, %v1278_v18  ;;  %v9734_v51 = vadd.f32 %v9650_v21, %v1279_v22  ;;  %v9737_v56 = vadd.f32 %v9650_v21, %v1280_v52  ;;  %v9740_v11 = vadd.f32 %v9650_v21, %v1281_v40 }
 0x40d   :  { %12785 = vst [vmem:[#allocation20_spill] sm:$0xff] %v9728_v33  ;;  %v9743_v9 = vadd.f32 %v9650_v21, %v1282_v10  ;;  %v9746_v38 = vadd.f32 %v9650_v21, %v1283_v31  ;;  %v9749_v14 = vadd.f32 %v9650_v21, %v1284_v0  ;;  %v9752_v63 = vadd.f32 %v9650_v21, %v1285_v3 }
 0x40e   :  { %v9755_v35 = vadd.f32 %v9650_v21, %v1286_v15  ;;  %v9758_v8 = vadd.f32 %v9650_v21, %v1287_v23  ;;  %v9761_v18 = vadd.f32 %v9650_v21, %v1288_v49  ;;  %v9764_v22 = vadd.f32 %v9650_v21, %v1289_v30 }
 0x40f   :  { %12786 = vst [vmem:[#allocation21_spill] sm:$0xff] %v9749_v14  ;;  %v9767_v52 = vadd.f32 %v9650_v21, %v1290_v7  ;;  %v9770_v40 = vadd.f32 %v9650_v21, %v1291_v24  ;;  %v9773_v10 = vadd.f32 %v9650_v21, %v1292_v36  ;;  %v9776_v31 = vadd.f32 %v9650_v21, %v1293_v58  ;;  %v12792_v24 = vld [vmem:[#allocation11_spill] sm:$0xff]  ;;  %v12793_v36 = vld [vmem:[#allocation12_spill] sm:$0xff]  ;;  %v12794_v58 = vld [vmem:[#allocation13_spill] sm:$0xff] }
 0x410   :  { %12787 = vst [vmem:[#allocation22_spill] sm:$0xff] %v9758_v8  ;;  %12788 = vst [vmem:[#allocation23_spill] sm:$0xff] %v9761_v18  ;;  %v1240_v0 = vmul.f32 %v9641_v12, %v9247_v20  ;;  %v1241_v3 = vmul.f32 %v9641_v12, %v9251_v41  ;;  %v1242_v15 = vmul.f32 %v9641_v12, %v9279_v17  ;;  %vm1367_vm15 = vcmp.gt.f32.partialorder %v9669_v43, 0.0 }
 0x411   :  { %12789 = vst [vmem:[#allocation24_spill] sm:$0xff] %v9770_v40  ;;  %12790 = vst [vmem:[#allocation25_spill] sm:$0xff] %v9773_v10  ;;  %v1243_v23 = vmul.f32 %v9641_v12, %v9283_v59  ;;  %v1244_v49 = vmul.f32 %v9641_v12, %v9299_v55  ;;  %v1245_v30 = vmul.f32 %v9641_v12, %v9303_v4  ;;  %vm1368_vm1 = vcmp.gt.f32.partialorder %v9672_v57, 0.0 }
 0x412   :  { %12791 = vst [vmem:[#allocation26_spill] sm:$0xff] %v9776_v31  ;;  %v1246_v7 = vmul.f32 %v9641_v12, %v9323_v45  ;;  %v1247_v20 = vmul.f32 %v9641_v12, %v9327_v29  ;;  %v1248_v41 = vmul.f32 %v9641_v12, %v9347_v60  ;;  %v1249_v17 = vmul.f32 %v9641_v12, %v9351_v5  ;;  %v12796_v31 = vld [vmem:[#allocation15_spill] sm:$0xff] }
 0x413   :  { %v1250_v59 = vmul.f32 %v9641_v12, %v9369_v42  ;;  %v1251_v55 = vmul.f32 %v9641_v12, %v9373_v27  ;;  %v1255_v4 = vmul.f32 %v9641_v12, %v9419_v32  ;;  %v1256_v45 = vmul.f32 %v9641_v12, %v12792_v24 }
 0x414   :  { %v1258_v29 = vmul.f32 %v9641_v12, %v9271_v47  ;;  %v1259_v60 = vmul.f32 %v9641_v12, %v12793_v36  ;;  %v1260_v5 = vmul.f32 %v9641_v12, %v12794_v58  ;;  %v1262_v42 = vmul.f32 %v9641_v12, %v9311_v19 }
 0x415   :  { %v1263_v27 = vmul.f32 %v9641_v12, %v9315_v50  ;;  %v1264_v32 = vmul.f32 %v9641_v12, %v9331_v16  ;;  %v1267_v24 = vmul.f32 %v9641_v12, %v9377_v26  ;;  %v1268_v47 = vmul.f32 %v9641_v12, %v9385_v46 }
 0x416   :  { %v1270_v36 = vmul.f32 %v9641_v12, %v9407_v61  ;;  %v1271_v58 = vmul.f32 %v9641_v12, %v12795_v62  ;;  %v1272_v19 = vmul.f32 %v9641_v12, %v12796_v31  ;;  %v1274_v50 = vmul.f32 %v9641_v12, %v12797_v28 }
 0x417   :  { %v1275_v16 = vmul.f32 %v9641_v12, %v12798_v13  ;;  %v1276_v26 = vmul.f32 %v9641_v12, %v12799_v34  ;;  %v1301_v46 = vadd.f32 %v9650_v21, %v1240_v0  ;;  %v1302_v25 = vadd.f32 %v9650_v21, %v1241_v3 }
 0x418   :  { %v1303_v61 = vadd.f32 %v9650_v21, %v1242_v15  ;;  %v1304_v62 = vadd.f32 %v9650_v21, %v1243_v23  ;;  %v9839_v48 = vadd.f32 %v9650_v21, %v1244_v49  ;;  %v9842_v31 = vadd.f32 %v9650_v21, %v1245_v30 }
 0x419   :  { %v9845_v28 = vadd.f32 %v9650_v21, %v1246_v7  ;;  %v9848_v13 = vadd.f32 %v9650_v21, %v1247_v20  ;;  %v9851_v34 = vadd.f32 %v9650_v21, %v1248_v41  ;;  %v9854_v12 = vadd.f32 %v9650_v21, %v1249_v17 }
 0x41a   :  { %v9857_v0 = vadd.f32 %v9650_v21, %v1250_v59  ;;  %v9860_v3 = vadd.f32 %v9650_v21, %v1251_v55  ;;  %v9863_v15 = vadd.f32 %v9650_v21, %v1255_v4  ;;  %v9866_v23 = vadd.f32 %v9650_v21, %v1256_v45 }
 0x41b   :  { %v9869_v49 = vadd.f32 %v9650_v21, %v1258_v29  ;;  %v9872_v30 = vadd.f32 %v9650_v21, %v1259_v60  ;;  %v9875_v7 = vadd.f32 %v9650_v21, %v1260_v5  ;;  %v9878_v20 = vadd.f32 %v9650_v21, %v1262_v42 }
 0x41c   :  { %v9881_v41 = vadd.f32 %v9650_v21, %v1263_v27  ;;  %v9884_v17 = vadd.f32 %v9650_v21, %v1264_v32  ;;  %v9887_v59 = vadd.f32 %v9650_v21, %v1267_v24  ;;  %v9890_v55 = vadd.f32 %v9650_v21, %v1268_v47 }
 0x41d   :  { %v9893_v4 = vadd.f32 %v9650_v21, %v1270_v36  ;;  %v9896_v45 = vadd.f32 %v9650_v21, %v1271_v58  ;;  %v9899_v29 = vadd.f32 %v9650_v21, %v1272_v19  ;;  %v9902_v60 = vadd.f32 %v9650_v21, %v1274_v50 }
 0x41e   :  { %v9905_v5 = vadd.f32 %v9650_v21, %v1275_v16  ;;  %vm1355_vm3 = vcmp.gt.f32.partialorder %v1301_v46, 0.0  ;;  %vm1356_vm4 = vcmp.gt.f32.partialorder %v1302_v25, 0.0  ;;  %vm1357_vm5 = vcmp.gt.f32.partialorder %v1303_v61, 0.0 }
 0x41f   :  { %12800 = vst [vmem:[#allocation11_spill] sm:$0xff] %v9902_v60  ;;  %vm1358_vm6 = vcmp.gt.f32.partialorder %v1304_v62, 0.0  ;;  %v1409_v42 = vmul.f32 0.01, %v1301_v46  ;;  %vm1359_vm7 = vcmp.gt.f32.partialorder %v9839_v48, 0.0  ;;  %vm1360_vm8 = vcmp.gt.f32.partialorder %v9842_v31, 0.0 }
 0x420   :  { %vm1361_vm9 = vcmp.gt.f32.partialorder %v9845_v28, 0.0  ;;  %v1410_v27 = vmul.f32 0.01, %v1302_v25  ;;  %vm1362_vm10 = vcmp.gt.f32.partialorder %v9848_v13, 0.0  ;;  %vm1363_vm11 = vcmp.gt.f32.partialorder %v9851_v34, 0.0 }
 0x421   :  { %vm1364_vm12 = vcmp.gt.f32.partialorder %v9854_v12, 0.0  ;;  %v1411_v32 = vmul.f32 0.01, %v1303_v61  ;;  %v9914_v24 = vadd.f32 %v9650_v21, %v1276_v26  ;;  %vm1365_vm13 = vcmp.gt.f32.partialorder %v9857_v0, 0.0 }
 0x422   :  { %v1412_v47 = vmul.f32 0.01, %v1304_v62  ;;  %v1413_v36 = vmul.f32 0.01, %v9839_v48  ;;  %v1414_v58 = vmul.f32 0.01, %v9842_v31  ;;  %v9924_v10 = vsel %vm1355_vm3, %v1301_v46, %v1409_v42 }
 0x423   :  { %12801 = vst [vmem:[#allocation12_spill] sm:$0xff] %v9914_v24  ;;  %vm1366_vm14 = vcmp.gt.f32.partialorder %v9860_v3, 0.0  ;;  %v1415_v19 = vmul.f32 0.01, %v9845_v28  ;;  %v1416_v50 = vmul.f32 0.01, %v9848_v13  ;;  %v9935_v18 = vsel %vm1356_vm4, %v1302_v25, %v1410_v27 }
 0x424   :  { %v1417_v16 = vmul.f32 0.01, %v9851_v34  ;;  %12802 = vst [vmem:[#allocation13_spill] sm:$0xff] %v9924_v10  ;;  %v1418_v21 = vmul.f32 0.01, %v9854_v12  ;;  %12803 = vst [vmem:[#allocation14_spill] sm:$0xff] %v9935_v18  ;;  %v9948_v10 = vsel %vm1357_vm5, %v1303_v61, %v1411_v32  ;;  %v9961_v18 = vsel %vm1358_vm6, %v1304_v62, %v1412_v47 }
 0x425   :  { %v9929_v26 = vmul.f32 0.01, %v9857_v0  ;;  %v9932_v40 = vmul.f32 0.01, %v9860_v3  ;;  %v9939_v8 = vmul.f32 0.01, %v9669_v43  ;;  %v9978_v62 = vsel %vm1359_vm7, %v9839_v48, %v1413_v36 }
 0x426   :  { %v9942_v46 = vmul.f32 0.01, %v9672_v57  ;;  %v9945_v42 = vmul.f32 0.01, %v9679_v44  ;;  %12804 = vst [vmem:[#allocation15_spill] sm:$0xff] %v9948_v10  ;;  %vm1369_vm3 = vcmp.gt.f32.partialorder %v9679_v44, 0.0  ;;  %v9996_v48 = vsel %vm1360_vm8, %v9842_v31, %v1414_v58 }
 0x427   :  { %v9952_v14 = vmul.f32 0.01, %v9863_v15  ;;  %v9955_v25 = vmul.f32 0.01, %v9866_v23  ;;  %v9958_v27 = vmul.f32 0.01, %v9682_v53  ;;  %v10014_v31 = vsel %vm1361_vm9, %v9845_v28, %v1415_v19 }
 0x428   :  { %12805 = vst [vmem:[#allocation16_spill] sm:$0xff] %v9961_v18  ;;  %vm1370_vm4 = vcmp.gt.f32.partialorder %v9863_v15, 0.0  ;;  %v9967_v61 = vmul.f32 0.01, %v9869_v49  ;;  %v9970_v32 = vmul.f32 0.01, %v9872_v30  ;;  %v10032_v28 = vsel %vm1362_vm10, %v9848_v13, %v1416_v50 }
 0x429   :  { %v9973_v10 = vmul.f32 0.01, %v9875_v7  ;;  %12807 = vst [vmem:[#allocation18_spill] sm:$0xff] %v9978_v62  ;;  %vm1373_vm6 = vcmp.gt.f32.partialorder %v9869_v49, 0.0  ;;  %v9985_v47 = vmul.f32 0.01, %v9691_v54  ;;  %v10050_v13 = vsel %vm1363_vm11, %v9851_v34, %v1417_v16 }
 0x42a   :  { %v9988_v18 = vmul.f32 0.01, %v9878_v20  ;;  %12809 = vst [vmem:[#allocation28_spill] sm:$0xff] %v9996_v48  ;;  %vm1377_vm7 = vcmp.gt.f32.partialorder %v9878_v20, 0.0  ;;  %v10003_v36 = vmul.f32 0.01, %v9884_v17 }
 0x42b   :  { %12806 = vst [vmem:[#allocation17_spill] sm:$0xff] %v9973_v10  ;;  %v9991_v10 = vmul.f32 0.01, %v9881_v41  ;;  %v10006_v62 = vmul.f32 0.01, %v9700_v6  ;;  %12811 = vst [vmem:[#allocation30_spill] sm:$0xff] %v10014_v31 }
 0x42c   :  { %vm1381_vm8 = vcmp.gt.f32.partialorder %v9707_v2, 0.0  ;;  %v10021_v58 = vmul.f32 0.01, %v9887_v59  ;;  %v10024_v48 = vmul.f32 0.01, %v9890_v55  ;;  %12813 = vst [vmem:[#allocation32_spill] sm:$0xff] %v10032_v28 }
 0x42d   :  { %12808 = vst [vmem:[#allocation27_spill] sm:$0xff] %v9991_v10  ;;  %v10009_v10 = vmul.f32 0.01, %v9707_v2  ;;  %vm1394_vm9 = vcmp.gt.f32.partialorder %v9734_v51, 0.0  ;;  %vm1397_vm0 = vcmp.gt.f32.partialorder %v9743_v9, 0.0  ;;  %vm1398_vm5 = vcmp.gt.f32.partialorder %v9746_v38, 0.0 }
 0x42e   :  { %v10039_v19 = vmul.f32 0.01, %v9893_v4  ;;  %v10042_v31 = vmul.f32 0.01, %v9896_v45  ;;  %12816 = vst [vmem:[#allocation35_spill] sm:$0xff] %v10050_v13  ;;  %vm1401_vm10 = vcmp.gt.f32.partialorder %v9755_v35, 0.0 }
 0x42f   :  { %12810 = vst [vmem:[#allocation29_spill] sm:$0xff] %v10009_v10  ;;  %v10027_v10 = vmul.f32 0.01, %v9710_v39  ;;  %v10054_v50 = vmul.f32 0.01, %v9719_v1  ;;  %vm1385_vm2 = vcmp.gt.f32.partialorder %v9893_v4, 0.0 }
 0x430   :  { %12814 = vst [vmem:[#allocation33_spill] sm:$0xff] %v10039_v19  ;;  %v10057_v28 = vmul.f32 0.01, %v9902_v60  ;;  %v10060_v19 = vmul.f32 0.01, %v9905_v5  ;;  %vm1386_vm11 = vcmp.gt.f32.partialorder %v9896_v45, 0.0 }
 0x431   :  { %12812 = vst [vmem:[#allocation31_spill] sm:$0xff] %v10027_v10  ;;  %v10045_v10 = vmul.f32 0.01, %v9899_v29  ;;  %v10070_v34 = vmul.f32 0.01, %v9914_v24 }
 0x432   :  { %12817 = vst [vmem:[#allocation36_spill] sm:$0xff] %v10060_v19  ;;  %v10073_v16 = vmul.f32 0.01, %v9728_v33  ;;  %v1447_v13 = vmul.f32 0.01, %v9731_v37  ;;  %v10080_v19 = vsel %vm1365_vm13, %v9857_v0, %v9929_v26  ;;  %vm1389_vm13 = vcmp.gt.f32.partialorder %v9902_v60, 0.0 }
 0x433   :  { %12815 = vst [vmem:[#allocation34_spill] sm:$0xff] %v10045_v10  ;;  %v10065_v10 = vsel %vm1364_vm12, %v9854_v12, %v1418_v21  ;;  %12819 = vst [vmem:[#allocation38_spill] sm:$0xff] %v10070_v34  ;;  %v1448_v12 = vmul.f32 0.01, %v9734_v51  ;;  %v10086_v21 = vmul.f32 0.01, %v9737_v56  ;;  %v1478_v33 = vsel %vm1370_vm4, %v9863_v15, %v9952_v14 }
 0x434   :  { %12818 = vst [vmem:[#allocation37_spill] sm:$0xff] %v10065_v10  ;;  %12820 = vst [vmem:[#allocation39_spill] sm:$0xff] %v10073_v16  ;;  %v10089_v10 = vmul.f32 0.01, %v9740_v11  ;;  %v10095_v16 = vsel %vm1366_vm14, %v9860_v3, %v9932_v40  ;;  %v1451_v0 = vmul.f32 0.01, %v9743_v9 }
 0x435   :  { %12821 = vst [vmem:[#allocation40_spill] sm:$0xff] %v10080_v19  ;;  %12822 = vst [vmem:[#allocation41_spill] sm:$0xff] %v10086_v21  ;;  %v1452_v26 = vmul.f32 0.01, %v9746_v38  ;;  %v12825_v19 = vld [vmem:[#allocation21_spill] sm:$0xff]  ;;  %vm12834_vm14 = vcmp.gt.f32.partialorder %v9682_v53, 0.0 }
 0x436   :  { %12823 = vst [vmem:[#allocation42_spill] sm:$0xff] %v10089_v10  ;;  %12824 = vst [vmem:[#allocation43_spill] sm:$0xff] %v10095_v16  ;;  %v10102_v21 = vmul.f32 0.01, %v12825_v19  ;;  %v10108_v10 = vsel %vm1367_vm15, %v9669_v43, %v9939_v8  ;;  %v1454_v40 = vmul.f32 0.01, %v9752_v63  ;;  %v1480_v24 = vsel %vm12834_vm14, %v9682_v53, %v9958_v27 }
 0x437   :  { %12827 = vst [vmem:[#allocation44_spill] sm:$0xff] %v10108_v10  ;;  %v1455_v3 = vmul.f32 0.01, %v9755_v35  ;;  %v12828_v16 = vld [vmem:[#allocation22_spill] sm:$0xff]  ;;  %v12830_v43 = vld [vmem:[#allocation23_spill] sm:$0xff]  ;;  %vm1396_vm12 = vcmp.gt.f32.partialorder %v9740_v11, 0.0 }
 0x438   :  { %12826 = vst [vmem:[#allocation21_spill] sm:$0xff] %v10102_v21  ;;  %v10115_v34 = vmul.f32 0.01, %v12828_v16  ;;  %v10121_v21 = vsel %vm1368_vm1, %v9672_v57, %v9942_v46  ;;  %v10127_v8 = vmul.f32 0.01, %v12830_v43  ;;  %v12832_v57 = vld [vmem:[#allocation24_spill] sm:$0xff] }
 0x439   :  { %v1458_v10 = vmul.f32 0.01, %v9764_v22  ;;  %v1459_v60 = vmul.f32 0.01, %v9767_v52  ;;  %v10136_v46 = vmul.f32 0.01, %v12832_v57 }
 0x43a   :  { %12829 = vst [vmem:[#allocation22_spill] sm:$0xff] %v10115_v34  ;;  %12831 = vst [vmem:[#allocation23_spill] sm:$0xff] %v10127_v8  ;;  %v1477_v34 = vsel %vm1369_vm3, %v9679_v44, %v9945_v42  ;;  %vm12833_vm1 = vcmp.gt.f32.partialorder %v9866_v23, 0.0  ;;  %vm1395_vm3 = vcmp.gt.f32.partialorder %v9737_v56, 0.0  ;;  %vm1399_vm15 = vcmp.gt.f32.partialorder %v12825_v19, 0.0  ;;  %v12836_v15 = vld [vmem:[#allocation17_spill] sm:$0xff] }
 0x43b   :  { %v1479_v8 = vsel %vm12833_vm1, %v9866_v23, %v9955_v25  ;;  %v10157_v44 = vsel %vm1373_vm6, %v9869_v49, %v9967_v61  ;;  %vm12835_vm4 = vcmp.gt.f32.partialorder %v9872_v30, 0.0  ;;  %vm12837_vm14 = vcmp.gt.f32.partialorder %v9875_v7, 0.0  ;;  %v12839_v42 = vld [vmem:[#allocation27_spill] sm:$0xff]  ;;  %v12851_v25 = vld [vmem:[#allocation25_spill] sm:$0xff] }
 0x43c   :  { %v10163_v14 = vsel %vm12835_vm4, %v9872_v30, %v9970_v32  ;;  %v10169_v53 = vsel %vm12837_vm14, %v9875_v7, %v12836_v15  ;;  %vm12838_vm1 = vcmp.gt.f32.partialorder %v9691_v54, 0.0  ;;  %v10179_v49 = vsel %vm1377_vm7, %v9878_v20, %v9988_v18  ;;  %v12843_v18 = vld [vmem:[#allocation29_spill] sm:$0xff]  ;;  %v12875_v15 = vld [vmem:[#allocation39_spill] sm:$0xff] }
 0x43d   :  { %v1484_v23 = vsel %vm12838_vm1, %v9691_v54, %v9985_v47  ;;  %vm12840_vm6 = vcmp.gt.f32.partialorder %v9881_v41, 0.0  ;;  %vm12841_vm4 = vcmp.gt.f32.partialorder %v9884_v17, 0.0  ;;  %vm12842_vm14 = vcmp.gt.f32.partialorder %v9700_v6, 0.0  ;;  %v12861_v47 = vld [vmem:[#allocation16_spill] sm:$0xff] }
 0x43e   :  { %v10185_v30 = vsel %vm12840_vm6, %v9881_v41, %v12839_v42  ;;  %v10191_v7 = vsel %vm12841_vm4, %v9884_v17, %v10003_v36  ;;  %v1488_v54 = vsel %vm12842_vm14, %v9700_v6, %v10006_v62  ;;  %vm1402_vm7 = vcmp.gt.f32.partialorder %v12828_v16, 0.0  ;;  %v12856_v62 = vld [vmem:[#allocation31_spill] sm:$0xff]  ;;  %v12863_v36 = vld [vmem:[#allocation34_spill] sm:$0xff] }
 0x43f   :  { %v10202_v20 = vsel %vm1381_vm8, %v9707_v2, %v12843_v18  ;;  %vm12844_vm1 = vcmp.gt.f32.partialorder %v9887_v59, 0.0  ;;  %vm12845_vm6 = vcmp.gt.f32.partialorder %v9890_v55, 0.0  ;;  %vm12846_vm4 = vcmp.gt.f32.partialorder %v9731_v37, 0.0 }
 0x440   :  { %v10208_v41 = vsel %vm12844_vm1, %v9887_v59, %v10021_v58  ;;  %v10214_v17 = vsel %vm12845_vm6, %v9890_v55, %v10024_v48  ;;  %v10219_v6 = vsel %vm12846_vm4, %v9731_v37, %v1447_v13  ;;  %vm1403_vm8 = vcmp.gt.f32.partialorder %v12830_v43, 0.0 }
 0x441   :  { %12847 = vst [vmem:[#allocation24_spill] sm:$0xff] %v10219_v6  ;;  %v1502_v2 = vsel %vm1394_vm9, %v9734_v51, %v1448_v12  ;;  %v10228_v59 = vsel %vm1397_vm0, %v9743_v9, %v1451_v0  ;;  %v1506_v55 = vsel %vm1398_vm5, %v9746_v38, %v1452_v26  ;;  %vm12849_vm14 = vcmp.gt.f32.partialorder %v9752_v63, 0.0  ;;  %v10319_v26 = vld [vmem:[%s12659_s5 + $0x20] ss:$8 sps:$4 sm:$0xff]  }
 0x442   :  { %12848 = vst [vmem:[#allocation17_spill] sm:$0xff] %v10228_v59  ;;  %v10236_v37 = vsel %vm12849_vm14, %v9752_v63, %v1454_v40  ;;  %vm1406_vm1 = vcmp.gt.f32.partialorder %v12832_v57, 0.0  ;;  %vm1407_vm6 = vcmp.gt.f32.partialorder %v12851_v25, 0.0  ;;  %v1509_v51 = vsel %vm1401_vm10, %v9755_v35, %v1455_v3  ;;  %v12869_v40 = vld [vmem:[#allocation7_spill] sm:$0xff]  ;;  %v12873_v3 = vld [vmem:[#allocation12_spill] sm:$0xff] }
 0x443   :  { %12850 = vst [vmem:[#allocation27_spill] sm:$0xff] %v10236_v37  ;;  %v10244_v9 = vpack.c.bf16 %v1477_v34, %v10121_v21  ;;  %v2567_v27 = vpack.c.bf16 %v1479_v8, %v1478_v33  ;;  %v10246_v61 = vpack.c.bf16 %v1480_v24, %v1479_v8  ;;  %vm12853_vm0 = vcmp.gt.f32.partialorder %v9764_v22, 0.0  ;;  %v12858_v24 = vld [vmem:[#allocation33_spill] sm:$0xff]  ;;  %v12866_v34 = vld [vmem:[#allocation6_spill] sm:$0xff] }
 0x444   :  { %v10251_v38 = vsel %vm12853_vm0, %v9764_v22, %v1458_v10  ;;  %vm12855_vm5 = vcmp.gt.f32.partialorder %v9767_v52, 0.0  ;;  %v10257_v32 = vpack.c.bf16 %v1484_v23, %v10169_v53  ;;  %v10260_v35 = vpack.c.bf16 %v1488_v54, %v10191_v7  ;;  %v12859_v10 = vld [vmem:[#allocation14_spill] sm:$0xff]  ;;  %v12876_v23 = vld [vmem:[#allocation20_spill] sm:$0xff]  ;;  %v12879_v54 = vld [vmem:[#allocation13_spill] sm:$0xff] }
 0x445   :  { %12852 = vst [vmem:[#allocation29_spill] sm:$0xff] %v10244_v9  ;;  %12854 = vst [vmem:[#allocation25_spill] sm:$0xff] %v10251_v38  ;;  %v1513_v63 = vsel %vm12855_vm5, %v9767_v52, %v1459_v60  ;;  %vm12857_vm9 = vcmp.gt.f32.partialorder %v9710_v39, 0.0  ;;  %v10272_v22 = vsel %vm1385_vm2, %v9893_v4, %v12858_v24  ;;  %v12860_v52 = vld [vmem:[#allocation15_spill] sm:$0xff]  ;;  %v1619_v48 = vpack.c.bf16 %v12861_v47, %v12861_v47  ;;  %v12905_v9 = vld [vmem:[#allocation26_spill] sm:$0xff] }
 0x446   :  { %v10266_v33 = vsel %vm12857_vm9, %v9710_v39, %v12856_v62  ;;  %v1618_v60 = vpack.c.bf16 %v12860_v52, %v12859_v10  ;;  %vm12862_vm10 = vcmask 261120   ;;  %v10283_v39 = vsel %vm1386_vm11, %v9896_v45, %v10042_v31  ;;  %v12868_v31 = vld [vmem:[#allocation11_spill] sm:$0xff]  ;;  %v12881_v52 = vld [vmem:[#allocation41_spill] sm:$0xff] }
 0x447   :  { %7895 = vmatmul.mubr.msk.bf16.vlgmr.msra.gmra.mrb[116].mxu0 %vm12862_vm10, %v2567_v27  ;;  %vm12864_vm4 = vcmp.gt.f32.partialorder %v9899_v29, 0.0  ;;  %v10292_v58 = vpack.c.bf16 %v1502_v2, %v10219_v6  ;;  %v10295_v13 = vpack.c.bf16 %v1506_v55, %v10228_v59  ;;  %vm12867_vm2 = vcmp.gt.f32.partialorder %v9719_v1, 0.0  ;;  %vm12887_vm0 = vmmov %vm12862_vm10  ;;  %v12915_v6 = vld [vmem:[#allocation44_spill] sm:$0xff] }
 0x448   :  { %v10289_v4 = vsel %vm12864_vm4, %v9899_v29, %v12863_v36  ;;  %2713 = vmatpush1.bf16.msra.mxu0 %v12866_v34  ;;  %v10302_v45 = vsel %vm12867_vm2, %v9719_v1, %v10054_v50  ;;  %v10308_v29 = vsel %vm1389_vm13, %v12868_v31, %v10057_v28  ;;  %v10311_v12 = vpack.c.bf16 %v1509_v51, %v10236_v37  ;;  %v12870_v1 = vld [vmem:[#allocation36_spill] sm:$0xff]  ;;  %v12872_v28 = vld [vmem:[#allocation38_spill] sm:$0xff]  ;;  %vm12911_vm5 = vmmov %vm12887_vm0 }
 0x449   :  { %12865 = vst [vmem:[#allocation31_spill] sm:$0xff] %v10295_v13  ;;  %v10314_v0 = vpack.c.bf16 %v1513_v63, %v10251_v38  ;;  %2714 = vmatprep.subr.bf16.mxu0 %v12869_v40  ;;  %vm12871_vm11 = vcmp.gt.f32.partialorder %v9905_v5, 0.0  ;;  %vm12874_vm13 = vcmp.gt.f32.partialorder %v12873_v3, 0.0  ;;  %vm12877_vm14 = vcmp.gt.f32.partialorder %v12876_v23, 0.0  ;;  %vm12914_vm10 = vmmov %vm12887_vm0 }
 0x44a   :  { %v10326_v50 = vsel %vm12871_vm11, %v9905_v5, %v12870_v1  ;;  %v10332_v8 = vsel %vm12874_vm13, %v12873_v3, %v12872_v28  ;;  %v10338_v42 = vsel %vm12877_vm14, %v12876_v23, %v12875_v15  ;;  %v1534_v18 = vpack.c.bf16 %v12859_v10, %v12879_v54  ;;  %v10345_v5 = vld [vmem:[%s12659_s5 + $0x34] ss:$8 sps:$4 sm:$0xff]   ;;  %v12883_v10 = vld [vmem:[#allocation42_spill] sm:$0xff]  ;;  %v12885_v1 = vld [vmem:[#allocation21_spill] sm:$0xff] }
 0x44b   :  { %12878 = vst [vmem:[#allocation33_spill] sm:$0xff] %v10338_v42  ;;  %v12880_v2 = vmov 0   ;;  %v1622_v55 = vshrl.u32 %v1618_v60, 16  ;;  %v1625_v51 = vshll.u32 %v1618_v60, 16  ;;  %v1630_v63 = vshrl.u32 %v1619_v48, 16  ;;  %v12889_v23 = vld [vmem:[#allocation22_spill] sm:$0xff]  ;;  %vm12917_vm4 = vmmov %vm12887_vm0 }
 0x44c   :  { %2744 = vmatprep.mubr.bf16.mxu0 %v12880_v2  ;;  %v1633_v62 = vshll.u32 %v1619_v48, 16  ;;  %v1461_v24 = vmul.f32 0.01, %v12851_v25  ;;  %v10353_v36 = vsel %vm1395_vm3, %v9737_v56, %v12881_v52  ;;  %v10359_v31 = vsel %vm1396_vm12, %v9740_v11, %v12883_v10  ;;  %7868 = vmatmul.mubr.msk.bf16.vlgmr.msra.gmra.mrb[8].mxu1 %vm12887_vm0, %v1534_v18  ;;  %v12888_v48 = vld [vmem:[#allocation8_spill] sm:$0xff]  ;;  %v10386_v54 = vld [vmem:[%s12659_s5 + $0x44] ss:$8 sps:$4 sm:$0xff]   ;;  %vm12918_vm2 = vmmov %vm12887_vm0 }
 0x44d   :  { %12882 = vst [vmem:[#allocation14_spill] sm:$0xff] %v10353_v36  ;;  %12884 = vst [vmem:[#allocation15_spill] sm:$0xff] %v10359_v31  ;;  %v10365_v60 = vsel %vm1399_vm15, %v12825_v19, %v12885_v1  ;;  %2715 = vmatpush1.bf16.msra.mxu0 %v12888_v48  ;;  %1662 = vmatpush1.bf16.msra.mxu1 %v10319_v26  ;;  %v10373_v56 = vld [vmem:[%s12659_s5 + $0x30] ss:$8 sps:$4 sm:$0xff]   ;;  %v1624_v11 = vrot.slane %v1622_v55, 3  ;;  %v1627_v28 = vrot.slane %v1625_v51, 4 }
 0x44e   :  { %12886 = vst [vmem:[#allocation16_spill] sm:$0xff] %v10365_v60  ;;  %1693 = vmatprep.mubr.bf16.mxu1 %v12880_v2  ;;  %v1632_v3 = vrot.slane %v1630_v63, 3  ;;  %v1635_v15 = vrot.slane %v1633_v62, 4  ;;  %v10380_v19 = vsel %vm1402_vm7, %v12828_v16, %v12889_v23  ;;  %1663 = vmatprep.subr.bf16.mxu1 %v10345_v5  ;;  %vm1620_vm12 = vsmask.f32 4352  ;;  %v12891_v51 = vld [vmem:[#allocation23_spill] sm:$0xff]  ;;  %vm12895_vm15 = vmmov %vm12887_vm0 }
 0x44f   :  { %12890 = vst [vmem:[#allocation34_spill] sm:$0xff] %v10380_v19  ;;  %2840 = vmatprep.subr.bf16.mxu0 %v10386_v54  ;;  %v2830_v18 = vpack.c.bf16 %v10163_v14, %v10157_v44  ;;  %v2831_v55 = vpack.c.bf16 %v10169_v53, %v10169_v53  ;;  %v10397_v16 = vsel %vm1403_vm8, %v12830_v43, %v12891_v51  ;;  %v12893_v63 = vld [vmem:[#allocation28_spill] sm:$0xff]  ;;  %v12894_v62 = vld [vmem:[#allocation30_spill] sm:$0xff]  ;;  %vm1724_vm3 = vcmask 1044480   ;;  %vm12907_vm8 = vmmov %vm12887_vm0 }
 0x450   :  { %12892 = vst [vmem:[#allocation6_spill] sm:$0xff] %v10397_v16  ;;  %v1810_v52 = vpack.c.bf16 %v12894_v62, %v12893_v63  ;;  %v1628_v10 = vor.u32 %v1627_v28, %v1624_v11  ;;  %v1636_v1 = vor.u32 %v1635_v15, %v1632_v3  ;;  %7897 = vmatmul.mubr.msk.bf16.vlgmr.msra.gmra.mrb[120].mxu0 %vm12895_vm15, %v2567_v27  ;;  %v12898_v43 = vld [vmem:[#allocation32_spill] sm:$0xff]  ;;  %v10418_v11 = vld [vmem:[%s12659_s5 + $0x40] ss:$8 sps:$4 sm:$0xff]   ;;  %v12901_v28 = vld [vmem:[#allocation3_spill] sm:$0xff]  ;;  %vm2041_vm7 = vcmask 1045504  }
 0x451   :  { %v10406_v14 = vsel %vm1406_vm1, %v12832_v57, %v10136_v46  ;;  %v10411_v53 = vsel %vm1407_vm6, %v12851_v25, %v1461_v24  ;;  %v1811_v23 = vpack.c.bf16 %v12898_v43, %v12898_v43  ;;  %2841 = vmatpush1.bf16.msra.mxu0 %v10418_v11  ;;  %2872 = vmatprep.mubr.bf16.mxu0 %v12880_v2  ;;  %v12899_v27 = vld [vmem:[#allocation37_spill] sm:$0xff]  ;;  %v12900_v57 = vld [vmem:[#allocation40_spill] sm:$0xff]  ;;  %v12902_v3 = vld [vmem:[#allocation43_spill] sm:$0xff]  ;;  %v2835_v13 = vrot.slane %v2831_v55, 3 }
 0x452   :  { %12896 = vst [vmem:[#allocation11_spill] sm:$0xff] %v10406_v14  ;;  %12897 = vst [vmem:[#allocation7_spill] sm:$0xff] %v10411_v53  ;;  %v10424_v46 = vpack.c.bf16 %v12900_v57, %v12899_v27  ;;  %v10428_v25 = vpack.c.bf16 %v10214_v17, %v10208_v41  ;;  %1664 = vmatpush1.bf16.msra.mxu1 %v10373_v56  ;;  %v1637_v24 = vsel %vm1620_vm12, %v1628_v10, %v1636_v1  ;;  %v12904_v51 = vld [vmem:[#allocation18_spill] sm:$0xff]  ;;  %vm1812_vm1 = vsmask.f32 5376 }
 0x453   :  { %2842 = vmatprep.subr.bf16.mxu0 %v12901_v28  ;;  %v10435_v15 = vpack.c.bf16 %v12902_v3, %v12902_v3  ;;  %1751 = vmatprep.subr.bf16.mxu1 %v10386_v54  ;;  %v1720_v62 = vpack.c.bf16 %v12904_v51, %v12861_v47  ;;  %v2834_v57 = vrot.slane %v2830_v18, 3  ;;  %v3383_v41 = vpack.c.bf16 %v10283_v39, %v10272_v22  ;;  %v12908_v18 = vld [vmem:[#allocation4_spill] sm:$0xff]  ;;  %vm12919_vm11 = vmmov %vm12887_vm0 }
 0x454   :  { %v1721_v17 = vpack.c.bf16 %v12893_v63, %v12893_v63  ;;  %v1814_v10 = vshrl.u32 %v1810_v52, 16  ;;  %v1817_v1 = vshll.u32 %v1810_v52, 16  ;;  %v10445_v53 = vmul.f32 0.01, %v12905_v9  ;;  %vm12921_vm14 = vmmov %vm12887_vm0 }
 0x455   :  { %12903 = vst [vmem:[#allocation36_spill] sm:$0xff] %v10435_v15  ;;  %v10449_v15 = vpack.c.bf16 %v10157_v44, %v10157_v44  ;;  %v10453_v47 = vpack.c.bf16 %v10179_v49, %v10179_v49  ;;  %v3384_v39 = vpack.c.bf16 %v10289_v4, %v10289_v4  ;;  %7873 = vmatmul.mubr.msk.bf16.vlgmr.msra.gmra.mrb[12].mxu1 %vm12907_vm8, %v1637_v24  ;;  %v3254_v63 = vshll.u32 %v10428_v25, 16  ;;  %v10470_v24 = vld [vmem:[%s12659_s5 + $0x64] ss:$8 sps:$4 sm:$0xff]   ;;  %vm12934_vm15 = vmmov %vm12887_vm0 }
 0x456   :  { %12906 = vst [vmem:[#allocation38_spill] sm:$0xff] %v10445_v53  ;;  %2843 = vmatpush1.bf16.msra.mxu0 %v12908_v18  ;;  %v10461_v55 = vpack.c.bf16 %v10202_v20, %v10202_v20  ;;  %1752 = vmatpush1.bf16.msra.mxu1 %v10418_v11  ;;  %v1822_v44 = vshrl.u32 %v1811_v23, 16  ;;  %v1825_v52 = vshll.u32 %v1811_v23, 16  ;;  %12909 = vst [vmem:[#allocation12_spill] sm:$0xff] %v10470_v24  ;;  %v1725_v51 = vrot.slane %v1720_v62, 3  ;;  %v12910_v20 = vld [vmem:[#allocation5_spill] sm:$0xff] }
 0x457   :  { %1783 = vmatprep.mubr.bf16.mxu1 %v12880_v2  ;;  %1753 = vmatprep.subr.bf16.mxu1 %v12901_v28  ;;  %v2836_v53 = vsel %vm1724_vm3, %v2834_v57, %v2835_v13  ;;  %v3099_v38 = vpack.c.bf16 %v10185_v30, %v10179_v49  ;;  %v3100_v16 = vpack.c.bf16 %v10191_v7, %v10191_v7  ;;  %vm2312_vm6 = vcmask 1046528   ;;  %vm12941_vm8 = vmmov %vm12887_vm0 }
 0x458   :  { %2981 = vmatprep.subr.bf16.mxu0 %v12910_v20  ;;  %v1726_v23 = vrot.slane %v1721_v17, 3  ;;  %v1816_v37 = vrot.slane %v1814_v10, 2  ;;  %v1819_v60 = vrot.slane %v1817_v1, 3  ;;  %v3386_v59 = vshrl.u32 %v3383_v41, 16 }
 0x459   :  { %7899 = vmatmul.mubr.msk.bf16.vlgmr.msra.gmra.mrb[124].mxu0 %vm12911_vm5, %v2836_v53  ;;  %v10481_v62 = vpack.c.bf16 %v10326_v50, %v10308_v29  ;;  %v3389_v13 = vshll.u32 %v3383_v41, 16  ;;  %v3394_v49 = vshrl.u32 %v3384_v39, 16  ;;  %v3397_v30 = vshll.u32 %v3384_v39, 16  ;;  %v10495_v50 = vld [vmem:[%s12659_s5 + $0x60] ss:$8 sps:$4 sm:$0xff]   ;;  %vm12946_vm5 = vmmov %vm12887_vm0 }
 0x45a   :  { %2982 = vmatpush1.bf16.msra.mxu0 %v12866_v34  ;;  %3013 = vmatprep.mubr.bf16.mxu0 %v12880_v2  ;;  %v10487_v7 = vpack.c.bf16 %v10332_v8, %v10332_v8  ;;  %v3922_v57 = vpack.c.bf16 %v10353_v36, %v10353_v36  ;;  %v1824_v17 = vrot.slane %v1822_v44, 2  ;;  %v1827_v41 = vrot.slane %v1825_v52, 3  ;;  %v10510_v39 = vld [vmem:[%s12659_s5 + $0x74] ss:$8 sps:$4 sm:$0xff]  }
 0x45b   :  { %12912 = vst [vmem:[#allocation39_spill] sm:$0xff] %v10481_v62  ;;  %1754 = vmatpush1.bf16.msra.mxu1 %v12908_v18  ;;  %2983 = vmatprep.subr.bf16.mxu0 %v12869_v40  ;;  %v10500_v10 = vpack.c.bf16 %v10380_v19, %v10380_v19  ;;  %v10504_v1 = vpack.c.bf16 %v10406_v14, %v10406_v14  ;;  %v3104_v62 = vrot.slane %v3100_v16, 2  ;;  %v3256_v31 = vrot.slane %v3254_v63, 1 }
 0x45c   :  { %12913 = vst [vmem:[#allocation20_spill] sm:$0xff] %v10487_v7  ;;  %1853 = vmatprep.subr.bf16.mxu1 %v10470_v24  ;;  %v3103_v7 = vrot.slane %v3099_v38, 2  ;;  %v10513_v44 = vsel %vm1724_vm3, %v1725_v51, %v1726_v23  ;;  %v1820_v52 = vor.u32 %v1819_v60, %v1816_v37  ;;  %v3388_v19 = vrot.slane %v3386_v59, 3  ;;  %v10524_v37 = vld [vmem:[%s12659_s5 + $0x70] ss:$8 sps:$4 sm:$0xff]  }
 0x45d   :  { %vm2109_vm9 = vsmask.f32 6400  ;;  %v3391_v24 = vrot.slane %v3389_v13, 4  ;;  %v3396_v14 = vrot.slane %v3394_v49, 3  ;;  %v3399_v36 = vrot.slane %v3397_v30, 4  ;;  %v12916_v60 = vld [vmem:[#allocation35_spill] sm:$0xff] }
 0x45e   :  { %7878 = vmatmul.mubr.msk.bf16.vlgmr.msra.gmra.mrb[16].mxu1 %vm12914_vm10, %v10513_v44  ;;  %2984 = vmatpush1.bf16.msra.mxu0 %v12888_v48  ;;  %v2308_v42 = vpack.c.bf16 %v12915_v6, %v12902_v3  ;;  %v1828_v59 = vor.u32 %v1827_v41, %v1824_v17  ;;  %v3252_v38 = vshrl.u32 %v10428_v25, 16  ;;  %v2037_v16 = vpack.c.bf16 %v12916_v60, %v12898_v43  ;;  %vm12948_vm10 = vmmov %vm12887_vm0 }
 0x45f   :  { %1854 = vmatpush1.bf16.msra.mxu1 %v10495_v50  ;;  %1885 = vmatprep.mubr.bf16.mxu1 %v12880_v2  ;;  %v2309_v63 = vpack.c.bf16 %v10121_v21, %v10121_v21  ;;  %v3105_v6 = vsel %vm2041_vm7, %v3103_v7, %v3104_v62  ;;  %v2038_v3 = vpack.c.bf16 %v12899_v27, %v12899_v27  ;;  %v3924_v23 = vshrl.u32 %v10292_v58, 16 }
 0x460   :  { %1855 = vmatprep.subr.bf16.mxu1 %v10510_v39  ;;  %3109 = vmatprep.subr.bf16.mxu0 %v10386_v54  ;;  %v2313_v51 = vrot.slane %v2308_v42, 1  ;;  %v10539_v25 = vor.u32 %v3256_v31, %v3252_v38  ;;  %v3927_v13 = vshll.u32 %v10292_v58, 16  ;;  %v3932_v21 = vshrl.u32 %v3922_v57, 16 }
 0x461   :  { %7901 = vmatmul.mubr.msk.bf16.vlgmr.msra.gmra.mrb[128].mxu0 %vm12917_vm4, %v2836_v53  ;;  %v2314_v43 = vrot.slane %v2309_v63, 1  ;;  %v3392_v49 = vor.u32 %v3391_v24, %v3388_v19  ;;  %v3400_v62 = vor.u32 %v3399_v36, %v3396_v14  ;;  %v3926_v30 = vrot.slane %v3924_v23, 1  ;;  %vm12950_vm4 = vmmov %vm12887_vm0 }
 0x462   :  { %3110 = vmatpush1.bf16.msra.mxu0 %v10418_v11  ;;  %3141 = vmatprep.mubr.bf16.mxu0 %v12880_v2  ;;  %v3935_v7 = vshll.u32 %v3922_v57, 16  ;;  %v10546_v42 = vsel %vm1812_vm1, %v1820_v52, %v1828_v59  ;;  %v3929_v58 = vrot.slane %v3927_v13, 2  ;;  %v3934_v53 = vrot.slane %v3932_v21, 1 }
 0x463   :  { %1856 = vmatpush1.bf16.msra.mxu1 %v10524_v37  ;;  %3111 = vmatprep.subr.bf16.mxu0 %v12901_v28  ;;  %v10550_v31 = vsel %vm2312_vm6, %v2313_v51, %v2314_v43  ;;  %v10553_v27 = vrot.slane %v2037_v16, 2  ;;  %v10555_v19 = vrot.slane %v2038_v3, 2  ;;  %v2111_v36 = vshrl.u32 %v10424_v46, 16 }
 0x464   :  { %1919 = vmatprep.subr.bf16.mxu1 %v12910_v20  ;;  %v3937_v14 = vrot.slane %v3935_v7, 2  ;;  %v3930_v24 = vor.u32 %v3929_v58, %v3926_v30  ;;  %v2633_v57 = vshrl.u32 %v10246_v61, 16  ;;  %v2636_v17 = vshll.u32 %v10246_v61, 16  ;;  %v12920_v58 = vld [vmem:[#allocation19_spill] sm:$0xff] }
 0x465   :  { %v2641_v28 = vshrl.u32 %v10449_v15, 16  ;;  %v10565_v41 = vsel %vm1620_vm12, %v3392_v49, %v3400_v62  ;;  %v2644_v59 = vshll.u32 %v10449_v15, 16  ;;  %v4445_v38 = vshrl.u32 %v10311_v12, 16 }
 0x466   :  { %7883 = vmatmul.mubr.msk.bf16.vlgmr.msra.gmra.mrb[20].mxu1 %vm12918_vm2, %v10546_v42  ;;  %3112 = vmatpush1.bf16.msra.mxu0 %v12908_v18  ;;  %v3938_v52 = vor.u32 %v3937_v14, %v3934_v53  ;;  %v2635_v61 = vrot.slane %v2633_v57, 3  ;;  %v2638_v60 = vrot.slane %v2636_v17, 4  ;;  %v4448_v63 = vshll.u32 %v10311_v12, 16  ;;  %vm12952_vm2 = vmmov %vm12887_vm0 }
 0x467   :  { %1920 = vmatpush1.bf16.msra.mxu1 %v12866_v34  ;;  %1951 = vmatprep.mubr.bf16.mxu1 %v12880_v2  ;;  %v2643_v16 = vrot.slane %v2641_v28, 3  ;;  %v2646_v3 = vrot.slane %v2644_v59, 4  ;;  %v4447_v15 = vrot.slane %v4445_v38, 3  ;;  %v4453_v51 = vshrl.u32 %v10500_v10, 16 }
 0x468   :  { %1921 = vmatprep.subr.bf16.mxu1 %v12869_v40  ;;  %3261 = vmatprep.subr.bf16.mxu0 %v12910_v20  ;;  %v10575_v18 = vsel %vm2109_vm9, %v3930_v24, %v3938_v52  ;;  %v2639_v23 = vor.u32 %v2638_v60, %v2635_v61  ;;  %v4450_v43 = vrot.slane %v4448_v63, 4  ;;  %v4456_v13 = vshll.u32 %v10500_v10, 16 }
 0x469   :  { %7903 = vmatmul.mubr.msk.bf16.vlgmr.msra.gmra.mrb[132].mxu0 %vm12919_vm11, %v3105_v6  ;;  %v2902_v21 = vshrl.u32 %v10257_v32, 16  ;;  %v2647_v12 = vor.u32 %v2646_v3, %v2643_v16  ;;  %v4455_v20 = vrot.slane %v4453_v51, 3  ;;  %v2905_v49 = vshll.u32 %v10257_v32, 16  ;;  %vm12953_vm11 = vmmov %vm12887_vm0 }
 0x46a   :  { %3262 = vmatpush1.bf16.msra.mxu0 %v12866_v34  ;;  %3293 = vmatprep.mubr.bf16.mxu0 %v12880_v2  ;;  %v2910_v62 = vshrl.u32 %v10453_v47, 16  ;;  %v4451_v6 = vor.u32 %v4450_v43, %v4447_v15  ;;  %v4458_v30 = vrot.slane %v4456_v13, 4  ;;  %v2913_v10 = vshll.u32 %v10453_v47, 16 }
 0x46b   :  { %1922 = vmatpush1.bf16.msra.mxu1 %v12888_v48  ;;  %3263 = vmatprep.subr.bf16.mxu0 %v12869_v40  ;;  %v2904_v7 = vrot.slane %v2902_v21, 2  ;;  %v10590_v34 = vsel %vm1620_vm12, %v2639_v23, %v2647_v12  ;;  %v2907_v53 = vrot.slane %v2905_v49, 3  ;;  %v4714_v32 = vshrl.u32 %v10314_v0, 16  ;;  %v12922_v12 = vld [vmem:[#allocation33_spill] sm:$0xff]  ;;  %v12923_v49 = vld [vmem:[#allocation24_spill] sm:$0xff] }
 0x46c   :  { %1978 = vmatprep.subr.bf16.mxu1 %v12920_v58  ;;  %v2912_v14 = vrot.slane %v2910_v62, 2  ;;  %vm1408_vm13 = vcmp.gt.f32.partialorder %v12905_v9, 0.0  ;;  %v4459_v24 = vor.u32 %v4458_v30, %v4455_v20  ;;  %v2915_v57 = vrot.slane %v2913_v10, 3  ;;  %v12924_v30 = vld [vmem:[#allocation14_spill] sm:$0xff] }
 0x46d   :  { %v4717_v40 = vshll.u32 %v10314_v0, 16  ;;  %v4722_v17 = vshrl.u32 %v10504_v1, 16  ;;  %v2908_v47 = vor.u32 %v2907_v53, %v2904_v7  ;;  %v4716_v28 = vrot.slane %v4714_v32, 2  ;;  %v12925_v7 = vld [vmem:[#allocation15_spill] sm:$0xff]  ;;  %v12927_v32 = vld [vmem:[#allocation17_spill] sm:$0xff] }
 0x46e   :  { %7885 = vmatmul.mubr.msk.bf16.vlgmr.msra.gmra.mrb[24].mxu1 %vm12921_vm14, %v10513_v44  ;;  %3264 = vmatpush1.bf16.msra.mxu0 %v12888_v48  ;;  %v4725_v52 = vshll.u32 %v10504_v1, 16  ;;  %v3171_v59 = vshrl.u32 %v10260_v35, 16  ;;  %v10604_v38 = vsel %vm1620_vm12, %v4451_v6, %v4459_v24  ;;  %v2916_v0 = vor.u32 %v2915_v57, %v2912_v14  ;;  %vm12926_vm12 = vmmov %vm12887_vm0 }
 0x46f   :  { %1979 = vmatpush1.bf16.msra.mxu1 %v10319_v26  ;;  %2010 = vmatprep.mubr.bf16.mxu1 %v12880_v2  ;;  %v4719_v61 = vrot.slane %v4717_v40, 3  ;;  %v4724_v60 = vrot.slane %v4722_v17, 2  ;;  %v3174_v1 = vshll.u32 %v10260_v35, 16  ;;  %v3179_v16 = vshrl.u32 %v10461_v55, 16  ;;  %v12928_v40 = vld [vmem:[#allocation16_spill] sm:$0xff]  ;;  %v12929_v17 = vld [vmem:[#allocation27_spill] sm:$0xff]  ;;  %vm12955_vm14 = vmmov %vm12887_vm0 }
 0x470   :  { %1980 = vmatprep.subr.bf16.mxu1 %v10345_v5  ;;  %3405 = vmatprep.subr.bf16.mxu0 %v10386_v54  ;;  %v4727_v48 = vrot.slane %v4725_v52, 3  ;;  %v3173_v44 = vrot.slane %v3171_v59, 1  ;;  %v10613_v63 = vsel %vm1812_vm1, %v2908_v47, %v2916_v0  ;;  %v3182_v15 = vshll.u32 %v10461_v55, 16  ;;  %v12931_v52 = vld [vmem:[#allocation6_spill] sm:$0xff] }
 0x471   :  { %7905 = vmatmul.mubr.msk.bf16.vlgmr.msra.gmra.mrb[136].mxu0 %vm12887_vm0, %v10539_v25  ;;  %v4720_v3 = vor.u32 %v4719_v61, %v4716_v28  ;;  %v3320_v51 = vpack.c.bf16 %v10272_v22, %v10266_v33  ;;  %v3176_v35 = vrot.slane %v3174_v1, 2  ;;  %v3181_v43 = vrot.slane %v3179_v16, 1  ;;  %v10626_v25 = vld [vmem:[%s12659_s5 + $0x54] ss:$8 sps:$4 sm:$0xff]   ;;  %v12930_v28 = vld [vmem:[#allocation34_spill] sm:$0xff]  ;;  %v12932_v1 = vld [vmem:[#allocation25_spill] sm:$0xff] }
 0x472   :  { %3406 = vmatpush1.bf16.msra.mxu0 %v10418_v11  ;;  %3437 = vmatprep.mubr.bf16.mxu0 %v12880_v2  ;;  %v4728_v23 = vor.u32 %v4727_v48, %v4724_v60  ;;  %v3464_v13 = vpack.c.bf16 %v10302_v45, %v10289_v4  ;;  %v3184_v55 = vrot.slane %v3182_v15, 2  ;;  %v3465_v21 = vpack.c.bf16 %v10308_v29, %v10308_v29  ;;  %v10673_v48 = vld [vmem:[%s12659_s5 + $0x4] ss:$8 sps:$4 sm:$0xff]  }
 0x473   :  { %1981 = vmatpush1.bf16.msra.mxu1 %v10373_v56  ;;  %3407 = vmatprep.subr.bf16.mxu0 %v10626_v25  ;;  %v3733_v20 = vpack.c.bf16 %v12922_v12, %v10332_v8  ;;  %v3734_v62 = vpack.c.bf16 %v12923_v49, %v12923_v49  ;;  %v3177_v45 = vor.u32 %v3176_v35, %v3173_v44  ;;  %v10646_v8 = vld [vmem:[%s12659_s5 + $0x50] ss:$8 sps:$4 sm:$0xff]   ;;  %v12933_v15 = vld [vmem:[#allocation38_spill] sm:$0xff] }
 0x474   :  { %2048 = vmatprep.subr.bf16.mxu1 %v10386_v54  ;;  %v10637_v4 = vsel %vm1812_vm1, %v4720_v3, %v4728_v23  ;;  %v3468_v6 = vrot.slane %v3464_v13, 3  ;;  %v4002_v10 = vpack.c.bf16 %v12925_v7, %v12924_v30  ;;  %v3185_v58 = vor.u32 %v3184_v55, %v3181_v43  ;;  %v12935_v35 = vld [vmem:[#allocation36_spill] sm:$0xff]  ;;  %v12936_v55 = vld [vmem:[#allocation11_spill] sm:$0xff] }
 0x475   :  { %v3469_v53 = vrot.slane %v3465_v21, 3  ;;  %v3737_v14 = vrot.slane %v3733_v20, 2  ;;  %v3738_v29 = vrot.slane %v3734_v62, 2  ;;  %v4003_v24 = vpack.c.bf16 %v12927_v32, %v12927_v32  ;;  %v12937_v21 = vld [vmem:[#allocation7_spill] sm:$0xff]  ;;  %v10694_v62 = vld [vmem:[%s12659_s5] ss:$8 sps:$4 sm:$0xff]  }
 0x476   :  { %7886 = vmatmul.mubr.msk.bf16.vlgmr.msra.gmra.mrb[28].mxu1 %vm12926_vm12, %v10546_v42  ;;  %3408 = vmatpush1.bf16.msra.mxu0 %v10646_v8  ;;  %v4006_v57 = vrot.slane %v4002_v10, 1  ;;  %v10653_v47 = vpack.c.bf16 %v12929_v17, %v12928_v40  ;;  %v4523_v59 = vpack.c.bf16 %v12931_v52, %v12930_v28  ;;  %v2114_v42 = vshll.u32 %v10424_v46, 16  ;;  %vm12956_vm12 = vmmov %vm12887_vm0 }
 0x477   :  { %2049 = vmatpush1.bf16.msra.mxu1 %v10418_v11  ;;  %2080 = vmatprep.mubr.bf16.mxu1 %v12880_v2  ;;  %v10661_v0 = vsel %vm2109_vm9, %v3177_v45, %v3185_v58  ;;  %v10664_v61 = vsel %vm1724_vm3, %v3468_v6, %v3469_v53  ;;  %v10667_v60 = vsel %vm2041_vm7, %v3737_v14, %v3738_v29  ;;  %v4007_v44 = vrot.slane %v4003_v24, 1  ;;  %v10705_v6 = vld [vmem:[%s12659_s5 + $0x14] ss:$8 sps:$4 sm:$0xff]  }
 0x478   :  { %2050 = vmatprep.subr.bf16.mxu1 %v10626_v25  ;;  %3534 = vmatprep.subr.bf16.mxu0 %v10673_v48  ;;  %v4524_v16 = vpack.c.bf16 %v12932_v1, %v12932_v1  ;;  %v4527_v3 = vrot.slane %v4523_v59, 3  ;;  %v1516_v23 = vsel %vm1408_vm13, %v12905_v9, %v12933_v15  ;;  %v2119_v43 = vshrl.u32 %v12935_v35, 16  ;;  %v12939_v58 = vld [vmem:[#allocation12_spill] sm:$0xff]  ;;  %vm12954_vm13 = vmmov %vm12887_vm0 }
 0x479   :  { %7907 = vmatmul.mubr.msk.bf16.vlgmr.msra.gmra.mrb[140].mxu0 %vm12934_vm15, %v10565_v41  ;;  %v2122_v13 = vshll.u32 %v12935_v35, 16  ;;  %v4792_v12 = vpack.c.bf16 %v12937_v21, %v12936_v55  ;;  %v4793_v20 = vpack.c.bf16 %v1516_v23, %v1516_v23  ;;  %v2044_v49 = vsel %vm2041_vm7, %v10553_v27, %v10555_v19  ;;  %v12938_v19 = vld [vmem:[#allocation39_spill] sm:$0xff]  ;;  %v12940_v14 = vld [vmem:[#allocation20_spill] sm:$0xff]  ;;  %v10755_v23 = vld [vmem:[%s12659_s5 + $0x24] ss:$8 sps:$4 sm:$0xff]  }
 0x47a   :  { %3535 = vmatpush1.bf16.msra.mxu0 %v10694_v62  ;;  %3566 = vmatprep.mubr.bf16.mxu0 %v12880_v2  ;;  %v10699_v9 = vsel %vm2312_vm6, %v4006_v57, %v4007_v44  ;;  %v4528_v45 = vrot.slane %v4524_v16, 3  ;;  %v2113_v27 = vrot.slane %v2111_v36, 1  ;;  %v3655_v30 = vshrl.u32 %v12938_v19, 16  ;;  %v10725_v36 = vld [vmem:[%s12659_s5 + $0x10] ss:$8 sps:$4 sm:$0xff]   ;;  %vm12944_vm6 = vmmov %vm12887_vm0  ;;  %v12949_v35 = vld [vmem:[#allocation29_spill] sm:$0xff] }
 0x47b   :  { %2051 = vmatpush1.bf16.msra.mxu1 %v10646_v8  ;;  %3536 = vmatprep.subr.bf16.mxu0 %v10705_v6  ;;  %v4796_v7 = vrot.slane %v4792_v12, 2  ;;  %v4797_v10 = vrot.slane %v4793_v20, 2  ;;  %v3658_v53 = vshll.u32 %v12938_v19, 16  ;;  %v3663_v29 = vshrl.u32 %v12940_v14, 16  ;;  %vm12957_vm15 = vmmov %vm12887_vm0  ;;  %v8604_v19 = vld [vmem:[%s12659_s5 + $0x34] ss:$8 sps:$4 sm:$0xff]  }
 0x47c   :  { %2130 = vmatprep.subr.bf16.mxu1 %v12939_v58  ;;  %v3666_v32 = vshll.u32 %v12940_v14, 16  ;;  %v10716_v24 = vsel %vm1724_vm3, %v4527_v3, %v4528_v45  ;;  %v2116_v57 = vrot.slane %v2114_v42, 2  ;;  %v2121_v40 = vrot.slane %v2119_v43, 1  ;;  %vm12942_vm3 = vmmov %vm12887_vm0 }
 0x47d   :  { %v2124_v17 = vrot.slane %v2122_v13, 2  ;;  %v10719_v46 = vsel %vm2041_vm7, %v4796_v7, %v4797_v10  ;;  %v3657_v28 = vrot.slane %v3655_v30, 2  ;;  %v3660_v52 = vrot.slane %v3658_v53, 3  ;;  %vm12943_vm7 = vmmov %vm12887_vm0  ;;  %v12951_v13 = vld [vmem:[#allocation31_spill] sm:$0xff] }
 0x47e   :  { %7887 = vmatmul.mubr.msk.bf16.vlgmr.msra.gmra.mrb[32].mxu1 %vm12941_vm8, %v2044_v49  ;;  %3537 = vmatpush1.bf16.msra.mxu0 %v10725_v36  ;;  %v3665_v59 = vrot.slane %v3663_v29, 2  ;;  %v3668_v42 = vrot.slane %v3666_v32, 3  ;;  %v2117_v44 = vor.u32 %v2116_v57, %v2113_v27  ;;  %v2382_v43 = vshll.u32 %v12949_v35, 16  ;;  %vm12958_vm8 = vmmov %vm12887_vm0 }
 0x47f   :  { %2131 = vmatpush1.bf16.msra.mxu1 %v10495_v50  ;;  %2162 = vmatprep.mubr.bf16.mxu1 %v12880_v2  ;;  %v2125_v1 = vor.u32 %v2124_v17, %v2121_v40  ;;  %v3661_v16 = vor.u32 %v3660_v52, %v3657_v28  ;;  %v4194_v55 = vshll.u32 %v12951_v13, 16  ;;  %v2380_v12 = vshrl.u32 %v12949_v35, 16 }
 0x480   :  { %2132 = vmatprep.subr.bf16.mxu1 %v10510_v39  ;;  %3674 = vmatprep.subr.bf16.mxu0 %v10386_v54  ;;  %v3669_v3 = vor.u32 %v3668_v42, %v3665_v59  ;;  %v2384_v21 = vrot.slane %v2382_v43, 1  ;;  %v4192_v45 = vshrl.u32 %v12951_v13, 16 }
 0x481   :  { %7909 = vmatmul.mubr.msk.bf16.vlgmr.msra.gmra.mrb[144].mxu0 %vm12942_vm3, %v10565_v41  ;;  %v2126_v15 = vsel %vm2109_vm9, %v2117_v44, %v2125_v1  ;;  %vm12947_vm9 = vmmov %vm12887_vm0  ;;  %v4196_v20 = vrot.slane %v4194_v55, 1 }
 0x482   :  { %3675 = vmatpush1.bf16.msra.mxu0 %v10418_v11  ;;  %3706 = vmatprep.mubr.bf16.mxu0 %v12880_v2  ;;  %v3670_v41 = vsel %vm1812_vm1, %v3661_v16, %v3669_v3  ;;  %vm12945_vm1 = vmmov %vm12887_vm0 }
 0x483   :  { %2133 = vmatpush1.bf16.msra.mxu1 %v10524_v37  ;;  %3676 = vmatprep.subr.bf16.mxu0 %v10626_v25  ;;  %vm12959_vm3 = vmmov %vm12887_vm0 }
 0x484   :  { %2190 = vmatprep.subr.bf16.mxu1 %v10673_v48 }
 0x486   :  { %7888 = vmatmul.mubr.msk.bf16.vlgmr.msra.gmra.mrb[36].mxu1 %vm12943_vm7, %v2126_v15  ;;  %3677 = vmatpush1.bf16.msra.mxu0 %v10646_v8  ;;  %vm12960_vm7 = vmmov %vm12887_vm0 }
 0x487   :  { %2191 = vmatpush1.bf16.msra.mxu1 %v10694_v62  ;;  %2222 = vmatprep.mubr.bf16.mxu1 %v12880_v2 }
 0x488   :  { %2192 = vmatprep.subr.bf16.mxu1 %v10705_v6  ;;  %3803 = vmatprep.subr.bf16.mxu0 %v10673_v48 }
 0x489   :  { %7911 = vmatmul.mubr.msk.bf16.vlgmr.msra.gmra.mrb[148].mxu0 %vm12944_vm6, %v3670_v41  ;;  %vm12961_vm6 = vmmov %vm12887_vm0 }
 0x48a   :  { %3804 = vmatpush1.bf16.msra.mxu0 %v10694_v62  ;;  %3835 = vmatprep.mubr.bf16.mxu0 %v12880_v2 }
 0x48b   :  { %2193 = vmatpush1.bf16.msra.mxu1 %v10725_v36  ;;  %3805 = vmatprep.subr.bf16.mxu0 %v10705_v6 }
 0x48c   :  { %2249 = vmatprep.subr.bf16.mxu1 %v10755_v23 }
 0x48e   :  { %7889 = vmatmul.mubr.msk.bf16.vlgmr.msra.gmra.mrb[40].mxu1 %vm12945_vm1, %v2044_v49  ;;  %3806 = vmatpush1.bf16.msra.mxu0 %v10725_v36  ;;  %v2385_v49 = vor.u32 %v2384_v21, %v2380_v12  ;;  %vm12962_vm1 = vmmov %vm12887_vm0 }
 0x48f   :  { %2250 = vmatpush1.bf16.msra.mxu1 %v10319_v26  ;;  %2281 = vmatprep.mubr.bf16.mxu1 %v12880_v2 }
 0x490   :  { %2251 = vmatprep.subr.bf16.mxu1 %v10345_v5  ;;  %3943 = vmatprep.subr.bf16.mxu0 %v10386_v54 }
 0x491   :  { %7913 = vmatmul.mubr.msk.bf16.vlgmr.msra.gmra.mrb[152].mxu0 %vm12946_vm5, %v3670_v41  ;;  %vm12963_vm5 = vmmov %vm12887_vm0 }
 0x492   :  { %3944 = vmatpush1.bf16.msra.mxu0 %v10418_v11  ;;  %3975 = vmatprep.mubr.bf16.mxu0 %v12880_v2 }
 0x493   :  { %2252 = vmatpush1.bf16.msra.mxu1 %v10373_v56  ;;  %3945 = vmatprep.subr.bf16.mxu0 %v10626_v25 }
 0x494   :  { %2319 = vmatprep.subr.bf16.mxu1 %v10386_v54 }
 0x496   :  { %7890 = vmatmul.mubr.msk.bf16.vlgmr.msra.gmra.mrb[44].mxu1 %vm12947_vm9, %v2126_v15  ;;  %3946 = vmatpush1.bf16.msra.mxu0 %v10646_v8  ;;  %vm12964_vm9 = vmmov %vm12887_vm0 }
 0x497   :  { %2320 = vmatpush1.bf16.msra.mxu1 %v10418_v11  ;;  %2351 = vmatprep.mubr.bf16.mxu1 %v12880_v2 }
 0x498   :  { %2321 = vmatprep.subr.bf16.mxu1 %v10626_v25  ;;  %4072 = vmatprep.subr.bf16.mxu0 %v10673_v48 }
 0x499   :  { %7915 = vmatmul.mubr.msk.bf16.vlgmr.msra.gmra.mrb[156].mxu0 %vm12948_vm10, %v10575_v18  ;;  %vm12965_vm10 = vmmov %vm12887_vm0 }
 0x49a   :  { %4073 = vmatpush1.bf16.msra.mxu0 %v10694_v62  ;;  %4104 = vmatprep.mubr.bf16.mxu0 %v12880_v2 }
 0x49b   :  { %2322 = vmatpush1.bf16.msra.mxu1 %v10646_v8  ;;  %4074 = vmatprep.subr.bf16.mxu0 %v10705_v6 }
 0x49c   :  { %2389 = vmatprep.subr.bf16.mxu1 %v12939_v58 }
 0x49e   :  { %7891 = vmatmul.mubr.msk.bf16.vlgmr.msra.gmra.mrb[48].mxu1 %vm12950_vm4, %v10550_v31  ;;  %4075 = vmatpush1.bf16.msra.mxu0 %v10725_v36  ;;  %vm12966_vm4 = vmmov %vm12887_vm0 }
 0x49f   :  { %2390 = vmatpush1.bf16.msra.mxu1 %v10495_v50  ;;  %2421 = vmatprep.mubr.bf16.mxu1 %v12880_v2 }
 0x4a0   :  { %2391 = vmatprep.subr.bf16.mxu1 %v10510_v39  ;;  %4201 = vmatprep.subr.bf16.mxu0 %v10386_v54 }
 0x4a1   :  { %7917 = vmatmul.mubr.msk.bf16.vlgmr.msra.gmra.mrb[160].mxu0 %vm12952_vm2, %v10575_v18  ;;  %v4197_v18 = vor.u32 %v4196_v20, %v4192_v45  ;;  %vm12967_vm2 = vmmov %vm12887_vm0 }
 0x4a2   :  { %4202 = vmatpush1.bf16.msra.mxu0 %v10418_v11  ;;  %4233 = vmatprep.mubr.bf16.mxu0 %v12880_v2 }
 0x4a3   :  { %2392 = vmatpush1.bf16.msra.mxu1 %v10524_v37  ;;  %4203 = vmatprep.subr.bf16.mxu0 %v10626_v25 }
 0x4a4   :  { %2449 = vmatprep.subr.bf16.mxu1 %v10673_v48 }
 0x4a6   :  { %7892 = vmatmul.mubr.msk.bf16.vlgmr.msra.gmra.mrb[52].mxu1 %vm12953_vm11, %v2385_v49  ;;  %4204 = vmatpush1.bf16.msra.mxu0 %v10646_v8  ;;  %vm12968_vm11 = vmmov %vm12887_vm0 }
 0x4a7   :  { %2450 = vmatpush1.bf16.msra.mxu1 %v10694_v62  ;;  %2481 = vmatprep.mubr.bf16.mxu1 %v12880_v2 }
 0x4a8   :  { %2451 = vmatprep.subr.bf16.mxu1 %v10705_v6  ;;  %4324 = vmatprep.subr.bf16.mxu0 %v10673_v48 }
 0x4a9   :  { %7919 = vmatmul.mubr.msk.bf16.vlgmr.msra.gmra.mrb[164].mxu0 %vm12954_vm13, %v4197_v18  ;;  %vm12969_vm13 = vmmov %vm12887_vm0 }
 0x4aa   :  { %4325 = vmatpush1.bf16.msra.mxu0 %v10694_v62  ;;  %4356 = vmatprep.mubr.bf16.mxu0 %v12880_v2 }
 0x4ab   :  { %2452 = vmatpush1.bf16.msra.mxu1 %v10725_v36  ;;  %4326 = vmatprep.subr.bf16.mxu0 %v10705_v6 }
 0x4ac   :  { %2508 = vmatprep.subr.bf16.mxu1 %v10755_v23 }
 0x4ae   :  { %7893 = vmatmul.mubr.msk.bf16.vlgmr.msra.gmra.mrb[56].mxu1 %vm12955_vm14, %v10550_v31  ;;  %4327 = vmatpush1.bf16.msra.mxu0 %v10725_v36  ;;  %vm12970_vm14 = vmmov %vm12887_vm0 }
 0x4af   :  { %2509 = vmatpush1.bf16.msra.mxu1 %v10319_v26  ;;  %2540 = vmatprep.mubr.bf16.mxu1 %v12880_v2 }
 0x4b0   :  { %2510 = vmatprep.subr.bf16.mxu1 %v10345_v5  ;;  %4464 = vmatprep.subr.bf16.mxu0 %v10386_v54 }
 0x4b1   :  { %7921 = vmatmul.mubr.msk.bf16.vlgmr.msra.gmra.mrb[168].mxu0 %vm12887_vm0, %v4197_v18 }
 0x4b2   :  { %4465 = vmatpush1.bf16.msra.mxu0 %v10418_v11  ;;  %4496 = vmatprep.mubr.bf16.mxu0 %v12880_v2 }
 0x4b3   :  { %2511 = vmatpush1.bf16.msra.mxu1 %v10373_v56  ;;  %4466 = vmatprep.subr.bf16.mxu0 %v10626_v25 }
 0x4b4   :  { %2652 = vmatprep.subr.bf16.mxu1 %v12939_v58 }
 0x4b6   :  { %7894 = vmatmul.mubr.msk.bf16.vlgmr.msra.gmra.mrb[60].mxu1 %vm12956_vm12, %v2385_v49  ;;  %4467 = vmatpush1.bf16.msra.mxu0 %v10646_v8  ;;  %vm12973_vm12 = vmmov %vm12887_vm0 }
 0x4b7   :  { %2653 = vmatpush1.bf16.msra.mxu1 %v10495_v50  ;;  %2684 = vmatprep.mubr.bf16.mxu1 %v12880_v2 }
 0x4b8   :  { %2654 = vmatprep.subr.bf16.mxu1 %v10510_v39  ;;  %4593 = vmatprep.subr.bf16.mxu0 %v10673_v48 }
 0x4b9   :  { %7923 = vmatmul.mubr.msk.bf16.vlgmr.msra.gmra.mrb[172].mxu0 %vm12957_vm15, %v10604_v38  ;;  %vm12974_vm15 = vmmov %vm12887_vm0 }
 0x4ba   :  { %4594 = vmatpush1.bf16.msra.mxu0 %v10694_v62  ;;  %4625 = vmatprep.mubr.bf16.mxu0 %v12880_v2 }
 0x4bb   :  { %2655 = vmatpush1.bf16.msra.mxu1 %v10524_v37  ;;  %4595 = vmatprep.subr.bf16.mxu0 %v10705_v6  ;;  %v8603_v6 = vld [vmem:[%s12659_s5 + $0x20] ss:$8 sps:$4 sm:$0xff]  }
 0x4bc   :  { %2771 = vmatprep.subr.bf16.mxu1 %v10755_v23 }
 0x4be   :  { %7896 = vmatmul.mubr.msk.bf16.vlgmr.msra.gmra.mrb[64].mxu1 %vm12958_vm8, %v10590_v34  ;;  %4596 = vmatpush1.bf16.msra.mxu0 %v10725_v36  ;;  %vm12977_vm8 = vmmov %vm12887_vm0 }
 0x4bf   :  { %2772 = vmatpush1.bf16.msra.mxu1 %v10319_v26  ;;  %2803 = vmatprep.mubr.bf16.mxu1 %v12880_v2 }
 0x4c0   :  { %2773 = vmatprep.subr.bf16.mxu1 %v10345_v5  ;;  %4733 = vmatprep.subr.bf16.mxu0 %v10386_v54 }
 0x4c1   :  { %7925 = vmatmul.mubr.msk.bf16.vlgmr.msra.gmra.mrb[176].mxu0 %vm12959_vm3, %v10604_v38  ;;  %vm12978_vm3 = vmmov %vm12887_vm0 }
 0x4c2   :  { %4734 = vmatpush1.bf16.msra.mxu0 %v10418_v11  ;;  %4765 = vmatprep.mubr.bf16.mxu0 %v12880_v2 }
 0x4c3   :  { %2774 = vmatpush1.bf16.msra.mxu1 %v10373_v56  ;;  %4735 = vmatprep.subr.bf16.mxu0 %v10626_v25 }
 0x4c4   :  { %2921 = vmatprep.subr.bf16.mxu1 %v12939_v58 }
 0x4c6   :  { %7898 = vmatmul.mubr.msk.bf16.vlgmr.msra.gmra.mrb[68].mxu1 %vm12960_vm7, %v10590_v34  ;;  %4736 = vmatpush1.bf16.msra.mxu0 %v10646_v8  ;;  %vm12981_vm7 = vmmov %vm12887_vm0 }
 0x4c7   :  { %2922 = vmatpush1.bf16.msra.mxu1 %v10495_v50  ;;  %2953 = vmatprep.mubr.bf16.mxu1 %v12880_v2 }
 0x4c8   :  { %2923 = vmatprep.subr.bf16.mxu1 %v10510_v39 }
 0x4c9   :  { %7927 = vmatmul.mubr.msk.bf16.vlgmr.msra.gmra.mrb[180].mxu0 %vm12961_vm6, %v10637_v4  ;;  %vm4864_vm6 = vcmask 521216  }
 0x4ca   :  { %5255 = vmatprep.mubr.bf16.mxu0 %v12880_v2 }
 0x4cb   :  { %2924 = vmatpush1.bf16.msra.mxu1 %v10524_v37 }
 0x4cc   :  { %3040 = vmatprep.subr.bf16.mxu1 %v10755_v23 }
 0x4ce   :  { %7900 = vmatmul.mubr.msk.bf16.vlgmr.msra.gmra.mrb[72].mxu1 %vm12962_vm1, %v10613_v63 }
 0x4cf   :  { %3041 = vmatpush1.bf16.msra.mxu1 %v10319_v26  ;;  %3072 = vmatprep.mubr.bf16.mxu1 %v12880_v2 }
 0x4d0   :  { %3042 = vmatprep.subr.bf16.mxu1 %v10345_v5 }
 0x4d3   :  { %3043 = vmatpush1.bf16.msra.mxu1 %v10373_v56 }
 0x4d4   :  { %3190 = vmatprep.subr.bf16.mxu1 %v12939_v58 }
 0x4d6   :  { %7902 = vmatmul.mubr.msk.bf16.vlgmr.msra.gmra.mrb[76].mxu1 %vm12963_vm5, %v10613_v63 }
 0x4d7   :  { %3191 = vmatpush1.bf16.msra.mxu1 %v10495_v50  ;;  %3222 = vmatprep.mubr.bf16.mxu1 %v12880_v2 }
 0x4d8   :  { %3192 = vmatprep.subr.bf16.mxu1 %v10510_v39 }
 0x4db   :  { %3193 = vmatpush1.bf16.msra.mxu1 %v10524_v37 }
 0x4dc   :  { %3324 = vmatprep.subr.bf16.mxu1 %v10755_v23 }
 0x4de   :  { %7904 = vmatmul.mubr.msk.bf16.vlgmr.msra.gmra.mrb[80].mxu1 %vm12964_vm9, %v10661_v0  ;;  %vm13053_vm9 = vcmask 523264  }
 0x4df   :  { %3325 = vmatpush1.bf16.msra.mxu1 %v10319_v26  ;;  %3356 = vmatprep.mubr.bf16.mxu1 %v12880_v2 }
 0x4e0   :  { %3326 = vmatprep.subr.bf16.mxu1 %v10345_v5 }
 0x4e3   :  { %3327 = vmatpush1.bf16.msra.mxu1 %v10373_v56 }
 0x4e4   :  { %3474 = vmatprep.subr.bf16.mxu1 %v12939_v58 }
 0x4e6   :  { %7906 = vmatmul.mubr.msk.bf16.vlgmr.msra.gmra.mrb[84].mxu1 %vm12965_vm10, %v3320_v51  ;;  %vm13054_vm10 = vmmov %vm13053_vm9 }
 0x4e7   :  { %3475 = vmatpush1.bf16.msra.mxu1 %v10495_v50  ;;  %3506 = vmatprep.mubr.bf16.mxu1 %v12880_v2 }
 0x4e8   :  { %3476 = vmatprep.subr.bf16.mxu1 %v10510_v39 }
 0x4eb   :  { %3477 = vmatpush1.bf16.msra.mxu1 %v10524_v37 }
 0x4ec   :  { %3593 = vmatprep.subr.bf16.mxu1 %v10755_v23 }
 0x4ee   :  { %7908 = vmatmul.mubr.msk.bf16.vlgmr.msra.gmra.mrb[88].mxu1 %vm12966_vm4, %v10664_v61 }
 0x4ef   :  { %3594 = vmatpush1.bf16.msra.mxu1 %v10319_v26  ;;  %3625 = vmatprep.mubr.bf16.mxu1 %v12880_v2 }
 0x4f0   :  { %3595 = vmatprep.subr.bf16.mxu1 %v10345_v5 }
 0x4f3   :  { %3596 = vmatpush1.bf16.msra.mxu1 %v10373_v56 }
 0x4f4   :  { %3743 = vmatprep.subr.bf16.mxu1 %v12939_v58 }
 0x4f6   :  { %7910 = vmatmul.mubr.msk.bf16.vlgmr.msra.gmra.mrb[92].mxu1 %vm12967_vm2, %v10664_v61  ;;  %vm13056_vm2 = vmmov %vm13053_vm9 }
 0x4f7   :  { %3744 = vmatpush1.bf16.msra.mxu1 %v10495_v50  ;;  %3775 = vmatprep.mubr.bf16.mxu1 %v12880_v2 }
 0x4f8   :  { %3745 = vmatprep.subr.bf16.mxu1 %v10510_v39 }
 0x4fb   :  { %3746 = vmatpush1.bf16.msra.mxu1 %v10524_v37 }
 0x4fc   :  { %3862 = vmatprep.subr.bf16.mxu1 %v10755_v23 }
 0x4fe   :  { %7912 = vmatmul.mubr.msk.bf16.vlgmr.msra.gmra.mrb[96].mxu1 %vm12968_vm11, %v10667_v60  ;;  %vm13057_vm11 = vmmov %vm13056_vm2 }
 0x4ff   :  { %3863 = vmatpush1.bf16.msra.mxu1 %v10319_v26  ;;  %3894 = vmatprep.mubr.bf16.mxu1 %v12880_v2 }
 0x500   :  { %3864 = vmatprep.subr.bf16.mxu1 %v10345_v5 }
 0x503   :  { %3865 = vmatpush1.bf16.msra.mxu1 %v10373_v56 }
 0x504   :  { %4012 = vmatprep.subr.bf16.mxu1 %v12939_v58 }
 0x506   :  { %7914 = vmatmul.mubr.msk.bf16.vlgmr.msra.gmra.mrb[100].mxu1 %vm12969_vm13, %v10667_v60 }
 0x507   :  { %4013 = vmatpush1.bf16.msra.mxu1 %v10495_v50  ;;  %4044 = vmatprep.mubr.bf16.mxu1 %v12880_v2 }
 0x508   :  { %4014 = vmatprep.subr.bf16.mxu1 %v10510_v39 }
 0x50b   :  { %4015 = vmatpush1.bf16.msra.mxu1 %v10524_v37 }
 0x50c   :  { %4131 = vmatprep.subr.bf16.mxu1 %v10755_v23 }
 0x50e   :  { %7916 = vmatmul.mubr.msk.bf16.vlgmr.msra.gmra.mrb[104].mxu1 %vm12970_vm14, %v10699_v9  ;;  %vm13060_vm14 = vmmov %vm13056_vm2 }
 0x50f   :  { %4132 = vmatpush1.bf16.msra.mxu1 %v10319_v26  ;;  %4163 = vmatprep.mubr.bf16.mxu1 %v12880_v2 }
 0x510   :  { %4133 = vmatprep.subr.bf16.mxu1 %v10345_v5 }
 0x513   :  { %4134 = vmatpush1.bf16.msra.mxu1 %v10373_v56 }
 0x514   :  { %4264 = vmatprep.subr.bf16.mxu1 %v12939_v58 }
 0x516   :  { %7918 = vmatmul.mubr.msk.bf16.vlgmr.msra.gmra.mrb[108].mxu1 %vm12887_vm0, %v10699_v9  ;;  %vm13061_vm0 = vmmov %vm13056_vm2 }
 0x517   :  { %4265 = vmatpush1.bf16.msra.mxu1 %v10495_v50  ;;  %4296 = vmatprep.mubr.bf16.mxu1 %v12880_v2 }
 0x518   :  { %4266 = vmatprep.subr.bf16.mxu1 %v10510_v39 }
 0x51a   :  { %v10936_v33 = vpop.f32.mrb[116].mxu0 }
 0x51b   :  { %4267 = vmatpush1.bf16.msra.mxu1 %v10524_v37  ;;  %12971 = vst [vmem:[#allocation13_spill] sm:$0xff] %v10936_v33  ;;  %v10938_v22 = vpop.f32.mrb[117].mxu0 }
 0x51c   :  { %4383 = vmatprep.subr.bf16.mxu1 %v10755_v23  ;;  %12972 = vst [vmem:[#allocation41_spill] sm:$0xff] %v10938_v22  ;;  %v2609_v54 = vpop.f32.mrb[118].mxu0 }
 0x51d   :  { %2616 = vrot.lane.b32.xlu1 %v2609_v54, %s8619_s27  ;;  %v2611_v11 = vpop.f32.mrb[119].mxu0 }
 0x51e   :  { %7920 = vmatmul.mubr.msk.bf16.vlgmr.msra.gmra.mrb[112].mxu1 %vm12973_vm12, %v10653_v47  ;;  %v2625_v8 = vrot.slane %v2611_v11, 1  ;;  %vm13062_vm12 = vmmov %vm13061_vm0 }
 0x51f   :  { %4384 = vmatpush1.bf16.msra.mxu1 %v10319_v26  ;;  %4415 = vmatprep.mubr.bf16.mxu1 %v12880_v2  ;;  %v10946_v31 = vpop.f32.mrb[8].mxu1 }
 0x520   :  { %4385 = vmatprep.subr.bf16.mxu1 %v10345_v5  ;;  %v10948_v34 = vpop.f32.mrb[9].mxu1 }
 0x521   :  { %v1597_v38 = vpop.f32.mrb[10].mxu1 }
 0x522   :  { %1604 = vrot.lane.b32.xlu0 %v1597_v38, %s8619_s27  ;;  %v1599_v63 = vpop.f32.mrb[11].mxu1 }
 0x523   :  { %4386 = vmatpush1.bf16.msra.mxu1 %v10373_v56  ;;  %v10953_v26 = vpop.f32.mrb[120].mxu0  ;;  %v1613_v51 = vrot.slane %v1599_v63, 1 }
 0x524   :  { %4533 = vmatprep.subr.bf16.mxu1 %v12939_v58  ;;  %v10955_v25 = vpop.f32.mrb[121].mxu0 }
 0x525   :  { %v2750_v5 = vpop.f32.mrb[122].mxu0  ;;  %1614 = vrot.lane.b32.xlu1 %v1613_v51, %s8619_s27 }
 0x526   :  { %7922 = vmatmul.mubr.msk.bf16.vlgmr.msra.gmra.mrb[116].mxu1 %vm12974_vm15, %v10653_v47  ;;  %v2752_v4 = vpop.f32.mrb[123].mxu0  ;;  %vm13063_vm15 = vmmov %vm13061_vm0 }
 0x527   :  { %4534 = vmatpush1.bf16.msra.mxu1 %v10495_v50  ;;  %4565 = vmatprep.mubr.bf16.mxu1 %v12880_v2  ;;  %v2766_v30 = vrot.slane %v2752_v4, 1 }
 0x528   :  { %4535 = vmatprep.subr.bf16.mxu1 %v10510_v39  ;;  %v10963_v0 = vpop.f32.mrb[12].mxu1 }
 0x529   :  { %v10965_v61 = vpop.f32.mrb[13].mxu1  ;;  %2626 = vrot.lane.b32.xlu1 %v2625_v8, %s8619_s27 }
 0x52a   :  { %v1699_v60 = vpop.f32.mrb[14].mxu1 }
 0x52b   :  { %4536 = vmatpush1.bf16.msra.mxu1 %v10524_v37  ;;  %1706 = vrot.lane.b32.xlu0 %v1699_v60, %s8619_s27  ;;  %v1701_v47 = vpop.f32.mrb[15].mxu1 }
 0x52c   :  { %4652 = vmatprep.subr.bf16.mxu1 %v10755_v23  ;;  %v10971_v48 = vpop.f32.mrb[124].mxu0  ;;  %v1715_v32 = vrot.slane %v1701_v47, 1 }
 0x52d   :  { %12975 = vst [vmem:[#allocation42_spill] sm:$0xff] %v10971_v48  ;;  %v10973_v62 = vpop.f32.mrb[125].mxu0  ;;  %2757 = vrot.lane.b32.xlu1 %v2750_v5, %s8619_s27 }
 0x52e   :  { %12976 = vst [vmem:[#allocation21_spill] sm:$0xff] %v10973_v62  ;;  %7924 = vmatmul.mubr.msk.bf16.vlgmr.msra.gmra.mrb[120].mxu1 %vm12977_vm8, %v10716_v24  ;;  %v2878_v9 = vpop.f32.mrb[126].mxu0 }
 0x52f   :  { %4653 = vmatpush1.bf16.msra.mxu1 %v8603_v6  ;;  %v2880_v27 = vpop.f32.mrb[127].mxu0  ;;  %4684 = vmatprep.mubr.bf16.mxu1 %v12880_v2 }
 0x530   :  { %4654 = vmatprep.subr.bf16.mxu1 %v8604_v19  ;;  %v2894_v44 = vrot.slane %v2880_v27, 1 }
 0x531   :  { %v10985_v7 = vpop.f32.mrb[16].mxu1  ;;  %2767 = vrot.lane.b32.xlu1 %v2766_v30, %s8619_s27 }
 0x532   :  { %v10987_v10 = vpop.f32.mrb[17].mxu1 }
 0x533   :  { %4655 = vmatpush1.bf16.msra.mxu1 %v10373_v56  ;;  %v1789_v53 = vpop.f32.mrb[18].mxu1 }
 0x534   :  { %1796 = vrot.lane.b32.xlu0 %v1789_v53, %s8619_s27  ;;  %v1791_v14 = vpop.f32.mrb[19].mxu1  ;;  %4802 = vmatprep.subr.bf16.mxu1 %v12939_v58  ;;  %v10993_v29 = vpop.f32.mrb[128].mxu0 }
 0x535   :  { %v10995_v57 = vpop.f32.mrb[129].mxu0  ;;  %1716 = vrot.lane.b32.xlu1 %v1715_v32, %s8619_s27  ;;  %v1805_v52 = vrot.slane %v1791_v14, 1 }
 0x536   :  { %7926 = vmatmul.mubr.msk.bf16.vlgmr.msra.gmra.mrb[124].mxu1 %vm12978_vm3, %v10716_v24  ;;  %v3019_v40 = vpop.f32.mrb[130].mxu0  ;;  %vm13064_vm3 = vmmov %vm13061_vm0 }
 0x537   :  { %4803 = vmatpush1.bf16.msra.mxu1 %v10495_v50  ;;  %v3021_v56 = vpop.f32.mrb[131].mxu0  ;;  %4834 = vmatprep.mubr.bf16.mxu1 %v12880_v2 }
 0x538   :  { %4804 = vmatprep.subr.bf16.mxu1 %v10510_v39  ;;  %v3035_v17 = vrot.slane %v3021_v56, 1 }
 0x539   :  { %v11003_v58 = vpop.f32.mrb[20].mxu1  ;;  %2885 = vrot.lane.b32.xlu1 %v2878_v9, %s8619_s27 }
 0x53a   :  { %v11005_v36 = vpop.f32.mrb[21].mxu1  ;;  %3036 = vrot.lane.b32.xlu0 %v3035_v17, %s8619_s27 }
 0x53b   :  { %v1891_v28 = vpop.f32.mrb[22].mxu1  ;;  %4805 = vmatpush1.bf16.msra.mxu1 %v10524_v37 }
 0x53c   :  { %v1893_v50 = vpop.f32.mrb[23].mxu1  ;;  %v11010_v24 = vpop.f32.mrb[132].mxu0 }
 0x53d   :  { %12979 = vst [vmem:[#allocation8_spill] sm:$0xff] %v11010_v24  ;;  %v11012_v59 = vpop.f32.mrb[133].mxu0  ;;  %1806 = vrot.lane.b32.xlu1 %v1805_v52, %s8619_s27  ;;  %v1907_v20 = vrot.slane %v1893_v50, 1 }
 0x53e   :  { %12980 = vst [vmem:[#allocation22_spill] sm:$0xff] %v11012_v59  ;;  %7928 = vmatmul.mubr.msk.bf16.vlgmr.msra.gmra.mrb[128].mxu1 %vm12981_vm7, %v10719_v46  ;;  %v3147_v39 = vpop.f32.mrb[134].mxu0  ;;  %vm13065_vm7 = vmmov %vm13061_vm0 }
 0x53f   :  { %v3149_v42 = vpop.f32.mrb[135].mxu0  ;;  %5351 = vmatprep.mubr.bf16.mxu1 %v12880_v2 }
 0x540   :  { %v3163_v45 = vrot.slane %v3149_v42, 1 }
 0x541   :  { %v11018_v1 = vpop.f32.mrb[24].mxu1  ;;  %2895 = vrot.lane.b32.xlu1 %v2894_v44, %s8619_s27 }
 0x542   :  { %v11020_v37 = vpop.f32.mrb[25].mxu1 }
 0x543   :  { %v1957_v16 = vpop.f32.mrb[26].mxu1 }
 0x544   :  { %1964 = vrot.lane.b32.xlu0 %v1957_v16, %s8619_s27  ;;  %v1959_v3 = vpop.f32.mrb[27].mxu1  ;;  %v11024_v15 = vpop.f32.mrb[136].mxu0 }
 0x545   :  { %v11026_v46 = vpop.f32.mrb[137].mxu0  ;;  %3026 = vrot.lane.b32.xlu1 %v3019_v40, %s8619_s27  ;;  %v1973_v43 = vrot.slane %v1959_v3, 1 }
 0x546   :  { %v3299_v41 = vpop.f32.mrb[138].mxu0 }
 0x547   :  { %v3301_v23 = vpop.f32.mrb[139].mxu0 }
 0x548   :  { %3154 = vrot.lane.b32.xlu0 %v3147_v39, %s8619_s27  ;;  %v3315_v6 = vrot.slane %v3301_v23, 1 }
 0x549   :  { %v11030_v35 = vpop.f32.mrb[28].mxu1  ;;  %1898 = vrot.lane.b32.xlu1 %v1891_v28, %s8619_s27 }
 0x54a   :  { %v11032_v13 = vpop.f32.mrb[29].mxu1 }
 0x54b   :  { %v2016_v55 = vpop.f32.mrb[30].mxu1 }
 0x54c   :  { %v2018_v21 = vpop.f32.mrb[31].mxu1  ;;  %1974 = vrot.lane.b32.xlu0 %v1973_v43, %s8619_s27  ;;  %v11036_v12 = vpop.f32.mrb[140].mxu0 }
 0x54d   :  { %12982 = vst [vmem:[#allocation23_spill] sm:$0xff] %v11036_v12  ;;  %v11038_v49 = vpop.f32.mrb[141].mxu0  ;;  %1908 = vrot.lane.b32.xlu1 %v1907_v20, %s8619_s27  ;;  %v2032_v8 = vrot.slane %v2018_v21, 1 }
 0x54e   :  { %12983 = vst [vmem:[#allocation28_spill] sm:$0xff] %v11038_v49  ;;  %v3443_v18 = vpop.f32.mrb[142].mxu0 }
 0x54f   :  { %v3445_v54 = vpop.f32.mrb[143].mxu0 }
 0x550   :  { %3164 = vrot.lane.b32.xlu0 %v3163_v45, %s8619_s27  ;;  %v3459_v44 = vrot.slane %v3445_v54, 1 }
 0x551   :  { %v11042_v11 = vpop.f32.mrb[32].mxu1  ;;  %2023 = vrot.lane.b32.xlu1 %v2016_v55, %s8619_s27 }
 0x552   :  { %v11044_v38 = vpop.f32.mrb[33].mxu1 }
 0x553   :  { %v2086_v63 = vpop.f32.mrb[34].mxu1 }
 0x554   :  { %v2088_v51 = vpop.f32.mrb[35].mxu1  ;;  %3306 = vrot.lane.b32.xlu0 %v3299_v41, %s8619_s27  ;;  %v11048_v5 = vpop.f32.mrb[144].mxu0 }
 0x555   :  { %v11050_v4 = vpop.f32.mrb[145].mxu0  ;;  %2093 = vrot.lane.b32.xlu1 %v2086_v63, %s8619_s27  ;;  %v2102_v17 = vrot.slane %v2088_v51, 1 }
 0x556   :  { %v3572_v60 = vpop.f32.mrb[146].mxu0 }
 0x557   :  { %v3574_v47 = vpop.f32.mrb[147].mxu0 }
 0x558   :  { %2033 = vrot.lane.b32.xlu0 %v2032_v8, %s8619_s27 }
 0x559   :  { %v11054_v9 = vpop.f32.mrb[36].mxu1  ;;  %3579 = vrot.lane.b32.xlu1 %v3572_v60, %s8619_s27 }
 0x55a   :  { %v11056_v27 = vpop.f32.mrb[37].mxu1 }
 0x55b   :  { %v2168_v19 = vpop.f32.mrb[38].mxu1 }
 0x55c   :  { %v2170_v30 = vpop.f32.mrb[39].mxu1  ;;  %3316 = vrot.lane.b32.xlu0 %v3315_v6, %s8619_s27  ;;  %v11060_v53 = vpop.f32.mrb[148].mxu0 }
 0x55d   :  { %12984 = vst [vmem:[#allocation30_spill] sm:$0xff] %v11060_v53  ;;  %v11062_v14 = vpop.f32.mrb[149].mxu0  ;;  %v2184_v8 = vrot.slane %v2170_v30, 1 }
 0x55e   :  { %12985 = vst [vmem:[#allocation32_spill] sm:$0xff] %v11062_v14  ;;  %v3712_v32 = vpop.f32.mrb[150].mxu0 }
 0x55f   :  { %v3714_v40 = vpop.f32.mrb[151].mxu0 }
 0x560   :  { %3450 = vrot.lane.b32.xlu0 %v3443_v18, %s8619_s27  ;;  %v3728_v23 = vrot.slane %v3714_v40, 1  ;;  %v3588_v18 = vrot.slane %v3574_v47, 1 }
 0x561   :  { %v11065_v56 = vpop.f32.mrb[40].mxu1 }
 0x562   :  { %v11067_v28 = vpop.f32.mrb[41].mxu1 }
 0x563   :  { %v2228_v50 = vpop.f32.mrb[42].mxu1 }
 0x564   :  { %v2230_v52 = vpop.f32.mrb[43].mxu1  ;;  %2103 = vrot.lane.b32.xlu0 %v2102_v17, %s8619_s27  ;;  %2235 = vrot.lane.b32.xlu1 %v2228_v50, %s8619_s27  ;;  %v11071_v39 = vpop.f32.mrb[152].mxu0 }
 0x565   :  { %v11073_v42 = vpop.f32.mrb[153].mxu0  ;;  %v2244_v17 = vrot.slane %v2230_v52, 1 }
 0x566   :  { %v3841_v16 = vpop.f32.mrb[154].mxu0 }
 0x567   :  { %v3843_v3 = vpop.f32.mrb[155].mxu0 }
 0x568   :  { %3460 = vrot.lane.b32.xlu0 %v3459_v44, %s8619_s27  ;;  %3719 = vrot.lane.b32.xlu1 %v3712_v32, %s8619_s27  ;;  %v3857_v60 = vrot.slane %v3843_v3, 1 }
 0x569   :  { %v11077_v41 = vpop.f32.mrb[44].mxu1 }
 0x56a   :  { %v11079_v43 = vpop.f32.mrb[45].mxu1 }
 0x56b   :  { %v2287_v55 = vpop.f32.mrb[46].mxu1 }
 0x56c   :  { %v2289_v21 = vpop.f32.mrb[47].mxu1  ;;  %2175 = vrot.lane.b32.xlu0 %v2168_v19, %s8619_s27  ;;  %3729 = vrot.lane.b32.xlu1 %v3728_v23, %s8619_s27  ;;  %v11083_v20 = vpop.f32.mrb[156].mxu0 }
 0x56d   :  { %12986 = vst [vmem:[#allocation37_spill] sm:$0xff] %v11083_v20  ;;  %v11085_v45 = vpop.f32.mrb[157].mxu0  ;;  %v2303_v52 = vrot.slane %v2289_v21, 1 }
 0x56e   :  { %12987 = vst [vmem:[#allocation40_spill] sm:$0xff] %v11085_v45  ;;  %v3981_v54 = vpop.f32.mrb[158].mxu0 }
 0x56f   :  { %v3983_v63 = vpop.f32.mrb[159].mxu0 }
 0x570   :  { %3589 = vrot.lane.b32.xlu0 %v3588_v18, %s8619_s27  ;;  %3848 = vrot.lane.b32.xlu1 %v3841_v16, %s8619_s27  ;;  %v3997_v14 = vrot.slane %v3983_v63, 1 }
 0x571   :  { %v11089_v51 = vpop.f32.mrb[48].mxu1 }
 0x572   :  { %v11091_v6 = vpop.f32.mrb[49].mxu1 }
 0x573   :  { %v2357_v19 = vpop.f32.mrb[50].mxu1 }
 0x574   :  { %v2359_v32 = vpop.f32.mrb[51].mxu1  ;;  %2185 = vrot.lane.b32.xlu0 %v2184_v8, %s8619_s27  ;;  %3858 = vrot.lane.b32.xlu1 %v3857_v60, %s8619_s27  ;;  %v11095_v40 = vpop.f32.mrb[160].mxu0 }
 0x575   :  { %v11097_v47 = vpop.f32.mrb[161].mxu0  ;;  %v2373_v21 = vrot.slane %v2359_v32, 1 }
 0x576   :  { %v4110_v50 = vpop.f32.mrb[162].mxu0 }
 0x577   :  { %v4112_v44 = vpop.f32.mrb[163].mxu0 }
 0x578   :  { %2245 = vrot.lane.b32.xlu0 %v2244_v17, %s8619_s27  ;;  %3988 = vrot.lane.b32.xlu1 %v3981_v54, %s8619_s27  ;;  %v4126_v63 = vrot.slane %v4112_v44, 1 }
 0x579   :  { %v11101_v30 = vpop.f32.mrb[52].mxu1 }
 0x57a   :  { %v11103_v16 = vpop.f32.mrb[53].mxu1 }
 0x57b   :  { %v2427_v3 = vpop.f32.mrb[54].mxu1 }
 0x57c   :  { %v2429_v23 = vpop.f32.mrb[55].mxu1  ;;  %2294 = vrot.lane.b32.xlu0 %v2287_v55, %s8619_s27  ;;  %4117 = vrot.lane.b32.xlu1 %v4110_v50, %s8619_s27  ;;  %v11107_v18 = vpop.f32.mrb[164].mxu0 }
 0x57d   :  { %12988 = vst [vmem:[#allocation3_spill] sm:$0xff] %v11107_v18  ;;  %v11109_v8 = vpop.f32.mrb[165].mxu0 }
 0x57e   :  { %12989 = vst [vmem:[#allocation43_spill] sm:$0xff] %v11109_v8  ;;  %v4239_v60 = vpop.f32.mrb[166].mxu0 }
 0x57f   :  { %v11111_v2 = vpop.f32.mrb[167].mxu0 }
 0x580   :  { %2304 = vrot.lane.b32.xlu0 %v2303_v52, %s8619_s27 }
 0x581   :  { %v11114_v54 = vpop.f32.mrb[56].mxu1 }
 0x582   :  { %v11116_v17 = vpop.f32.mrb[57].mxu1 }
 0x583   :  { %v2487_v45 = vpop.f32.mrb[58].mxu1 }
 0x584   :  { %v2489_v20 = vpop.f32.mrb[59].mxu1  ;;  %2364 = vrot.lane.b32.xlu0 %v2357_v19, %s8619_s27  ;;  %2494 = vrot.lane.b32.xlu1 %v2487_v45, %s8619_s27  ;;  %v11120_v55 = vpop.f32.mrb[168].mxu0 }
 0x585   :  { %12990 = vst [vmem:[#allocation18_spill] sm:$0xff] %v11120_v55  ;;  %v11122_v50 = vpop.f32.mrb[169].mxu0 }
 0x586   :  { %12991 = vst [vmem:[#allocation26_spill] sm:$0xff] %v11122_v50  ;;  %v11124_v8 = vpop.f32.mrb[170].mxu0 }
 0x587   :  { %v11126_v18 = vpop.f32.mrb[171].mxu0 }
 0x588   :  { %2374 = vrot.lane.b32.xlu0 %v2373_v21, %s8619_s27 }
 0x589   :  { %v11129_v52 = vpop.f32.mrb[60].mxu1 }
 0x58a   :  { %v11131_v53 = vpop.f32.mrb[61].mxu1 }
 0x58b   :  { %v2546_v49 = vpop.f32.mrb[62].mxu1 }
 0x58c   :  { %v11133_v19 = vpop.f32.mrb[63].mxu1  ;;  %3998 = vrot.lane.b32.xlu0 %v3997_v14, %s8619_s27  ;;  %2553 = vrot.lane.b32.xlu1 %v2546_v49, %s8619_s27  ;;  %v11137_v45 = vpop.f32.mrb[172].mxu0 }
 0x58d   :  { %12992 = vst [vmem:[#allocation4_spill] sm:$0xff] %v11137_v45  ;;  %v11139_v32 = vpop.f32.mrb[173].mxu0  ;;  %v2443_v45 = vrot.slane %v2429_v23, 1 }
 0x58e   :  { %12993 = vst [vmem:[#allocation5_spill] sm:$0xff] %v11139_v32  ;;  %v4502_v12 = vpop.f32.mrb[174].mxu0 }
 0x58f   :  { %v11141_v59 = vpop.f32.mrb[175].mxu0  ;;  %v11148_v33 = vpop.permute.xlu1 %2616 }
 0x590   :  { %2434 = vrot.lane.b32.xlu0 %v2427_v3, %s8619_s27  ;;  %12996 = vst [vmem:[#allocation19_spill] sm:$0xff] %v11148_v33 }
 0x591   :  { %v11144_v21 = vpop.f32.mrb[64].mxu1 }
 0x592   :  { %12994 = vst [vmem:[#allocation44_spill] sm:$0xff] %v11144_v21  ;;  %v11146_v24 = vpop.f32.mrb[65].mxu1  ;;  %v1609_v21 = vrot.slane %v10948_v34, 1 }
 0x593   :  { %12995 = vst [vmem:[#allocation35_spill] sm:$0xff] %v11146_v24  ;;  %v2690_v22 = vpop.f32.mrb[66].mxu1 }
 0x594   :  { %v2692_v14 = vpop.f32.mrb[67].mxu1  ;;  %4127 = vrot.lane.b32.xlu0 %v4126_v63, %s8619_s27  ;;  %2697 = vrot.lane.b32.xlu1 %v2690_v22, %s8619_s27  ;;  %v11152_v49 = vpop.f32.mrb[176].mxu0 }
 0x595   :  { %12997 = vst [vmem:[#allocation33_spill] sm:$0xff] %v11152_v49  ;;  %v11154_v32 = vpop.f32.mrb[177].mxu0  ;;  %v1605_v62 = vpop.permute.xlu0 %1604  ;;  %v2706_v22 = vrot.slane %v2692_v14, 1 }
 0x596   :  { %v4631_v3 = vpop.f32.mrb[178].mxu0  ;;  %v1607_v44 = vadd.f32 %v1605_v62, %v10946_v31 }
 0x597   :  { %v4633_v24 = vpop.f32.mrb[179].mxu0  ;;  %v1615_v48 = vpop.permute.xlu1 %1614 }
 0x598   :  { %2444 = vrot.lane.b32.xlu0 %v2443_v45, %s8619_s27  ;;  %4509 = vrot.lane.b32.xlu1 %v4502_v12, %s8619_s27  ;;  %v1611_v63 = vadd.f32 %v1609_v21, %v1607_v44  ;;  %v2503_v45 = vrot.slane %v2489_v20, 1  ;;  %v1711_v44 = vrot.slane %v10965_v61, 1 }
 0x599   :  { %v2805_v33 = vpop.f32.mrb[68].mxu1 }
 0x59a   :  { %v11160_v55 = vpop.f32.mrb[69].mxu1  ;;  %v1617_v50 = vadd.f32 %v1615_v48, %v1611_v63 }
 0x59b   :  { %v2809_v49 = vpop.f32.mrb[70].mxu1  ;;  %v11167_v62 = vpop.permute.xlu1 %2626 }
 0x59c   :  { %v2811_v23 = vpop.f32.mrb[71].mxu1  ;;  %4246 = vrot.lane.b32.xlu0 %v4239_v60, %s8619_s27  ;;  %2707 = vrot.lane.b32.xlu1 %v2706_v22, %s8619_s27  ;;  %v11164_v34 = vpop.f32.mrb[180].mxu0  ;;  %v1704_v31 = vadd.f32 %v10963_v0, %v1617_v50  ;;  %12999 = vst [vmem:[#allocation14_spill] sm:$0xff] %v11167_v62  ;;  %v2762_v50 = vrot.slane %v10955_v25, 1 }
 0x59d   :  { %12998 = vst [vmem:[#allocation24_spill] sm:$0xff] %v11164_v34  ;;  %v11169_v12 = vpop.f32.mrb[181].mxu0  ;;  %v1707_v21 = vpop.permute.xlu0 %1706 }
 0x59e   :  { %13000 = vst [vmem:[#allocation15_spill] sm:$0xff] %v11169_v12  ;;  %v4771_v14 = vpop.f32.mrb[182].mxu0  ;;  %v1709_v48 = vadd.f32 %v1707_v21, %v1704_v31  ;;  %v4255_v12 = vrot.slane %v11111_v2, 1  ;;  %v2825_v21 = vrot.slane %v2811_v23, 1 }
 0x59f   :  { %v11172_v63 = vpop.f32.mrb[183].mxu0  ;;  %v2758_v22 = vpop.permute.xlu1 %2757 }
 0x5a0   :  { %2504 = vrot.lane.b32.xlu0 %v2503_v45, %s8619_s27  ;;  %2816 = vrot.lane.b32.xlu1 %v2809_v49, %s8619_s27  ;;  %v1713_v0 = vadd.f32 %v1711_v44, %v1709_v48  ;;  %v2760_v34 = vadd.f32 %v2758_v22, %v10953_v26  ;;  %v2562_v26 = vrot.slane %v11133_v19, 1  ;;  %v4647_v48 = vrot.slane %v4633_v24, 1 }
 0x5a1   :  { %v11176_v60 = vpop.f32.mrb[72].mxu1 }
 0x5a2   :  { %v11180_v20 = vpop.f32.mrb[73].mxu1  ;;  %v2764_v45 = vadd.f32 %v2762_v50, %v2760_v34 }
 0x5a3   :  { %v2959_v61 = vpop.f32.mrb[74].mxu1  ;;  %v2768_v49 = vpop.permute.xlu1 %2767 }
 0x5a4   :  { %v2961_v31 = vpop.f32.mrb[75].mxu1  ;;  %4256 = vrot.lane.b32.xlu0 %v4255_v12, %s8619_s27  ;;  %4638 = vrot.lane.b32.xlu1 %v4631_v3, %s8619_s27  ;;  %v2770_v62 = vadd.f32 %v2768_v49, %v2764_v45  ;;  %v4518_v49 = vrot.slane %v11141_v59, 1 }
 0x5a6   :  { %v11188_v2 = vadd.f32 %v2805_v33, %v2770_v62  ;;  %v1797_v34 = vpop.permute.xlu0 %1796  ;;  %v1801_v33 = vrot.slane %v10987_v10, 1  ;;  %v4378_v62 = vrot.slane %v11126_v18, 1 }
 0x5a7   :  { %v1717_v44 = vpop.permute.xlu1 %1716 }
 0x5a8   :  { %4369 = vrot.lane.b32.xlu0 %v11124_v8, %s8619_s27  ;;  %2826 = vrot.lane.b32.xlu1 %v2825_v21, %s8619_s27  ;;  %v1719_v12 = vadd.f32 %v1717_v44, %v1713_v0 }
 0x5a9   :  { %v3074_v25 = vpop.f32.mrb[76].mxu1 }
 0x5aa   :  { %v11191_v22 = vpop.f32.mrb[77].mxu1  ;;  %v1794_v23 = vadd.f32 %v10985_v7, %v1719_v12 }
 0x5ab   :  { %v3078_v3 = vpop.f32.mrb[78].mxu1  ;;  %v11196_v8 = vpop.permute.xlu1 %2885 }
 0x5ac   :  { %v3080_v50 = vpop.f32.mrb[79].mxu1  ;;  %2563 = vrot.lane.b32.xlu0 %v2562_v26, %s8619_s27  ;;  %4648 = vrot.lane.b32.xlu1 %v4647_v48, %s8619_s27  ;;  %v1799_v19 = vadd.f32 %v1797_v34, %v1794_v23  ;;  %v3037_v24 = vpop.permute.xlu0 %3036  ;;  %v1969_v34 = vrot.slane %v11020_v37, 1 }
 0x5ae   :  { %v1803_v0 = vadd.f32 %v1801_v33, %v1799_v19  ;;  %v3094_v19 = vrot.slane %v3080_v50, 1 }
 0x5af   :  { %v1807_v7 = vpop.permute.xlu1 %1806 }
 0x5b0   :  { %4379 = vrot.lane.b32.xlu0 %v4378_v62, %s8619_s27  ;;  %2966 = vrot.lane.b32.xlu1 %v2959_v61, %s8619_s27  ;;  %v1809_v44 = vadd.f32 %v1807_v7, %v1803_v0  ;;  %v2975_v61 = vrot.slane %v2961_v31, 1 }
 0x5b1   :  { %v11202_v45 = vpop.f32.mrb[80].mxu1 }
 0x5b2   :  { %v11205_v21 = vpop.f32.mrb[81].mxu1  ;;  %v1896_v10 = vadd.f32 %v11003_v58, %v1809_v44 }
 0x5b3   :  { %13001 = vst [vmem:[#allocation17_spill] sm:$0xff] %v11205_v21  ;;  %v3228_v26 = vpop.f32.mrb[82].mxu1  ;;  %v11210_v18 = vpop.permute.xlu1 %2895 }
 0x5b4   :  { %v3230_v48 = vpop.f32.mrb[83].mxu1  ;;  %4519 = vrot.lane.b32.xlu0 %v4518_v49, %s8619_s27  ;;  %4778 = vrot.lane.b32.xlu1 %v4771_v14, %s8619_s27  ;;  %v3031_v14 = vrot.slane %v10995_v57, 1 }
 0x5b6   :  { %v1965_v12 = vpop.permute.xlu0 %1964 }
 0x5b7   :  { %v1967_v23 = vadd.f32 %v1965_v12, %v11018_v1  ;;  %v3027_v33 = vpop.permute.xlu1 %3026 }
 0x5b8   :  { %2976 = vrot.lane.b32.xlu0 %v2975_v61, %s8619_s27  ;;  %3085 = vrot.lane.b32.xlu1 %v3078_v3, %s8619_s27  ;;  %v3029_v31 = vadd.f32 %v3027_v33, %v10993_v29  ;;  %v1903_v3 = vrot.slane %v11005_v36, 1 }
 0x5b9   :  { %v11216_v59 = vpop.f32.mrb[84].mxu1  ;;  %v1971_v62 = vadd.f32 %v1969_v34, %v1967_v23 }
 0x5ba   :  { %v11219_v58 = vpop.permute.xlu0 %3154  ;;  %v11221_v0 = vpop.f32.mrb[85].mxu1  ;;  %v3033_v7 = vadd.f32 %v3031_v14, %v3029_v31  ;;  %v3244_v14 = vrot.slane %v3230_v48, 1 }
 0x5bb   :  { %v3362_v37 = vpop.f32.mrb[86].mxu1  ;;  %v1899_v49 = vpop.permute.xlu1 %1898 }
 0x5bc   :  { %v3364_v1 = vpop.f32.mrb[87].mxu1  ;;  %3095 = vrot.lane.b32.xlu0 %v3094_v19, %s8619_s27  ;;  %v1901_v61 = vadd.f32 %v1899_v49, %v1896_v10  ;;  %v3039_v12 = vadd.f32 %v3037_v24, %v3033_v7 }
 0x5be   :  { %v1975_v44 = vpop.permute.xlu0 %1974  ;;  %v1905_v57 = vadd.f32 %v1903_v3, %v1901_v61  ;;  %v11227_v50 = vadd.f32 %v3074_v25, %v3039_v12  ;;  %v2028_v25 = vrot.slane %v11032_v13, 1 }
 0x5bf   :  { %v1977_v34 = vadd.f32 %v1975_v44, %v1971_v62  ;;  %v1909_v29 = vpop.permute.xlu1 %1908  ;;  %v3311_v62 = vrot.slane %v11026_v46, 1  ;;  %v3378_v44 = vrot.slane %v3364_v1, 1 }
 0x5c0   :  { %3235 = vrot.lane.b32.xlu0 %v3228_v26, %s8619_s27 }
 0x5c1   :  { %v11229_v23 = vpop.f32.mrb[88].mxu1  ;;  %v2021_v33 = vadd.f32 %v11030_v35, %v1977_v34 }
 0x5c2   :  { %v11232_v31 = vpop.f32.mrb[89].mxu1  ;;  %v11234_v19 = vpop.permute.xlu0 %3164 }
 0x5c3   :  { %v3512_v36 = vpop.f32.mrb[90].mxu1  ;;  %v2024_v24 = vpop.permute.xlu1 %2023 }
 0x5c4   :  { %v3514_v21 = vpop.f32.mrb[91].mxu1  ;;  %3245 = vrot.lane.b32.xlu0 %v3244_v14, %s8619_s27  ;;  %3519 = vrot.lane.b32.xlu1 %v3512_v36, %s8619_s27  ;;  %v2026_v10 = vadd.f32 %v2024_v24, %v2021_v33  ;;  %v3584_v33 = vrot.slane %v11050_v4, 1 }
 0x5c5   :  { %v3528_v36 = vrot.slane %v3514_v21, 1 }
 0x5c6   :  { %v3307_v26 = vpop.permute.xlu0 %3306  ;;  %v2030_v48 = vadd.f32 %v2028_v25, %v2026_v10  ;;  %v2098_v25 = vrot.slane %v11044_v38, 1 }
 0x5c7   :  { %v3309_v35 = vadd.f32 %v3307_v26, %v11024_v15  ;;  %v2094_v49 = vpop.permute.xlu1 %2093 }
 0x5c8   :  { %3369 = vrot.lane.b32.xlu0 %v3362_v37, %s8619_s27 }
 0x5c9   :  { %v11242_v7 = vpop.f32.mrb[92].mxu1  ;;  %v3313_v3 = vadd.f32 %v3311_v62, %v3309_v35 }
 0x5ca   :  { %v11244_v61 = vpop.f32.mrb[93].mxu1  ;;  %v2034_v12 = vpop.permute.xlu0 %2033 }
 0x5cb   :  { %v2036_v34 = vadd.f32 %v2034_v12, %v2030_v48  ;;  %v3631_v14 = vpop.f32.mrb[94].mxu1  ;;  %v3580_v37 = vpop.permute.xlu1 %3579  ;;  %v2240_v12 = vrot.slane %v11067_v28, 1 }
 0x5cc   :  { %v3633_v13 = vpop.f32.mrb[95].mxu1  ;;  %3379 = vrot.lane.b32.xlu0 %v3378_v44, %s8619_s27  ;;  %3638 = vrot.lane.b32.xlu1 %v3631_v14, %s8619_s27  ;;  %v3582_v1 = vadd.f32 %v3580_v37, %v11048_v5 }
 0x5cd   :  { %v2091_v15 = vadd.f32 %v11042_v11, %v2036_v34  ;;  %v3647_v46 = vrot.slane %v3633_v13, 1  ;;  %v1911_v34 = vadd.f32 %v1909_v29, %v1905_v57 }
 0x5ce   :  { %v3317_v24 = vpop.permute.xlu0 %3316  ;;  %v3586_v62 = vadd.f32 %v3584_v33, %v3582_v1 }
 0x5cf   :  { %v2096_v26 = vadd.f32 %v2094_v49, %v2091_v15  ;;  %v3319_v10 = vadd.f32 %v3317_v24, %v3313_v3 }
 0x5d0   :  { %3529 = vrot.lane.b32.xlu0 %v3528_v36, %s8619_s27  ;;  %3648 = vrot.lane.b32.xlu1 %v3647_v46, %s8619_s27 }
 0x5d1   :  { %v11254_v35 = vpop.f32.mrb[96].mxu1  ;;  %v2100_v11 = vadd.f32 %v2098_v25, %v2096_v26  ;;  %v11257_v48 = vadd.f32 %v11216_v59, %v3319_v10  ;;  %v11269_v59 = vld [vmem:[%s12662_s6] ss:$0 sm:$0xff]  ;;  %v2180_v25 = vrot.slane %v11056_v27, 1  ;;  %v3853_v27 = vrot.slane %v11073_v42, 1 }
 0x5d2   :  { %v11259_v4 = vpop.f32.mrb[97].mxu1  ;;  %v11261_v21 = vpop.permute.xlu0 %3450  ;;  %v11278_v28 = vadd.f32 %v11269_v59, %v1911_v34 }
 0x5d3   :  { %v3781_v5 = vpop.f32.mrb[98].mxu1 }
 0x5d4   :  { %v3783_v44 = vpop.f32.mrb[99].mxu1  ;;  %3788 = vrot.lane.b32.xlu1 %v3781_v5, %s8619_s27  ;;  %13002 = vst [vmem:[#allocation16_spill] sm:$0xff] %v11278_v28 }
 0x5d5   :  { %v3797_v38 = vrot.slane %v3783_v44, 1 }
 0x5d6   :  { %v2104_v49 = vpop.permute.xlu0 %2103  ;;  %v2236_v3 = vpop.permute.xlu1 %2235 }
 0x5d7   :  { %v2106_v14 = vadd.f32 %v2104_v49, %v2100_v11  ;;  %v2238_v13 = vadd.f32 %v2236_v3, %v11065_v56 }
 0x5d8   :  { %3798 = vrot.lane.b32.xlu1 %v3797_v38, %s8619_s27 }
 0x5d9   :  { %v3896_v15 = vpop.f32.mrb[100].mxu1  ;;  %v2173_v46 = vadd.f32 %v11054_v9, %v2106_v14  ;;  %v2242_v37 = vadd.f32 %v2240_v12, %v2238_v13  ;;  %v4865_v9 = vsel %vm4864_vm6, %v11278_v28, 0.0 }
 0x5da   :  { %v11273_v33 = vpop.f32.mrb[101].mxu1  ;;  %v11275_v36 = vpop.permute.xlu0 %3460  ;;  %v4866_v44 = vrot.slane %v4865_v9, 4 }
 0x5db   :  { %v11280_v57 = vpop.permute.xlu1 %3719  ;;  %v3900_v56 = vpop.f32.mrb[102].mxu1 }
 0x5dc   :  { %v3902_v29 = vpop.f32.mrb[103].mxu1  ;;  %3907 = vrot.lane.b32.xlu1 %v3900_v56, %s8619_s27  ;;  %v4867_v56 = vadd.f32 %v4866_v44, %v4865_v9 }
 0x5dd   :  { %v3916_v24 = vrot.slane %v3902_v29, 1 }
 0x5de   :  { %v2176_v1 = vpop.permute.xlu0 %2175  ;;  %v4868_v42 = vrot.slane %v4867_v56, 2 }
 0x5df   :  { %v2178_v26 = vadd.f32 %v2176_v1, %v2173_v46  ;;  %v11286_v10 = vpop.permute.xlu1 %3729 }
 0x5e0   :  { %3917 = vrot.lane.b32.xlu1 %v3916_v24, %s8619_s27 }
 0x5e1   :  { %v11289_v11 = vpop.f32.mrb[104].mxu1  ;;  %v2182_v5 = vadd.f32 %v2180_v25, %v2178_v26 }
 0x5e2   :  { %v11291_v38 = vpop.f32.mrb[105].mxu1  ;;  %v3590_v49 = vpop.permute.xlu0 %3589 }
 0x5e3   :  { %13003 = vst [vmem:[#allocation27_spill] sm:$0xff] %v11291_v38  ;;  %v3592_v3 = vadd.f32 %v3590_v49, %v3586_v62  ;;  %v3849_v12 = vpop.permute.xlu1 %3848  ;;  %v4050_v34 = vpop.f32.mrb[106].mxu1 }
 0x5e4   :  { %v3851_v14 = vadd.f32 %v3849_v12, %v11071_v39  ;;  %v11295_v13 = vpop.f32.mrb[107].mxu1  ;;  %4057 = vrot.lane.b32.xlu1 %v4050_v34, %s8619_s27 }
 0x5e5   :  { %v11299_v46 = vadd.f32 %v11242_v7, %v3592_v3 }
 0x5e6   :  { %v2186_v29 = vpop.permute.xlu0 %2185  ;;  %v3855_v24 = vadd.f32 %v3853_v27, %v3851_v14 }
 0x5e7   :  { %v2188_v1 = vadd.f32 %v2186_v29, %v2182_v5  ;;  %v3859_v25 = vpop.permute.xlu1 %3858  ;;  %v4869_v29 = vadd.f32 %v4868_v42, %v4867_v56 }
 0x5e8   :  { %v3861_v26 = vadd.f32 %v3859_v25, %v3855_v24 }
 0x5e9   :  { %v11302_v62 = vadd.f32 %v11269_v59, %v2188_v1  ;;  %v11304_v49 = vpop.f32.mrb[108].mxu1 }
 0x5ea   :  { %v11306_v39 = vpop.f32.mrb[109].mxu1  ;;  %v2246_v12 = vpop.permute.xlu0 %2245  ;;  %v11308_v28 = vadd.f32 %v3896_v15, %v3861_v26  ;;  %v2299_v15 = vrot.slane %v11079_v43, 1 }
 0x5eb   :  { %13004 = vst [vmem:[#allocation34_spill] sm:$0xff] %v11302_v62  ;;  %13005 = vst [vmem:[#allocation6_spill] sm:$0xff] %v11306_v39  ;;  %v4872_v7 = vsel %vm4864_vm6, %v11302_v62, 0.0  ;;  %v2248_v9 = vadd.f32 %v2246_v12, %v2242_v37  ;;  %v11312_v44 = vpop.permute.xlu1 %3988  ;;  %v4169_v5 = vpop.f32.mrb[110].mxu1  ;;  %v4122_v62 = vrot.slane %v11097_v47, 1 }
 0x5ec   :  { %v4873_v3 = vrot.slane %v4872_v7, 4  ;;  %v4171_v34 = vpop.f32.mrb[111].mxu1  ;;  %4176 = vrot.lane.b32.xlu0 %v4169_v5, %s8619_s27 }
 0x5ed   :  { %v4185_v27 = vrot.slane %v4171_v34, 1  ;;  %v2292_v14 = vadd.f32 %v11077_v41, %v2248_v9  ;;  %v4870_v34 = vrot.slane %v4869_v29, 1 }
 0x5ee   :  { %v4874_v24 = vadd.f32 %v4873_v3, %v4872_v7  ;;  %v2295_v1 = vpop.permute.xlu0 %2294 }
 0x5ef   :  { %v2297_v25 = vadd.f32 %v2295_v1, %v2292_v14  ;;  %v4118_v26 = vpop.permute.xlu1 %4117  ;;  %v4871_v14 = vadd.f32 %v4870_v34, %v4869_v29 }
 0x5f0   :  { %v4875_v37 = vrot.slane %v4874_v24, 2  ;;  %v4120_v12 = vadd.f32 %v4118_v26, %v11095_v40  ;;  %4186 = vrot.lane.b32.xlu0 %v4185_v27, %s8619_s27  ;;  %v2369_v27 = vrot.slane %v11091_v6, 1 }
 0x5f1   :  { %v11320_v39 = vpop.f32.mrb[112].mxu1  ;;  %v2301_v5 = vadd.f32 %v2299_v15, %v2297_v25  ;;  %v2499_v15 = vrot.slane %v11116_v17, 1 }
 0x5f2   :  { %v4876_v38 = vadd.f32 %v4875_v37, %v4874_v24  ;;  %v11322_v41 = vpop.f32.mrb[113].mxu1  ;;  %v2305_v56 = vpop.permute.xlu0 %2304  ;;  %v4124_v42 = vadd.f32 %v4122_v62, %v4120_v12 }
 0x5f3   :  { %v2307_v7 = vadd.f32 %v2305_v56, %v2301_v5  ;;  %v4302_v43 = vpop.f32.mrb[114].mxu1 }
 0x5f4   :  { %v4877_v9 = vrot.slane %v4876_v38, 1  ;;  %v4304_v3 = vpop.f32.mrb[115].mxu1 }
 0x5f5   :  { %v2362_v47 = vadd.f32 %v11089_v51, %v2307_v7 }
 0x5f6   :  { %v4878_v1 = vadd.f32 %v4877_v9, %v4876_v38  ;;  %v2365_v40 = vpop.permute.xlu0 %2364  ;;  %v2495_v26 = vpop.permute.xlu1 %2494 }
 0x5f7   :  { %v2367_v25 = vadd.f32 %v2365_v40, %v2362_v47  ;;  %v2497_v24 = vadd.f32 %v2495_v26, %v11114_v54 }
 0x5f8   :  { %v11328_v37 = vadd.f32 %v4878_v1, %v4871_v14  ;;  %v2439_v1 = vrot.slane %v11103_v16, 1  ;;  %v4318_v16 = vrot.slane %v4304_v3, 1 }
 0x5f9   :  { %v11330_v62 = vpop.f32.mrb[116].mxu1  ;;  %v2371_v12 = vadd.f32 %v2369_v27, %v2367_v25  ;;  %v2501_v5 = vadd.f32 %v2499_v15, %v2497_v24 }
 0x5fa   :  { %v11332_v56 = vpop.f32.mrb[117].mxu1  ;;  %v2375_v51 = vpop.permute.xlu0 %2374 }
 0x5fb   :  { %v2377_v29 = vadd.f32 %v2375_v51, %v2371_v12  ;;  %v4421_v38 = vpop.f32.mrb[118].mxu1 }
 0x5fc   :  { %v4423_v34 = vpop.f32.mrb[119].mxu1  ;;  %4428 = vrot.lane.b32.xlu0 %v4421_v38, %s8619_s27 }
 0x5fd   :  { %v4437_v6 = vrot.slane %v4423_v34, 1  ;;  %v2432_v17 = vadd.f32 %v11101_v30, %v2377_v29  ;;  %v4066_v30 = vrot.slane %v11295_v13, 1 }
 0x5fe   :  { %v11336_v7 = vpop.permute.xlu0 %3998  ;;  %v2554_v54 = vpop.permute.xlu1 %2553 }
 0x600   :  { %4438 = vrot.lane.b32.xlu0 %v4437_v6, %s8619_s27 }
 0x601   :  { %v11339_v9 = vpop.f32.mrb[120].mxu1 }
 0x602   :  { %13006 = vst [vmem:[#allocation25_spill] sm:$0xff] %v11339_v9  ;;  %v11341_v47 = vpop.f32.mrb[121].mxu1  ;;  %v2435_v14 = vpop.permute.xlu0 %2434 }
 0x603   :  { %13007 = vst [vmem:[#allocation38_spill] sm:$0xff] %v11341_v47  ;;  %v2437_v40 = vadd.f32 %v2435_v14, %v2432_v17  ;;  %v4571_v26 = vpop.f32.mrb[122].mxu1 }
 0x604   :  { %v4573_v27 = vpop.f32.mrb[123].mxu1  ;;  %4309 = vrot.lane.b32.xlu0 %v4302_v43, %s8619_s27 }
 0x605   :  { %v2441_v15 = vadd.f32 %v2439_v1, %v2437_v40  ;;  %v4587_v1 = vrot.slane %v4573_v27, 1 }
 0x606   :  { %v4128_v25 = vpop.permute.xlu0 %4127  ;;  %v11346_v24 = vpop.permute.xlu1 %2697 }
 0x607   :  { %v4130_v12 = vadd.f32 %v4128_v25, %v4124_v42  ;;  %v4787_v25 = vrot.slane %v11172_v63, 1 }
 0x608   :  { %4067 = vrot.lane.b32.xlu0 %v4066_v30, %s8619_s27 }
 0x609   :  { %v11349_v51 = vpop.f32.mrb[124].mxu1  ;;  %v11352_v29 = vadd.f32 %v11304_v49, %v4130_v12 }
 0x60a   :  { %v11354_v38 = vpop.f32.mrb[125].mxu1  ;;  %v2445_v34 = vpop.permute.xlu0 %2444 }
 0x60b   :  { %13008 = vst [vmem:[#allocation36_spill] sm:$0xff] %v11354_v38  ;;  %v2447_v6 = vadd.f32 %v2445_v34, %v2441_v15  ;;  %v11356_v43 = vpop.permute.xlu1 %4509  ;;  %v4690_v17 = vpop.f32.mrb[126].mxu1 }
 0x60c   :  { %13009 = vst [vmem:[#allocation11_spill] sm:$0xff] %v11356_v43  ;;  %v4692_v13 = vpop.f32.mrb[127].mxu1  ;;  %4319 = vrot.lane.b32.xlu0 %v4318_v16, %s8619_s27  ;;  %4697 = vrot.lane.b32.xlu1 %v4690_v17, %s8619_s27 }
 0x60d   :  { %v11361_v42 = vadd.f32 %v11269_v59, %v2447_v6  ;;  %v4706_v14 = vrot.slane %v4692_v13, 1  ;;  %v2821_v13 = vrot.slane %v11160_v55, 1  ;;  %v13013_v55 = vld [vmem:[#allocation33_spill] sm:$0xff] }
 0x60e   :  { %v11363_v49 = vpop.permute.xlu0 %4246 }
 0x60f   :  { %13010 = vst [vmem:[#allocation7_spill] sm:$0xff] %v11361_v42  ;;  %v4880_v3 = vsel %vm4864_vm6, %v11361_v42, 0.0  ;;  %v11367_v40 = vpop.permute.xlu1 %2707 }
 0x610   :  { %v4881_v15 = vrot.slane %v4880_v3, 4  ;;  %4588 = vrot.lane.b32.xlu0 %v4587_v1, %s8619_s27  ;;  %4707 = vrot.lane.b32.xlu1 %v4706_v14, %s8619_s27 }
 0x611   :  { %v11371_v30 = vpop.f32.mrb[128].mxu1 }
 0x612   :  { %13011 = vst [vmem:[#allocation39_spill] sm:$0xff] %v11371_v30  ;;  %v4882_v12 = vadd.f32 %v4881_v15, %v4880_v3  ;;  %v11374_v16 = vpop.f32.mrb[129].mxu1  ;;  %v2505_v27 = vpop.permute.xlu0 %2504  ;;  %v2558_v3 = vrot.slane %v11131_v53, 1 }
 0x613   :  { %13012 = vst [vmem:[#allocation12_spill] sm:$0xff] %v11374_v16  ;;  %v2507_v34 = vadd.f32 %v2505_v27, %v2501_v5  ;;  %v2817_v6 = vpop.permute.xlu1 %2816  ;;  %v4840_v17 = vpop.f32.mrb[130].mxu1  ;;  %v4643_v27 = vrot.slane %v11154_v32, 1 }
 0x614   :  { %v4883_v42 = vrot.slane %v4882_v12, 2  ;;  %v2819_v47 = vadd.f32 %v2817_v6, %v11188_v2  ;;  %v4842_v38 = vpop.f32.mrb[131].mxu1  ;;  %4788 = vrot.lane.b32.xlu1 %v4787_v25, %s8619_s27 }
 0x615   :  { %v2551_v14 = vadd.f32 %v11129_v52, %v2507_v34  ;;  %v13014_v52 = vld [vmem:[#allocation26_spill] sm:$0xff] }
 0x616   :  { %v4884_v1 = vadd.f32 %v4883_v42, %v4882_v12  ;;  %v11380_v30 = vpop.permute.xlu0 %4256  ;;  %v2823_v63 = vadd.f32 %v2821_v13, %v2819_v47  ;;  %v4374_v42 = vrot.slane %v13014_v52, 1  ;;  %v13015_v12 = vld [vmem:[#allocation18_spill] sm:$0xff]  ;;  %v4856_v13 = vrot.slane %v4842_v38, 1  ;;  %v13019_v38 = vld [vmem:[#allocation41_spill] sm:$0xff]  ;;  %v13020_v52 = vld [vmem:[#allocation19_spill] sm:$0xff] }
 0x617   :  { %v4639_v15 = vpop.permute.xlu1 %4638  ;;  %v2556_v5 = vadd.f32 %v2554_v54, %v2551_v14  ;;  %v13016_v14 = vld [vmem:[#allocation42_spill] sm:$0xff] }
 0x618   :  { %v4885_v16 = vrot.slane %v4884_v1, 1  ;;  %v4641_v9 = vadd.f32 %v4639_v15, %v13013_v55  ;;  %4578 = vrot.lane.b32.xlu1 %v4571_v26, %s8619_s27  ;;  %v13018_v55 = vld [vmem:[#allocation13_spill] sm:$0xff] }
 0x619   :  { %v2560_v2 = vadd.f32 %v2558_v3, %v2556_v5 }
 0x61a   :  { %v4886_v6 = vadd.f32 %v4885_v16, %v4884_v1  ;;  %v4370_v25 = vpop.permute.xlu0 %4369  ;;  %v4645_v43 = vadd.f32 %v4643_v27, %v4641_v9  ;;  %v13017_v1 = vld [vmem:[#allocation21_spill] sm:$0xff] }
 0x61b   :  { %v4372_v34 = vadd.f32 %v4370_v25, %v13015_v12  ;;  %v2827_v47 = vpop.permute.xlu1 %2826  ;;  %v2890_v9 = vrot.slane %v13017_v1, 1  ;;  %v2621_v25 = vrot.slane %v13019_v38, 1 }
 0x61c   :  { %v11389_v53 = vadd.f32 %v4886_v6, %v11328_v37  ;;  %v2829_v54 = vadd.f32 %v2827_v47, %v2823_v63  ;;  %4847 = vrot.lane.b32.xlu1 %v4840_v17, %s8619_s27 }
 0x61d   :  { %v4376_v32 = vadd.f32 %v4374_v42, %v4372_v34 }
 0x61e   :  { %v2883_v15 = vadd.f32 %v13016_v14, %v2829_v54  ;;  %v2564_v26 = vpop.permute.xlu0 %2563 }
 0x61f   :  { %v2566_v3 = vadd.f32 %v2564_v26, %v2560_v2  ;;  %v4649_v16 = vpop.permute.xlu1 %4648 }
 0x620   :  { %v2888_v5 = vadd.f32 %v11196_v8, %v2883_v15  ;;  %v4651_v27 = vadd.f32 %v4649_v16, %v4645_v43  ;;  %4857 = vrot.lane.b32.xlu1 %v4856_v13, %s8619_s27  ;;  %v13021_v13 = vld [vmem:[#allocation14_spill] sm:$0xff]  ;;  %v2971_v15 = vrot.slane %v11180_v20, 1 }
 0x621   :  { %v2614_v37 = vadd.f32 %v13018_v55, %v2566_v3  ;;  %v13022_v3 = vld [vmem:[#allocation44_spill] sm:$0xff] }
 0x622   :  { %v4380_v6 = vpop.permute.xlu0 %4379  ;;  %v2892_v63 = vadd.f32 %v2890_v9, %v2888_v5  ;;  %v11398_v17 = vadd.f32 %v11349_v51, %v4651_v27 }
 0x623   :  { %v2619_v42 = vadd.f32 %v13020_v52, %v2614_v37  ;;  %v4382_v2 = vadd.f32 %v4380_v6, %v4376_v32  ;;  %v2967_v12 = vpop.permute.xlu1 %2966 }
 0x624   :  { %v2898_v34 = vadd.f32 %v11210_v18, %v2892_v63  ;;  %v13023_v18 = vld [vmem:[#allocation35_spill] sm:$0xff] }
 0x625   :  { %v2623_v47 = vadd.f32 %v2621_v25, %v2619_v42  ;;  %v11404_v8 = vadd.f32 %v11330_v62, %v4382_v2  ;;  %v2702_v9 = vrot.slane %v13023_v18, 1 }
 0x626   :  { %v2964_v43 = vadd.f32 %v11176_v60, %v2898_v34  ;;  %v11407_v54 = vpop.permute.xlu0 %4519  ;;  %v3090_v60 = vrot.slane %v11191_v22, 1  ;;  %v13024_v22 = vld [vmem:[#allocation8_spill] sm:$0xff] }
 0x627   :  { %v2629_v14 = vadd.f32 %v13021_v13, %v2623_v47  ;;  %v11410_v51 = vpop.permute.xlu1 %4778  ;;  %v13025_v47 = vld [vmem:[#allocation22_spill] sm:$0xff] }
 0x628   :  { %v2969_v26 = vadd.f32 %v2967_v12, %v2964_v43  ;;  %v3159_v43 = vrot.slane %v13025_v47, 1 }
 0x629   :  { %v2695_v32 = vadd.f32 %v13022_v3, %v2629_v14 }
 0x62a   :  { %v2977_v16 = vpop.permute.xlu0 %2976  ;;  %v2973_v1 = vadd.f32 %v2971_v15, %v2969_v26 }
 0x62b   :  { %v2700_v62 = vadd.f32 %v11346_v24, %v2695_v32  ;;  %v3086_v5 = vpop.permute.xlu1 %3085 }
 0x62c   :  { %v2979_v27 = vadd.f32 %v2977_v16, %v2973_v1  ;;  %v3088_v55 = vadd.f32 %v3086_v5, %v11227_v50 }
 0x62d   :  { %v2704_v37 = vadd.f32 %v2702_v9, %v2700_v62 }
 0x62e   :  { %v11419_v6 = vadd.f32 %v11269_v59, %v2979_v27  ;;  %v3096_v20 = vpop.permute.xlu0 %3095  ;;  %v3092_v63 = vadd.f32 %v3090_v60, %v3088_v55  ;;  %v3374_v60 = vrot.slane %v11221_v0, 1  ;;  %v13026_v55 = vld [vmem:[#allocation17_spill] sm:$0xff] }
 0x62f   :  { %v2710_v38 = vadd.f32 %v11367_v40, %v2704_v37  ;;  %v3240_v37 = vrot.slane %v13026_v55, 1 }
 0x630   :  { %v4896_v25 = vsel %vm4864_vm6, %v11419_v6, 0.0  ;;  %v3098_v52 = vadd.f32 %v3096_v20, %v3092_v63 }
 0x631   :  { %v11425_v24 = vadd.f32 %v11269_v59, %v2710_v38  ;;  %v4897_v42 = vrot.slane %v4896_v25, 4 }
 0x632   :  { %v3152_v2 = vadd.f32 %v13024_v22, %v3098_v52  ;;  %v3236_v12 = vpop.permute.xlu0 %3235 }
 0x633   :  { %v4888_v50 = vsel %vm4864_vm6, %v11425_v24, 0.0  ;;  %v4898_v34 = vadd.f32 %v4897_v42, %v4896_v25 }
 0x634   :  { %v4889_v13 = vrot.slane %v4888_v50, 4  ;;  %v3157_v40 = vadd.f32 %v11219_v58, %v3152_v2 }
 0x635   :  { %v4899_v14 = vrot.slane %v4898_v34, 2 }
 0x636   :  { %v4890_v15 = vadd.f32 %v4889_v13, %v4888_v50  ;;  %v3161_v26 = vadd.f32 %v3159_v43, %v3157_v40  ;;  %v3246_v3 = vpop.permute.xlu0 %3245  ;;  %v3520_v62 = vpop.permute.xlu1 %3519 }
 0x637   :  { %v4900_v16 = vadd.f32 %v4899_v14, %v4898_v34  ;;  %v13028_v14 = vld [vmem:[#allocation28_spill] sm:$0xff] }
 0x638   :  { %v4891_v32 = vrot.slane %v4890_v15, 2  ;;  %v3167_v1 = vadd.f32 %v11234_v19, %v3161_v26  ;;  %v3643_v19 = vrot.slane %v11244_v61, 1 }
 0x639   :  { %v4901_v20 = vrot.slane %v4900_v16, 1 }
 0x63a   :  { %v4892_v18 = vadd.f32 %v4891_v32, %v4890_v15  ;;  %v3233_v9 = vadd.f32 %v11202_v45, %v3167_v1  ;;  %v3370_v5 = vpop.permute.xlu0 %3369  ;;  %v3455_v15 = vrot.slane %v13028_v14, 1 }
 0x63b   :  { %v3372_v27 = vadd.f32 %v3370_v5, %v11257_v48  ;;  %v4902_v0 = vadd.f32 %v4901_v20, %v4900_v16  ;;  %v13027_v48 = vld [vmem:[#allocation23_spill] sm:$0xff]  ;;  %v13029_v16 = vld [vmem:[#allocation30_spill] sm:$0xff]  ;;  %v3524_v20 = vrot.slane %v11232_v31, 1 }
 0x63c   :  { %v4893_v58 = vrot.slane %v4892_v18, 1  ;;  %v3238_v63 = vadd.f32 %v3236_v12, %v3233_v9 }
 0x63d   :  { %v3376_v38 = vadd.f32 %v3374_v60, %v3372_v27 }
 0x63e   :  { %v4894_v25 = vadd.f32 %v4893_v58, %v4892_v18  ;;  %v3242_v52 = vadd.f32 %v3240_v37, %v3238_v63  ;;  %v3380_v42 = vpop.permute.xlu0 %3379  ;;  %v3639_v22 = vpop.permute.xlu1 %3638  ;;  %v13030_v18 = vld [vmem:[#allocation32_spill] sm:$0xff] }
 0x63f   :  { %v3382_v2 = vadd.f32 %v3380_v42, %v3376_v38  ;;  %v3641_v45 = vadd.f32 %v3639_v22, %v11299_v46  ;;  %v3724_v9 = vrot.slane %v13030_v18, 1 }
 0x640   :  { %v4895_v50 = vadd.f32 %v4894_v25, %v11389_v53  ;;  %v3248_v34 = vadd.f32 %v3246_v3, %v3242_v52 }
 0x641   :  { %v3448_v47 = vadd.f32 %v13027_v48, %v3382_v2  ;;  %v3645_v43 = vadd.f32 %v3643_v19, %v3641_v45  ;;  %v3793_v19 = vrot.slane %v11259_v4, 1 }
 0x642   :  { %v4903_v13 = vadd.f32 %v4902_v0, %v4895_v50  ;;  %v11442_v12 = vadd.f32 %v11269_v59, %v3248_v34  ;;  %v3649_v40 = vpop.permute.xlu1 %3648 }
 0x643   :  { %v3453_v26 = vadd.f32 %v11261_v21, %v3448_v47  ;;  %v3651_v61 = vadd.f32 %v3649_v40, %v3645_v43  ;;  %v13031_v40 = vld [vmem:[#allocation37_spill] sm:$0xff] }
 0x644   :  { %v4904_v46 = vsel %vm4864_vm6, %v11442_v12, 0.0 }
 0x645   :  { %v4905_v32 = vrot.slane %v4904_v46, 4  ;;  %v3457_v53 = vadd.f32 %v3455_v15, %v3453_v26  ;;  %v3717_v3 = vadd.f32 %v13029_v16, %v3651_v61 }
 0x646   :  { %v3789_v1 = vpop.permute.xlu1 %3788 }
 0x647   :  { %v4906_v5 = vadd.f32 %v4905_v32, %v4904_v46  ;;  %v3463_v60 = vadd.f32 %v11275_v36, %v3457_v53  ;;  %v3722_v27 = vadd.f32 %v11280_v57, %v3717_v3  ;;  %v3912_v36 = vrot.slane %v11273_v33, 1  ;;  %v3530_v57 = vpop.permute.xlu0 %3529 }
 0x649   :  { %v4907_v55 = vrot.slane %v4906_v5, 2  ;;  %v3517_v37 = vadd.f32 %v11229_v23, %v3463_v60  ;;  %v3726_v21 = vadd.f32 %v3724_v9, %v3722_v27 }
 0x64a   :  { %v3799_v58 = vpop.permute.xlu1 %3798 }
 0x64b   :  { %v4908_v63 = vadd.f32 %v4907_v55, %v4906_v5  ;;  %v3522_v38 = vadd.f32 %v3520_v62, %v3517_v37  ;;  %v3732_v25 = vadd.f32 %v11286_v10, %v3726_v21  ;;  %v13033_v21 = vld [vmem:[#allocation27_spill] sm:$0xff] }
 0x64d   :  { %v4909_v52 = vrot.slane %v4908_v63, 1  ;;  %v3526_v42 = vadd.f32 %v3524_v20, %v3522_v38  ;;  %v3786_v22 = vadd.f32 %v11254_v35, %v3732_v25  ;;  %v13034_v20 = vld [vmem:[#allocation6_spill] sm:$0xff] }
 0x64e   :  { %v3908_v2 = vpop.permute.xlu1 %3907 }
 0x64f   :  { %v4910_v45 = vadd.f32 %v4909_v52, %v4908_v63  ;;  %v3532_v23 = vadd.f32 %v3530_v57, %v3526_v42  ;;  %v3791_v50 = vadd.f32 %v3789_v1, %v3786_v22  ;;  %v3910_v0 = vadd.f32 %v3908_v2, %v11308_v28  ;;  %v13032_v28 = vld [vmem:[#allocation40_spill] sm:$0xff] }
 0x650   :  { %v4181_v63 = vrot.slane %v13034_v20, 1 }
 0x651   :  { %v4911_v31 = vadd.f32 %v4910_v45, %v4903_v13  ;;  %v11460_v62 = vadd.f32 %v11269_v59, %v3532_v23  ;;  %v3795_v10 = vadd.f32 %v3793_v19, %v3791_v50  ;;  %v3914_v34 = vadd.f32 %v3912_v36, %v3910_v0  ;;  %v13036_v45 = vld [vmem:[#allocation43_spill] sm:$0xff] }
 0x652   :  { %v3918_v48 = vpop.permute.xlu1 %3917  ;;  %v3993_v13 = vrot.slane %v13032_v28, 1  ;;  %v4251_v23 = vrot.slane %v13036_v45, 1  ;;  %v11550_v28 = vld [vmem:[%s12663_s9 + $0x60] ss:$8 sps:$4 sm:$0xff]  }
 0x653   :  { %v4912_v35 = vsel %vm4864_vm6, %v11460_v62, 0.0  ;;  %v3801_v4 = vadd.f32 %v3799_v58, %v3795_v10  ;;  %v3920_v47 = vadd.f32 %v3918_v48, %v3914_v34  ;;  %v4062_v58 = vrot.slane %v13033_v21, 1  ;;  %v11491_v10 = vld [vmem:[%s12663_s9 + $0x44] ss:$8 sps:$4 sm:$0xff]   ;;  %v11497_v34 = vld [vmem:[%s12663_s9] ss:$8 sps:$4 sm:$0xff]  }
 0x654   :  { %v4913_v33 = vrot.slane %v4912_v35, 4  ;;  %5319 = vmatprep.subr.bf16.mxu1 %v11491_v10 }
 0x655   :  { %v11465_v43 = vadd.f32 %v11269_v59, %v3801_v4  ;;  %v3986_v14 = vadd.f32 %v13031_v40, %v3920_v47  ;;  %v11516_v4 = vld [vmem:[%s12663_s9 + $0x54] ss:$8 sps:$4 sm:$0xff]   ;;  %v4433_v47 = vrot.slane %v11332_v56, 1  ;;  %v11529_v40 = vld [vmem:[%s12663_s9 + $0x50] ss:$8 sps:$4 sm:$0xff]  }
 0x656   :  { %v4914_v15 = vadd.f32 %v4913_v33, %v4912_v35  ;;  %v4058_v55 = vpop.permute.xlu1 %4057  ;;  %v11540_v56 = vld [vmem:[%s12663_s9 + $0x64] ss:$8 sps:$4 sm:$0xff]  }
 0x657   :  { %v4920_v26 = vsel %vm4864_vm6, %v11465_v43, 0.0  ;;  %v3991_v61 = vadd.f32 %v11312_v44, %v3986_v14  ;;  %v11535_v14 = vld [vmem:[%s12663_s9 + $0x24] ss:$8 sps:$4 sm:$0xff]  }
 0x658   :  { %v4915_v46 = vrot.slane %v4914_v15, 2  ;;  %v4921_v32 = vrot.slane %v4920_v26, 4 }
 0x659   :  { %v3995_v53 = vadd.f32 %v3993_v13, %v3991_v61 }
 0x65a   :  { %v4916_v16 = vadd.f32 %v4915_v46, %v4914_v15  ;;  %v4922_v3 = vadd.f32 %v4921_v32, %v4920_v26  ;;  %v11557_v26 = vld [vmem:[%s12663_s9 + $0x34] ss:$8 sps:$4 sm:$0xff]  }
 0x65b   :  { %v4001_v1 = vadd.f32 %v11336_v7, %v3995_v53  ;;  %v11564_v46 = vld [vmem:[%s12663_s9 + $0x74] ss:$8 sps:$4 sm:$0xff]  }
 0x65c   :  { %v4917_v18 = vrot.slane %v4916_v16, 1  ;;  %v4923_v9 = vrot.slane %v4922_v3, 2  ;;  %v13038_v32 = vld [vmem:[#allocation4_spill] sm:$0xff] }
 0x65d   :  { %v4055_v5 = vadd.f32 %v11289_v11, %v4001_v1  ;;  %v13035_v11 = vld [vmem:[#allocation3_spill] sm:$0xff] }
 0x65e   :  { %v4918_v60 = vadd.f32 %v4917_v18, %v4916_v16  ;;  %v4924_v27 = vadd.f32 %v4923_v9, %v4922_v3  ;;  %v4177_v37 = vpop.permute.xlu0 %4176  ;;  %v11570_v16 = vld [vmem:[%s12663_s9 + $0x30] ss:$8 sps:$4 sm:$0xff]   ;;  %v13040_v18 = vld [vmem:[#allocation5_spill] sm:$0xff] }
 0x65f   :  { %v4060_v44 = vadd.f32 %v4058_v55, %v4055_v5  ;;  %v4179_v38 = vadd.f32 %v4177_v37, %v11352_v29  ;;  %v11485_v29 = vld [vmem:[%s12663_s9 + $0x4] ss:$8 sps:$4 sm:$0xff]   ;;  %v11577_v1 = vld [vmem:[%s12663_s9 + $0x70] ss:$8 sps:$4 sm:$0xff]   ;;  %v4514_v9 = vrot.slane %v13040_v18, 1  ;;  %v4314_v5 = vrot.slane %v11322_v41, 1 }
 0x660   :  { %v4919_v25 = vadd.f32 %v4918_v60, %v4911_v31  ;;  %v4925_v52 = vrot.slane %v4924_v27, 1  ;;  %13037 = vst [vmem:[#allocation20_spill] sm:$0xff] %v11485_v29  ;;  %5223 = vmatprep.subr.bf16.mxu0 %v11485_v29  ;;  %13039 = vst [vmem:[#allocation29_spill] sm:$0xff] %v11577_v1  ;;  %v13041_v60 = vld [vmem:[#allocation11_spill] sm:$0xff]  ;;  %v11587_v37 = vld [vmem:[%s12663_s9 + $0x84] ss:$8 sps:$4 sm:$0xff]  }
 0x661   :  { %v4183_v42 = vadd.f32 %v4181_v63, %v4179_v38  ;;  %v4064_v22 = vadd.f32 %v4062_v58, %v4060_v44  ;;  %5224 = vmatpush1.bf16.msra.mxu0 %v11497_v34  ;;  %v13042_v38 = vld [vmem:[#allocation25_spill] sm:$0xff] }
 0x662   :  { %v4926_v7 = vadd.f32 %v4925_v52, %v4924_v27  ;;  %v4187_v19 = vpop.permute.xlu0 %4186 }
 0x663   :  { %v4189_v36 = vadd.f32 %v4187_v19, %v4183_v42 }
 0x664   :  { %v11477_v57 = vadd.f32 %v4926_v7, %v4919_v25  ;;  %v13043_v7 = vld [vmem:[#allocation36_spill] sm:$0xff] }
 0x665   :  { %v4244_v2 = vadd.f32 %v13035_v11, %v4189_v36  ;;  %v4702_v19 = vrot.slane %v13043_v7, 1 }
 0x667   :  { %v4249_v50 = vadd.f32 %v11363_v49, %v4244_v2  ;;  %v11502_v49 = vld [vmem:[%s12663_s9 + $0x40] ss:$8 sps:$4 sm:$0xff]  }
 0x668   :  { %5320 = vmatpush1.bf16.msra.mxu1 %v11502_v49 }
 0x669   :  { %v4253_v0 = vadd.f32 %v4251_v23, %v4249_v50  ;;  %5321 = vmatprep.subr.bf16.mxu1 %v11516_v4 }
 0x66b   :  { %v4259_v31 = vadd.f32 %v11380_v30, %v4253_v0  ;;  %v11509_v30 = vld [vmem:[%s12663_s9 + $0x14] ss:$8 sps:$4 sm:$0xff]  }
 0x66c   :  { %5225 = vmatprep.subr.bf16.mxu0 %v11509_v30  ;;  %5322 = vmatpush1.bf16.msra.mxu1 %v11529_v40 }
 0x66d   :  { %v4307_v48 = vadd.f32 %v11320_v39, %v4259_v31  ;;  %v11521_v39 = vld [vmem:[%s12663_s9 + $0x10] ss:$8 sps:$4 sm:$0xff]   ;;  %5323 = vmatprep.subr.bf16.mxu1 %v11540_v56 }
 0x66e   :  { %v4429_v35 = vpop.permute.xlu0 %4428  ;;  %5226 = vmatpush1.bf16.msra.mxu0 %v11521_v39 }
 0x66f   :  { %v4431_v33 = vadd.f32 %v4429_v35, %v11404_v8  ;;  %v11545_v8 = vld [vmem:[%s12663_s9 + $0x20] ss:$8 sps:$4 sm:$0xff]   ;;  %5227 = vmatprep.subr.bf16.mxu0 %v11535_v14 }
 0x670   :  { %5324 = vmatpush1.bf16.msra.mxu1 %v11550_v28 }
 0x671   :  { %v4435_v15 = vadd.f32 %v4433_v47, %v4431_v33  ;;  %5325 = vmatprep.subr.bf16.mxu1 %v11564_v46  ;;  %v13044_v47 = vld [vmem:[#allocation24_spill] sm:$0xff] }
 0x672   :  { %v4439_v13 = vpop.permute.xlu0 %4438  ;;  %5228 = vmatpush1.bf16.msra.mxu0 %v11545_v8 }
 0x673   :  { %v4441_v61 = vadd.f32 %v4439_v13, %v4435_v15  ;;  %5229 = vmatprep.subr.bf16.mxu0 %v11557_v26 }
 0x674   :  { %5326 = vmatpush1.bf16.msra.mxu1 %v11577_v1 }
 0x675   :  { %v4507_v53 = vadd.f32 %v13038_v32, %v4441_v61  ;;  %5474 = vmatprep.subr.bf16.mxu1 %v11485_v29  ;;  %v13045_v32 = vld [vmem:[#allocation15_spill] sm:$0xff] }
 0x676   :  { %v4310_v3 = vpop.permute.xlu0 %4309  ;;  %5230 = vmatpush1.bf16.msra.mxu0 %v11570_v16 }
 0x677   :  { %v4512_v27 = vadd.f32 %v13041_v60, %v4507_v53  ;;  %v4312_v55 = vadd.f32 %v4310_v3, %v4307_v48  ;;  %5415 = vmatprep.subr.bf16.mxu0 %v11587_v37 }
 0x679   :  { %v4316_v21 = vadd.f32 %v4314_v5, %v4312_v55  ;;  %v4516_v58 = vadd.f32 %v4514_v9, %v4512_v27  ;;  %v13046_v55 = vld [vmem:[#allocation38_spill] sm:$0xff] }
 0x67a   :  { %v4068_v20 = vpop.permute.xlu0 %4067 }
 0x67b   :  { %v4070_v41 = vadd.f32 %v4068_v20, %v4064_v22  ;;  %v4522_v63 = vadd.f32 %v11407_v54, %v4516_v58 }
 0x67d   :  { %v11595_v44 = vadd.f32 %v11269_v59, %v4070_v41  ;;  %v4576_v25 = vadd.f32 %v13042_v38, %v4522_v63 }
 0x67e   :  { %v4320_v52 = vpop.permute.xlu0 %4319  ;;  %v4698_v42 = vpop.permute.xlu1 %4697 }
 0x67f   :  { %v4928_v36 = vsel %vm4864_vm6, %v11595_v44, 0.0  ;;  %v4322_v11 = vadd.f32 %v4320_v52, %v4316_v21  ;;  %v4700_v22 = vadd.f32 %v4698_v42, %v11398_v17  ;;  %v4783_v17 = vrot.slane %v13045_v32, 1  ;;  %v13047_v52 = vld [vmem:[#allocation39_spill] sm:$0xff] }
 0x680   :  { %v4929_v54 = vrot.slane %v4928_v36, 4  ;;  %v4583_v21 = vrot.slane %v13046_v55, 1 }
 0x681   :  { %v11603_v2 = vadd.f32 %v11269_v59, %v4322_v11  ;;  %v4704_v45 = vadd.f32 %v4702_v19, %v4700_v22 }
 0x682   :  { %v4930_v23 = vadd.f32 %v4929_v54, %v4928_v36  ;;  %v4708_v50 = vpop.permute.xlu1 %4707  ;;  %v4589_v19 = vpop.permute.xlu0 %4588 }
 0x683   :  { %v4936_v0 = vsel %vm4864_vm6, %v11603_v2, 0.0  ;;  %v4710_v31 = vadd.f32 %v4708_v50, %v4704_v45 }
 0x684   :  { %v4931_v48 = vrot.slane %v4930_v23, 2  ;;  %v4937_v35 = vrot.slane %v4936_v0, 4 }
 0x685   :  { %v4776_v33 = vadd.f32 %v13044_v47, %v4710_v31 }
 0x686   :  { %v4932_v15 = vadd.f32 %v4931_v48, %v4930_v23  ;;  %v4938_v13 = vadd.f32 %v4937_v35, %v4936_v0  ;;  %v4789_v61 = vpop.permute.xlu1 %4788 }
 0x687   :  { %v4781_v53 = vadd.f32 %v11410_v51, %v4776_v33  ;;  %v13048_v51 = vld [vmem:[#allocation12_spill] sm:$0xff] }
 0x688   :  { %v4933_v3 = vrot.slane %v4932_v15, 1  ;;  %v4939_v18 = vrot.slane %v4938_v13, 2  ;;  %v4852_v11 = vrot.slane %v13048_v51, 1 }
 0x689   :  { %v4785_v9 = vadd.f32 %v4783_v17, %v4781_v53 }
 0x68a   :  { %v4934_v5 = vadd.f32 %v4933_v3, %v4932_v15  ;;  %v4940_v60 = vadd.f32 %v4939_v18, %v4938_v13  ;;  %v4579_v27 = vpop.permute.xlu1 %4578 }
 0x68b   :  { %v4791_v58 = vadd.f32 %v4789_v61, %v4785_v9  ;;  %v4581_v20 = vadd.f32 %v4579_v27, %v4576_v25 }
 0x68c   :  { %v4935_v41 = vadd.f32 %v4934_v5, %v11477_v57  ;;  %v4941_v63 = vrot.slane %v4940_v60, 1 }
 0x68d   :  { %v4585_v38 = vadd.f32 %v4583_v21, %v4581_v20  ;;  %v4845_v42 = vadd.f32 %v13047_v52, %v4791_v58  ;;  %v13050_v21 = vld [vmem:[#allocation34_spill] sm:$0xff]  ;;  %v13051_v20 = vld [vmem:[#allocation7_spill] sm:$0xff] }
 0x68e   :  { %v4942_v7 = vadd.f32 %v4941_v63, %v4940_v60  ;;  %v4848_v36 = vpop.permute.xlu1 %4847 }
 0x68f   :  { %v4591_v22 = vadd.f32 %v4589_v19, %v4585_v38  ;;  %v4850_v54 = vadd.f32 %v4848_v36, %v4845_v42 }
 0x690   :  { %v4943_v45 = vadd.f32 %v4942_v7, %v4935_v41 }
 0x691   :  { %v11615_v23 = vadd.f32 %v11269_v59, %v4591_v22  ;;  %v4854_v50 = vadd.f32 %v4852_v11, %v4850_v54 }
 0x692   :  { %v4858_v0 = vpop.permute.xlu1 %4857 }
 0x693   :  { %v4944_v57 = vsel %vm4864_vm6, %v11615_v23, 0.0  ;;  %v4860_v25 = vadd.f32 %v4858_v0, %v4854_v50 }
 0x694   :  { %v4945_v31 = vrot.slane %v4944_v57, 4 }
 0x695   :  { %v11620_v48 = vadd.f32 %v11269_v59, %v4860_v25  ;;  %v13049_v59 = vld [vmem:[#allocation16_spill] sm:$0xff] }
 0x696   :  { %v4946_v35 = vadd.f32 %v4945_v31, %v4944_v57 }
 0x697   :  { %v4952_v47 = vsel %vm4864_vm6, %v11620_v48, 0.0 }
 0x698   :  { %v4947_v33 = vrot.slane %v4946_v35, 2  ;;  %v4953_v15 = vrot.slane %v4952_v47, 4 }
 0x69a   :  { %v4948_v13 = vadd.f32 %v4947_v33, %v4946_v35  ;;  %v4954_v61 = vadd.f32 %v4953_v15, %v4952_v47 }
 0x69c   :  { %v4949_v32 = vrot.slane %v4948_v13, 1  ;;  %v4955_v17 = vrot.slane %v4954_v61, 2 }
 0x69e   :  { %v4950_v53 = vadd.f32 %v4949_v32, %v4948_v13  ;;  %v4956_v3 = vadd.f32 %v4955_v17, %v4954_v61 }
 0x6a0   :  { %v4951_v18 = vadd.f32 %v4950_v53, %v4943_v45  ;;  %v4957_v9 = vrot.slane %v4956_v3, 1 }
 0x6a2   :  { %v4958_v5 = vadd.f32 %v4957_v9, %v4956_v3 }
 0x6a4   :  { %v4959_v60 = vadd.f32 %v4958_v5, %v4951_v18 }
 0x6a6   :  { %v11624_v27 = vmul.f32 0.013888889, %v4959_v60 }
 0x6a8   :  { %v11628_v55 = vsub.f32 %v13049_v59, %v11624_v27  ;;  %v11632_v58 = vsub.f32 %v13050_v21, %v11624_v27  ;;  %v11636_v41 = vsub.f32 %v13051_v20, %v11624_v27  ;;  %v11640_v63 = vsub.f32 %v11425_v24, %v11624_v27 }
 0x6a9   :  { %v11644_v38 = vsub.f32 %v11419_v6, %v11624_v27  ;;  %v11648_v52 = vsub.f32 %v11442_v12, %v11624_v27  ;;  %v11652_v42 = vsub.f32 %v11460_v62, %v11624_v27  ;;  %v11656_v7 = vsub.f32 %v11465_v43, %v11624_v27 }
 0x6aa   :  { %v4962_v24 = vmul.f32 %v11628_v55, %v11628_v55  ;;  %v4971_v19 = vmul.f32 %v11632_v58, %v11632_v58  ;;  %v4981_v6 = vmul.f32 %v11636_v41, %v11636_v41  ;;  %v4991_v12 = vmul.f32 %v11640_v63, %v11640_v63 }
 0x6ab   :  { %v5001_v62 = vmul.f32 %v11644_v38, %v11644_v38  ;;  %v5011_v36 = vmul.f32 %v11648_v52, %v11648_v52  ;;  %v5021_v43 = vmul.f32 %v11652_v42, %v11652_v42  ;;  %v5031_v51 = vmul.f32 %v11656_v7, %v11656_v7 }
 0x6ac   :  { %v4963_v11 = vsel %vm4864_vm6, %v4962_v24, 0.0  ;;  %v4972_v22 = vsel %vm4864_vm6, %v4971_v19, 0.0  ;;  %v4982_v54 = vsel %vm4864_vm6, %v4981_v6, 0.0  ;;  %v4992_v45 = vsel %vm4864_vm6, %v4991_v12, 0.0 }
 0x6ad   :  { %v4964_v50 = vrot.slane %v4963_v11, 4  ;;  %v4973_v0 = vrot.slane %v4972_v22, 4  ;;  %v4983_v57 = vrot.slane %v4982_v54, 4  ;;  %v4993_v25 = vrot.slane %v4992_v45, 4 }
 0x6ae   :  { %v5002_v31 = vsel %vm4864_vm6, %v5001_v62, 0.0  ;;  %v5012_v35 = vsel %vm4864_vm6, %v5011_v36, 0.0  ;;  %v5022_v47 = vsel %vm4864_vm6, %v5021_v43, 0.0  ;;  %v5032_v33 = vsel %vm4864_vm6, %v5031_v51, 0.0 }
 0x6af   :  { %v4965_v15 = vadd.f32 %v4964_v50, %v4963_v11  ;;  %v4974_v13 = vadd.f32 %v4973_v0, %v4972_v22  ;;  %v4984_v61 = vadd.f32 %v4983_v57, %v4982_v54  ;;  %v4994_v32 = vadd.f32 %v4993_v25, %v4992_v45 }
 0x6b0   :  { %v5003_v17 = vrot.slane %v5002_v31, 4  ;;  %v5013_v53 = vrot.slane %v5012_v35, 4  ;;  %v5023_v3 = vrot.slane %v5022_v47, 4  ;;  %v5033_v18 = vrot.slane %v5032_v33, 4 }
 0x6b1   :  { %v4966_v9 = vrot.slane %v4965_v15, 2  ;;  %v4975_v5 = vrot.slane %v4974_v13, 2  ;;  %v4985_v60 = vrot.slane %v4984_v61, 2  ;;  %v4995_v59 = vrot.slane %v4994_v32, 2 }
 0x6b2   :  { %v5004_v21 = vadd.f32 %v5003_v17, %v5002_v31  ;;  %v5014_v20 = vadd.f32 %v5013_v53, %v5012_v35  ;;  %v5024_v24 = vadd.f32 %v5023_v3, %v5022_v47  ;;  %v5034_v19 = vadd.f32 %v5033_v18, %v5032_v33 }
 0x6b3   :  { %v4967_v6 = vadd.f32 %v4966_v9, %v4965_v15  ;;  %v4976_v12 = vadd.f32 %v4975_v5, %v4974_v13  ;;  %v4986_v62 = vadd.f32 %v4985_v60, %v4984_v61  ;;  %v4996_v36 = vadd.f32 %v4995_v59, %v4994_v32 }
 0x6b4   :  { %v5005_v43 = vrot.slane %v5004_v21, 2  ;;  %v5015_v51 = vrot.slane %v5014_v20, 2  ;;  %v5025_v11 = vrot.slane %v5024_v24, 2  ;;  %v5035_v25 = vrot.slane %v5034_v19, 2 }
 0x6b5   :  { %v4968_v22 = vrot.slane %v4967_v6, 1  ;;  %v4977_v54 = vrot.slane %v4976_v12, 1  ;;  %v4987_v45 = vrot.slane %v4986_v62, 1  ;;  %v4997_v50 = vrot.slane %v4996_v36, 1 }
 0x6b6   :  { %v5006_v0 = vadd.f32 %v5005_v43, %v5004_v21  ;;  %v5016_v57 = vadd.f32 %v5015_v51, %v5014_v20  ;;  %v5026_v47 = vadd.f32 %v5025_v11, %v5024_v24  ;;  %v11684_v15 = vsub.f32 %v11595_v44, %v11624_v27 }
 0x6b7   :  { %v4969_v29 = vadd.f32 %v4968_v22, %v4967_v6  ;;  %v4978_v1 = vadd.f32 %v4977_v54, %v4976_v12  ;;  %v4988_v31 = vadd.f32 %v4987_v45, %v4986_v62  ;;  %v11688_v13 = vsub.f32 %v11603_v2, %v11624_v27 }
 0x6b8   :  { %v5007_v35 = vrot.slane %v5006_v0, 1  ;;  %v11692_v61 = vsub.f32 %v11615_v23, %v11624_v27  ;;  %v4998_v32 = vadd.f32 %v4997_v50, %v4996_v36  ;;  %v5017_v17 = vrot.slane %v5016_v57, 1 }
 0x6b9   :  { %v4979_v33 = vadd.f32 %v4978_v1, %v4969_v29  ;;  %v5036_v53 = vadd.f32 %v5035_v25, %v5034_v19  ;;  %v5041_v18 = vmul.f32 %v11684_v15, %v11684_v15  ;;  %v5051_v29 = vmul.f32 %v11688_v13, %v11688_v13 }
 0x6ba   :  { %v5061_v1 = vmul.f32 %v11692_v61, %v11692_v61  ;;  %v5008_v44 = vadd.f32 %v5007_v35, %v5006_v0  ;;  %v5027_v2 = vrot.slane %v5026_v47, 1  ;;  %v5070_v9 = vsub.f32 %v11620_v48, %v11624_v27 }
 0x6bb   :  { %v4989_v3 = vadd.f32 %v4988_v31, %v4979_v33  ;;  %v5042_v5 = vsel %vm4864_vm6, %v5041_v18, 0.0  ;;  %v5052_v60 = vsel %vm4864_vm6, %v5051_v29, 0.0  ;;  %v5018_v12 = vadd.f32 %v5017_v17, %v5016_v57 }
 0x6bc   :  { %v5062_v59 = vsel %vm4864_vm6, %v5061_v1, 0.0  ;;  %v5043_v21 = vrot.slane %v5042_v5, 4  ;;  %v5053_v20 = vrot.slane %v5052_v60, 4  ;;  %v5071_v19 = vmul.f32 %v5070_v9, %v5070_v9 }
 0x6bd   :  { %v4999_v23 = vadd.f32 %v4998_v32, %v4989_v3  ;;  %v5063_v24 = vrot.slane %v5062_v59, 4  ;;  %v5037_v62 = vrot.slane %v5036_v53, 1  ;;  %v5028_v27 = vadd.f32 %v5027_v2, %v5026_v47 }
 0x6be   :  { %v5044_v36 = vadd.f32 %v5043_v21, %v5042_v5  ;;  %v5054_v43 = vadd.f32 %v5053_v20, %v5052_v60  ;;  %v5072_v11 = vsel %vm4864_vm6, %v5071_v19, 0.0  ;;  %v4862_v19 = vld [vmem:[%s12664_s7] sm:$0x1] }
 0x6bf   :  { %v5009_v6 = vadd.f32 %v5008_v44, %v4999_v23  ;;  %v5064_v51 = vadd.f32 %v5063_v24, %v5062_v59  ;;  %v5073_v22 = vrot.slane %v5072_v11, 4  ;;  %v5038_v31 = vadd.f32 %v5037_v62, %v5036_v53  ;;  %v13052_v62 = vld [vmem:[#allocation10_spill] sm:$0xff] }
 0x6c0   :  { %v5045_v54 = vrot.slane %v5044_v36, 2  ;;  %v5055_v45 = vrot.slane %v5054_v43, 2 }
 0x6c1   :  { %v5019_v48 = vadd.f32 %v5018_v12, %v5009_v6  ;;  %v5065_v50 = vrot.slane %v5064_v51, 2  ;;  %v5074_v25 = vadd.f32 %v5073_v22, %v5072_v11 }
 0x6c2   :  { %v5046_v35 = vadd.f32 %v5045_v54, %v5044_v36  ;;  %v5056_v33 = vadd.f32 %v5055_v45, %v5054_v43  ;;  %v11713_v43 = vld [vmem:[%s12665_s8] ss:$0 sm:$0xff] }
 0x6c3   :  { %v5029_v0 = vadd.f32 %v5028_v27, %v5019_v48  ;;  %v5066_v32 = vadd.f32 %v5065_v50, %v5064_v51  ;;  %v5075_v3 = vrot.slane %v5074_v25, 2 }
 0x6c4   :  { %v5047_v17 = vrot.slane %v5046_v35, 1  ;;  %v5057_v18 = vrot.slane %v5056_v33, 1 }
 0x6c5   :  { %v5039_v57 = vadd.f32 %v5038_v31, %v5029_v0  ;;  %v5076_v29 = vadd.f32 %v5075_v3, %v5074_v25  ;;  %v5067_v44 = vrot.slane %v5066_v32, 1  ;;  %v11741_v25 = vld [vmem:[%s12663_s9 + $0x80] ss:$8 sps:$4 sm:$0xff]   ;;  %v11754_v3 = vld [vmem:[%s12663_s9 + $0x90] ss:$8 sps:$4 sm:$0xff]  }
 0x6c6   :  { %v5048_v1 = vadd.f32 %v5047_v17, %v5046_v35  ;;  %v5058_v5 = vadd.f32 %v5057_v18, %v5056_v33  ;;  %v11746_v33 = vld [vmem:[%s12663_s9 + $0x94] ss:$8 sps:$4 sm:$0xff]   ;;  %v11763_v18 = vld [vmem:[%s12663_s9 + $0xa4] ss:$8 sps:$4 sm:$0xff]  }
 0x6c7   :  { %v5077_v47 = vrot.slane %v5076_v29, 1  ;;  %v5068_v60 = vadd.f32 %v5067_v44, %v5066_v32  ;;  %v13055_v44 = vmov 0  }
 0x6c8   :  { %v5049_v23 = vadd.f32 %v5048_v1, %v5039_v57 }
 0x6c9   :  { %v5078_v21 = vadd.f32 %v5077_v47, %v5076_v29  ;;  %v11794_v47 = vld [vmem:[%s12663_s9 + $0xb4] ss:$8 sps:$4 sm:$0xff]  }
 0x6ca   :  { %v5059_v2 = vadd.f32 %v5058_v5, %v5049_v23 }
 0x6cc   :  { %v5069_v59 = vadd.f32 %v5068_v60, %v5059_v2  ;;  %v11801_v60 = vld [vmem:[%s12663_s9 + $0xb0] ss:$8 sps:$4 sm:$0xff]  }
 0x6ce   :  { %v5079_v20 = vadd.f32 %v5078_v21, %v5069_v59 }
 0x6d0   :  { %v5080_v24 = vmul.f32 0.013888889, %v5079_v20 }
 0x6d2   :  { %v5081_v53 = vadd.f32 1e-05, %v5080_v24 }
 0x6d4   :  { %8586 = vrsqrt.f32 %v5081_v53 }
 0x6de   :  { %v8587_v6 = vpop.eup %8586 }
 0x6df   :  { %v5083_v12 = vmul.f32 %v8587_v6, %v4862_v19  ;;  %v13058_v19 = vld [vmem:[#allocation29_spill] sm:$0xff]  ;;  %v13059_v6 = vld [vmem:[#allocation20_spill] sm:$0xff] }
 0x6e1   :  { %v5087_v36 = vrot.slane %v5083_v12, %v13052_v62 }
 0x6e3   :  { %v5149_v51 = vmul.f32 %v5087_v36, %v5070_v9  ;;  %v5088_v11 = vmul.f32 %v5087_v36, %v11628_v55  ;;  %v5099_v48 = vmul.f32 %v5087_v36, %v11632_v58  ;;  %v5104_v27 = vmul.f32 %v5087_v36, %v11636_v41 }
 0x6e4   :  { %v11719_v22 = vmul.f32 %v5087_v36, %v11640_v63  ;;  %v5114_v54 = vmul.f32 %v5087_v36, %v11644_v38  ;;  %v5119_v45 = vmul.f32 %v5087_v36, %v11648_v52  ;;  %v5124_v50 = vmul.f32 %v5087_v36, %v11652_v42 }
 0x6e5   :  { %v11725_v0 = vadd.f32 %v11713_v43, %v5149_v51  ;;  %v5095_v9 = vadd.f32 %v11713_v43, %v5088_v11  ;;  %v5100_v55 = vadd.f32 %v11713_v43, %v5099_v48  ;;  %v5129_v57 = vmul.f32 %v5087_v36, %v11656_v7 }
 0x6e6   :  { %v11730_v58 = vadd.f32 %v11713_v43, %v5114_v54  ;;  %v11733_v41 = vadd.f32 %v11713_v43, %v5119_v45  ;;  %v11736_v63 = vadd.f32 %v11713_v43, %v5124_v50  ;;  %v5134_v17 = vmul.f32 %v5087_v36, %v11684_v15 }
 0x6e7   :  { %vm5096_vm1 = vcmp.gt.f32.partialorder %v5095_v9, 0.0  ;;  %v5097_v38 = vmul.f32 0.01, %v5095_v9  ;;  %vm5101_vm5 = vcmp.gt.f32.partialorder %v5100_v55, 0.0  ;;  %v5102_v52 = vmul.f32 0.01, %v5100_v55 }
 0x6e8   :  { %v5139_v29 = vmul.f32 %v5087_v36, %v11688_v13  ;;  %v5144_v1 = vmul.f32 %v5087_v36, %v11692_v61  ;;  %v5105_v7 = vadd.f32 %v11713_v43, %v5104_v27  ;;  %v11771_v15 = vadd.f32 %v11713_v43, %v5129_v57  ;;  %v11787_v61 = vld [vmem:[%s12663_s9 + $0xa0] ss:$8 sps:$4 sm:$0xff]  }
 0x6e9   :  { %v5098_v42 = vsel %vm5096_vm1, %v5095_v9, %v5097_v38  ;;  %v5103_v35 = vsel %vm5101_vm5, %v5100_v55, %v5102_v52  ;;  %v11775_v23 = vadd.f32 %v11713_v43, %v5134_v17  ;;  %v5110_v20 = vadd.f32 %v11713_v43, %v11719_v22  ;;  %vm13066_vm1 = vmmov %vm13061_vm0 }
 0x6ea   :  { %v5179_v31 = vpack.c.bf16 %v5098_v42, %v5098_v42  ;;  %v5275_v32 = vpack.c.bf16 %v5103_v35, %v5103_v35  ;;  %v11778_v5 = vadd.f32 %v11713_v43, %v5139_v29  ;;  %v11781_v13 = vadd.f32 %v11713_v43, %v5144_v1  ;;  %vm13067_vm5 = vmmov %vm13061_vm0 }
 0x6eb   :  { %v5107_v2 = vmul.f32 0.01, %v5105_v7  ;;  %vm5106_vm4 = vcmp.gt.f32.partialorder %v5105_v7, 0.0  ;;  %v5112_v24 = vmul.f32 0.01, %v5110_v20  ;;  %vm5111_vm13 = vcmp.gt.f32.partialorder %v5110_v20, 0.0 }
 0x6ec   :  { %7938 = vmatmul.mubr.msk.bf16.vlgmr.msra.gmra.mrb[184].mxu0 %vm13053_vm9, %v5179_v31  ;;  %7947 = vmatmul.mubr.msk.bf16.vlgmr.msra.gmra.mrb[132].mxu1 %vm13054_vm10, %v5275_v32  ;;  %v5117_v36 = vmul.f32 0.01, %v11730_v58  ;;  %vm5116_vm8 = vcmp.gt.f32.partialorder %v11730_v58, 0.0  ;;  %v5122_v11 = vmul.f32 0.01, %v11733_v41  ;;  %vm5121_vm6 = vcmp.gt.f32.partialorder %v11733_v41, 0.0 }
 0x6ed   :  { %5416 = vmatpush1.bf16.msra.mxu0 %v11741_v25  ;;  %5475 = vmatpush1.bf16.msra.mxu1 %v11497_v34  ;;  %v5108_v59 = vsel %vm5106_vm4, %v5105_v7, %v5107_v2  ;;  %v5113_v53 = vsel %vm5111_vm13, %v5110_v20, %v5112_v24  ;;  %v5127_v22 = vmul.f32 0.01, %v11736_v63  ;;  %vm5126_vm9 = vcmp.gt.f32.partialorder %v11736_v63, 0.0  ;;  %vm13068_vm4 = vmmov %vm13061_vm0 }
 0x6ee   :  { %5417 = vmatprep.subr.bf16.mxu0 %v11746_v33  ;;  %5476 = vmatprep.subr.bf16.mxu1 %v11509_v30  ;;  %v5371_v21 = vpack.c.bf16 %v5108_v59, %v5108_v59  ;;  %v5578_v12 = vpack.c.bf16 %v5113_v53, %v5113_v53  ;;  %v5118_v43 = vsel %vm5116_vm8, %v11730_v58, %v5117_v36  ;;  %v5132_v54 = vmul.f32 0.01, %v11771_v15  ;;  %vm13070_vm13 = vmmov %vm13061_vm0 }
 0x6ef   :  { %5447 = vmatprep.mubr.bf16.mxu0 %v13055_v44  ;;  %5506 = vmatprep.mubr.bf16.mxu1 %v13055_v44  ;;  %v5739_v51 = vpack.c.bf16 %v5118_v43, %v5118_v43  ;;  %v5123_v48 = vsel %vm5121_vm6, %v11733_v41, %v5122_v11  ;;  %vm5131_vm10 = vcmp.gt.f32.partialorder %v11771_v15, 0.0  ;;  %v5128_v45 = vsel %vm5126_vm9, %v11736_v63, %v5127_v22  ;;  %vm13074_vm8 = vmmov %vm13066_vm1 }
 0x6f0   :  { %v5900_v27 = vpack.c.bf16 %v5123_v48, %v5123_v48  ;;  %v5133_v50 = vsel %vm5131_vm10, %v11771_v15, %v5132_v54  ;;  %v5957_v9 = vpack.c.bf16 %v5128_v45, %v5128_v45  ;;  %v5137_v58 = vmul.f32 0.01, %v11775_v23  ;;  %vm13076_vm6 = vmmov %vm13066_vm1 }
 0x6f1   :  { %5418 = vmatpush1.bf16.msra.mxu0 %v11754_v3  ;;  %5477 = vmatpush1.bf16.msra.mxu1 %v11521_v39  ;;  %v6013_v55 = vpack.c.bf16 %v5133_v50, %v5133_v50  ;;  %v5142_v38 = vmul.f32 0.01, %v11778_v5  ;;  %vm13077_vm9 = vmmov %vm13066_vm1 }
 0x6f2   :  { %5419 = vmatprep.subr.bf16.mxu0 %v11763_v18  ;;  %5478 = vmatprep.subr.bf16.mxu1 %v11535_v14  ;;  %vm13078_vm10 = vmmov %vm13066_vm1 }
 0x6f5   :  { %5420 = vmatpush1.bf16.msra.mxu0 %v11787_v61  ;;  %5479 = vmatpush1.bf16.msra.mxu1 %v11545_v8 }
 0x6f6   :  { %5421 = vmatprep.subr.bf16.mxu0 %v11794_v47  ;;  %5480 = vmatprep.subr.bf16.mxu1 %v11557_v26 }
 0x6f9   :  { %5422 = vmatpush1.bf16.msra.mxu0 %v11801_v60  ;;  %5481 = vmatpush1.bf16.msra.mxu1 %v11570_v16 }
 0x6fa   :  { %5526 = vmatprep.subr.bf16.mxu0 %v11491_v10  ;;  %5582 = vmatprep.subr.bf16.mxu1 %v11587_v37 }
 0x6fc   :  { %7956 = vmatmul.mubr.msk.bf16.vlgmr.msra.gmra.mrb[188].mxu0 %vm13056_vm2, %v5371_v21  ;;  %7958 = vmatmul.mubr.msk.bf16.vlgmr.msra.gmra.mrb[136].mxu1 %vm13057_vm11, %v5275_v32  ;;  %vm13069_vm2 = vmmov %vm13061_vm0  ;;  %vm5136_vm11 = vcmp.gt.f32.partialorder %v11775_v23, 0.0 }
 0x6fd   :  { %5527 = vmatpush1.bf16.msra.mxu0 %v11502_v49  ;;  %5583 = vmatpush1.bf16.msra.mxu1 %v11741_v25  ;;  %v5138_v41 = vsel %vm5136_vm11, %v11775_v23, %v5137_v58 }
 0x6fe   :  { %5528 = vmatprep.subr.bf16.mxu0 %v11516_v4  ;;  %5584 = vmatprep.subr.bf16.mxu1 %v11746_v33  ;;  %v6069_v63 = vpack.c.bf16 %v5138_v41, %v5138_v41 }
 0x6ff   :  { %5558 = vmatprep.mubr.bf16.mxu0 %v13055_v44  ;;  %5614 = vmatprep.mubr.bf16.mxu1 %v13055_v44 }
 0x701   :  { %5529 = vmatpush1.bf16.msra.mxu0 %v11529_v40  ;;  %5585 = vmatpush1.bf16.msra.mxu1 %v11754_v3 }
 0x702   :  { %5530 = vmatprep.subr.bf16.mxu0 %v11540_v56  ;;  %5586 = vmatprep.subr.bf16.mxu1 %v11763_v18 }
 0x705   :  { %5531 = vmatpush1.bf16.msra.mxu0 %v11550_v28  ;;  %5587 = vmatpush1.bf16.msra.mxu1 %v11787_v61 }
 0x706   :  { %5532 = vmatprep.subr.bf16.mxu0 %v11564_v46  ;;  %5588 = vmatprep.subr.bf16.mxu1 %v11794_v47 }
 0x709   :  { %5533 = vmatpush1.bf16.msra.mxu0 %v13058_v19  ;;  %5589 = vmatpush1.bf16.msra.mxu1 %v11801_v60 }
 0x70a   :  { %5635 = vmatprep.subr.bf16.mxu0 %v13059_v6  ;;  %5687 = vmatprep.subr.bf16.mxu1 %v11491_v10 }
 0x70c   :  { %7959 = vmatmul.mubr.msk.bf16.vlgmr.msra.gmra.mrb[192].mxu0 %vm13060_vm14, %v5371_v21  ;;  %7960 = vmatmul.mubr.msk.bf16.vlgmr.msra.gmra.mrb[140].mxu1 %vm13061_vm0, %v5578_v12  ;;  %vm13071_vm14 = vmmov %vm13061_vm0  ;;  %vm5141_vm0 = vcmp.gt.f32.partialorder %v11778_v5, 0.0 }
 0x70d   :  { %5636 = vmatpush1.bf16.msra.mxu0 %v11497_v34  ;;  %5688 = vmatpush1.bf16.msra.mxu1 %v11502_v49  ;;  %v5143_v52 = vsel %vm5141_vm0, %v11778_v5, %v5142_v38 }
 0x70e   :  { %5637 = vmatprep.subr.bf16.mxu0 %v11509_v30  ;;  %5689 = vmatprep.subr.bf16.mxu1 %v11516_v4  ;;  %v6230_v42 = vpack.c.bf16 %v5143_v52, %v5143_v52 }
 0x70f   :  { %5667 = vmatprep.mubr.bf16.mxu0 %v13055_v44  ;;  %5719 = vmatprep.mubr.bf16.mxu1 %v13055_v44 }
 0x711   :  { %5638 = vmatpush1.bf16.msra.mxu0 %v11521_v39  ;;  %5690 = vmatpush1.bf16.msra.mxu1 %v11529_v40 }
 0x712   :  { %5639 = vmatprep.subr.bf16.mxu0 %v11535_v14  ;;  %5691 = vmatprep.subr.bf16.mxu1 %v11540_v56 }
 0x715   :  { %5640 = vmatpush1.bf16.msra.mxu0 %v11545_v8  ;;  %5692 = vmatpush1.bf16.msra.mxu1 %v11550_v28 }
 0x716   :  { %5641 = vmatprep.subr.bf16.mxu0 %v11557_v26  ;;  %5693 = vmatprep.subr.bf16.mxu1 %v11564_v46 }
 0x719   :  { %5642 = vmatpush1.bf16.msra.mxu0 %v11570_v16  ;;  %5694 = vmatpush1.bf16.msra.mxu1 %v13058_v19 }
 0x71a   :  { %5743 = vmatprep.subr.bf16.mxu0 %v11587_v37  ;;  %5796 = vmatprep.subr.bf16.mxu1 %v13059_v6 }
 0x71c   :  { %7961 = vmatmul.mubr.msk.bf16.vlgmr.msra.gmra.mrb[196].mxu0 %vm13062_vm12, %v5371_v21  ;;  %7962 = vmatmul.mubr.msk.bf16.vlgmr.msra.gmra.mrb[144].mxu1 %vm13063_vm15, %v5578_v12  ;;  %vm13072_vm12 = vmmov %vm13066_vm1 }
 0x71d   :  { %5744 = vmatpush1.bf16.msra.mxu0 %v11741_v25  ;;  %5797 = vmatpush1.bf16.msra.mxu1 %v11497_v34  ;;  %vm13073_vm15 = vmmov %vm13066_vm1 }
 0x71e   :  { %5745 = vmatprep.subr.bf16.mxu0 %v11746_v33  ;;  %5798 = vmatprep.subr.bf16.mxu1 %v11509_v30 }
 0x71f   :  { %5775 = vmatprep.mubr.bf16.mxu0 %v13055_v44  ;;  %5828 = vmatprep.mubr.bf16.mxu1 %v13055_v44 }
 0x721   :  { %5746 = vmatpush1.bf16.msra.mxu0 %v11754_v3  ;;  %5799 = vmatpush1.bf16.msra.mxu1 %v11521_v39 }
 0x722   :  { %5747 = vmatprep.subr.bf16.mxu0 %v11763_v18  ;;  %5800 = vmatprep.subr.bf16.mxu1 %v11535_v14 }
 0x725   :  { %5748 = vmatpush1.bf16.msra.mxu0 %v11787_v61  ;;  %5801 = vmatpush1.bf16.msra.mxu1 %v11545_v8 }
 0x726   :  { %5749 = vmatprep.subr.bf16.mxu0 %v11794_v47  ;;  %5802 = vmatprep.subr.bf16.mxu1 %v11557_v26 }
 0x729   :  { %5750 = vmatpush1.bf16.msra.mxu0 %v11801_v60  ;;  %5803 = vmatpush1.bf16.msra.mxu1 %v11570_v16 }
 0x72a   :  { %5848 = vmatprep.subr.bf16.mxu0 %v11491_v10  ;;  %5904 = vmatprep.subr.bf16.mxu1 %v11587_v37 }
 0x72c   :  { %7963 = vmatmul.mubr.msk.bf16.vlgmr.msra.gmra.mrb[200].mxu0 %vm13064_vm3, %v5739_v51  ;;  %7964 = vmatmul.mubr.msk.bf16.vlgmr.msra.gmra.mrb[148].mxu1 %vm13065_vm7, %v5578_v12  ;;  %vm13075_vm3 = vmmov %vm13066_vm1  ;;  %vm5146_vm7 = vcmp.gt.f32.partialorder %v11781_v13, 0.0 }
 0x72d   :  { %5849 = vmatpush1.bf16.msra.mxu0 %v11502_v49  ;;  %5905 = vmatpush1.bf16.msra.mxu1 %v11741_v25 }
 0x72e   :  { %5850 = vmatprep.subr.bf16.mxu0 %v11516_v4  ;;  %5906 = vmatprep.subr.bf16.mxu1 %v11746_v33 }
 0x72f   :  { %5880 = vmatprep.mubr.bf16.mxu0 %v13055_v44  ;;  %5936 = vmatprep.mubr.bf16.mxu1 %v13055_v44 }
 0x731   :  { %5851 = vmatpush1.bf16.msra.mxu0 %v11529_v40  ;;  %5907 = vmatpush1.bf16.msra.mxu1 %v11754_v3 }
 0x732   :  { %5852 = vmatprep.subr.bf16.mxu0 %v11540_v56  ;;  %5908 = vmatprep.subr.bf16.mxu1 %v11763_v18 }
 0x735   :  { %5853 = vmatpush1.bf16.msra.mxu0 %v11550_v28  ;;  %5909 = vmatpush1.bf16.msra.mxu1 %v11787_v61 }
 0x736   :  { %5854 = vmatprep.subr.bf16.mxu0 %v11564_v46  ;;  %5910 = vmatprep.subr.bf16.mxu1 %v11794_v47 }
 0x739   :  { %5855 = vmatpush1.bf16.msra.mxu0 %v13058_v19  ;;  %5911 = vmatpush1.bf16.msra.mxu1 %v11801_v60 }
 0x73a   :  { %5961 = vmatprep.subr.bf16.mxu0 %v13059_v6  ;;  %6017 = vmatprep.subr.bf16.mxu1 %v11491_v10 }
 0x73c   :  { %7965 = vmatmul.mubr.msk.bf16.vlgmr.msra.gmra.mrb[204].mxu0 %vm13066_vm1, %v5739_v51  ;;  %7966 = vmatmul.mubr.msk.bf16.vlgmr.msra.gmra.mrb[152].mxu1 %vm13067_vm5, %v5900_v27  ;;  %vm5151_vm5 = vcmp.gt.f32.partialorder %v11725_v0, 0.0 }
 0x73d   :  { %5962 = vmatpush1.bf16.msra.mxu0 %v11497_v34  ;;  %6018 = vmatpush1.bf16.msra.mxu1 %v11502_v49 }
 0x73e   :  { %5963 = vmatprep.subr.bf16.mxu0 %v11509_v30  ;;  %6019 = vmatprep.subr.bf16.mxu1 %v11516_v4 }
 0x73f   :  { %5993 = vmatprep.mubr.bf16.mxu0 %v13055_v44  ;;  %6049 = vmatprep.mubr.bf16.mxu1 %v13055_v44 }
 0x741   :  { %5964 = vmatpush1.bf16.msra.mxu0 %v11521_v39  ;;  %6020 = vmatpush1.bf16.msra.mxu1 %v11529_v40 }
 0x742   :  { %5965 = vmatprep.subr.bf16.mxu0 %v11535_v14  ;;  %6021 = vmatprep.subr.bf16.mxu1 %v11540_v56 }
 0x745   :  { %5966 = vmatpush1.bf16.msra.mxu0 %v11545_v8  ;;  %6022 = vmatpush1.bf16.msra.mxu1 %v11550_v28 }
 0x746   :  { %5967 = vmatprep.subr.bf16.mxu0 %v11557_v26  ;;  %6023 = vmatprep.subr.bf16.mxu1 %v11564_v46 }
 0x749   :  { %5968 = vmatpush1.bf16.msra.mxu0 %v11570_v16  ;;  %6024 = vmatpush1.bf16.msra.mxu1 %v13058_v19 }
 0x74a   :  { %6073 = vmatprep.subr.bf16.mxu0 %v11587_v37  ;;  %6126 = vmatprep.subr.bf16.mxu1 %v13059_v6 }
 0x74c   :  { %7967 = vmatmul.mubr.msk.bf16.vlgmr.msra.gmra.mrb[208].mxu0 %vm13068_vm4, %v5957_v9  ;;  %7968 = vmatmul.mubr.msk.bf16.vlgmr.msra.gmra.mrb[156].mxu1 %vm13069_vm2, %v6013_v55  ;;  %vm6611_vm4 = vcmask 519168   ;;  %vm6809_vm2 = vcmask 516096  }
 0x74d   :  { %6074 = vmatpush1.bf16.msra.mxu0 %v11741_v25  ;;  %6127 = vmatpush1.bf16.msra.mxu1 %v11497_v34 }
 0x74e   :  { %6075 = vmatprep.subr.bf16.mxu0 %v11746_v33  ;;  %6128 = vmatprep.subr.bf16.mxu1 %v11509_v30 }
 0x74f   :  { %6105 = vmatprep.mubr.bf16.mxu0 %v13055_v44  ;;  %6158 = vmatprep.mubr.bf16.mxu1 %v13055_v44 }
 0x751   :  { %6076 = vmatpush1.bf16.msra.mxu0 %v11754_v3  ;;  %6129 = vmatpush1.bf16.msra.mxu1 %v11521_v39 }
 0x752   :  { %6077 = vmatprep.subr.bf16.mxu0 %v11763_v18  ;;  %6130 = vmatprep.subr.bf16.mxu1 %v11535_v14 }
 0x755   :  { %6078 = vmatpush1.bf16.msra.mxu0 %v11787_v61  ;;  %6131 = vmatpush1.bf16.msra.mxu1 %v11545_v8 }
 0x756   :  { %6079 = vmatprep.subr.bf16.mxu0 %v11794_v47  ;;  %6132 = vmatprep.subr.bf16.mxu1 %v11557_v26 }
 0x759   :  { %6080 = vmatpush1.bf16.msra.mxu0 %v11801_v60  ;;  %6133 = vmatpush1.bf16.msra.mxu1 %v11570_v16 }
 0x75a   :  { %6178 = vmatprep.subr.bf16.mxu0 %v11491_v10  ;;  %6234 = vmatprep.subr.bf16.mxu1 %v11587_v37 }
 0x75c   :  { %7969 = vmatmul.mubr.msk.bf16.vlgmr.msra.gmra.mrb[212].mxu0 %vm13070_vm13, %v6069_v63  ;;  %7970 = vmatmul.mubr.msk.bf16.vlgmr.msra.gmra.mrb[160].mxu1 %vm13071_vm14, %v6013_v55 }
 0x75d   :  { %6179 = vmatpush1.bf16.msra.mxu0 %v11502_v49  ;;  %6235 = vmatpush1.bf16.msra.mxu1 %v11741_v25 }
 0x75e   :  { %6180 = vmatprep.subr.bf16.mxu0 %v11516_v4  ;;  %6236 = vmatprep.subr.bf16.mxu1 %v11746_v33 }
 0x75f   :  { %6210 = vmatprep.mubr.bf16.mxu0 %v13055_v44  ;;  %6266 = vmatprep.mubr.bf16.mxu1 %v13055_v44 }
 0x761   :  { %6181 = vmatpush1.bf16.msra.mxu0 %v11529_v40  ;;  %6237 = vmatpush1.bf16.msra.mxu1 %v11754_v3 }
 0x762   :  { %6182 = vmatprep.subr.bf16.mxu0 %v11540_v56  ;;  %6238 = vmatprep.subr.bf16.mxu1 %v11763_v18 }
 0x765   :  { %6183 = vmatpush1.bf16.msra.mxu0 %v11550_v28  ;;  %6239 = vmatpush1.bf16.msra.mxu1 %v11787_v61 }
 0x766   :  { %6184 = vmatprep.subr.bf16.mxu0 %v11564_v46  ;;  %6240 = vmatprep.subr.bf16.mxu1 %v11794_v47 }
 0x769   :  { %6185 = vmatpush1.bf16.msra.mxu0 %v13058_v19  ;;  %6241 = vmatpush1.bf16.msra.mxu1 %v11801_v60 }
 0x76a   :  { %6287 = vmatprep.subr.bf16.mxu0 %v13059_v6  ;;  %6339 = vmatprep.subr.bf16.mxu1 %v11491_v10  ;;  %v8605_v10 = vld [vmem:[%s12663_s9 + $0x4] ss:$8 sps:$4 sm:$0xff]  }
 0x76c   :  { %7971 = vmatmul.mubr.msk.bf16.vlgmr.msra.gmra.mrb[216].mxu0 %vm13072_vm12, %v6069_v63  ;;  %7972 = vmatmul.mubr.msk.bf16.vlgmr.msra.gmra.mrb[164].mxu1 %vm13073_vm15, %v6230_v42 }
 0x76d   :  { %6288 = vmatpush1.bf16.msra.mxu0 %v11497_v34  ;;  %6340 = vmatpush1.bf16.msra.mxu1 %v11502_v49  ;;  %v8606_v34 = vld [vmem:[%s12663_s9] ss:$8 sps:$4 sm:$0xff]   ;;  %v8607_v49 = vld [vmem:[%s12663_s9 + $0x14] ss:$8 sps:$4 sm:$0xff]  }
 0x76e   :  { %6289 = vmatprep.subr.bf16.mxu0 %v11509_v30  ;;  %6341 = vmatprep.subr.bf16.mxu1 %v11516_v4  ;;  %v5147_v30 = vmul.f32 0.01, %v11781_v13 }
 0x76f   :  { %6319 = vmatprep.mubr.bf16.mxu0 %v13055_v44  ;;  %6371 = vmatprep.mubr.bf16.mxu1 %v13055_v44 }
 0x770   :  { %v5148_v4 = vsel %vm5146_vm7, %v11781_v13, %v5147_v30  ;;  %vm6824_vm7 = vcmask 1040896  }
 0x771   :  { %6290 = vmatpush1.bf16.msra.mxu0 %v11521_v39  ;;  %6342 = vmatpush1.bf16.msra.mxu1 %v11529_v40  ;;  %v8608_v40 = vld [vmem:[%s12663_s9 + $0x44] ss:$8 sps:$4 sm:$0xff]  }
 0x772   :  { %6291 = vmatprep.subr.bf16.mxu0 %v11535_v14  ;;  %6343 = vmatprep.subr.bf16.mxu1 %v11540_v56  ;;  %v8610_v56 = vld [vmem:[%s12663_s9 + $0x54] ss:$8 sps:$4 sm:$0xff]  }
 0x775   :  { %6292 = vmatpush1.bf16.msra.mxu0 %v11545_v8  ;;  %6344 = vmatpush1.bf16.msra.mxu1 %v11550_v28  ;;  %v8612_v28 = vld [vmem:[%s12663_s9 + $0x64] ss:$8 sps:$4 sm:$0xff]  }
 0x776   :  { %6293 = vmatprep.subr.bf16.mxu0 %v11557_v26  ;;  %6345 = vmatprep.subr.bf16.mxu1 %v11564_v46  ;;  %v8613_v46 = vld [vmem:[%s12663_s9 + $0x60] ss:$8 sps:$4 sm:$0xff]  }
 0x779   :  { %6294 = vmatpush1.bf16.msra.mxu0 %v11570_v16  ;;  %6346 = vmatpush1.bf16.msra.mxu1 %v13058_v19 }
 0x77a   :  { %6395 = vmatprep.subr.bf16.mxu0 %v11587_v37  ;;  %6448 = vmatprep.subr.bf16.mxu1 %v8605_v10 }
 0x77c   :  { %7973 = vmatmul.mubr.msk.bf16.vlgmr.msra.gmra.mrb[220].mxu0 %vm13074_vm8, %v6069_v63  ;;  %7974 = vmatmul.mubr.msk.bf16.vlgmr.msra.gmra.mrb[168].mxu1 %vm13075_vm3, %v6230_v42 }
 0x77d   :  { %6396 = vmatpush1.bf16.msra.mxu0 %v11741_v25  ;;  %6449 = vmatpush1.bf16.msra.mxu1 %v8606_v34 }
 0x77e   :  { %6397 = vmatprep.subr.bf16.mxu0 %v11746_v33  ;;  %6450 = vmatprep.subr.bf16.mxu1 %v8607_v49 }
 0x77f   :  { %6427 = vmatprep.mubr.bf16.mxu0 %v13055_v44  ;;  %6480 = vmatprep.mubr.bf16.mxu1 %v13055_v44 }
 0x781   :  { %6398 = vmatpush1.bf16.msra.mxu0 %v11754_v3  ;;  %6451 = vmatpush1.bf16.msra.mxu1 %v11521_v39  ;;  %v6391_v39 = vpack.c.bf16 %v5148_v4, %v5148_v4 }
 0x782   :  { %6399 = vmatprep.subr.bf16.mxu0 %v11763_v18  ;;  %6452 = vmatprep.subr.bf16.mxu1 %v11535_v14  ;;  %v8609_v14 = vld [vmem:[%s12663_s9 + $0x40] ss:$8 sps:$4 sm:$0xff]  }
 0x785   :  { %6400 = vmatpush1.bf16.msra.mxu0 %v11787_v61  ;;  %6453 = vmatpush1.bf16.msra.mxu1 %v11545_v8  ;;  %v8611_v8 = vld [vmem:[%s12663_s9 + $0x50] ss:$8 sps:$4 sm:$0xff]  }
 0x786   :  { %6401 = vmatprep.subr.bf16.mxu0 %v11794_v47  ;;  %6454 = vmatprep.subr.bf16.mxu1 %v11557_v26  ;;  %v5152_v26 = vmul.f32 0.01, %v11725_v0 }
 0x789   :  { %6402 = vmatpush1.bf16.msra.mxu0 %v11801_v60  ;;  %6455 = vmatpush1.bf16.msra.mxu1 %v11570_v16  ;;  %v8614_v16 = vld [vmem:[%s12663_s9 + $0x74] ss:$8 sps:$4 sm:$0xff]  }
 0x78a   :  { %6500 = vmatprep.subr.bf16.mxu0 %v8608_v40  ;;  %6556 = vmatprep.subr.bf16.mxu1 %v11587_v37  ;;  %v5153_v37 = vsel %vm5151_vm5, %v11725_v0, %v5152_v26 }
 0x78c   :  { %7975 = vmatmul.mubr.msk.bf16.vlgmr.msra.gmra.mrb[224].mxu0 %vm13076_vm6, %v6391_v39  ;;  %7976 = vmatmul.mubr.msk.bf16.vlgmr.msra.gmra.mrb[172].mxu1 %vm13066_vm1, %v6230_v42  ;;  %vm13081_vm1 = vcmask 1041408  }
 0x78d   :  { %6501 = vmatpush1.bf16.msra.mxu0 %v8609_v14  ;;  %6557 = vmatpush1.bf16.msra.mxu1 %v11741_v25  ;;  %v6552_v25 = vpack.c.bf16 %v5153_v37, %v5153_v37  ;;  %vm13082_vm5 = vmmov %vm13081_vm1 }
 0x78e   :  { %6502 = vmatprep.subr.bf16.mxu0 %v8610_v56  ;;  %6558 = vmatprep.subr.bf16.mxu1 %v11746_v33 }
 0x78f   :  { %6532 = vmatprep.mubr.bf16.mxu0 %v13055_v44  ;;  %6588 = vmatprep.mubr.bf16.mxu1 %v13055_v44 }
 0x791   :  { %6503 = vmatpush1.bf16.msra.mxu0 %v8611_v8  ;;  %6559 = vmatpush1.bf16.msra.mxu1 %v11754_v3 }
 0x792   :  { %6504 = vmatprep.subr.bf16.mxu0 %v8612_v28  ;;  %6560 = vmatprep.subr.bf16.mxu1 %v11763_v18 }
 0x795   :  { %6505 = vmatpush1.bf16.msra.mxu0 %v8613_v46  ;;  %6561 = vmatpush1.bf16.msra.mxu1 %v11787_v61 }
 0x796   :  { %6506 = vmatprep.subr.bf16.mxu0 %v8614_v16  ;;  %6562 = vmatprep.subr.bf16.mxu1 %v11794_v47 }
 0x799   :  { %6507 = vmatpush1.bf16.msra.mxu0 %v13058_v19  ;;  %6563 = vmatpush1.bf16.msra.mxu1 %v11801_v60 }
 0x79c   :  { %7977 = vmatmul.mubr.msk.bf16.vlgmr.msra.gmra.mrb[228].mxu0 %vm13077_vm9, %v6391_v39  ;;  %7978 = vmatmul.mubr.msk.bf16.vlgmr.msra.gmra.mrb[176].mxu1 %vm13078_vm10, %v6552_v25 }
 0x7bf   :  { %v12056_v31 = vpop.f32.mrb[184].mxu0  ;;  %v12059_v33 = vpop.f32.mrb[132].mxu1 }
 0x7c0   :  { %v5266_v35 = vrot.slane %v12056_v31, 1  ;;  %v12061_v32 = vpop.f32.mrb[185].mxu0  ;;  %v12063_v3 = vpop.f32.mrb[133].mxu1  ;;  %v5362_v29 = vrot.slane %v12059_v33, 1 }
 0x7c1   :  { %v5261_v0 = vpop.f32.mrb[186].mxu0  ;;  %v5357_v57 = vpop.f32.mrb[134].mxu1 }
 0x7c2   :  { %5267 = vrot.lane.b32.xlu0 %v5266_v35, %s8619_s27  ;;  %v5262_v17 = vpop.f32.mrb[187].mxu0  ;;  %v5358_v18 = vpop.f32.mrb[135].mxu1 }
 0x7c6   :  { %5363 = vrot.lane.b32.xlu0 %v5362_v29, %s8619_s27 }
 0x7cf   :  { %v12068_v1 = vpop.f32.mrb[188].mxu0  ;;  %v12070_v44 = vpop.f32.mrb[136].mxu1 }
 0x7d0   :  { %v12072_v7 = vpop.f32.mrb[189].mxu0  ;;  %v5517_v15 = vrot.slane %v12070_v44, 1  ;;  %v12075_v23 = vpop.f32.mrb[137].mxu1  ;;  %v5458_v2 = vrot.slane %v12068_v1, 1 }
 0x7d1   :  { %v5453_v5 = vpop.f32.mrb[190].mxu0  ;;  %v5512_v13 = vpop.f32.mrb[138].mxu1 }
 0x7d2   :  { %v5454_v61 = vpop.f32.mrb[191].mxu0  ;;  %5518 = vrot.lane.b32.xlu1 %v5517_v15, %s8619_s27  ;;  %v5513_v47 = vpop.f32.mrb[139].mxu1 }
 0x7d6   :  { %5459 = vrot.lane.b32.xlu1 %v5458_v2, %s8619_s27 }
 0x7df   :  { %v12080_v60 = vpop.f32.mrb[192].mxu0  ;;  %v12083_v21 = vpop.f32.mrb[140].mxu1 }
 0x7e0   :  { %v5569_v59 = vrot.slane %v12080_v60, 1  ;;  %v12085_v20 = vpop.f32.mrb[193].mxu0  ;;  %v5625_v24 = vrot.slane %v12083_v21, 1  ;;  %v12088_v53 = vpop.f32.mrb[141].mxu1 }
 0x7e1   :  { %v5564_v19 = vpop.f32.mrb[194].mxu0  ;;  %v5620_v6 = vpop.f32.mrb[142].mxu1 }
 0x7e2   :  { %5570 = vrot.lane.b32.xlu1 %v5569_v59, %s8619_s27  ;;  %v5565_v12 = vpop.f32.mrb[195].mxu0  ;;  %v5621_v36 = vpop.f32.mrb[143].mxu1  ;;  %5626 = vrot.lane.b32.xlu0 %v5625_v24, %s8619_s27 }
 0x7ef   :  { %v12092_v43 = vpop.f32.mrb[196].mxu0  ;;  %v12095_v11 = vpop.f32.mrb[144].mxu1 }
 0x7f0   :  { %v5678_v51 = vrot.slane %v12092_v43, 1  ;;  %v12097_v48 = vpop.f32.mrb[197].mxu0  ;;  %v5730_v27 = vrot.slane %v12095_v11, 1  ;;  %v12100_v22 = vpop.f32.mrb[145].mxu1 }
 0x7f1   :  { %v5673_v54 = vpop.f32.mrb[198].mxu0  ;;  %v5725_v45 = vpop.f32.mrb[146].mxu1 }
 0x7f2   :  { %5679 = vrot.lane.b32.xlu0 %v5678_v51, %s8619_s27  ;;  %v5674_v50 = vpop.f32.mrb[199].mxu0  ;;  %v5726_v9 = vpop.f32.mrb[147].mxu1  ;;  %5731 = vrot.lane.b32.xlu1 %v5730_v27, %s8619_s27  ;;  %v5272_v51 = vrot.slane %v12061_v32, 2 }
 0x7f3   :  { %v5368_v9 = vrot.slane %v12063_v3, 2 }
 0x7ff   :  { %v12104_v55 = vpop.f32.mrb[200].mxu0  ;;  %v12106_v58 = vpop.f32.mrb[148].mxu1 }
 0x800   :  { %v12108_v41 = vpop.f32.mrb[201].mxu0  ;;  %v5839_v63 = vrot.slane %v12106_v58, 1  ;;  %v12111_v38 = vpop.f32.mrb[149].mxu1  ;;  %v5786_v49 = vrot.slane %v12104_v55, 1 }
 0x801   :  { %v5781_v52 = vpop.f32.mrb[202].mxu0  ;;  %v5834_v42 = vpop.f32.mrb[150].mxu1 }
 0x802   :  { %v5782_v10 = vpop.f32.mrb[203].mxu0  ;;  %v5835_v34 = vpop.f32.mrb[151].mxu1  ;;  %5840 = vrot.lane.b32.xlu1 %v5839_v63, %s8619_s27 }
 0x806   :  { %5787 = vrot.lane.b32.xlu1 %v5786_v49, %s8619_s27 }
 0x80f   :  { %v12116_v30 = vpop.f32.mrb[204].mxu0  ;;  %v12119_v39 = vpop.f32.mrb[152].mxu1 }
 0x810   :  { %v5891_v4 = vrot.slane %v12116_v30, 1  ;;  %v12121_v40 = vpop.f32.mrb[205].mxu0  ;;  %v12123_v14 = vpop.f32.mrb[153].mxu1  ;;  %v5947_v46 = vrot.slane %v12119_v39, 1 }
 0x811   :  { %v5886_v56 = vpop.f32.mrb[206].mxu0  ;;  %v5942_v8 = vpop.f32.mrb[154].mxu1 }
 0x812   :  { %5892 = vrot.lane.b32.xlu1 %v5891_v4, %s8619_s27  ;;  %v5887_v28 = vpop.f32.mrb[207].mxu0  ;;  %v5943_v26 = vpop.f32.mrb[155].mxu1 }
 0x816   :  { %5948 = vrot.lane.b32.xlu1 %v5947_v46, %s8619_s27 }
 0x81f   :  { %v12128_v16 = vpop.f32.mrb[208].mxu0  ;;  %v12131_v25 = vpop.f32.mrb[156].mxu1 }
 0x820   :  { %v6004_v37 = vrot.slane %v12128_v16, 1  ;;  %v12133_v35 = vpop.f32.mrb[209].mxu0  ;;  %v6060_v0 = vrot.slane %v12131_v25, 1  ;;  %v12136_v57 = vpop.f32.mrb[157].mxu1 }
 0x821   :  { %v5999_v17 = vpop.f32.mrb[210].mxu0  ;;  %v6055_v18 = vpop.f32.mrb[158].mxu1 }
 0x822   :  { %6005 = vrot.lane.b32.xlu0 %v6004_v37, %s8619_s27  ;;  %v6000_v29 = vpop.f32.mrb[211].mxu0  ;;  %v6056_v15 = vpop.f32.mrb[159].mxu1  ;;  %6061 = vrot.lane.b32.xlu1 %v6060_v0, %s8619_s27  ;;  %v5464_v0 = vrot.slane %v12072_v7, 2 }
 0x823   :  { %v12176_v15 = vld [vmem:[%s12666_s10] ss:$0 sm:$0xff] }
 0x82f   :  { %v12140_v5 = vpop.f32.mrb[212].mxu0  ;;  %v12143_v61 = vpop.f32.mrb[160].mxu1 }
 0x830   :  { %v6116_v13 = vrot.slane %v12140_v5, 1  ;;  %v12145_v47 = vpop.f32.mrb[213].mxu0  ;;  %v6169_v2 = vrot.slane %v12143_v61, 1  ;;  %v12148_v59 = vpop.f32.mrb[161].mxu1 }
 0x831   :  { %v6111_v24 = vpop.f32.mrb[214].mxu0  ;;  %v6164_v19 = vpop.f32.mrb[162].mxu1 }
 0x832   :  { %6117 = vrot.lane.b32.xlu1 %v6116_v13, %s8619_s27  ;;  %v6112_v6 = vpop.f32.mrb[215].mxu0  ;;  %v6165_v12 = vpop.f32.mrb[163].mxu1  ;;  %6170 = vrot.lane.b32.xlu0 %v6169_v2, %s8619_s27 }
 0x834   :  { %v5268_v36 = vpop.permute.xlu0 %5267 }
 0x835   :  { %v5270_v27 = vadd.f32 %v5268_v36, %v12056_v31 }
 0x837   :  { %v5274_v54 = vadd.f32 %v5272_v51, %v5270_v27  ;;  %v5575_v51 = vrot.slane %v12085_v20, 2 }
 0x838   :  { %v5364_v50 = vpop.permute.xlu0 %5363 }
 0x839   :  { %v5360_v45 = vadd.f32 %v12059_v33, %v5274_v54 }
 0x83b   :  { %v5366_v63 = vadd.f32 %v5364_v50, %v5360_v45 }
 0x83d   :  { %v5370_v52 = vadd.f32 %v5368_v9, %v5366_v63 }
 0x83f   :  { %v12156_v42 = vpop.f32.mrb[216].mxu0  ;;  %v5456_v10 = vadd.f32 %v12068_v1, %v5370_v52  ;;  %v12160_v49 = vpop.f32.mrb[164].mxu1  ;;  %v5523_v1 = vrot.slane %v12075_v23, 2  ;;  %v5631_v52 = vrot.slane %v12088_v53, 2 }
 0x840   :  { %v6221_v34 = vrot.slane %v12156_v42, 1  ;;  %v12162_v4 = vpop.f32.mrb[217].mxu0  ;;  %v6277_v31 = vrot.slane %v12160_v49, 1  ;;  %v12165_v32 = vpop.f32.mrb[165].mxu1 }
 0x841   :  { %v6216_v33 = vpop.f32.mrb[218].mxu0  ;;  %v6272_v56 = vpop.f32.mrb[166].mxu1 }
 0x842   :  { %6222 = vrot.lane.b32.xlu0 %v6221_v34, %s8619_s27  ;;  %v6217_v3 = vpop.f32.mrb[219].mxu0  ;;  %v6273_v8 = vpop.f32.mrb[167].mxu1  ;;  %6278 = vrot.lane.b32.xlu1 %v6277_v31, %s8619_s27 }
 0x844   :  { %v5519_v28 = vpop.permute.xlu1 %5518 }
 0x845   :  { %v5521_v26 = vadd.f32 %v5519_v28, %v12070_v44 }
 0x847   :  { %v5525_v46 = vadd.f32 %v5523_v1, %v5521_v26 }
 0x848   :  { %v5460_v37 = vpop.permute.xlu1 %5459 }
 0x849   :  { %v5462_v17 = vadd.f32 %v5460_v37, %v5456_v10  ;;  %v5567_v18 = vadd.f32 %v12080_v60, %v5525_v46 }
 0x84b   :  { %v5466_v29 = vadd.f32 %v5464_v0, %v5462_v17 }
 0x84d   :  { %v12186_v24 = vadd.f32 %v12176_v15, %v5466_v29 }
 0x84f   :  { %v12178_v13 = vpop.f32.mrb[220].mxu0  ;;  %v12181_v23 = vpop.f32.mrb[168].mxu1  ;;  %v6612_v27 = vsel %vm6611_vm4, %v12186_v24, 0.0 }
 0x850   :  { %v6330_v2 = vrot.slane %v12178_v13, 1  ;;  %v12183_v44 = vpop.f32.mrb[221].mxu0  ;;  %v12188_v7 = vpop.f32.mrb[169].mxu1  ;;  %v6613_v50 = vrot.slane %v6612_v27, 4 }
 0x851   :  { %v6325_v60 = vpop.f32.mrb[222].mxu0  ;;  %v6377_v19 = vpop.f32.mrb[170].mxu1 }
 0x852   :  { %6331 = vrot.lane.b32.xlu0 %v6330_v2, %s8619_s27  ;;  %v6326_v6 = vpop.f32.mrb[223].mxu0  ;;  %v6378_v12 = vpop.f32.mrb[171].mxu1  ;;  %v6614_v34 = vadd.f32 %v6613_v50, %v6612_v27  ;;  %v5684_v2 = vrot.slane %v12097_v48, 2  ;;  %v6382_v60 = vrot.slane %v12181_v23, 1  ;;  %v5736_v50 = vrot.slane %v12100_v22, 2 }
 0x854   :  { %v5571_v36 = vpop.permute.xlu1 %5570  ;;  %v5627_v63 = vpop.permute.xlu0 %5626  ;;  %v6615_v20 = vrot.slane %v6614_v34, 2 }
 0x855   :  { %v5573_v54 = vadd.f32 %v5571_v36, %v5567_v18 }
 0x856   :  { %v6616_v17 = vadd.f32 %v6615_v20, %v6614_v34 }
 0x857   :  { %v5577_v45 = vadd.f32 %v5575_v51, %v5573_v54 }
 0x858   :  { %v6617_v36 = vrot.slane %v6616_v17, 1 }
 0x859   :  { %v5623_v9 = vadd.f32 %v12083_v21, %v5577_v45 }
 0x85b   :  { %v5629_v10 = vadd.f32 %v5627_v63, %v5623_v9  ;;  %v6618_v63 = vadd.f32 %v6617_v36, %v6616_v17 }
 0x85d   :  { %v5633_v31 = vadd.f32 %v5631_v52, %v5629_v10 }
 0x85f   :  { %v12197_v33 = vadd.f32 %v12176_v15, %v5633_v31  ;;  %v12199_v56 = vpop.f32.mrb[224].mxu0  ;;  %v12201_v3 = vpop.f32.mrb[172].mxu1 }
 0x860   :  { %v12203_v8 = vpop.f32.mrb[225].mxu0  ;;  %v6491_v21 = vrot.slane %v12201_v3, 1  ;;  %v12208_v1 = vpop.f32.mrb[173].mxu1 }
 0x861   :  { %v6619_v28 = vsel %vm6611_vm4, %v12197_v33, 0.0  ;;  %v6433_v53 = vpop.f32.mrb[226].mxu0  ;;  %v6486_v46 = vpop.f32.mrb[174].mxu1 }
 0x862   :  { %v6620_v26 = vrot.slane %v6619_v28, 4  ;;  %v6434_v37 = vpop.f32.mrb[227].mxu0  ;;  %v6487_v0 = vpop.f32.mrb[175].mxu1  ;;  %6492 = vrot.lane.b32.xlu0 %v6491_v21, %s8619_s27 }
 0x863   :  { %v5845_v0 = vrot.slane %v12111_v38, 2 }
 0x864   :  { %v6621_v18 = vadd.f32 %v6620_v26, %v6619_v28  ;;  %v5680_v29 = vpop.permute.xlu0 %5679  ;;  %v5732_v45 = vpop.permute.xlu1 %5731 }
 0x865   :  { %v5682_v19 = vadd.f32 %v5680_v29, %v12092_v43 }
 0x866   :  { %v6622_v6 = vrot.slane %v6621_v18, 2  ;;  %6383 = vrot.lane.b32.xlu0 %v6382_v60, %s8619_s27 }
 0x867   :  { %v5686_v12 = vadd.f32 %v5684_v2, %v5682_v19  ;;  %v5792_v2 = vrot.slane %v12108_v41, 2 }
 0x868   :  { %v6623_v51 = vadd.f32 %v6622_v6, %v6621_v18 }
 0x869   :  { %v5728_v27 = vadd.f32 %v12095_v11, %v5686_v12 }
 0x86a   :  { %v6624_v54 = vrot.slane %v6623_v51, 1 }
 0x86b   :  { %v5734_v9 = vadd.f32 %v5732_v45, %v5728_v27 }
 0x86c   :  { %v6625_v52 = vadd.f32 %v6624_v54, %v6623_v51 }
 0x86d   :  { %v5738_v48 = vadd.f32 %v5736_v50, %v5734_v9 }
 0x86e   :  { %v6626_v10 = vadd.f32 %v6625_v52, %v6618_v63  ;;  %v5953_v52 = vrot.slane %v12123_v14, 2 }
 0x86f   :  { %v12217_v34 = vpop.f32.mrb[228].mxu0  ;;  %v5784_v43 = vadd.f32 %v12104_v55, %v5738_v48  ;;  %v12221_v20 = vpop.f32.mrb[176].mxu1  ;;  %v6438_v55 = vrot.slane %v12199_v56, 1 }
 0x870   :  { %v6543_v31 = vrot.slane %v12217_v34, 1  ;;  %v12223_v28 = vpop.f32.mrb[229].mxu0  ;;  %v6599_v11 = vrot.slane %v12221_v20, 1  ;;  %v12226_v21 = vpop.f32.mrb[177].mxu1 }
 0x871   :  { %v6538_v22 = vpop.f32.mrb[230].mxu0  ;;  %v6594_v53 = vpop.f32.mrb[178].mxu1 }
 0x872   :  { %6544 = vrot.lane.b32.xlu0 %v6543_v31, %s8619_s27  ;;  %v6539_v26 = vpop.f32.mrb[231].mxu0  ;;  %v6595_v46 = vpop.f32.mrb[179].mxu1  ;;  %6600 = vrot.lane.b32.xlu1 %v6599_v11, %s8619_s27 }
 0x874   :  { %v5841_v37 = vpop.permute.xlu1 %5840 }
 0x875   :  { %v5843_v17 = vadd.f32 %v5841_v37, %v12106_v58  ;;  %v5897_v58 = vrot.slane %v12121_v40, 2 }
 0x876   :  { %6439 = vrot.lane.b32.xlu0 %v6438_v55, %s8619_s27  ;;  %v6010_v55 = vrot.slane %v12133_v35, 2  ;;  %v6122_v35 = vrot.slane %v12145_v47, 2 }
 0x877   :  { %v5847_v18 = vadd.f32 %v5845_v0, %v5843_v17 }
 0x878   :  { %v5788_v29 = vpop.permute.xlu1 %5787 }
 0x879   :  { %v5790_v60 = vadd.f32 %v5788_v29, %v5784_v43  ;;  %v5889_v19 = vadd.f32 %v12116_v30, %v5847_v18  ;;  %v6066_v29 = vrot.slane %v12136_v57, 2 }
 0x87b   :  { %v5794_v6 = vadd.f32 %v5792_v2, %v5790_v60 }
 0x87d   :  { %v12237_v12 = vadd.f32 %v12176_v15, %v5794_v6 }
 0x87f   :  { %v6627_v36 = vsel %vm6611_vm4, %v12237_v12, 0.0 }
 0x880   :  { %v6628_v51 = vrot.slane %v6627_v36, 4 }
 0x882   :  { %v6629_v38 = vadd.f32 %v6628_v51, %v6627_v36 }
 0x884   :  { %v5893_v27 = vpop.permute.xlu1 %5892  ;;  %v6630_v54 = vrot.slane %v6629_v38, 2 }
 0x885   :  { %v5895_v45 = vadd.f32 %v5893_v27, %v5889_v19  ;;  %v6175_v27 = vrot.slane %v12148_v59, 2  ;;  %v6227_v59 = vrot.slane %v12162_v4, 2 }
 0x886   :  { %v6631_v50 = vadd.f32 %v6630_v54, %v6629_v38 }
 0x887   :  { %v5899_v9 = vadd.f32 %v5897_v58, %v5895_v45 }
 0x888   :  { %v6632_v41 = vrot.slane %v6631_v50, 1  ;;  %v5949_v30 = vpop.permute.xlu1 %5948 }
 0x889   :  { %v5945_v63 = vadd.f32 %v12119_v39, %v5899_v9 }
 0x88a   :  { %v6633_v48 = vadd.f32 %v6632_v41, %v6631_v50 }
 0x88b   :  { %v5951_v43 = vadd.f32 %v5949_v30, %v5945_v63 }
 0x88c   :  { %v6634_v31 = vadd.f32 %v6633_v48, %v6626_v10 }
 0x88d   :  { %v5955_v11 = vadd.f32 %v5953_v52, %v5951_v43 }
 0x88f   :  { %v12245_v22 = vadd.f32 %v12176_v15, %v5955_v11 }
 0x891   :  { %v6635_v40 = vsel %vm6611_vm4, %v12245_v22, 0.0 }
 0x892   :  { %v6636_v53 = vrot.slane %v6635_v40, 4 }
 0x894   :  { %v6637_v26 = vadd.f32 %v6636_v53, %v6635_v40  ;;  %v6006_v46 = vpop.permute.xlu0 %6005  ;;  %v6062_v18 = vpop.permute.xlu1 %6061 }
 0x895   :  { %v6008_v39 = vadd.f32 %v6006_v46, %v12128_v16 }
 0x896   :  { %v6638_v37 = vrot.slane %v6637_v26, 2 }
 0x897   :  { %v6012_v0 = vadd.f32 %v6010_v55, %v6008_v39 }
 0x898   :  { %v6639_v14 = vadd.f32 %v6638_v37, %v6637_v26  ;;  %v6336_v37 = vrot.slane %v12183_v44, 2 }
 0x899   :  { %v6058_v17 = vadd.f32 %v12131_v25, %v6012_v0 }
 0x89a   :  { %v6640_v10 = vrot.slane %v6639_v14, 1 }
 0x89b   :  { %v6064_v2 = vadd.f32 %v6062_v18, %v6058_v17 }
 0x89c   :  { %v6641_v60 = vadd.f32 %v6640_v10, %v6639_v14 }
 0x89d   :  { %v6068_v19 = vadd.f32 %v6066_v29, %v6064_v2 }
 0x89e   :  { %v6642_v6 = vadd.f32 %v6641_v60, %v6634_v31  ;;  %v6497_v60 = vrot.slane %v12208_v1, 2  ;;  %v6549_v1 = vrot.slane %v12223_v28, 2 }
 0x89f   :  { %v6114_v36 = vadd.f32 %v12140_v5, %v6068_v19 }
 0x8a4   :  { %v6118_v51 = vpop.permute.xlu1 %6117  ;;  %v6171_v38 = vpop.permute.xlu0 %6170 }
 0x8a5   :  { %v6120_v16 = vadd.f32 %v6118_v51, %v6114_v36  ;;  %v6173_v58 = vadd.f32 %v6171_v38, %v12143_v61  ;;  %v6388_v51 = vrot.slane %v12188_v7, 2  ;;  %v8521_v7 = vld [vmem:[%s12667_s13 + $0xc0] sm:$0xff]  }
 0x8a6   :  { %8153 = vmatprep.subr.bf16.mxu1 %v8521_v7 }
 0x8a7   :  { %v6124_v25 = vadd.f32 %v6122_v35, %v6120_v16  ;;  %v6177_v54 = vadd.f32 %v6175_v27, %v6173_v58  ;;  %v6444_v16 = vrot.slane %v12203_v8, 2 }
 0x8a9   :  { %v12258_v45 = vadd.f32 %v12176_v15, %v6124_v25  ;;  %v6219_v57 = vadd.f32 %v12156_v42, %v6177_v54  ;;  %v6283_v42 = vrot.slane %v12165_v32, 2 }
 0x8ab   :  { %v6643_v50 = vsel %vm6611_vm4, %v12258_v45, 0.0 }
 0x8ac   :  { %v6644_v5 = vrot.slane %v6643_v50, 4 }
 0x8ae   :  { %v6645_v9 = vadd.f32 %v6644_v5, %v6643_v50 }
 0x8b0   :  { %v6646_v41 = vrot.slane %v6645_v9, 2 }
 0x8b2   :  { %v6647_v47 = vadd.f32 %v6646_v41, %v6645_v9 }
 0x8b4   :  { %v6648_v63 = vrot.slane %v6647_v47, 1  ;;  %v6223_v30 = vpop.permute.xlu0 %6222  ;;  %v6279_v11 = vpop.permute.xlu1 %6278 }
 0x8b5   :  { %v6225_v52 = vadd.f32 %v6223_v30, %v6219_v57 }
 0x8b6   :  { %v6649_v61 = vadd.f32 %v6648_v63, %v6647_v47 }
 0x8b7   :  { %v6229_v48 = vadd.f32 %v6227_v59, %v6225_v52 }
 0x8b8   :  { %v6650_v43 = vadd.f32 %v6649_v61, %v6642_v6 }
 0x8b9   :  { %v6275_v31 = vadd.f32 %v12160_v49, %v6229_v48 }
 0x8bb   :  { %v6281_v40 = vadd.f32 %v6279_v11, %v6275_v31 }
 0x8bd   :  { %v6285_v53 = vadd.f32 %v6283_v42, %v6281_v40 }
 0x8bf   :  { %v12267_v26 = vadd.f32 %v12176_v15, %v6285_v53 }
 0x8c1   :  { %v6651_v46 = vsel %vm6611_vm4, %v12267_v26, 0.0 }
 0x8c2   :  { %v6652_v55 = vrot.slane %v6651_v46, 4 }
 0x8c4   :  { %v6653_v39 = vadd.f32 %v6652_v55, %v6651_v46  ;;  %v6332_v4 = vpop.permute.xlu0 %6331 }
 0x8c5   :  { %v6334_v0 = vadd.f32 %v6332_v4, %v12178_v13 }
 0x8c6   :  { %v6654_v14 = vrot.slane %v6653_v39, 2 }
 0x8c7   :  { %v6338_v49 = vadd.f32 %v6336_v37, %v6334_v0 }
 0x8c8   :  { %v6655_v17 = vadd.f32 %v6654_v14, %v6653_v39 }
 0x8c9   :  { %v6380_v32 = vadd.f32 %v12181_v23, %v6338_v49  ;;  %v8519_v23 = vld [vmem:[%s12667_s13 + $0x40] sm:$0xff]  }
 0x8ca   :  { %v6656_v10 = vrot.slane %v6655_v17, 1  ;;  %8131 = vmatprep.subr.bf16.mxu0 %v8519_v23 }
 0x8cc   :  { %v6657_v18 = vadd.f32 %v6656_v10, %v6655_v17 }
 0x8ce   :  { %v6658_v29 = vadd.f32 %v6657_v18, %v6650_v43 }
 0x8d4   :  { %v6493_v2 = vpop.permute.xlu0 %6492 }
 0x8d5   :  { %v6495_v19 = vadd.f32 %v6493_v2, %v12201_v3  ;;  %v8520_v3 = vld [vmem:[%s12667_s13] sm:$0xff]  }
 0x8d6   :  { %8132 = vmatpush3.bf16.msra.mxu0 %v8520_v3 }
 0x8d7   :  { %v6499_v6 = vadd.f32 %v6497_v60, %v6495_v19 }
 0x8d8   :  { %v6384_v36 = vpop.permute.xlu0 %6383 }
 0x8d9   :  { %v6386_v44 = vadd.f32 %v6384_v36, %v6380_v32  ;;  %v6541_v13 = vadd.f32 %v12217_v34, %v6499_v6  ;;  %v6605_v34 = vrot.slane %v12226_v21, 2 }
 0x8db   :  { %v6390_v35 = vadd.f32 %v6388_v51, %v6386_v44 }
 0x8dd   :  { %v6436_v38 = vadd.f32 %v12199_v56, %v6390_v35  ;;  %v8522_v56 = vld [vmem:[%s12667_s13 + $0x80] sm:$0xff]  }
 0x8de   :  { %8154 = vmatpush3.bf16.msra.mxu1 %v8522_v56 }
 0x8e4   :  { %v6545_v8 = vpop.permute.xlu0 %6544  ;;  %v6601_v57 = vpop.permute.xlu1 %6600 }
 0x8e5   :  { %v6547_v27 = vadd.f32 %v6545_v8, %v6541_v13 }
 0x8e7   :  { %v6551_v58 = vadd.f32 %v6549_v1, %v6547_v27 }
 0x8e8   :  { %v6440_v25 = vpop.permute.xlu0 %6439 }
 0x8e9   :  { %v6597_v28 = vadd.f32 %v12221_v20, %v6551_v58  ;;  %v6442_v54 = vadd.f32 %v6440_v25, %v6436_v38 }
 0x8eb   :  { %v6603_v50 = vadd.f32 %v6601_v57, %v6597_v28  ;;  %v6446_v5 = vadd.f32 %v6444_v16, %v6442_v54 }
 0x8ed   :  { %v6607_v9 = vadd.f32 %v6605_v34, %v6603_v50  ;;  %v6447_v21 = vadd.f32 %v12176_v15, %v6446_v5 }
 0x8ef   :  { %v6608_v41 = vadd.f32 %v12176_v15, %v6607_v9  ;;  %v6659_v47 = vsel %vm6611_vm4, %v6447_v21, 0.0 }
 0x8f0   :  { %v6660_v63 = vrot.slane %v6659_v47, 4 }
 0x8f1   :  { %v6667_v30 = vsel %vm6611_vm4, %v6608_v41, 0.0 }
 0x8f2   :  { %v6668_v59 = vrot.slane %v6667_v30, 4  ;;  %v6661_v52 = vadd.f32 %v6660_v63, %v6659_v47 }
 0x8f4   :  { %v6669_v61 = vadd.f32 %v6668_v59, %v6667_v30  ;;  %v6662_v48 = vrot.slane %v6661_v52, 2 }
 0x8f6   :  { %v6670_v43 = vrot.slane %v6669_v61, 2  ;;  %v6663_v20 = vadd.f32 %v6662_v48, %v6661_v52 }
 0x8f8   :  { %v6671_v31 = vadd.f32 %v6670_v43, %v6669_v61  ;;  %v6664_v11 = vrot.slane %v6663_v20, 1 }
 0x8fa   :  { %v6672_v42 = vrot.slane %v6671_v31, 1  ;;  %v6665_v40 = vadd.f32 %v6664_v11, %v6663_v20 }
 0x8fc   :  { %v6666_v53 = vadd.f32 %v6665_v40, %v6658_v29  ;;  %v6673_v46 = vadd.f32 %v6672_v42, %v6671_v31 }
 0x8fe   :  { %v6674_v55 = vadd.f32 %v6673_v46, %v6666_v53 }
 0x900   :  { %v6675_v39 = vmul.f32 0.03125, %v6674_v55 }
 0x902   :  { %v12300_v15 = vsub.f32 %v12186_v24, %v6675_v39  ;;  %v12303_v4 = vsub.f32 %v12197_v33, %v6675_v39  ;;  %v12306_v37 = vsub.f32 %v12237_v12, %v6675_v39  ;;  %v12309_v0 = vsub.f32 %v12245_v22, %v6675_v39 }
 0x903   :  { %v12312_v14 = vsub.f32 %v12258_v45, %v6675_v39  ;;  %v12315_v49 = vsub.f32 %v12267_v26, %v6675_v39  ;;  %v12317_v17 = vsub.f32 %v6447_v21, %v6675_v39  ;;  %v12319_v32 = vsub.f32 %v6608_v41, %v6675_v39 }
 0x904   :  { %v6677_v24 = vmul.f32 %v12300_v15, %v12300_v15  ;;  %v6686_v33 = vmul.f32 %v12303_v4, %v12303_v4  ;;  %v6696_v12 = vmul.f32 %v12306_v37, %v12306_v37  ;;  %v6706_v22 = vmul.f32 %v12309_v0, %v12309_v0 }
 0x905   :  { %v6716_v45 = vmul.f32 %v12312_v14, %v12312_v14  ;;  %v6726_v26 = vmul.f32 %v12315_v49, %v12315_v49  ;;  %v6736_v10 = vmul.f32 %v12317_v17, %v12317_v17  ;;  %v6746_v18 = vmul.f32 %v12319_v32, %v12319_v32 }
 0x906   :  { %v6678_v29 = vsel %vm6611_vm4, %v6677_v24, 0.0  ;;  %v6687_v2 = vsel %vm6611_vm4, %v6686_v33, 0.0  ;;  %v6697_v60 = vsel %vm6611_vm4, %v6696_v12, 0.0  ;;  %v6707_v19 = vsel %vm6611_vm4, %v6706_v22, 0.0 }
 0x907   :  { %v6679_v6 = vrot.slane %v6678_v29, 4  ;;  %v6688_v36 = vrot.slane %v6687_v2, 4  ;;  %v6698_v51 = vrot.slane %v6697_v60, 4  ;;  %v6708_v44 = vrot.slane %v6707_v19, 4 }
 0x908   :  { %v6717_v13 = vsel %vm6611_vm4, %v6716_v45, 0.0  ;;  %v6727_v35 = vsel %vm6611_vm4, %v6726_v26, 0.0  ;;  %v6737_v38 = vsel %vm6611_vm4, %v6736_v10, 0.0  ;;  %v6747_v23 = vsel %vm6611_vm4, %v6746_v18, 0.0 }
 0x909   :  { %v6680_v16 = vadd.f32 %v6679_v6, %v6678_v29  ;;  %v6689_v3 = vadd.f32 %v6688_v36, %v6687_v2  ;;  %v6699_v1 = vadd.f32 %v6698_v51, %v6697_v60  ;;  %v6709_v7 = vadd.f32 %v6708_v44, %v6707_v19 }
 0x90a   :  { %v6718_v34 = vrot.slane %v6717_v13, 4  ;;  %v6728_v56 = vrot.slane %v6727_v35, 4  ;;  %v6738_v8 = vrot.slane %v6737_v38, 4  ;;  %v6748_v27 = vrot.slane %v6747_v23, 4 }
 0x90b   :  { %v6681_v58 = vrot.slane %v6680_v16, 2  ;;  %v6690_v25 = vrot.slane %v6689_v3, 2  ;;  %v6700_v28 = vrot.slane %v6699_v1, 2  ;;  %v6710_v54 = vrot.slane %v6709_v7, 2 }
 0x90c   :  { %v6719_v57 = vadd.f32 %v6718_v34, %v6717_v13  ;;  %v6729_v50 = vadd.f32 %v6728_v56, %v6727_v35  ;;  %v6739_v5 = vadd.f32 %v6738_v8, %v6737_v38  ;;  %v6749_v9 = vadd.f32 %v6748_v27, %v6747_v23  ;;  %v8523_v56 = vld [vmem:[%s12667_s13 + $0x48] sm:$0xff]   ;;  %v7979_v27 = vld [vmem:[%s12669_s12] ss:$0 sm:$0xff] }
 0x90d   :  { %v6682_v21 = vadd.f32 %v6681_v58, %v6680_v16  ;;  %v6691_v41 = vadd.f32 %v6690_v25, %v6689_v3  ;;  %v6701_v47 = vadd.f32 %v6700_v28, %v6699_v1  ;;  %v6711_v63 = vadd.f32 %v6710_v54, %v6709_v7  ;;  %v6609_v16 = vld [vmem:[%s12668_s11] sm:$0x1]  ;;  %v8524_v8 = vld [vmem:[%s12667_s13 + $0x8] sm:$0xff]   ;;  %8133 = vmatprep.subr.bf16.mxu0 %v8523_v56 }
 0x90e   :  { %v6720_v30 = vrot.slane %v6719_v57, 2  ;;  %v6730_v59 = vrot.slane %v6729_v50, 2  ;;  %v6740_v52 = vrot.slane %v6739_v5, 2  ;;  %v6750_v20 = vrot.slane %v6749_v9, 2  ;;  %v13079_v58 = vld [vmem:[#allocation9_spill] sm:$0xff]  ;;  %8134 = vmatpush3.bf16.msra.mxu0 %v8524_v8  ;;  %v8539_v56 = vld [vmem:[%s12667_s13 + $0x68] sm:$0xff]  }
 0x90f   :  { %v6683_v61 = vrot.slane %v6682_v21, 1  ;;  %v6692_v48 = vrot.slane %v6691_v41, 1  ;;  %v6702_v43 = vrot.slane %v6701_v47, 1  ;;  %v6712_v40 = vrot.slane %v6711_v63, 1  ;;  %v8540_v8 = vld [vmem:[%s12667_s13 + $0x28] sm:$0xff]  }
 0x910   :  { %v6721_v31 = vadd.f32 %v6720_v30, %v6719_v57  ;;  %v6731_v53 = vadd.f32 %v6730_v59, %v6729_v50  ;;  %v6741_v24 = vadd.f32 %v6740_v52, %v6739_v5  ;;  %v6751_v45 = vadd.f32 %v6750_v20, %v6749_v9  ;;  %v8525_v50 = vld [vmem:[%s12667_s13 + $0xc8] sm:$0xff]  }
 0x911   :  { %v6684_v11 = vadd.f32 %v6683_v61, %v6682_v21  ;;  %v6693_v42 = vadd.f32 %v6692_v48, %v6691_v41  ;;  %v6703_v55 = vadd.f32 %v6702_v43, %v6701_v47  ;;  %v6713_v12 = vadd.f32 %v6712_v40, %v6711_v63  ;;  %v8526_v5 = vld [vmem:[%s12667_s13 + $0x88] sm:$0xff]   ;;  %8155 = vmatprep.subr.bf16.mxu1 %v8525_v50  ;;  %v8527_v47 = vld [vmem:[%s12667_s13 + $0x50] sm:$0xff]  }
 0x912   :  { %v6722_v39 = vrot.slane %v6721_v31, 1  ;;  %v6732_v22 = vrot.slane %v6731_v53, 1  ;;  %v6742_v18 = vrot.slane %v6741_v24, 1  ;;  %v6752_v60 = vrot.slane %v6751_v45, 1  ;;  %8156 = vmatpush3.bf16.msra.mxu1 %v8526_v5  ;;  %8135 = vmatprep.subr.bf16.mxu0 %v8527_v47  ;;  %v8546_v47 = vld [vmem:[%s12667_s13 + $0xb0] sm:$0xff]  }
 0x913   :  { %v6694_v46 = vadd.f32 %v6693_v42, %v6684_v11  ;;  %v8620_v38 = vmov 1983009808   ;;  %v8530_v11 = vld [vmem:[%s12667_s13 + $0x90] sm:$0xff]   ;;  %v8531_v42 = vld [vmem:[%s12667_s13 + $0x58] sm:$0xff]  }
 0x914   :  { %v6723_v10 = vadd.f32 %v6722_v39, %v6721_v31  ;;  %v6733_v2 = vadd.f32 %v6732_v22, %v6731_v53  ;;  %v6743_v6 = vadd.f32 %v6742_v18, %v6741_v24  ;;  %v6753_v51 = vadd.f32 %v6752_v60, %v6751_v45  ;;  %v8529_v31 = vld [vmem:[%s12667_s13 + $0xd0] sm:$0xff]   ;;  %v8532_v39 = vld [vmem:[%s12667_s13 + $0x18] sm:$0xff]  }
 0x915   :  { %v6704_v33 = vadd.f32 %v6703_v55, %v6694_v46  ;;  %v6813_v23 = vunpack.c.l.s4 %v8620_v38  ;;  %8157 = vmatprep.subr.bf16.mxu1 %v8529_v31  ;;  %v8533_v22 = vld [vmem:[%s12667_s13 + $0xd8] sm:$0xff]  }
 0x916   :  { %8158 = vmatpush3.bf16.msra.mxu1 %v8530_v11 }
 0x917   :  { %v6714_v26 = vadd.f32 %v6713_v12, %v6704_v33  ;;  %v6814_v1 = vunpack.c.0.s8 %v6813_v23  ;;  %8159 = vmatprep.subr.bf16.mxu1 %v8533_v22 }
 0x919   :  { %v6724_v29 = vadd.f32 %v6723_v10, %v6714_v26  ;;  %v12359_v25 = vsub.s32 %v6814_v1, %v13079_v58 }
 0x91b   :  { %v6734_v19 = vadd.f32 %v6733_v2, %v6724_v29  ;;  %v8534_v29 = vld [vmem:[%s12667_s13 + $0x98] sm:$0xff]  }
 0x91c   :  { %8160 = vmatpush3.bf16.msra.mxu1 %v8534_v29 }
 0x91d   :  { %v6744_v36 = vadd.f32 %v6743_v6, %v6734_v19  ;;  %v8535_v19 = vld [vmem:[%s12667_s13 + $0x60] sm:$0xff]  }
 0x91e   :  { %v8536_v6 = vld [vmem:[%s12667_s13 + $0x20] sm:$0xff]  }
 0x91f   :  { %v6754_v44 = vadd.f32 %v6753_v51, %v6744_v36 }
 0x921   :  { %v6755_v13 = vmul.f32 0.03125, %v6754_v44 }
 0x923   :  { %v6756_v35 = vadd.f32 1e-05, %v6755_v13 }
 0x925   :  { %8588 = vrsqrt.f32 %v6756_v35  ;;  %v8537_v35 = vld [vmem:[%s12667_s13 + $0xe0] sm:$0xff]  }
 0x926   :  { %8161 = vmatprep.subr.bf16.mxu1 %v8537_v35 }
 0x92f   :  { %v8589_v3 = vpop.eup %8588 }
 0x930   :  { %v6758_v7 = vmul.f32 %v8589_v3, %v6609_v16  ;;  %v8538_v3 = vld [vmem:[%s12667_s13 + $0xa0] sm:$0xff]  }
 0x931   :  { %8162 = vmatpush3.bf16.msra.mxu1 %v8538_v3  ;;  %v8554_v3 = vld [vmem:[%s12667_s13 + $0x180] sm:$0xff]  }
 0x932   :  { %v6762_v34 = vrot.slane %v6758_v7, %v13052_v62 }
 0x934   :  { %v6799_v28 = vmul.f32 %v6762_v34, %v12317_v17  ;;  %v6763_v54 = vmul.f32 %v6762_v34, %v12300_v15  ;;  %v6774_v62 = vmul.f32 %v6762_v34, %v12303_v4  ;;  %v6789_v57 = vmul.f32 %v6762_v34, %v12312_v14 }
 0x935   :  { %v6794_v9 = vmul.f32 %v6762_v34, %v12315_v49  ;;  %v6779_v21 = vmul.f32 %v6762_v34, %v12306_v37  ;;  %v6784_v17 = vmul.f32 %v6762_v34, %v12309_v0  ;;  %v6804_v15 = vmul.f32 %v6762_v34, %v12319_v32  ;;  %v8528_v49 = vld [vmem:[%s12667_s13 + $0x10] sm:$0xff]  }
 0x936   :  { %v6770_v4 = vadd.f32 %v7979_v27, %v6763_v54  ;;  %v6775_v14 = vadd.f32 %v7979_v27, %v6774_v62  ;;  %v6790_v41 = vadd.f32 %v7979_v27, %v6789_v57  ;;  %v12381_v63 = vadd.f32 %v7979_v27, %v6799_v28  ;;  %8136 = vmatpush3.bf16.msra.mxu0 %v8528_v49  ;;  %v8541_v62 = vld [vmem:[%s12667_s13 + $0xe8] sm:$0xff]   ;;  %v8547_v49 = vld [vmem:[%s12667_s13 + $0x78] sm:$0xff]  }
 0x937   :  { %v6795_v37 = vadd.f32 %v7979_v27, %v6794_v9  ;;  %v6780_v0 = vadd.f32 %v7979_v27, %v6779_v21  ;;  %v12383_v30 = vadd.f32 %v7979_v27, %v6784_v17  ;;  %8137 = vmatprep.subr.bf16.mxu0 %v8531_v42  ;;  %v6805_v18 = vadd.f32 %v7979_v27, %v6804_v15  ;;  %v8542_v9 = vld [vmem:[%s12667_s13 + $0xa8] sm:$0xff]   ;;  %v8543_v21 = vld [vmem:[%s12667_s13 + $0x70] sm:$0xff]  }
 0x938   :  { %vm6771_vm11 = vcmp.gt.f32.partialorder %v6770_v4, 0.0  ;;  %v6772_v32 = vmul.f32 0.01, %v6770_v4  ;;  %vm6776_vm13 = vcmp.gt.f32.partialorder %v6775_v14, 0.0  ;;  %v6777_v59 = vmul.f32 0.01, %v6775_v14  ;;  %8163 = vmatprep.subr.bf16.mxu1 %v8541_v62 }
 0x939   :  { %vm6791_vm14 = vcmp.gt.f32.partialorder %v6790_v41, 0.0  ;;  %v6792_v52 = vmul.f32 0.01, %v6790_v41  ;;  %vm6796_vm0 = vcmp.gt.f32.partialorder %v6795_v37, 0.0  ;;  %v6797_v61 = vmul.f32 0.01, %v6795_v37  ;;  %8164 = vmatpush3.bf16.msra.mxu1 %v8542_v9 }
 0x93a   :  { %v6773_v48 = vsel %vm6771_vm11, %v6770_v4, %v6772_v32  ;;  %v6778_v43 = vsel %vm6776_vm13, %v6775_v14, %v6777_v59  ;;  %vm6781_vm12 = vcmp.gt.f32.partialorder %v6780_v0, 0.0  ;;  %v6782_v20 = vmul.f32 0.01, %v6780_v0  ;;  %8138 = vmatpush3.bf16.msra.mxu0 %v8532_v39  ;;  %v8544_v17 = vld [vmem:[%s12667_s13 + $0x30] sm:$0xff]   ;;  %v8550_v32 = vld [vmem:[%s12667_s13 + $0xb8] sm:$0xff]   ;;  %v8551_v59 = vld [vmem:[%s12667_s13 + $0x140] sm:$0xff]  }
 0x93b   :  { %v6818_v40 = vrot.slane %v6773_v48, %v12359_v25  ;;  %v6843_v53 = vrot.slane %v6778_v43, %v12359_v25  ;;  %v6793_v46 = vsel %vm6791_vm14, %v6790_v41, %v6792_v52  ;;  %v6798_v55 = vsel %vm6796_vm0, %v6795_v37, %v6797_v61  ;;  %6810 = vst.msk [vmem:[#allocation2] sm:$0x1] %vm6809_vm2, %v6773_v48  ;;  %v8545_v14 = vld [vmem:[%s12667_s13 + $0xf0] sm:$0xff]   ;;  %v8553_v61 = vld [vmem:[%s12667_s13 + $0x1c0] sm:$0xff]  }
 0x93c   :  { %6835 = vst.msk [vmem:[#allocation2 + $0x4] sm:$0x1] %vm6809_vm2, %v6778_v43  ;;  %v12402_v24 = vrot.slane %v6793_v46, %v12359_v25  ;;  %v12405_v33 = vrot.slane %v6798_v55, %v12359_v25  ;;  %v6783_v12 = vsel %vm6781_vm12, %v6780_v0, %v6782_v20  ;;  %6907 = vst.msk [vmem:[#allocation2 + $0x1] sm:$0x1] %vm6809_vm2, %v6793_v46  ;;  %vm6786_vm15 = vcmp.gt.f32.partialorder %v12383_v30, 0.0  ;;  %v8549_v0 = vld [vmem:[%s12667_s13 + $0xf8] sm:$0xff]  }
 0x93d   :  { %6931 = vst.msk [vmem:[#allocation2 + $0x5] sm:$0x1] %vm6809_vm2, %v6798_v55  ;;  %v7980_v45 = vrot.slane %v6818_v40, 9  ;;  %v6826_v26 = vcombine.high %v6818_v40, %v6818_v40  ;;  %v6850_v10 = vcombine.high %v6843_v53, %v6843_v53  ;;  %6859 = vst.msk [vmem:[#allocation2 + $0x8] sm:$0x1] %vm6809_vm2, %v6783_v12  ;;  %v12431_v51 = vrot.slane %v6783_v12, %v12359_v25  ;;  %v8562_v62 = vld [vmem:[%s12667_s13 + $0x190] sm:$0xff]  }
 0x93e   :  { %v6922_v2 = vcombine.high %v12402_v24, %v12402_v24  ;;  %v12420_v60 = vcombine.high %v12405_v33, %v12405_v33  ;;  %v6787_v44 = vmul.f32 0.01, %v12383_v30  ;;  %vm6801_vm8 = vcmp.gt.f32.partialorder %v12381_v63, 0.0  ;;  %8139 = vmatprep.subr.bf16.mxu0 %v8535_v19  ;;  %8165 = vmatprep.subr.bf16.mxu1 %v8545_v14 }
 0x93f   :  { %6821 = vrot.lane.b32.xlu0 %v7980_v45, %s8619_s27  ;;  %v7981_v36 = vrot.slane %v6826_v26, 9  ;;  %6828 = vst.msk [vmem:[#allocation2 + $0x2] sm:$0x1] %vm6809_vm2, %v6826_v26  ;;  %6852 = vst.msk [vmem:[#allocation2 + $0x6] sm:$0x1] %vm6809_vm2, %v6850_v10  ;;  %v7982_v38 = vrot.slane %v6843_v53, 9  ;;  %v12447_v23 = vcombine.high %v12431_v51, %v12431_v51  ;;  %8140 = vmatpush3.bf16.msra.mxu0 %v8536_v6 }
 0x940   :  { %v6802_v13 = vmul.f32 0.01, %v12381_v63  ;;  %6924 = vst.msk [vmem:[#allocation2 + $0x3] sm:$0x1] %vm6809_vm2, %v6922_v2  ;;  %6948 = vst.msk [vmem:[#allocation2 + $0x7] sm:$0x1] %vm6809_vm2, %v12420_v60  ;;  %v6788_v16 = vsel %vm6786_vm15, %v12383_v30, %v6787_v44  ;;  %8141 = vmatprep.subr.bf16.mxu0 %v8539_v56  ;;  %8166 = vmatpush3.bf16.msra.mxu1 %v8546_v47 }
 0x941   :  { %6831 = vrot.lane.b32.xlu1 %v7981_v36, %s8619_s27  ;;  %vm6806_vm3 = vcmp.gt.f32.partialorder %v6805_v18, 0.0  ;;  %v12456_v1 = vrot.slane %v6788_v16, %v12359_v25  ;;  %v6807_v34 = vmul.f32 0.01, %v6805_v18  ;;  %6883 = vst.msk [vmem:[#allocation2 + $0xc] sm:$0x1] %vm6809_vm2, %v6788_v16  ;;  %v7983_v27 = vrot.slane %v6850_v10, 9  ;;  %8167 = vmatprep.subr.bf16.mxu1 %v8549_v0 }
 0x942   :  { %v6803_v7 = vsel %vm6801_vm8, %v12381_v63, %v6802_v13  ;;  %6876 = vst.msk [vmem:[#allocation2 + $0xa] sm:$0x1] %vm6809_vm2, %v12447_v23  ;;  %v7988_v57 = vrot.slane %v12402_v24, 9  ;;  %v7989_v15 = vrot.slane %v6922_v2, 9  ;;  %v7990_v41 = vrot.slane %v12405_v33, 9  ;;  %v8548_v63 = vld [vmem:[%s12667_s13 + $0x38] sm:$0xff]  }
 0x943   :  { %6846 = vrot.lane.b32.xlu0 %v7982_v38, %s8619_s27  ;;  %v6963_v58 = vrot.slane %v6803_v7, %v12359_v25  ;;  %6955 = vst.msk [vmem:[#allocation2 + $0x9] sm:$0x1] %vm6809_vm2, %v6803_v7  ;;  %v6898_v28 = vcombine.high %v12456_v1, %v12456_v1  ;;  %v6808_v54 = vsel %vm6806_vm3, %v6805_v18, %v6807_v34  ;;  %v7991_v37 = vrot.slane %v12420_v60, 9  ;;  %v8552_v44 = vld [vmem:[%s12667_s13 + $0x100] sm:$0xff]   ;;  %v8557_v34 = vld [vmem:[%s12667_s13 + $0x1c8] sm:$0xff]  }
 0x944   :  { %v6987_v5 = vrot.slane %v6808_v54, %v12359_v25  ;;  %6979 = vst.msk [vmem:[#allocation2 + $0xd] sm:$0x1] %vm6809_vm2, %v6808_v54  ;;  %8142 = vmatpush3.bf16.msra.mxu0 %v8540_v8  ;;  %v7984_v30 = vrot.slane %v12431_v51, 9  ;;  %v7985_v52 = vrot.slane %v12447_v23, 9  ;;  %v7986_v48 = vrot.slane %v12456_v1, 9  ;;  %8168 = vmatpush3.bf16.msra.mxu1 %v8550_v32  ;;  %v8555_v23 = vld [vmem:[%s12667_s13 + $0x148] sm:$0xff]  }
 0x945   :  { %6855 = vrot.lane.b32.xlu1 %v7983_v27, %s8619_s27  ;;  %v6970_v50 = vcombine.high %v6963_v58, %v6963_v58  ;;  %6900 = vst.msk [vmem:[#allocation2 + $0xe] sm:$0x1] %vm6809_vm2, %v6898_v28  ;;  %8143 = vmatprep.subr.bf16.mxu0 %v8543_v21  ;;  %v7987_v43 = vrot.slane %v6898_v28, 9  ;;  %v7992_v20 = vrot.slane %v6963_v58, 9  ;;  %v8556_v56 = vld [vmem:[%s12667_s13 + $0x108] sm:$0xff]   ;;  %v8559_v8 = vld [vmem:[%s12667_s13 + $0x150] sm:$0xff]  }
 0x946   :  { %v6994_v4 = vcombine.high %v6987_v5, %v6987_v5  ;;  %8197 = vmatprep.subr.bf16.mxu1 %v8553_v61  ;;  %v7994_v11 = vrot.slane %v6987_v5, 9  ;;  %v8558_v27 = vld [vmem:[%s12667_s13 + $0x188] sm:$0xff]   ;;  %v8561_v58 = vld [vmem:[%s12667_s13 + $0x1d0] sm:$0xff]   ;;  %v8563_v54 = vld [vmem:[%s12667_s13 + $0x158] sm:$0xff]  }
 0x947   :  { %6918 = vrot.lane.b32.xlu0 %v7988_v57, %s8619_s27  ;;  %6972 = vst.msk [vmem:[#allocation2 + $0xb] sm:$0x1] %vm6809_vm2, %v6970_v50  ;;  %v7993_v31 = vrot.slane %v6970_v50, 9  ;;  %v8560_v28 = vld [vmem:[%s12667_s13 + $0x110] sm:$0xff]   ;;  %v8565_v57 = vld [vmem:[%s12667_s13 + $0x1d8] sm:$0xff]   ;;  %v8571_v0 = vld [vmem:[%s12667_s13 + $0x1a0] sm:$0xff]  }
 0x948   :  { %6996 = vst.msk [vmem:[#allocation2 + $0xf] sm:$0x1] %vm6809_vm2, %v6994_v4  ;;  %8144 = vmatpush3.bf16.msra.mxu0 %v8544_v17  ;;  %v7995_v42 = vrot.slane %v6994_v4, 9  ;;  %v8564_v5 = vld [vmem:[%s12667_s13 + $0x118] sm:$0xff]   ;;  %v8567_v17 = vld [vmem:[%s12667_s13 + $0x160] sm:$0xff]   ;;  %v8573_v32 = vld [vmem:[%s12667_s13 + $0x128] sm:$0xff]  }
 0x949   :  { %6927 = vrot.lane.b32.xlu1 %v7989_v15, %s8619_s27  ;;  %8145 = vmatprep.subr.bf16.mxu0 %v8547_v49  ;;  %v8566_v15 = vld [vmem:[%s12667_s13 + $0x198] sm:$0xff]   ;;  %v8568_v49 = vld [vmem:[%s12667_s13 + $0x120] sm:$0xff]   ;;  %v8578_v61 = vld [vmem:[%s12667_s13 + $0x1f0] sm:$0xff]  }
 0x94b   :  { %6942 = vrot.lane.b32.xlu0 %v7990_v41, %s8619_s27  ;;  %v8569_v41 = vld [vmem:[%s12667_s13 + $0x1e0] sm:$0xff]  }
 0x94c   :  { %8146 = vmatpush3.bf16.msra.mxu0 %v8548_v63 }
 0x94d   :  { %6951 = vrot.lane.b32.xlu1 %v7991_v37, %s8619_s27  ;;  %8175 = vmatprep.subr.bf16.mxu0 %v8551_v59  ;;  %v8572_v37 = vld [vmem:[%s12667_s13 + $0x168] sm:$0xff]   ;;  %v8576_v59 = vld [vmem:[%s12667_s13 + $0x170] sm:$0xff]  }
 0x94f   :  { %6870 = vrot.lane.b32.xlu0 %v7984_v30, %s8619_s27  ;;  %v8574_v30 = vld [vmem:[%s12667_s13 + $0x1e8] sm:$0xff]  }
 0x951   :  { %6879 = vrot.lane.b32.xlu1 %v7985_v52, %s8619_s27  ;;  %v8575_v52 = vld [vmem:[%s12667_s13 + $0x1a8] sm:$0xff]  }
 0x953   :  { %6894 = vrot.lane.b32.xlu0 %v7986_v48, %s8619_s27  ;;  %v8577_v48 = vld [vmem:[%s12667_s13 + $0x130] sm:$0xff]  }
 0x955   :  { %6903 = vrot.lane.b32.xlu1 %v7987_v43, %s8619_s27  ;;  %v8580_v43 = vld [vmem:[%s12667_s13 + $0x178] sm:$0xff]  }
 0x957   :  { %6966 = vrot.lane.b32.xlu0 %v7992_v20, %s8619_s27  ;;  %v8579_v20 = vld [vmem:[%s12667_s13 + $0x1b0] sm:$0xff]  }
 0x959   :  { %6975 = vrot.lane.b32.xlu1 %v7993_v31, %s8619_s27  ;;  %v8582_v31 = vld [vmem:[%s12667_s13 + $0x1f8] sm:$0xff]  }
 0x95b   :  { %6990 = vrot.lane.b32.xlu0 %v7994_v11, %s8619_s27  ;;  %v8581_v11 = vld [vmem:[%s12667_s13 + $0x138] sm:$0xff]  }
 0x95d   :  { %6999 = vrot.lane.b32.xlu1 %v7995_v42, %s8619_s27  ;;  %v8583_v42 = vld [vmem:[%s12667_s13 + $0x1b8] sm:$0xff]  }
 0x9b1   :  { %v6822_v40 = vpop.permute.xlu0 %6821 }
 0x9b2   :  { %6825 = vst.msk [vmem:[#allocation2] sm:$0x1] %vm6824_vm7, %v6822_v40 }
 0x9b3   :  { %v6832_v53 = vpop.permute.xlu1 %6831 }
 0x9b4   :  { %6834 = vst.msk [vmem:[#allocation2 + $0x2] sm:$0x1] %vm6824_vm7, %v6832_v53 }
 0x9b5   :  { %v6847_v46 = vpop.permute.xlu0 %6846 }
 0x9b6   :  { %6849 = vst.msk [vmem:[#allocation2 + $0x4] sm:$0x1] %vm6824_vm7, %v6847_v46 }
 0x9b7   :  { %v6856_v55 = vpop.permute.xlu1 %6855 }
 0x9b8   :  { %6858 = vst.msk [vmem:[#allocation2 + $0x6] sm:$0x1] %vm6824_vm7, %v6856_v55  ;;  %v7996_v55 = vld [vmem:[%s12670_s14] ss:$0 sm:$0xff] }
 0x9b9   :  { %v6919_v39 = vpop.permute.xlu0 %6918 }
 0x9ba   :  { %6921 = vst.msk [vmem:[#allocation2 + $0x1] sm:$0x1] %vm6824_vm7, %v6919_v39 }
 0x9bb   :  { %v6928_v24 = vpop.permute.xlu1 %6927 }
 0x9bc   :  { %6930 = vst.msk [vmem:[#allocation2 + $0x3] sm:$0x1] %vm6824_vm7, %v6928_v24 }
 0x9bd   :  { %v6943_v33 = vpop.permute.xlu0 %6942 }
 0x9be   :  { %6945 = vst.msk [vmem:[#allocation2 + $0x5] sm:$0x1] %vm6824_vm7, %v6943_v33 }
 0x9bf   :  { %v6952_v12 = vpop.permute.xlu1 %6951 }
 0x9c0   :  { %6954 = vst.msk [vmem:[#allocation2 + $0x7] sm:$0x1] %vm6824_vm7, %v6952_v12 }
 0x9c1   :  { %v6871_v22 = vpop.permute.xlu0 %6870 }
 0x9c2   :  { %6873 = vst.msk [vmem:[#allocation2 + $0x8] sm:$0x1] %vm6824_vm7, %v6871_v22 }
 0x9c3   :  { %v6880_v45 = vpop.permute.xlu1 %6879 }
 0x9c4   :  { %6882 = vst.msk [vmem:[#allocation2 + $0xa] sm:$0x1] %vm6824_vm7, %v6880_v45 }
 0x9c5   :  { %v6895_v26 = vpop.permute.xlu0 %6894 }
 0x9c6   :  { %6897 = vst.msk [vmem:[#allocation2 + $0xc] sm:$0x1] %vm6824_vm7, %v6895_v26 }
 0x9c7   :  { %v6904_v10 = vpop.permute.xlu1 %6903  ;;  %v7003_v18 = vld [vmem:[#allocation2] sm:$0xff] }
 0x9c8   :  { %6906 = vst.msk [vmem:[#allocation2 + $0xe] sm:$0x1] %vm6824_vm7, %v6904_v10  ;;  %v7014_v29 = vrot.slane %v7003_v18, %v12359_v25  ;;  %v7007_v2 = vcombine.high %v7003_v18, %v7003_v18 }
 0x9c9   :  { %v6967_v60 = vpop.permute.xlu0 %6966 }
 0x9ca   :  { %6969 = vst.msk [vmem:[#allocation2 + $0x9] sm:$0x1] %vm6824_vm7, %v6967_v60  ;;  %v7022_v19 = vcombine.high %v7014_v29, %v7014_v29  ;;  %v7021_v6 = vrot.slane %v7007_v2, %v12359_v25  ;;  %v7049_v38 = vpack.c.bf16 %v7014_v29, %v7014_v29 }
 0x9cb   :  { %v6976_v36 = vpop.permute.xlu1 %6975 }
 0x9cc   :  { %6978 = vst.msk [vmem:[#allocation2 + $0xb] sm:$0x1] %vm6824_vm7, %v6976_v36  ;;  %v7050_v51 = vpack.c.bf16 %v7022_v19, %v7022_v19  ;;  %v7023_v13 = vcombine.high %v7021_v6, %v7021_v6  ;;  %v7051_v7 = vpack.c.bf16 %v7021_v6, %v7021_v6  ;;  %v13080_v6 = vlaneseq }
 0x9cd   :  { %v6991_v35 = vpop.permute.xlu0 %6990 }
 0x9ce   :  { %6993 = vst.msk [vmem:[#allocation2 + $0xd] sm:$0x1] %vm6824_vm7, %v6991_v35  ;;  %7608 = vmatprep.mubr.bf16.mxu0 %v7050_v51  ;;  %v7052_v16 = vpack.c.bf16 %v7023_v13, %v7023_v13  ;;  %v7737_v36 = vand.u32 127, %v13080_v6 }
 0x9cf   :  { %v7000_v1 = vpop.permute.xlu1 %6999  ;;  %7609 = vmatmul.mubr.bf16.vlgmr.msra.gmra.mrb[232].mxu0 %v7049_v38 }
 0x9d0   :  { %7002 = vst.msk [vmem:[#allocation2 + $0xf] sm:$0x1] %vm6824_vm7, %v7000_v1  ;;  %8176 = vmatpush3.bf16.msra.mxu0 %v8552_v44  ;;  %7648 = vmatprep.mubr.bf16.mxu1 %v7052_v16  ;;  %vm7738_vm6 = vcmp.lt.s32.totalorder %v7737_v36, 6 }
 0x9d1   :  { %7649 = vmatmul.mubr.bf16.vlgmr.msra.gmra.mrb[180].mxu1 %v7051_v7  ;;  %8177 = vmatprep.subr.bf16.mxu0 %v8555_v23 }
 0x9d2   :  { %8198 = vmatpush3.bf16.msra.mxu1 %v8554_v3 }
 0x9d3   :  { %8199 = vmatprep.subr.bf16.mxu1 %v8557_v34 }
 0x9d4   :  { %8178 = vmatpush3.bf16.msra.mxu0 %v8556_v56 }
 0x9d5   :  { %8179 = vmatprep.subr.bf16.mxu0 %v8559_v8 }
 0x9d6   :  { %8200 = vmatpush3.bf16.msra.mxu1 %v8558_v27 }
 0x9d7   :  { %8201 = vmatprep.subr.bf16.mxu1 %v8561_v58  ;;  %v7004_v50 = vld [vmem:[#allocation2 + $0x8] sm:$0xff] }
 0x9d8   :  { %8180 = vmatpush3.bf16.msra.mxu0 %v8560_v28  ;;  %v7031_v9 = vrot.slane %v7004_v50, %v12359_v25  ;;  %v7024_v21 = vcombine.high %v7004_v50, %v7004_v50 }
 0x9d9   :  { %8181 = vmatprep.subr.bf16.mxu0 %v8563_v54 }
 0x9da   :  { %8202 = vmatpush3.bf16.msra.mxu1 %v8562_v62  ;;  %v7039_v4 = vcombine.high %v7031_v9, %v7031_v9  ;;  %v7038_v14 = vrot.slane %v7024_v21, %v12359_v25  ;;  %v7053_v40 = vpack.c.bf16 %v7031_v9, %v7031_v9 }
 0x9db   :  { %8203 = vmatprep.subr.bf16.mxu1 %v8565_v57 }
 0x9dc   :  { %8182 = vmatpush3.bf16.msra.mxu0 %v8564_v5  ;;  %v7054_v47 = vpack.c.bf16 %v7039_v4, %v7039_v4  ;;  %v7040_v63 = vcombine.high %v7038_v14, %v7038_v14  ;;  %v7055_v53 = vpack.c.bf16 %v7038_v14, %v7038_v14 }
 0x9dd   :  { %8183 = vmatprep.subr.bf16.mxu0 %v8567_v17 }
 0x9de   :  { %8204 = vmatpush3.bf16.msra.mxu1 %v8566_v15  ;;  %7688 = vmatprep.mubr.bf16.mxu0 %v7054_v47  ;;  %v7056_v25 = vpack.c.bf16 %v7040_v63, %v7040_v63 }
 0x9df   :  { %8205 = vmatprep.subr.bf16.mxu1 %v8569_v41 }
 0x9e0   :  { %8184 = vmatpush3.bf16.msra.mxu0 %v8568_v49  ;;  %7728 = vmatprep.mubr.bf16.mxu1 %v7056_v25 }
 0x9e1   :  { %8185 = vmatprep.subr.bf16.mxu0 %v8572_v37 }
 0x9e2   :  { %8206 = vmatpush3.bf16.msra.mxu1 %v8571_v0 }
 0x9e3   :  { %8207 = vmatprep.subr.bf16.mxu1 %v8574_v30 }
 0x9e4   :  { %8186 = vmatpush3.bf16.msra.mxu0 %v8573_v32 }
 0x9e5   :  { %8187 = vmatprep.subr.bf16.mxu0 %v8576_v59 }
 0x9e6   :  { %8208 = vmatpush3.bf16.msra.mxu1 %v8575_v52 }
 0x9e7   :  { %8209 = vmatprep.subr.bf16.mxu1 %v8578_v61 }
 0x9e8   :  { %8188 = vmatpush3.bf16.msra.mxu0 %v8577_v48 }
 0x9e9   :  { %8189 = vmatprep.subr.bf16.mxu0 %v8580_v43 }
 0x9ea   :  { %8210 = vmatpush3.bf16.msra.mxu1 %v8579_v20 }
 0x9eb   :  { %8211 = vmatprep.subr.bf16.mxu1 %v8582_v31 }
 0x9ec   :  { %8190 = vmatpush3.bf16.msra.mxu0 %v8581_v11 }
 0x9ee   :  { %8212 = vmatpush3.bf16.msra.mxu1 %v8583_v42 }
 0x9ef   :  { %7689 = vmatmul.mubr.bf16.vlgmr.msra.gmra.mrb[236].mxu0 %v7053_v40 }
 0x9f1   :  { %7729 = vmatmul.mubr.bf16.vlgmr.msra.gmra.mrb[184].mxu1 %v7055_v53 }
 0xaa2   :  { %v8147_v46 = vpop.f32.mrb[232].mxu0 }
 0xaa3   :  { %v8148_v39 = vpop.f32.mrb[233].mxu0 }
 0xaa4   :  { %v8149_v24 = vadd.f32 %v8148_v39, %v8147_v46  ;;  %v8150_v33 = vpop.f32.mrb[234].mxu0  ;;  %v8169_v12 = vpop.f32.mrb[180].mxu1 }
 0xaa5   :  { %v8151_v22 = vpop.f32.mrb[235].mxu0  ;;  %v8170_v45 = vpop.f32.mrb[181].mxu1 }
 0xaa6   :  { %v7611_v26 = vadd.f32 %v8149_v24, %v7996_v55  ;;  %v8171_v10 = vadd.f32 %v8170_v45, %v8169_v12  ;;  %v8172_v18 = vpop.f32.mrb[182].mxu1 }
 0xaa7   :  { %v8173_v29 = vpop.f32.mrb[183].mxu1 }
 0xaa8   :  { %v7651_v2 = vadd.f32 %v8171_v10, %v7611_v26 }
 0xac2   :  { %v8191_v60 = vpop.f32.mrb[236].mxu0 }
 0xac3   :  { %v8192_v19 = vpop.f32.mrb[237].mxu0 }
 0xac4   :  { %v8193_v51 = vadd.f32 %v8192_v19, %v8191_v60  ;;  %v8194_v44 = vpop.f32.mrb[238].mxu0  ;;  %v8213_v13 = vpop.f32.mrb[184].mxu1 }
 0xac5   :  { %v8195_v35 = vpop.f32.mrb[239].mxu0  ;;  %v8214_v38 = vpop.f32.mrb[185].mxu1 }
 0xac6   :  { %v7691_v23 = vadd.f32 %v8193_v51, %v7651_v2  ;;  %v8215_v16 = vadd.f32 %v8214_v38, %v8213_v13  ;;  %v8216_v3 = vpop.f32.mrb[186].mxu1 }
 0xac7   :  { %v8217_v1 = vpop.f32.mrb[187].mxu1 }
 0xac8   :  { %v7731_v7 = vadd.f32 %v8215_v16, %v7691_v23 }
 0xaca   :  { %v7739_v34 = vsel %vm7738_vm6, %v7731_v7, -1e+30 }
 0xacb   :  { %v7740_v56 = vsel %vm13081_vm1, %v7739_v34, -inf }
 0xacc   :  { %7741 = vmax.xlane.f32.xlu0 %v7740_v56 }
 0xb59   :  { %v7742_v8 = vpop.xlane.xlu0 %7741 }
 0xb5a   :  { %v7743_v27 = vsub.f32 %v7731_v7, %v7742_v8 }
 0xb5c   :  { %v7744_v58 = vmul.f32 1.442695, %v7743_v27 }
 0xb5e   :  { %8590 = vpow2.f32 %v7744_v58 }
 0xb68   :  { %v8591_v28 = vpop.eup %8590 }
 0xb69   :  { %v7746_v54 = vsel %vm7738_vm6, %v8591_v28, 0.0 }
 0xb6a   :  { %v7747_v62 = vsel %vm13082_vm5, %v7746_v54, 0.0 }
 0xb6b   :  { %7748 = vadd.xlane.f32.xlu1 %v7747_v62 }
 0xbf8   :  { %v7749_v57 = vpop.xlane.xlu1 %7748 }
 0xbf9   :  { %8592 = vlog2.f32 %v7749_v57 }
 0xc03   :  { %v8593_v50 = vpop.eup %8592 }
 0xc04   :  { %v7751_v5 = vmul.f32 0.6931472, %v8593_v50 }
 0xc06   :  { %v7752_v9 = vsub.f32 %v7743_v27, %v7751_v5 }
 0xc08   :  { %v7753_v21 = vsel %vm7738_vm6, %v7752_v9, %v7731_v7 }
 0xc09   :  { %7754 = vst [vmem:[%s12671_s15] sm:$0x3] %v7753_v21 }

</bundles_post_ra>
